<compile_context>
chip_gen: v7x
topology: tpu7x:2x2x1
jax: 0.10.0
libtpu: 0.0.40
codegen_flags: <defaults>
</compile_context>

<pallas_src>
import math
import functools
import numpy as np
import jax
import jax.numpy as jnp
from jax.experimental import pallas as pl
from jax.experimental.pallas import tpu as pltpu


NEG_SLOPE = 0.2
INV_SQRT2 = 1.0 / math.sqrt(2.0)


# ------------------------------------------------------------------ resample kernel
def make_resample_kernel(k):
    k = np.asarray(k, dtype=np.float32)
    if k.ndim == 1:
        k = k[None, :] * k[:, None]
    k = k / k.sum()
    return k


_FIR = make_resample_kernel((1, 3, 3, 1))   # 4x4, symmetric (flip-invariant)


# ------------------------------------------------------------------ Pallas kernels
def _tap_accumulate(x2d_f32, w_ref, kh, kw, n_rows, wp):
    """sum_t x2d[i*wp+j : i*wp+j+n_rows] @ w_ref[t]  -> (n_rows, Cout) f32 accumulator.

    x2d_f32: flattened padded frame (R, Cin), f32 (sliced in f32 so arbitrary
             row offsets stay sublane-aligned, cast to bf16 per tap for the MXU).
    w_ref:   (kh*kw, Cin, Cout) bf16 tap weights (resident, constant over grid).
    """
    cout = w_ref.shape[-1]
    acc = jnp.zeros((n_rows, cout), jnp.float32)
    for i in range(kh):
        for j in range(kw):
            off = i * wp + j
            a = x2d_f32[off:off + n_rows, :].astype(jnp.bfloat16)
            acc = acc + jnp.dot(a, w_ref[i * kw + j],
                                preferred_element_type=jnp.float32)
    return acc


def _conv_frame_kernel(x_ref, w_ref, b_ref, o_ref, *, kh, kw, ho, wo, wp, act):
    """Stride-1 conv: taps as row shifts of the flattened padded frame."""
    x2d = x_ref[0].astype(jnp.float32)                 # (R, Cin)
    acc = _tap_accumulate(x2d, w_ref, kh, kw, ho * wp, wp)
    acc = acc + b_ref[...]                             # f32 epilogue
    if act:
        acc = jnp.where(acc >= 0, acc, NEG_SLOPE * acc)
    if wp == wo:                                       # no padded columns (1x1 conv)
        o_ref[0, :, :] = acc.astype(o_ref.dtype)
    else:                                              # drop the Wp-Wo frame columns
        for y in range(ho):
            o_ref[0, y * wo:(y + 1) * wo, :] = (
                acc[y * wp:y * wp + wo, :].astype(o_ref.dtype))


def _resdown_kernel(xc_ref, xs_ref, wc_ref, ws_ref, b_ref, o_ref, *,
                    ho, wo, wpc, wps):
    """Fused ResBlock tail: lrelu(conv2(blur(c1))+b) + skip(blur(x)), /sqrt(2).

    Both branches are stride-1 phase convolutions (blur already folded into the
    weights, stride-2 folded into a 2x2 space-to-depth of the inputs).
    """
    xc = xc_ref[0].astype(jnp.float32)
    xs = xs_ref[0].astype(jnp.float32)
    acc_c = _tap_accumulate(xc, wc_ref, 3, 3, ho * wpc, wpc)
    acc_c = acc_c + b_ref[...]
    acc_c = jnp.where(acc_c >= 0, acc_c, NEG_SLOPE * acc_c)
    acc_s = _tap_accumulate(xs, ws_ref, 2, 2, ho * wps, wps)
    for y in range(ho):
        row = (acc_c[y * wpc:y * wpc + wo, :] +
               acc_s[y * wps:y * wps + wo, :]) * INV_SQRT2
        o_ref[0, y * wo:(y + 1) * wo, :] = row.astype(o_ref.dtype)


def _fc_head_kernel(a_ref, w1_ref, b1_ref, w2_ref, b2_ref, o_ref):
    """Fused final head: lrelu(a @ w1 + b1) @ w2 + b2."""
    h = jnp.dot(a_ref[...], w1_ref[...],
                preferred_element_type=jnp.float32) + b1_ref[...]
    h = jnp.where(h >= 0, h, NEG_SLOPE * h)
    o_ref[...] = (jnp.dot(h.astype(jnp.bfloat16), w2_ref[...],
                          preferred_element_type=jnp.float32) + b2_ref[...])


# ------------------------------------------------------------------ wrappers
def conv_nhwc(x, w_taps, bias2, kh, kw, pad, act):
    """Stride-1 cross-correlation on NHWC bf16 activations (f32 accumulate)."""
    B, H, W, C = x.shape
    T, _, Cout = w_taps.shape
    Ho, Wo = H + 2 * pad - kh + 1, W + 2 * pad - kw + 1
    Wp = W + 2 * pad
    # one extra zero row at the bottom so every tap-shifted window stays in bounds
    xp = jnp.pad(x, ((0, 0), (pad, pad + 1), (pad, pad), (0, 0)))
    R = (H + 2 * pad + 1) * Wp
    A = xp.reshape(B, R, C).astype(jnp.bfloat16)
    out = pl.pallas_call(
        functools.partial(_conv_frame_kernel, kh=kh, kw=kw,
                          ho=Ho, wo=Wo, wp=Wp, act=act),
        out_shape=jax.ShapeDtypeStruct((B, Ho * Wo, Cout), jnp.bfloat16),
        grid=(B,),
        in_specs=[
            pl.BlockSpec((1, R, C), lambda b: (b, 0, 0)),
            pl.BlockSpec((T, C, Cout), lambda b: (0, 0, 0)),   # resident weight
            pl.BlockSpec((1, Cout), lambda b: (0, 0)),
        ],
        out_specs=pl.BlockSpec((1, Ho * Wo, Cout), lambda b: (b, 0, 0)),
        compiler_params=pltpu.CompilerParams(dimension_semantics=("parallel",)),
    )(A, w_taps, bias2)
    return out.reshape(B, Ho, Wo, Cout)


def _space_to_depth_pad(x, pad):
    """Zero-pad spatially by (pad, pad+2)/(pad, pad) then 2x2 space-to-depth."""
    B, H, W, C = x.shape
    xp = jnp.pad(x, ((0, 0), (pad, pad + 2), (pad, pad), (0, 0)))
    Hp, Wp = H + 2 * pad + 2, W + 2 * pad
    ph = xp.reshape(B, Hp // 2, 2, Wp // 2, 2, C).transpose(0, 1, 3, 2, 4, 5)
    return ph.reshape(B, Hp // 2, Wp // 2, 4 * C)


def resblock_down(c1, xin, wc_ph, ws_ph, bias2):
    """Fused downsample tail of a ResBlock (see _resdown_kernel)."""
    B, H, W, Cin = c1.shape
    Cout = wc_ph.shape[-1]
    Ho, Wo = H // 2, W // 2
    ph_c = _space_to_depth_pad(c1, 2)        # (B, H/2+3, W/2+2, 4Cin)
    ph_s = _space_to_depth_pad(xin, 1)       # (B, H/2+2, W/2+1, 4Cin)
    Hc, Wc = ph_c.shape[1], ph_c.shape[2]
    Hs, Ws = ph_s.shape[1], ph_s.shape[2]
    Rc, Rs = Hc * Wc, Hs * Ws
    Ac = ph_c.reshape(B, Rc, 4 * Cin).astype(jnp.bfloat16)
    As = ph_s.reshape(B, Rs, 4 * Cin).astype(jnp.bfloat16)
    out = pl.pallas_call(
        functools.partial(_resdown_kernel, ho=Ho, wo=Wo, wpc=Wc, wps=Ws),
        out_shape=jax.ShapeDtypeStruct((B, Ho * Wo, Cout), jnp.bfloat16),
        grid=(B,),
        in_specs=[
            pl.BlockSpec((1, Rc, 4 * Cin), lambda b: (b, 0, 0)),
            pl.BlockSpec((1, Rs, 4 * Cin), lambda b: (b, 0, 0)),
            pl.BlockSpec((9, 4 * Cin, Cout), lambda b: (0, 0, 0)),
            pl.BlockSpec((4, 4 * Cin, Cout), lambda b: (0, 0, 0)),
            pl.BlockSpec((1, Cout), lambda b: (0, 0)),
        ],
        out_specs=pl.BlockSpec((1, Ho * Wo, Cout), lambda b: (b, 0, 0)),
        compiler_params=pltpu.CompilerParams(dimension_semantics=("parallel",)),
    )(Ac, As, wc_ph, ws_ph, bias2)
    return out.reshape(B, Ho, Wo, Cout)


def fc_head(a, w1, b1, w2, b2):
    """Fused final_linear: Linear -> LeakyReLU(0.2) -> Linear in one launch."""
    M, K = a.shape
    N1 = w1.shape[1]
    N2 = w2.shape[1]
    return pl.pallas_call(
        _fc_head_kernel,
        out_shape=jax.ShapeDtypeStruct((M, N2), jnp.float32),
        grid=(1,),
        in_specs=[
            pl.BlockSpec((M, K), lambda i: (0, 0)),
            pl.BlockSpec((K, N1), lambda i: (0, 0)),
            pl.BlockSpec((1, N1), lambda i: (0, 0)),
            pl.BlockSpec((N1, N2), lambda i: (0, 0)),
            pl.BlockSpec((1, N2), lambda i: (0, 0)),
        ],
        out_specs=pl.BlockSpec((M, N2), lambda i: (0, 0)),
    )(a.astype(jnp.bfloat16), w1, b1, w2, b2)


# ------------------------------------------------------------------ weight preparation
def conv_taps(w):
    """PyTorch (Cout, Cin, kh, kw) -> tap-major (kh*kw, Cin, Cout) bf16."""
    co, ci, kh, kw = w.shape
    return jnp.transpose(w, (2, 3, 1, 0)).reshape(kh * kw, ci, co).astype(jnp.bfloat16)


def compose_fir(w, fir):
    """Compose the (flip-symmetric) FIR blur into the conv weight: effective
    (Cout, Cin, k+3, k+3) kernel equal to blur followed by the conv."""
    co, ci, kh, kw = w.shape
    fh, fw = fir.shape
    weff = jnp.zeros((co, ci, kh + fh - 1, kw + fw - 1), jnp.float32)
    for a in range(kh):
        for b in range(kw):
            weff = weff.at[:, :, a:a + fh, b:b + fw].add(
                w[:, :, a, b][:, :, None, None] * fir)
    return weff


def phase_taps(weff):
    """(Cout, Cin, K, K) stride-2 kernel (K even) -> phase-conv taps
    (K/2*K/2, 4*Cin, Cout) bf16 matching 2x2 space-to-depth channel order."""
    co, ci, K, _ = weff.shape
    kh = K // 2
    w6 = weff.reshape(co, ci, kh, 2, kh, 2)          # co ci a pu b pv
    w6 = jnp.transpose(w6, (2, 4, 3, 5, 1, 0))       # a b pu pv ci co
    return w6.reshape(kh * kh, 4 * ci, co).astype(jnp.bfloat16)


def prepare_params(params):
    """One-time re-layout of the raw (PyTorch-shaped) parameters into the
    tap-major / FIR-composed / phase-decomposed bf16 form the kernels consume.
    Done once outside the jitted forward so per-call weight shuffling is zero."""
    fir = jnp.asarray(_FIR, jnp.float32)

    def bias2(b):
        return b.reshape(1, -1).astype(jnp.float32)

    p = {
        'conv0_w': conv_taps(params['conv0']['w']),
        'conv0_b': bias2(params['conv0']['b']),
        'blocks': [],
        'final_w': conv_taps(params['final_conv']['w']),
        'final_b': bias2(params['final_conv']['b']),
        'fc1_w': params['fc1']['w'].astype(jnp.bfloat16),
        'fc1_b': bias2(params['fc1']['b']),
        'fc2_w': params['fc2']['w'].astype(jnp.bfloat16),
        'fc2_b': bias2(params['fc2']['b']),
    }
    for blk in params['blocks']:
        p['blocks'].append({
            'c1_w': conv_taps(blk['conv1']['w']),
            'c1_b': bias2(blk['conv1']['b']),
            'c2_w': phase_taps(compose_fir(blk['conv2']['w'], fir)),  # 6x6 -> 3x3 phase
            'c2_b': bias2(blk['conv2']['b']),
            'sk_w': phase_taps(compose_fir(blk['skip']['w'], fir)),   # 4x4 -> 2x2 phase
        })
    return p


# ------------------------------------------------------------------ minibatch stddev
def minibatch_stddev_nhwc(out, stddev_group=4):
    # Tiny (B,4,4,C) tensor: plain JAX (a Pallas launch only adds overhead).
    b, h, w, c = out.shape
    group = min(b, stddev_group)
    m = b // group
    x = out.astype(jnp.float32).reshape(group, m, h, w, c)
    var = jnp.mean((x - jnp.mean(x, axis=0, keepdims=True)) ** 2, axis=0)  # unbiased=False
    sd = jnp.sqrt(var + 1e-8)
    sd = jnp.mean(sd, axis=(1, 2, 3))                      # (m,)
    sd_map = jnp.tile(sd.reshape(m, 1, 1, 1), (group, h, w, 1))
    return jnp.concatenate([out, sd_map.astype(out.dtype)], axis=-1)


# ------------------------------------------------------------------ parameters
def _channels(channel_multiplier, narrow):
    return {
        '4': int(512 * narrow), '8': int(512 * narrow), '16': int(512 * narrow),
        '32': int(512 * narrow), '64': int(256 * channel_multiplier * narrow),
        '128': int(128 * channel_multiplier * narrow),
        '256': int(64 * channel_multiplier * narrow),
        '512': int(32 * channel_multiplier * narrow),
        '1024': int(16 * channel_multiplier * narrow)}


def init_params(key, out_size, channel_multiplier=2, narrow=1.0):
    ch = _channels(channel_multiplier, narrow)
    log_size = int(round(math.log2(out_size)))
    keys = jax.random.split(key, 64)
    ki = iter(range(64))

    def conv_p(cout, cin, k, bias=True):
        w = 0.1 * jax.random.normal(keys[next(ki)], (cout, cin, k, k), jnp.float32)
        b = (0.01 * jax.random.normal(keys[next(ki)], (cout,), jnp.float32)
             if bias else jnp.zeros((cout,), jnp.float32))
        return {'w': w, 'b': b}

    params = {'conv0': conv_p(ch[str(out_size)], 3, 1)}
    in_c = ch[str(out_size)]
    blocks = []
    for i in range(log_size, 2, -1):
        out_c = ch[str(2 ** (i - 1))]
        blocks.append({
            'conv1': conv_p(in_c, in_c, 3),
            'conv2': conv_p(out_c, in_c, 3),
            'skip': conv_p(out_c, in_c, 1, bias=False),
        })
        in_c = out_c
    params['blocks'] = blocks
    params['final_conv'] = conv_p(ch['4'], in_c + 1, 3)
    feat = ch['4'] * 4 * 4
    params['fc1'] = {'w': 0.05 * jax.random.normal(keys[next(ki)], (feat, ch['4']), jnp.float32),
                     'b': 0.01 * jax.random.normal(keys[next(ki)], (ch['4'],), jnp.float32)}
    params['fc2'] = {'w': 0.05 * jax.random.normal(keys[next(ki)], (ch['4'], 1), jnp.float32),
                     'b': 0.01 * jax.random.normal(keys[next(ki)], (1,), jnp.float32)}
    return params


# ------------------------------------------------------------------ forward
def forward(p, x, stddev_group=4):
    """p: output of prepare_params(); x: NCHW f32 image batch."""
    # model boundary: NCHW -> NHWC, bf16 activations
    out = jnp.transpose(x, (0, 2, 3, 1)).astype(jnp.bfloat16)

    # conv_body[0]: 1x1 conv + LeakyReLU(0.2)
    out = conv_nhwc(out, p['conv0_w'], p['conv0_b'], 1, 1, 0, True)

    # ResBlocks: conv1 (3x3 s1) then fused [blur->conv2 s2 + bias + lrelu] + [blur->skip s2]
    for blk in p['blocks']:
        c1 = conv_nhwc(out, blk['c1_w'], blk['c1_b'], 3, 3, 1, True)
        out = resblock_down(c1, out, blk['c2_w'], blk['sk_w'], blk['c2_b'])

    # minibatch stddev statistic + channel concat
    out = minibatch_stddev_nhwc(out, stddev_group)

    # final 3x3 conv
    out = conv_nhwc(out, p['final_w'], p['final_b'], 3, 3, 1, True)

    # final linear head (fused); flatten in (C, H, W) order to match torch .view(b, -1)
    b, h, w, c = out.shape
    flat = jnp.transpose(out, (0, 3, 1, 2)).reshape(b, c * h * w)
    return fc_head(flat, p['fc1_w'], p['fc1_b'], p['fc2_w'], p['fc2_b'])


if __name__ == "__main__":
    key = jax.random.PRNGKey(0)
    pkey, xkey = jax.random.split(key)

    out_size = 16
    # narrow=1/16 keeps channels small (all 32) while exercising the full graph.
    params = init_params(pkey, out_size, channel_multiplier=2, narrow=1.0 / 16.0)
    prepped = prepare_params(params)          # one-time weight re-layout
    x = jax.random.normal(xkey, (2, 3, out_size, out_size), jnp.float32)

    fwd = jax.jit(functools.partial(forward, stddev_group=4))
    y = fwd(prepped, x)
    jax.block_until_ready(y)
    assert y.shape == (2, 1) and y.dtype == jnp.float32
    print("KERNEL_OK")
</pallas_src>

<mosaic_0001>
module attributes {stable_mosaic.version = 11 : i64} {
  func.func @_conv_frame_kernel(%arg0: i32, %arg1: memref<1x272x3xbf16, #tpu.memory_space<vmem>>, %arg2: memref<1x3x32xbf16, #tpu.memory_space<vmem>>, %arg3: memref<1x32xf32, #tpu.memory_space<vmem>>, %arg4: memref<1x256x32xbf16, #tpu.memory_space<vmem>>) attributes {dimension_semantics = [#tpu.dimension_semantics<parallel>], iteration_bounds = array<i64: 2>, scalar_prefetch = 0 : i64, scratch_operands = 0 : i64, tpu.core_type = #tpu.core_type<tc>, window_params = [{transform_indices = @transform_0, window_bounds = array<i64: 1, 272, 3>}, {pipeline_mode = #tpu.pipeline_mode<synchronous>, transform_indices = @transform_1, window_bounds = array<i64: 1, 3, 32>}, {pipeline_mode = #tpu.pipeline_mode<synchronous>, transform_indices = @transform_2, window_bounds = array<i64: 1, 32>}, {transform_indices = @transform_3, window_bounds = array<i64: 1, 256, 32>}]} {
    %c0 = arith.constant 0 : index
    %c0_0 = arith.constant 0 : index
    %c0_1 = arith.constant 0 : index
    %0 = vector.load %arg1[%c0, %c0_0, %c0_1] : memref<1x272x3xbf16, #tpu.memory_space<vmem>>, vector<1x272x3xbf16>
    %1 = vector.shape_cast %0 : vector<1x272x3xbf16> to vector<272x3xbf16>
    %2 = arith.extf %1 : vector<272x3xbf16> to vector<272x3xf32>
    %cst = arith.constant 0.000000e+00 : f32
    %3 = vector.broadcast %cst : f32 to vector<256x32xf32>
    %4 = vector.extract_strided_slice %2 {offsets = [0, 0], sizes = [256, 3], strides = [1, 1]} : vector<272x3xf32> to vector<256x3xf32>
    %5 = arith.truncf %4 : vector<256x3xf32> to vector<256x3xbf16>
    %c0_2 = arith.constant 0 : index
    %c0_3 = arith.constant 0 : index
    %c0_4 = arith.constant 0 : index
    %6 = vector.load %arg2[%c0_2, %c0_3, %c0_4] : memref<1x3x32xbf16, #tpu.memory_space<vmem>>, vector<1x3x32xbf16>
    %7 = vector.shape_cast %6 : vector<1x3x32xbf16> to vector<3x32xbf16>
    %cst_5 = arith.constant dense<0.000000e+00> : vector<256x32xf32>
    %8 = tpu.matmul %5, %7, %cst_5 {dimension_numbers = #tpu.dot_dimension_numbers<[1], [0], [0], [1], [0, 0, 1, 1], [], []>} : vector<256x3xbf16>, vector<3x32xbf16>, vector<256x32xf32> -> vector<256x32xf32>
    %9 = arith.addf %3, %8 : vector<256x32xf32>
    %c0_6 = arith.constant 0 : index
    %c0_7 = arith.constant 0 : index
    %10 = vector.load %arg3[%c0_6, %c0_7] : memref<1x32xf32, #tpu.memory_space<vmem>>, vector<1x32xf32>
    %11 = vector.broadcast %10 : vector<1x32xf32> to vector<256x32xf32>
    %12 = arith.addf %9, %11 : vector<256x32xf32>
    %cst_8 = arith.constant 0.000000e+00 : f32
    %13 = vector.broadcast %cst_8 : f32 to vector<256x32xf32>
    %14 = arith.cmpf oge, %12, %13 : vector<256x32xf32>
    %cst_9 = arith.constant 2.000000e-01 : f32
    %15 = vector.broadcast %cst_9 : f32 to vector<256x32xf32>
    %16 = arith.mulf %15, %12 : vector<256x32xf32>
    %17 = arith.select %14, %12, %16 : vector<256x32xi1>, vector<256x32xf32>
    %18 = arith.truncf %17 : vector<256x32xf32> to vector<256x32xbf16>
    %c0_10 = arith.constant 0 : index
    %c0_11 = arith.constant 0 : index
    %c0_12 = arith.constant 0 : index
    %19 = vector.load %arg4[%c0_10, %c0_11, %c0_12] : memref<1x256x32xbf16, #tpu.memory_space<vmem>>, vector<1x256x32xbf16>
    %20 = vector.shape_cast %19 : vector<1x256x32xbf16> to vector<256x32xbf16>
    %21 = vector.shape_cast %18 : vector<256x32xbf16> to vector<1x256x32xbf16>
    tpu.vector_store %arg4[%c0_10, %c0_11, %c0_12], %21 {strides = array<i32>} : memref<1x256x32xbf16, #tpu.memory_space<vmem>>, vector<1x256x32xbf16>,
    return
  }
  func.func @transform_0(%arg0: i32) -> (i32, i32, i32) {
    %c0_i32 = arith.constant 0 : i32
    %c0_i32_0 = arith.constant 0 : i32
    %c0_i32_1 = arith.constant 0 : i32
    return %arg0, %c0_i32, %c0_i32_0 : i32, i32, i32
  }
  func.func @transform_1(%arg0: i32) -> (i32, i32, i32) {
    %c0_i32 = arith.constant 0 : i32
    %c0_i32_0 = arith.constant 0 : i32
    %c0_i32_1 = arith.constant 0 : i32
    %c0_i32_2 = arith.constant 0 : i32
    return %c0_i32, %c0_i32_0, %c0_i32_1 : i32, i32, i32
  }
  func.func @transform_2(%arg0: i32) -> (i32, i32) {
    %c0_i32 = arith.constant 0 : i32
    %c0_i32_0 = arith.constant 0 : i32
    %c0_i32_1 = arith.constant 0 : i32
    return %c0_i32, %c0_i32_0 : i32, i32
  }
  func.func @transform_3(%arg0: i32) -> (i32, i32, i32) {
    %c0_i32 = arith.constant 0 : i32
    %c0_i32_0 = arith.constant 0 : i32
    %c0_i32_1 = arith.constant 0 : i32
    return %arg0, %c0_i32, %c0_i32_0 : i32, i32, i32
  }
}

module attributes {stable_mosaic.version = 11 : i64} {
  func.func @_conv_frame_kernel(%arg0: i32, %arg1: memref<1x342x32xbf16, #tpu.memory_space<vmem>>, %arg2: memref<9x32x32xbf16, #tpu.memory_space<vmem>>, %arg3: memref<1x32xf32, #tpu.memory_space<vmem>>, %arg4: memref<1x256x32xbf16, #tpu.memory_space<vmem>>) attributes {dimension_semantics = [#tpu.dimension_semantics<parallel>], iteration_bounds = array<i64: 2>, scalar_prefetch = 0 : i64, scratch_operands = 0 : i64, tpu.core_type = #tpu.core_type<tc>, window_params = [{transform_indices = @transform_0, window_bounds = array<i64: 1, 342, 32>}, {pipeline_mode = #tpu.pipeline_mode<synchronous>, transform_indices = @transform_1, window_bounds = array<i64: 9, 32, 32>}, {pipeline_mode = #tpu.pipeline_mode<synchronous>, transform_indices = @transform_2, window_bounds = array<i64: 1, 32>}, {transform_indices = @transform_3, window_bounds = array<i64: 1, 256, 32>}]} {
    %c0 = arith.constant 0 : index
    %c0_0 = arith.constant 0 : index
    %c0_1 = arith.constant 0 : index
    %0 = vector.load %arg1[%c0, %c0_0, %c0_1] : memref<1x342x32xbf16, #tpu.memory_space<vmem>>, vector<1x342x32xbf16>
    %1 = vector.shape_cast %0 : vector<1x342x32xbf16> to vector<342x32xbf16>
    %2 = arith.extf %1 : vector<342x32xbf16> to vector<342x32xf32>
    %cst = arith.constant 0.000000e+00 : f32
    %3 = vector.broadcast %cst : f32 to vector<288x32xf32>
    %4 = vector.extract_strided_slice %2 {offsets = [0, 0], sizes = [288, 32], strides = [1, 1]} : vector<342x32xf32> to vector<288x32xf32>
    %5 = arith.truncf %4 : vector<288x32xf32> to vector<288x32xbf16>
    %c0_2 = arith.constant 0 : index
    %c0_3 = arith.constant 0 : index
    %c0_4 = arith.constant 0 : index
    %6 = vector.load %arg2[%c0_2, %c0_3, %c0_4] : memref<9x32x32xbf16, #tpu.memory_space<vmem>>, vector<1x32x32xbf16>
    %7 = vector.shape_cast %6 : vector<1x32x32xbf16> to vector<32x32xbf16>
    %cst_5 = arith.constant dense<0.000000e+00> : vector<288x32xf32>
    %8 = tpu.matmul %5, %7, %cst_5 {dimension_numbers = #tpu.dot_dimension_numbers<[1], [0], [0], [1], [0, 0, 1, 1], [], []>} : vector<288x32xbf16>, vector<32x32xbf16>, vector<288x32xf32> -> vector<288x32xf32>
    %9 = arith.addf %3, %8 : vector<288x32xf32>
    %10 = vector.extract_strided_slice %2 {offsets = [1, 0], sizes = [288, 32], strides = [1, 1]} : vector<342x32xf32> to vector<288x32xf32>
    %11 = arith.truncf %10 : vector<288x32xf32> to vector<288x32xbf16>
    %c1 = arith.constant 1 : index
    %c0_6 = arith.constant 0 : index
    %c0_7 = arith.constant 0 : index
    %12 = vector.load %arg2[%c1, %c0_6, %c0_7] : memref<9x32x32xbf16, #tpu.memory_space<vmem>>, vector<1x32x32xbf16>
    %13 = vector.shape_cast %12 : vector<1x32x32xbf16> to vector<32x32xbf16>
    %cst_8 = arith.constant dense<0.000000e+00> : vector<288x32xf32>
    %14 = tpu.matmul %11, %13, %cst_8 {dimension_numbers = #tpu.dot_dimension_numbers<[1], [0], [0], [1], [0, 0, 1, 1], [], []>} : vector<288x32xbf16>, vector<32x32xbf16>, vector<288x32xf32> -> vector<288x32xf32>
    %15 = arith.addf %9, %14 : vector<288x32xf32>
    %16 = vector.extract_strided_slice %2 {offsets = [2, 0], sizes = [288, 32], strides = [1, 1]} : vector<342x32xf32> to vector<288x32xf32>
    %17 = arith.truncf %16 : vector<288x32xf32> to vector<288x32xbf16>
    %c2 = arith.constant 2 : index
    %c0_9 = arith.constant 0 : index
    %c0_10 = arith.constant 0 : index
    %18 = vector.load %arg2[%c2, %c0_9, %c0_10] : memref<9x32x32xbf16, #tpu.memory_space<vmem>>, vector<1x32x32xbf16>
    %19 = vector.shape_cast %18 : vector<1x32x32xbf16> to vector<32x32xbf16>
    %cst_11 = arith.constant dense<0.000000e+00> : vector<288x32xf32>
    %20 = tpu.matmul %17, %19, %cst_11 {dimension_numbers = #tpu.dot_dimension_numbers<[1], [0], [0], [1], [0, 0, 1, 1], [], []>} : vector<288x32xbf16>, vector<32x32xbf16>, vector<288x32xf32> -> vector<288x32xf32>
    %21 = arith.addf %15, %20 : vector<288x32xf32>
    %22 = vector.extract_strided_slice %2 {offsets = [18, 0], sizes = [288, 32], strides = [1, 1]} : vector<342x32xf32> to vector<288x32xf32>
    %23 = arith.truncf %22 : vector<288x32xf32> to vector<288x32xbf16>
    %c3 = arith.constant 3 : index
    %c0_12 = arith.constant 0 : index
    %c0_13 = arith.constant 0 : index
    %24 = vector.load %arg2[%c3, %c0_12, %c0_13] : memref<9x32x32xbf16, #tpu.memory_space<vmem>>, vector<1x32x32xbf16>
    %25 = vector.shape_cast %24 : vector<1x32x32xbf16> to vector<32x32xbf16>
    %cst_14 = arith.constant dense<0.000000e+00> : vector<288x32xf32>
    %26 = tpu.matmul %23, %25, %cst_14 {dimension_numbers = #tpu.dot_dimension_numbers<[1], [0], [0], [1], [0, 0, 1, 1], [], []>} : vector<288x32xbf16>, vector<32x32xbf16>, vector<288x32xf32> -> vector<288x32xf32>
    %27 = arith.addf %21, %26 : vector<288x32xf32>
    %28 = vector.extract_strided_slice %2 {offsets = [19, 0], sizes = [288, 32], strides = [1, 1]} : vector<342x32xf32> to vector<288x32xf32>
    %29 = arith.truncf %28 : vector<288x32xf32> to vector<288x32xbf16>
    %c4 = arith.constant 4 : index
    %c0_15 = arith.constant 0 : index
    %c0_16 = arith.constant 0 : index
    %30 = vector.load %arg2[%c4, %c0_15, %c0_16] : memref<9x32x32xbf16, #tpu.memory_space<vmem>>, vector<1x32x32xbf16>
    %31 = vector.shape_cast %30 : vector<1x32x32xbf16> to vector<32x32xbf16>
    %cst_17 = arith.constant dense<0.000000e+00> : vector<288x32xf32>
    %32 = tpu.matmul %29, %31, %cst_17 {dimension_numbers = #tpu.dot_dimension_numbers<[1], [0], [0], [1], [0, 0, 1, 1], [], []>} : vector<288x32xbf16>, vector<32x32xbf16>, vector<288x32xf32> -> vector<288x32xf32>
    %33 = arith.addf %27, %32 : vector<288x32xf32>
    %34 = vector.extract_strided_slice %2 {offsets = [20, 0], sizes = [288, 32], strides = [1, 1]} : vector<342x32xf32> to vector<288x32xf32>
    %35 = arith.truncf %34 : vector<288x32xf32> to vector<288x32xbf16>
    %c5 = arith.constant 5 : index
    %c0_18 = arith.constant 0 : index
    %c0_19 = arith.constant 0 : index
    %36 = vector.load %arg2[%c5, %c0_18, %c0_19] : memref<9x32x32xbf16, #tpu.memory_space<vmem>>, vector<1x32x32xbf16>
    %37 = vector.shape_cast %36 : vector<1x32x32xbf16> to vector<32x32xbf16>
    %cst_20 = arith.constant dense<0.000000e+00> : vector<288x32xf32>
    %38 = tpu.matmul %35, %37, %cst_20 {dimension_numbers = #tpu.dot_dimension_numbers<[1], [0], [0], [1], [0, 0, 1, 1], [], []>} : vector<288x32xbf16>, vector<32x32xbf16>, vector<288x32xf32> -> vector<288x32xf32>
    %39 = arith.addf %33, %38 : vector<288x32xf32>
    %40 = vector.extract_strided_slice %2 {offsets = [36, 0], sizes = [288, 32], strides = [1, 1]} : vector<342x32xf32> to vector<288x32xf32>
    %41 = arith.truncf %40 : vector<288x32xf32> to vector<288x32xbf16>
    %c6 = arith.constant 6 : index
    %c0_21 = arith.constant 0 : index
    %c0_22 = arith.constant 0 : index
    %42 = vector.load %arg2[%c6, %c0_21, %c0_22] : memref<9x32x32xbf16, #tpu.memory_space<vmem>>, vector<1x32x32xbf16>
    %43 = vector.shape_cast %42 : vector<1x32x32xbf16> to vector<32x32xbf16>
    %cst_23 = arith.constant dense<0.000000e+00> : vector<288x32xf32>
    %44 = tpu.matmul %41, %43, %cst_23 {dimension_numbers = #tpu.dot_dimension_numbers<[1], [0], [0], [1], [0, 0, 1, 1], [], []>} : vector<288x32xbf16>, vector<32x32xbf16>, vector<288x32xf32> -> vector<288x32xf32>
    %45 = arith.addf %39, %44 : vector<288x32xf32>
    %46 = vector.extract_strided_slice %2 {offsets = [37, 0], sizes = [288, 32], strides = [1, 1]} : vector<342x32xf32> to vector<288x32xf32>
    %47 = arith.truncf %46 : vector<288x32xf32> to vector<288x32xbf16>
    %c7 = arith.constant 7 : index
    %c0_24 = arith.constant 0 : index
    %c0_25 = arith.constant 0 : index
    %48 = vector.load %arg2[%c7, %c0_24, %c0_25] : memref<9x32x32xbf16, #tpu.memory_space<vmem>>, vector<1x32x32xbf16>
    %49 = vector.shape_cast %48 : vector<1x32x32xbf16> to vector<32x32xbf16>
    %cst_26 = arith.constant dense<0.000000e+00> : vector<288x32xf32>
    %50 = tpu.matmul %47, %49, %cst_26 {dimension_numbers = #tpu.dot_dimension_numbers<[1], [0], [0], [1], [0, 0, 1, 1], [], []>} : vector<288x32xbf16>, vector<32x32xbf16>, vector<288x32xf32> -> vector<288x32xf32>
    %51 = arith.addf %45, %50 : vector<288x32xf32>
    %52 = vector.extract_strided_slice %2 {offsets = [38, 0], sizes = [288, 32], strides = [1, 1]} : vector<342x32xf32> to vector<288x32xf32>
    %53 = arith.truncf %52 : vector<288x32xf32> to vector<288x32xbf16>
    %c8 = arith.constant 8 : index
    %c0_27 = arith.constant 0 : index
    %c0_28 = arith.constant 0 : index
    %54 = vector.load %arg2[%c8, %c0_27, %c0_28] : memref<9x32x32xbf16, #tpu.memory_space<vmem>>, vector<1x32x32xbf16>
    %55 = vector.shape_cast %54 : vector<1x32x32xbf16> to vector<32x32xbf16>
    %cst_29 = arith.constant dense<0.000000e+00> : vector<288x32xf32>
    %56 = tpu.matmul %53, %55, %cst_29 {dimension_numbers = #tpu.dot_dimension_numbers<[1], [0], [0], [1], [0, 0, 1, 1], [], []>} : vector<288x32xbf16>, vector<32x32xbf16>, vector<288x32xf32> -> vector<288x32xf32>
    %57 = arith.addf %51, %56 : vector<288x32xf32>
    %c0_30 = arith.constant 0 : index
    %c0_31 = arith.constant 0 : index
    %58 = vector.load %arg3[%c0_30, %c0_31] : memref<1x32xf32, #tpu.memory_space<vmem>>, vector<1x32xf32>
    %59 = vector.broadcast %58 : vector<1x32xf32> to vector<288x32xf32>
    %60 = arith.addf %57, %59 : vector<288x32xf32>
    %cst_32 = arith.constant 0.000000e+00 : f32
    %61 = vector.broadcast %cst_32 : f32 to vector<288x32xf32>
    %62 = arith.cmpf oge, %60, %61 : vector<288x32xf32>
    %cst_33 = arith.constant 2.000000e-01 : f32
    %63 = vector.broadcast %cst_33 : f32 to vector<288x32xf32>
    %64 = arith.mulf %63, %60 : vector<288x32xf32>
    %65 = arith.select %62, %60, %64 : vector<288x32xi1>, vector<288x32xf32>
    %66 = vector.extract_strided_slice %65 {offsets = [0, 0], sizes = [16, 32], strides = [1, 1]} : vector<288x32xf32> to vector<16x32xf32>
    %67 = arith.truncf %66 : vector<16x32xf32> to vector<16x32xbf16>
    %c0_34 = arith.constant 0 : index
    %c0_35 = arith.constant 0 : index
    %c0_36 = arith.constant 0 : index
    %68 = vector.load %arg4[%c0_34, %c0_35, %c0_36] : memref<1x256x32xbf16, #tpu.memory_space<vmem>>, vector<1x16x32xbf16>
    %69 = vector.shape_cast %68 : vector<1x16x32xbf16> to vector<16x32xbf16>
    %70 = vector.shape_cast %67 : vector<16x32xbf16> to vector<1x16x32xbf16>
    tpu.vector_store %arg4[%c0_34, %c0_35, %c0_36], %70 {strides = array<i32>} : memref<1x256x32xbf16, #tpu.memory_space<vmem>>, vector<1x16x32xbf16>,
    %71 = vector.extract_strided_slice %65 {offsets = [18, 0], sizes = [16, 32], strides = [1, 1]} : vector<288x32xf32> to vector<16x32xf32>
    %72 = arith.truncf %71 : vector<16x32xf32> to vector<16x32xbf16>
    %c0_37 = arith.constant 0 : index
    %c16 = arith.constant 16 : index
    %c0_38 = arith.constant 0 : index
    %73 = vector.load %arg4[%c0_37, %c16, %c0_38] : memref<1x256x32xbf16, #tpu.memory_space<vmem>>, vector<1x16x32xbf16>
    %74 = vector.shape_cast %73 : vector<1x16x32xbf16> to vector<16x32xbf16>
    %75 = vector.shape_cast %72 : vector<16x32xbf16> to vector<1x16x32xbf16>
    tpu.vector_store %arg4[%c0_37, %c16, %c0_38], %75 {strides = array<i32>} : memref<1x256x32xbf16, #tpu.memory_space<vmem>>, vector<1x16x32xbf16>,
    %76 = vector.extract_strided_slice %65 {offsets = [36, 0], sizes = [16, 32], strides = [1, 1]} : vector<288x32xf32> to vector<16x32xf32>
    %77 = arith.truncf %76 : vector<16x32xf32> to vector<16x32xbf16>
    %c0_39 = arith.constant 0 : index
    %c32 = arith.constant 32 : index
    %c0_40 = arith.constant 0 : index
    %78 = vector.load %arg4[%c0_39, %c32, %c0_40] : memref<1x256x32xbf16, #tpu.memory_space<vmem>>, vector<1x16x32xbf16>
    %79 = vector.shape_cast %78 : vector<1x16x32xbf16> to vector<16x32xbf16>
    %80 = vector.shape_cast %77 : vector<16x32xbf16> to vector<1x16x32xbf16>
    tpu.vector_store %arg4[%c0_39, %c32, %c0_40], %80 {strides = array<i32>} : memref<1x256x32xbf16, #tpu.memory_space<vmem>>, vector<1x16x32xbf16>,
    %81 = vector.extract_strided_slice %65 {offsets = [54, 0], sizes = [16, 32], strides = [1, 1]} : vector<288x32xf32> to vector<16x32xf32>
    %82 = arith.truncf %81 : vector<16x32xf32> to vector<16x32xbf16>
    %c0_41 = arith.constant 0 : index
    %c48 = arith.constant 48 : index
    %c0_42 = arith.constant 0 : index
    %83 = vector.load %arg4[%c0_41, %c48, %c0_42] : memref<1x256x32xbf16, #tpu.memory_space<vmem>>, vector<1x16x32xbf16>
    %84 = vector.shape_cast %83 : vector<1x16x32xbf16> to vector<16x32xbf16>
    %85 = vector.shape_cast %82 : vector<16x32xbf16> to vector<1x16x32xbf16>
    tpu.vector_store %arg4[%c0_41, %c48, %c0_42], %85 {strides = array<i32>} : memref<1x256x32xbf16, #tpu.memory_space<vmem>>, vector<1x16x32xbf16>,
    %86 = vector.extract_strided_slice %65 {offsets = [72, 0], sizes = [16, 32], strides = [1, 1]} : vector<288x32xf32> to vector<16x32xf32>
    %87 = arith.truncf %86 : vector<16x32xf32> to vector<16x32xbf16>
    %c0_43 = arith.constant 0 : index
    %c64 = arith.constant 64 : index
    %c0_44 = arith.constant 0 : index
    %88 = vector.load %arg4[%c0_43, %c64, %c0_44] : memref<1x256x32xbf16, #tpu.memory_space<vmem>>, vector<1x16x32xbf16>
    %89 = vector.shape_cast %88 : vector<1x16x32xbf16> to vector<16x32xbf16>
    %90 = vector.shape_cast %87 : vector<16x32xbf16> to vector<1x16x32xbf16>
    tpu.vector_store %arg4[%c0_43, %c64, %c0_44], %90 {strides = array<i32>} : memref<1x256x32xbf16, #tpu.memory_space<vmem>>, vector<1x16x32xbf16>,
    %91 = vector.extract_strided_slice %65 {offsets = [90, 0], sizes = [16, 32], strides = [1, 1]} : vector<288x32xf32> to vector<16x32xf32>
    %92 = arith.truncf %91 : vector<16x32xf32> to vector<16x32xbf16>
    %c0_45 = arith.constant 0 : index
    %c80 = arith.constant 80 : index
    %c0_46 = arith.constant 0 : index
    %93 = vector.load %arg4[%c0_45, %c80, %c0_46] : memref<1x256x32xbf16, #tpu.memory_space<vmem>>, vector<1x16x32xbf16>
    %94 = vector.shape_cast %93 : vector<1x16x32xbf16> to vector<16x32xbf16>
    %95 = vector.shape_cast %92 : vector<16x32xbf16> to vector<1x16x32xbf16>
    tpu.vector_store %arg4[%c0_45, %c80, %c0_46], %95 {strides = array<i32>} : memref<1x256x32xbf16, #tpu.memory_space<vmem>>, vector<1x16x32xbf16>,
    %96 = vector.extract_strided_slice %65 {offsets = [108, 0], sizes = [16, 32], strides = [1, 1]} : vector<288x32xf32> to vector<16x32xf32>
    %97 = arith.truncf %96 : vector<16x32xf32> to vector<16x32xbf16>
    %c0_47 = arith.constant 0 : index
    %c96 = arith.constant 96 : index
    %c0_48 = arith.constant 0 : index
    %98 = vector.load %arg4[%c0_47, %c96, %c0_48] : memref<1x256x32xbf16, #tpu.memory_space<vmem>>, vector<1x16x32xbf16>
    %99 = vector.shape_cast %98 : vector<1x16x32xbf16> to vector<16x32xbf16>
    %100 = vector.shape_cast %97 : vector<16x32xbf16> to vector<1x16x32xbf16>
    tpu.vector_store %arg4[%c0_47, %c96, %c0_48], %100 {strides = array<i32>} : memref<1x256x32xbf16, #tpu.memory_space<vmem>>, vector<1x16x32xbf16>,
    %101 = vector.extract_strided_slice %65 {offsets = [126, 0], sizes = [16, 32], strides = [1, 1]} : vector<288x32xf32> to vector<16x32xf32>
    %102 = arith.truncf %101 : vector<16x32xf32> to vector<16x32xbf16>
    %c0_49 = arith.constant 0 : index
    %c112 = arith.constant 112 : index
    %c0_50 = arith.constant 0 : index
    %103 = vector.load %arg4[%c0_49, %c112, %c0_50] : memref<1x256x32xbf16, #tpu.memory_space<vmem>>, vector<1x16x32xbf16>
    %104 = vector.shape_cast %103 : vector<1x16x32xbf16> to vector<16x32xbf16>
    %105 = vector.shape_cast %102 : vector<16x32xbf16> to vector<1x16x32xbf16>
    tpu.vector_store %arg4[%c0_49, %c112, %c0_50], %105 {strides = array<i32>} : memref<1x256x32xbf16, #tpu.memory_space<vmem>>, vector<1x16x32xbf16>,
    %106 = vector.extract_strided_slice %65 {offsets = [144, 0], sizes = [16, 32], strides = [1, 1]} : vector<288x32xf32> to vector<16x32xf32>
    %107 = arith.truncf %106 : vector<16x32xf32> to vector<16x32xbf16>
    %c0_51 = arith.constant 0 : index
    %c128 = arith.constant 128 : index
    %c0_52 = arith.constant 0 : index
    %108 = vector.load %arg4[%c0_51, %c128, %c0_52] : memref<1x256x32xbf16, #tpu.memory_space<vmem>>, vector<1x16x32xbf16>
    %109 = vector.shape_cast %108 : vector<1x16x32xbf16> to vector<16x32xbf16>
    %110 = vector.shape_cast %107 : vector<16x32xbf16> to vector<1x16x32xbf16>
    tpu.vector_store %arg4[%c0_51, %c128, %c0_52], %110 {strides = array<i32>} : memref<1x256x32xbf16, #tpu.memory_space<vmem>>, vector<1x16x32xbf16>,
    %111 = vector.extract_strided_slice %65 {offsets = [162, 0], sizes = [16, 32], strides = [1, 1]} : vector<288x32xf32> to vector<16x32xf32>
    %112 = arith.truncf %111 : vector<16x32xf32> to vector<16x32xbf16>
    %c0_53 = arith.constant 0 : index
    %c144 = arith.constant 144 : index
    %c0_54 = arith.constant 0 : index
    %113 = vector.load %arg4[%c0_53, %c144, %c0_54] : memref<1x256x32xbf16, #tpu.memory_space<vmem>>, vector<1x16x32xbf16>
    %114 = vector.shape_cast %113 : vector<1x16x32xbf16> to vector<16x32xbf16>
    %115 = vector.shape_cast %112 : vector<16x32xbf16> to vector<1x16x32xbf16>
    tpu.vector_store %arg4[%c0_53, %c144, %c0_54], %115 {strides = array<i32>} : memref<1x256x32xbf16, #tpu.memory_space<vmem>>, vector<1x16x32xbf16>,
    %116 = vector.extract_strided_slice %65 {offsets = [180, 0], sizes = [16, 32], strides = [1, 1]} : vector<288x32xf32> to vector<16x32xf32>
    %117 = arith.truncf %116 : vector<16x32xf32> to vector<16x32xbf16>
    %c0_55 = arith.constant 0 : index
    %c160 = arith.constant 160 : index
    %c0_56 = arith.constant 0 : index
    %118 = vector.load %arg4[%c0_55, %c160, %c0_56] : memref<1x256x32xbf16, #tpu.memory_space<vmem>>, vector<1x16x32xbf16>
    %119 = vector.shape_cast %118 : vector<1x16x32xbf16> to vector<16x32xbf16>
    %120 = vector.shape_cast %117 : vector<16x32xbf16> to vector<1x16x32xbf16>
    tpu.vector_store %arg4[%c0_55, %c160, %c0_56], %120 {strides = array<i32>} : memref<1x256x32xbf16, #tpu.memory_space<vmem>>, vector<1x16x32xbf16>,
    %121 = vector.extract_strided_slice %65 {offsets = [198, 0], sizes = [16, 32], strides = [1, 1]} : vector<288x32xf32> to vector<16x32xf32>
    %122 = arith.truncf %121 : vector<16x32xf32> to vector<16x32xbf16>
    %c0_57 = arith.constant 0 : index
    %c176 = arith.constant 176 : index
    %c0_58 = arith.constant 0 : index
    %123 = vector.load %arg4[%c0_57, %c176, %c0_58] : memref<1x256x32xbf16, #tpu.memory_space<vmem>>, vector<1x16x32xbf16>
    %124 = vector.shape_cast %123 : vector<1x16x32xbf16> to vector<16x32xbf16>
    %125 = vector.shape_cast %122 : vector<16x32xbf16> to vector<1x16x32xbf16>
    tpu.vector_store %arg4[%c0_57, %c176, %c0_58], %125 {strides = array<i32>} : memref<1x256x32xbf16, #tpu.memory_space<vmem>>, vector<1x16x32xbf16>,
    %126 = vector.extract_strided_slice %65 {offsets = [216, 0], sizes = [16, 32], strides = [1, 1]} : vector<288x32xf32> to vector<16x32xf32>
    %127 = arith.truncf %126 : vector<16x32xf32> to vector<16x32xbf16>
    %c0_59 = arith.constant 0 : index
    %c192 = arith.constant 192 : index
    %c0_60 = arith.constant 0 : index
    %128 = vector.load %arg4[%c0_59, %c192, %c0_60] : memref<1x256x32xbf16, #tpu.memory_space<vmem>>, vector<1x16x32xbf16>
    %129 = vector.shape_cast %128 : vector<1x16x32xbf16> to vector<16x32xbf16>
    %130 = vector.shape_cast %127 : vector<16x32xbf16> to vector<1x16x32xbf16>
    tpu.vector_store %arg4[%c0_59, %c192, %c0_60], %130 {strides = array<i32>} : memref<1x256x32xbf16, #tpu.memory_space<vmem>>, vector<1x16x32xbf16>,
    %131 = vector.extract_strided_slice %65 {offsets = [234, 0], sizes = [16, 32], strides = [1, 1]} : vector<288x32xf32> to vector<16x32xf32>
    %132 = arith.truncf %131 : vector<16x32xf32> to vector<16x32xbf16>
    %c0_61 = arith.constant 0 : index
    %c208 = arith.constant 208 : index
    %c0_62 = arith.constant 0 : index
    %133 = vector.load %arg4[%c0_61, %c208, %c0_62] : memref<1x256x32xbf16, #tpu.memory_space<vmem>>, vector<1x16x32xbf16>
    %134 = vector.shape_cast %133 : vector<1x16x32xbf16> to vector<16x32xbf16>
    %135 = vector.shape_cast %132 : vector<16x32xbf16> to vector<1x16x32xbf16>
    tpu.vector_store %arg4[%c0_61, %c208, %c0_62], %135 {strides = array<i32>} : memref<1x256x32xbf16, #tpu.memory_space<vmem>>, vector<1x16x32xbf16>,
    %136 = vector.extract_strided_slice %65 {offsets = [252, 0], sizes = [16, 32], strides = [1, 1]} : vector<288x32xf32> to vector<16x32xf32>
    %137 = arith.truncf %136 : vector<16x32xf32> to vector<16x32xbf16>
    %c0_63 = arith.constant 0 : index
    %c224 = arith.constant 224 : index
    %c0_64 = arith.constant 0 : index
    %138 = vector.load %arg4[%c0_63, %c224, %c0_64] : memref<1x256x32xbf16, #tpu.memory_space<vmem>>, vector<1x16x32xbf16>
    %139 = vector.shape_cast %138 : vector<1x16x32xbf16> to vector<16x32xbf16>
    %140 = vector.shape_cast %137 : vector<16x32xbf16> to vector<1x16x32xbf16>
    tpu.vector_store %arg4[%c0_63, %c224, %c0_64], %140 {strides = array<i32>} : memref<1x256x32xbf16, #tpu.memory_space<vmem>>, vector<1x16x32xbf16>,
    %141 = vector.extract_strided_slice %65 {offsets = [270, 0], sizes = [16, 32], strides = [1, 1]} : vector<288x32xf32> to vector<16x32xf32>
    %142 = arith.truncf %141 : vector<16x32xf32> to vector<16x32xbf16>
    %c0_65 = arith.constant 0 : index
    %c240 = arith.constant 240 : index
    %c0_66 = arith.constant 0 : index
    %143 = vector.load %arg4[%c0_65, %c240, %c0_66] : memref<1x256x32xbf16, #tpu.memory_space<vmem>>, vector<1x16x32xbf16>
    %144 = vector.shape_cast %143 : vector<1x16x32xbf16> to vector<16x32xbf16>
    %145 = vector.shape_cast %142 : vector<16x32xbf16> to vector<1x16x32xbf16>
    tpu.vector_store %arg4[%c0_65, %c240, %c0_66], %145 {strides = array<i32>} : memref<1x256x32xbf16, #tpu.memory_space<vmem>>, vector<1x16x32xbf16>,
    return
  }
  func.func @transform_0(%arg0: i32) -> (i32, i32, i32) {
    %c0_i32 = arith.constant 0 : i32
    %c0_i32_0 = arith.constant 0 : i32
    %c0_i32_1 = arith.constant 0 : i32
    return %arg0, %c0_i32, %c0_i32_0 : i32, i32, i32
  }
  func.func @transform_1(%arg0: i32) -> (i32, i32, i32) {
    %c0_i32 = arith.constant 0 : i32
    %c0_i32_0 = arith.constant 0 : i32
    %c0_i32_1 = arith.constant 0 : i32
    %c0_i32_2 = arith.constant 0 : i32
    return %c0_i32, %c0_i32_0, %c0_i32_1 : i32, i32, i32
  }
  func.func @transform_2(%arg0: i32) -> (i32, i32) {
    %c0_i32 = arith.constant 0 : i32
    %c0_i32_0 = arith.constant 0 : i32
    %c0_i32_1 = arith.constant 0 : i32
    return %c0_i32, %c0_i32_0 : i32, i32
  }
  func.func @transform_3(%arg0: i32) -> (i32, i32, i32) {
    %c0_i32 = arith.constant 0 : i32
    %c0_i32_0 = arith.constant 0 : i32
    %c0_i32_1 = arith.constant 0 : i32
    return %arg0, %c0_i32, %c0_i32_0 : i32, i32, i32
  }
}

module attributes {stable_mosaic.version = 11 : i64} {
  func.func @_resdown_kernel(%arg0: i32, %arg1: memref<1x110x128xbf16, #tpu.memory_space<vmem>>, %arg2: memref<1x90x128xbf16, #tpu.memory_space<vmem>>, %arg3: memref<9x128x32xbf16, #tpu.memory_space<vmem>>, %arg4: memref<4x128x32xbf16, #tpu.memory_space<vmem>>, %arg5: memref<1x32xf32, #tpu.memory_space<vmem>>, %arg6: memref<1x64x32xbf16, #tpu.memory_space<vmem>>) attributes {dimension_semantics = [#tpu.dimension_semantics<parallel>], iteration_bounds = array<i64: 2>, scalar_prefetch = 0 : i64, scratch_operands = 0 : i64, tpu.core_type = #tpu.core_type<tc>, window_params = [{transform_indices = @transform_0, window_bounds = array<i64: 1, 110, 128>}, {transform_indices = @transform_1, window_bounds = array<i64: 1, 90, 128>}, {pipeline_mode = #tpu.pipeline_mode<synchronous>, transform_indices = @transform_2, window_bounds = array<i64: 9, 128, 32>}, {pipeline_mode = #tpu.pipeline_mode<synchronous>, transform_indices = @transform_3, window_bounds = array<i64: 4, 128, 32>}, {pipeline_mode = #tpu.pipeline_mode<synchronous>, transform_indices = @transform_4, window_bounds = array<i64: 1, 32>}, {transform_indices = @transform_5, window_bounds = array<i64: 1, 64, 32>}]} {
    %c0 = arith.constant 0 : index
    %c0_0 = arith.constant 0 : index
    %c0_1 = arith.constant 0 : index
    %0 = vector.load %arg1[%c0, %c0_0, %c0_1] : memref<1x110x128xbf16, #tpu.memory_space<vmem>>, vector<1x110x128xbf16>
    %1 = vector.shape_cast %0 : vector<1x110x128xbf16> to vector<110x128xbf16>
    %2 = arith.extf %1 : vector<110x128xbf16> to vector<110x128xf32>
    %c0_2 = arith.constant 0 : index
    %c0_3 = arith.constant 0 : index
    %c0_4 = arith.constant 0 : index
    %3 = vector.load %arg2[%c0_2, %c0_3, %c0_4] : memref<1x90x128xbf16, #tpu.memory_space<vmem>>, vector<1x90x128xbf16>
    %4 = vector.shape_cast %3 : vector<1x90x128xbf16> to vector<90x128xbf16>
    %5 = arith.extf %4 : vector<90x128xbf16> to vector<90x128xf32>
    %cst = arith.constant 0.000000e+00 : f32
    %6 = vector.broadcast %cst : f32 to vector<80x32xf32>
    %7 = vector.extract_strided_slice %2 {offsets = [0, 0], sizes = [80, 128], strides = [1, 1]} : vector<110x128xf32> to vector<80x128xf32>
    %8 = arith.truncf %7 : vector<80x128xf32> to vector<80x128xbf16>
    %c0_5 = arith.constant 0 : index
    %c0_6 = arith.constant 0 : index
    %c0_7 = arith.constant 0 : index
    %9 = vector.load %arg3[%c0_5, %c0_6, %c0_7] : memref<9x128x32xbf16, #tpu.memory_space<vmem>>, vector<1x128x32xbf16>
    %10 = vector.shape_cast %9 : vector<1x128x32xbf16> to vector<128x32xbf16>
    %cst_8 = arith.constant dense<0.000000e+00> : vector<80x32xf32>
    %11 = tpu.matmul %8, %10, %cst_8 {dimension_numbers = #tpu.dot_dimension_numbers<[1], [0], [0], [1], [0, 0, 1, 1], [], []>} : vector<80x128xbf16>, vector<128x32xbf16>, vector<80x32xf32> -> vector<80x32xf32>
    %12 = arith.addf %6, %11 : vector<80x32xf32>
    %13 = vector.extract_strided_slice %2 {offsets = [1, 0], sizes = [80, 128], strides = [1, 1]} : vector<110x128xf32> to vector<80x128xf32>
    %14 = arith.truncf %13 : vector<80x128xf32> to vector<80x128xbf16>
    %c1 = arith.constant 1 : index
    %c0_9 = arith.constant 0 : index
    %c0_10 = arith.constant 0 : index
    %15 = vector.load %arg3[%c1, %c0_9, %c0_10] : memref<9x128x32xbf16, #tpu.memory_space<vmem>>, vector<1x128x32xbf16>
    %16 = vector.shape_cast %15 : vector<1x128x32xbf16> to vector<128x32xbf16>
    %cst_11 = arith.constant dense<0.000000e+00> : vector<80x32xf32>
    %17 = tpu.matmul %14, %16, %cst_11 {dimension_numbers = #tpu.dot_dimension_numbers<[1], [0], [0], [1], [0, 0, 1, 1], [], []>} : vector<80x128xbf16>, vector<128x32xbf16>, vector<80x32xf32> -> vector<80x32xf32>
    %18 = arith.addf %12, %17 : vector<80x32xf32>
    %19 = vector.extract_strided_slice %2 {offsets = [2, 0], sizes = [80, 128], strides = [1, 1]} : vector<110x128xf32> to vector<80x128xf32>
    %20 = arith.truncf %19 : vector<80x128xf32> to vector<80x128xbf16>
    %c2 = arith.constant 2 : index
    %c0_12 = arith.constant 0 : index
    %c0_13 = arith.constant 0 : index
    %21 = vector.load %arg3[%c2, %c0_12, %c0_13] : memref<9x128x32xbf16, #tpu.memory_space<vmem>>, vector<1x128x32xbf16>
    %22 = vector.shape_cast %21 : vector<1x128x32xbf16> to vector<128x32xbf16>
    %cst_14 = arith.constant dense<0.000000e+00> : vector<80x32xf32>
    %23 = tpu.matmul %20, %22, %cst_14 {dimension_numbers = #tpu.dot_dimension_numbers<[1], [0], [0], [1], [0, 0, 1, 1], [], []>} : vector<80x128xbf16>, vector<128x32xbf16>, vector<80x32xf32> -> vector<80x32xf32>
    %24 = arith.addf %18, %23 : vector<80x32xf32>
    %25 = vector.extract_strided_slice %2 {offsets = [10, 0], sizes = [80, 128], strides = [1, 1]} : vector<110x128xf32> to vector<80x128xf32>
    %26 = arith.truncf %25 : vector<80x128xf32> to vector<80x128xbf16>
    %c3 = arith.constant 3 : index
    %c0_15 = arith.constant 0 : index
    %c0_16 = arith.constant 0 : index
    %27 = vector.load %arg3[%c3, %c0_15, %c0_16] : memref<9x128x32xbf16, #tpu.memory_space<vmem>>, vector<1x128x32xbf16>
    %28 = vector.shape_cast %27 : vector<1x128x32xbf16> to vector<128x32xbf16>
    %cst_17 = arith.constant dense<0.000000e+00> : vector<80x32xf32>
    %29 = tpu.matmul %26, %28, %cst_17 {dimension_numbers = #tpu.dot_dimension_numbers<[1], [0], [0], [1], [0, 0, 1, 1], [], []>} : vector<80x128xbf16>, vector<128x32xbf16>, vector<80x32xf32> -> vector<80x32xf32>
    %30 = arith.addf %24, %29 : vector<80x32xf32>
    %31 = vector.extract_strided_slice %2 {offsets = [11, 0], sizes = [80, 128], strides = [1, 1]} : vector<110x128xf32> to vector<80x128xf32>
    %32 = arith.truncf %31 : vector<80x128xf32> to vector<80x128xbf16>
    %c4 = arith.constant 4 : index
    %c0_18 = arith.constant 0 : index
    %c0_19 = arith.constant 0 : index
    %33 = vector.load %arg3[%c4, %c0_18, %c0_19] : memref<9x128x32xbf16, #tpu.memory_space<vmem>>, vector<1x128x32xbf16>
    %34 = vector.shape_cast %33 : vector<1x128x32xbf16> to vector<128x32xbf16>
    %cst_20 = arith.constant dense<0.000000e+00> : vector<80x32xf32>
    %35 = tpu.matmul %32, %34, %cst_20 {dimension_numbers = #tpu.dot_dimension_numbers<[1], [0], [0], [1], [0, 0, 1, 1], [], []>} : vector<80x128xbf16>, vector<128x32xbf16>, vector<80x32xf32> -> vector<80x32xf32>
    %36 = arith.addf %30, %35 : vector<80x32xf32>
    %37 = vector.extract_strided_slice %2 {offsets = [12, 0], sizes = [80, 128], strides = [1, 1]} : vector<110x128xf32> to vector<80x128xf32>
    %38 = arith.truncf %37 : vector<80x128xf32> to vector<80x128xbf16>
    %c5 = arith.constant 5 : index
    %c0_21 = arith.constant 0 : index
    %c0_22 = arith.constant 0 : index
    %39 = vector.load %arg3[%c5, %c0_21, %c0_22] : memref<9x128x32xbf16, #tpu.memory_space<vmem>>, vector<1x128x32xbf16>
    %40 = vector.shape_cast %39 : vector<1x128x32xbf16> to vector<128x32xbf16>
    %cst_23 = arith.constant dense<0.000000e+00> : vector<80x32xf32>
    %41 = tpu.matmul %38, %40, %cst_23 {dimension_numbers = #tpu.dot_dimension_numbers<[1], [0], [0], [1], [0, 0, 1, 1], [], []>} : vector<80x128xbf16>, vector<128x32xbf16>, vector<80x32xf32> -> vector<80x32xf32>
    %42 = arith.addf %36, %41 : vector<80x32xf32>
    %43 = vector.extract_strided_slice %2 {offsets = [20, 0], sizes = [80, 128], strides = [1, 1]} : vector<110x128xf32> to vector<80x128xf32>
    %44 = arith.truncf %43 : vector<80x128xf32> to vector<80x128xbf16>
    %c6 = arith.constant 6 : index
    %c0_24 = arith.constant 0 : index
    %c0_25 = arith.constant 0 : index
    %45 = vector.load %arg3[%c6, %c0_24, %c0_25] : memref<9x128x32xbf16, #tpu.memory_space<vmem>>, vector<1x128x32xbf16>
    %46 = vector.shape_cast %45 : vector<1x128x32xbf16> to vector<128x32xbf16>
    %cst_26 = arith.constant dense<0.000000e+00> : vector<80x32xf32>
    %47 = tpu.matmul %44, %46, %cst_26 {dimension_numbers = #tpu.dot_dimension_numbers<[1], [0], [0], [1], [0, 0, 1, 1], [], []>} : vector<80x128xbf16>, vector<128x32xbf16>, vector<80x32xf32> -> vector<80x32xf32>
    %48 = arith.addf %42, %47 : vector<80x32xf32>
    %49 = vector.extract_strided_slice %2 {offsets = [21, 0], sizes = [80, 128], strides = [1, 1]} : vector<110x128xf32> to vector<80x128xf32>
    %50 = arith.truncf %49 : vector<80x128xf32> to vector<80x128xbf16>
    %c7 = arith.constant 7 : index
    %c0_27 = arith.constant 0 : index
    %c0_28 = arith.constant 0 : index
    %51 = vector.load %arg3[%c7, %c0_27, %c0_28] : memref<9x128x32xbf16, #tpu.memory_space<vmem>>, vector<1x128x32xbf16>
    %52 = vector.shape_cast %51 : vector<1x128x32xbf16> to vector<128x32xbf16>
    %cst_29 = arith.constant dense<0.000000e+00> : vector<80x32xf32>
    %53 = tpu.matmul %50, %52, %cst_29 {dimension_numbers = #tpu.dot_dimension_numbers<[1], [0], [0], [1], [0, 0, 1, 1], [], []>} : vector<80x128xbf16>, vector<128x32xbf16>, vector<80x32xf32> -> vector<80x32xf32>
    %54 = arith.addf %48, %53 : vector<80x32xf32>
    %55 = vector.extract_strided_slice %2 {offsets = [22, 0], sizes = [80, 128], strides = [1, 1]} : vector<110x128xf32> to vector<80x128xf32>
    %56 = arith.truncf %55 : vector<80x128xf32> to vector<80x128xbf16>
    %c8 = arith.constant 8 : index
    %c0_30 = arith.constant 0 : index
    %c0_31 = arith.constant 0 : index
    %57 = vector.load %arg3[%c8, %c0_30, %c0_31] : memref<9x128x32xbf16, #tpu.memory_space<vmem>>, vector<1x128x32xbf16>
    %58 = vector.shape_cast %57 : vector<1x128x32xbf16> to vector<128x32xbf16>
    %cst_32 = arith.constant dense<0.000000e+00> : vector<80x32xf32>
    %59 = tpu.matmul %56, %58, %cst_32 {dimension_numbers = #tpu.dot_dimension_numbers<[1], [0], [0], [1], [0, 0, 1, 1], [], []>} : vector<80x128xbf16>, vector<128x32xbf16>, vector<80x32xf32> -> vector<80x32xf32>
    %60 = arith.addf %54, %59 : vector<80x32xf32>
    %c0_33 = arith.constant 0 : index
    %c0_34 = arith.constant 0 : index
    %61 = vector.load %arg5[%c0_33, %c0_34] : memref<1x32xf32, #tpu.memory_space<vmem>>, vector<1x32xf32>
    %62 = vector.broadcast %61 : vector<1x32xf32> to vector<80x32xf32>
    %63 = arith.addf %60, %62 : vector<80x32xf32>
    %cst_35 = arith.constant 0.000000e+00 : f32
    %64 = vector.broadcast %cst_35 : f32 to vector<80x32xf32>
    %65 = arith.cmpf oge, %63, %64 : vector<80x32xf32>
    %cst_36 = arith.constant 2.000000e-01 : f32
    %66 = vector.broadcast %cst_36 : f32 to vector<80x32xf32>
    %67 = arith.mulf %66, %63 : vector<80x32xf32>
    %68 = arith.select %65, %63, %67 : vector<80x32xi1>, vector<80x32xf32>
    %cst_37 = arith.constant 0.000000e+00 : f32
    %69 = vector.broadcast %cst_37 : f32 to vector<72x32xf32>
    %70 = vector.extract_strided_slice %5 {offsets = [0, 0], sizes = [72, 128], strides = [1, 1]} : vector<90x128xf32> to vector<72x128xf32>
    %71 = arith.truncf %70 : vector<72x128xf32> to vector<72x128xbf16>
    %c0_38 = arith.constant 0 : index
    %c0_39 = arith.constant 0 : index
    %c0_40 = arith.constant 0 : index
    %72 = vector.load %arg4[%c0_38, %c0_39, %c0_40] : memref<4x128x32xbf16, #tpu.memory_space<vmem>>, vector<1x128x32xbf16>
    %73 = vector.shape_cast %72 : vector<1x128x32xbf16> to vector<128x32xbf16>
    %cst_41 = arith.constant dense<0.000000e+00> : vector<72x32xf32>
    %74 = tpu.matmul %71, %73, %cst_41 {dimension_numbers = #tpu.dot_dimension_numbers<[1], [0], [0], [1], [0, 0, 1, 1], [], []>} : vector<72x128xbf16>, vector<128x32xbf16>, vector<72x32xf32> -> vector<72x32xf32>
    %75 = arith.addf %69, %74 : vector<72x32xf32>
    %76 = vector.extract_strided_slice %5 {offsets = [1, 0], sizes = [72, 128], strides = [1, 1]} : vector<90x128xf32> to vector<72x128xf32>
    %77 = arith.truncf %76 : vector<72x128xf32> to vector<72x128xbf16>
    %c1_42 = arith.constant 1 : index
    %c0_43 = arith.constant 0 : index
    %c0_44 = arith.constant 0 : index
    %78 = vector.load %arg4[%c1_42, %c0_43, %c0_44] : memref<4x128x32xbf16, #tpu.memory_space<vmem>>, vector<1x128x32xbf16>
    %79 = vector.shape_cast %78 : vector<1x128x32xbf16> to vector<128x32xbf16>
    %cst_45 = arith.constant dense<0.000000e+00> : vector<72x32xf32>
    %80 = tpu.matmul %77, %79, %cst_45 {dimension_numbers = #tpu.dot_dimension_numbers<[1], [0], [0], [1], [0, 0, 1, 1], [], []>} : vector<72x128xbf16>, vector<128x32xbf16>, vector<72x32xf32> -> vector<72x32xf32>
    %81 = arith.addf %75, %80 : vector<72x32xf32>
    %82 = vector.extract_strided_slice %5 {offsets = [9, 0], sizes = [72, 128], strides = [1, 1]} : vector<90x128xf32> to vector<72x128xf32>
    %83 = arith.truncf %82 : vector<72x128xf32> to vector<72x128xbf16>
    %c2_46 = arith.constant 2 : index
    %c0_47 = arith.constant 0 : index
    %c0_48 = arith.constant 0 : index
    %84 = vector.load %arg4[%c2_46, %c0_47, %c0_48] : memref<4x128x32xbf16, #tpu.memory_space<vmem>>, vector<1x128x32xbf16>
    %85 = vector.shape_cast %84 : vector<1x128x32xbf16> to vector<128x32xbf16>
    %cst_49 = arith.constant dense<0.000000e+00> : vector<72x32xf32>
    %86 = tpu.matmul %83, %85, %cst_49 {dimension_numbers = #tpu.dot_dimension_numbers<[1], [0], [0], [1], [0, 0, 1, 1], [], []>} : vector<72x128xbf16>, vector<128x32xbf16>, vector<72x32xf32> -> vector<72x32xf32>
    %87 = arith.addf %81, %86 : vector<72x32xf32>
    %88 = vector.extract_strided_slice %5 {offsets = [10, 0], sizes = [72, 128], strides = [1, 1]} : vector<90x128xf32> to vector<72x128xf32>
    %89 = arith.truncf %88 : vector<72x128xf32> to vector<72x128xbf16>
    %c3_50 = arith.constant 3 : index
    %c0_51 = arith.constant 0 : index
    %c0_52 = arith.constant 0 : index
    %90 = vector.load %arg4[%c3_50, %c0_51, %c0_52] : memref<4x128x32xbf16, #tpu.memory_space<vmem>>, vector<1x128x32xbf16>
    %91 = vector.shape_cast %90 : vector<1x128x32xbf16> to vector<128x32xbf16>
    %cst_53 = arith.constant dense<0.000000e+00> : vector<72x32xf32>
    %92 = tpu.matmul %89, %91, %cst_53 {dimension_numbers = #tpu.dot_dimension_numbers<[1], [0], [0], [1], [0, 0, 1, 1], [], []>} : vector<72x128xbf16>, vector<128x32xbf16>, vector<72x32xf32> -> vector<72x32xf32>
    %93 = arith.addf %87, %92 : vector<72x32xf32>
    %94 = vector.extract_strided_slice %68 {offsets = [0, 0], sizes = [8, 32], strides = [1, 1]} : vector<80x32xf32> to vector<8x32xf32>
    %95 = vector.extract_strided_slice %93 {offsets = [0, 0], sizes = [8, 32], strides = [1, 1]} : vector<72x32xf32> to vector<8x32xf32>
    %96 = arith.addf %94, %95 : vector<8x32xf32>
    %cst_54 = arith.constant 0.707106769 : f32
    %97 = vector.broadcast %cst_54 : f32 to vector<8x32xf32>
    %98 = arith.mulf %96, %97 : vector<8x32xf32>
    %99 = arith.truncf %98 : vector<8x32xf32> to vector<8x32xbf16>
    %c0_55 = arith.constant 0 : index
    %c0_56 = arith.constant 0 : index
    %c0_57 = arith.constant 0 : index
    %100 = vector.load %arg6[%c0_55, %c0_56, %c0_57] : memref<1x64x32xbf16, #tpu.memory_space<vmem>>, vector<1x8x32xbf16>
    %101 = vector.shape_cast %100 : vector<1x8x32xbf16> to vector<8x32xbf16>
    %102 = vector.shape_cast %99 : vector<8x32xbf16> to vector<1x8x32xbf16>
    tpu.vector_store %arg6[%c0_55, %c0_56, %c0_57], %102 {strides = array<i32>} : memref<1x64x32xbf16, #tpu.memory_space<vmem>>, vector<1x8x32xbf16>,
    %103 = vector.extract_strided_slice %68 {offsets = [10, 0], sizes = [8, 32], strides = [1, 1]} : vector<80x32xf32> to vector<8x32xf32>
    %104 = vector.extract_strided_slice %93 {offsets = [9, 0], sizes = [8, 32], strides = [1, 1]} : vector<72x32xf32> to vector<8x32xf32>
    %105 = arith.addf %103, %104 : vector<8x32xf32>
    %cst_58 = arith.constant 0.707106769 : f32
    %106 = vector.broadcast %cst_58 : f32 to vector<8x32xf32>
    %107 = arith.mulf %105, %106 : vector<8x32xf32>
    %108 = arith.truncf %107 : vector<8x32xf32> to vector<8x32xbf16>
    %c0_59 = arith.constant 0 : index
    %c8_60 = arith.constant 8 : index
    %c0_61 = arith.constant 0 : index
    %109 = vector.load %arg6[%c0_59, %c8_60, %c0_61] : memref<1x64x32xbf16, #tpu.memory_space<vmem>>, vector<1x8x32xbf16>
    %110 = vector.shape_cast %109 : vector<1x8x32xbf16> to vector<8x32xbf16>
    %111 = vector.shape_cast %108 : vector<8x32xbf16> to vector<1x8x32xbf16>
    tpu.vector_store %arg6[%c0_59, %c8_60, %c0_61], %111 {strides = array<i32>} : memref<1x64x32xbf16, #tpu.memory_space<vmem>>, vector<1x8x32xbf16>,
    %112 = vector.extract_strided_slice %68 {offsets = [20, 0], sizes = [8, 32], strides = [1, 1]} : vector<80x32xf32> to vector<8x32xf32>
    %113 = vector.extract_strided_slice %93 {offsets = [18, 0], sizes = [8, 32], strides = [1, 1]} : vector<72x32xf32> to vector<8x32xf32>
    %114 = arith.addf %112, %113 : vector<8x32xf32>
    %cst_62 = arith.constant 0.707106769 : f32
    %115 = vector.broadcast %cst_62 : f32 to vector<8x32xf32>
    %116 = arith.mulf %114, %115 : vector<8x32xf32>
    %117 = arith.truncf %116 : vector<8x32xf32> to vector<8x32xbf16>
    %c0_63 = arith.constant 0 : index
    %c16 = arith.constant 16 : index
    %c0_64 = arith.constant 0 : index
    %118 = vector.load %arg6[%c0_63, %c16, %c0_64] : memref<1x64x32xbf16, #tpu.memory_space<vmem>>, vector<1x8x32xbf16>
    %119 = vector.shape_cast %118 : vector<1x8x32xbf16> to vector<8x32xbf16>
    %120 = vector.shape_cast %117 : vector<8x32xbf16> to vector<1x8x32xbf16>
    tpu.vector_store %arg6[%c0_63, %c16, %c0_64], %120 {strides = array<i32>} : memref<1x64x32xbf16, #tpu.memory_space<vmem>>, vector<1x8x32xbf16>,
    %121 = vector.extract_strided_slice %68 {offsets = [30, 0], sizes = [8, 32], strides = [1, 1]} : vector<80x32xf32> to vector<8x32xf32>
    %122 = vector.extract_strided_slice %93 {offsets = [27, 0], sizes = [8, 32], strides = [1, 1]} : vector<72x32xf32> to vector<8x32xf32>
    %123 = arith.addf %121, %122 : vector<8x32xf32>
    %cst_65 = arith.constant 0.707106769 : f32
    %124 = vector.broadcast %cst_65 : f32 to vector<8x32xf32>
    %125 = arith.mulf %123, %124 : vector<8x32xf32>
    %126 = arith.truncf %125 : vector<8x32xf32> to vector<8x32xbf16>
    %c0_66 = arith.constant 0 : index
    %c24 = arith.constant 24 : index
    %c0_67 = arith.constant 0 : index
    %127 = vector.load %arg6[%c0_66, %c24, %c0_67] : memref<1x64x32xbf16, #tpu.memory_space<vmem>>, vector<1x8x32xbf16>
    %128 = vector.shape_cast %127 : vector<1x8x32xbf16> to vector<8x32xbf16>
    %129 = vector.shape_cast %126 : vector<8x32xbf16> to vector<1x8x32xbf16>
    tpu.vector_store %arg6[%c0_66, %c24, %c0_67], %129 {strides = array<i32>} : memref<1x64x32xbf16, #tpu.memory_space<vmem>>, vector<1x8x32xbf16>,
    %130 = vector.extract_strided_slice %68 {offsets = [40, 0], sizes = [8, 32], strides = [1, 1]} : vector<80x32xf32> to vector<8x32xf32>
    %131 = vector.extract_strided_slice %93 {offsets = [36, 0], sizes = [8, 32], strides = [1, 1]} : vector<72x32xf32> to vector<8x32xf32>
    %132 = arith.addf %130, %131 : vector<8x32xf32>
    %cst_68 = arith.constant 0.707106769 : f32
    %133 = vector.broadcast %cst_68 : f32 to vector<8x32xf32>
    %134 = arith.mulf %132, %133 : vector<8x32xf32>
    %135 = arith.truncf %134 : vector<8x32xf32> to vector<8x32xbf16>
    %c0_69 = arith.constant 0 : index
    %c32 = arith.constant 32 : index
    %c0_70 = arith.constant 0 : index
    %136 = vector.load %arg6[%c0_69, %c32, %c0_70] : memref<1x64x32xbf16, #tpu.memory_space<vmem>>, vector<1x8x32xbf16>
    %137 = vector.shape_cast %136 : vector<1x8x32xbf16> to vector<8x32xbf16>
    %138 = vector.shape_cast %135 : vector<8x32xbf16> to vector<1x8x32xbf16>
    tpu.vector_store %arg6[%c0_69, %c32, %c0_70], %138 {strides = array<i32>} : memref<1x64x32xbf16, #tpu.memory_space<vmem>>, vector<1x8x32xbf16>,
    %139 = vector.extract_strided_slice %68 {offsets = [50, 0], sizes = [8, 32], strides = [1, 1]} : vector<80x32xf32> to vector<8x32xf32>
    %140 = vector.extract_strided_slice %93 {offsets = [45, 0], sizes = [8, 32], strides = [1, 1]} : vector<72x32xf32> to vector<8x32xf32>
    %141 = arith.addf %139, %140 : vector<8x32xf32>
    %cst_71 = arith.constant 0.707106769 : f32
    %142 = vector.broadcast %cst_71 : f32 to vector<8x32xf32>
    %143 = arith.mulf %141, %142 : vector<8x32xf32>
    %144 = arith.truncf %143 : vector<8x32xf32> to vector<8x32xbf16>
    %c0_72 = arith.constant 0 : index
    %c40 = arith.constant 40 : index
    %c0_73 = arith.constant 0 : index
    %145 = vector.load %arg6[%c0_72, %c40, %c0_73] : memref<1x64x32xbf16, #tpu.memory_space<vmem>>, vector<1x8x32xbf16>
    %146 = vector.shape_cast %145 : vector<1x8x32xbf16> to vector<8x32xbf16>
    %147 = vector.shape_cast %144 : vector<8x32xbf16> to vector<1x8x32xbf16>
    tpu.vector_store %arg6[%c0_72, %c40, %c0_73], %147 {strides = array<i32>} : memref<1x64x32xbf16, #tpu.memory_space<vmem>>, vector<1x8x32xbf16>,
    %148 = vector.extract_strided_slice %68 {offsets = [60, 0], sizes = [8, 32], strides = [1, 1]} : vector<80x32xf32> to vector<8x32xf32>
    %149 = vector.extract_strided_slice %93 {offsets = [54, 0], sizes = [8, 32], strides = [1, 1]} : vector<72x32xf32> to vector<8x32xf32>
    %150 = arith.addf %148, %149 : vector<8x32xf32>
    %cst_74 = arith.constant 0.707106769 : f32
    %151 = vector.broadcast %cst_74 : f32 to vector<8x32xf32>
    %152 = arith.mulf %150, %151 : vector<8x32xf32>
    %153 = arith.truncf %152 : vector<8x32xf32> to vector<8x32xbf16>
    %c0_75 = arith.constant 0 : index
    %c48 = arith.constant 48 : index
    %c0_76 = arith.constant 0 : index
    %154 = vector.load %arg6[%c0_75, %c48, %c0_76] : memref<1x64x32xbf16, #tpu.memory_space<vmem>>, vector<1x8x32xbf16>
    %155 = vector.shape_cast %154 : vector<1x8x32xbf16> to vector<8x32xbf16>
    %156 = vector.shape_cast %153 : vector<8x32xbf16> to vector<1x8x32xbf16>
    tpu.vector_store %arg6[%c0_75, %c48, %c0_76], %156 {strides = array<i32>} : memref<1x64x32xbf16, #tpu.memory_space<vmem>>, vector<1x8x32xbf16>,
    %157 = vector.extract_strided_slice %68 {offsets = [70, 0], sizes = [8, 32], strides = [1, 1]} : vector<80x32xf32> to vector<8x32xf32>
    %158 = vector.extract_strided_slice %93 {offsets = [63, 0], sizes = [8, 32], strides = [1, 1]} : vector<72x32xf32> to vector<8x32xf32>
    %159 = arith.addf %157, %158 : vector<8x32xf32>
    %cst_77 = arith.constant 0.707106769 : f32
    %160 = vector.broadcast %cst_77 : f32 to vector<8x32xf32>
    %161 = arith.mulf %159, %160 : vector<8x32xf32>
    %162 = arith.truncf %161 : vector<8x32xf32> to vector<8x32xbf16>
    %c0_78 = arith.constant 0 : index
    %c56 = arith.constant 56 : index
    %c0_79 = arith.constant 0 : index
    %163 = vector.load %arg6[%c0_78, %c56, %c0_79] : memref<1x64x32xbf16, #tpu.memory_space<vmem>>, vector<1x8x32xbf16>
    %164 = vector.shape_cast %163 : vector<1x8x32xbf16> to vector<8x32xbf16>
    %165 = vector.shape_cast %162 : vector<8x32xbf16> to vector<1x8x32xbf16>
    tpu.vector_store %arg6[%c0_78, %c56, %c0_79], %165 {strides = array<i32>} : memref<1x64x32xbf16, #tpu.memory_space<vmem>>, vector<1x8x32xbf16>,
    return
  }
  func.func @transform_0(%arg0: i32) -> (i32, i32, i32) {
    %c0_i32 = arith.constant 0 : i32
    %c0_i32_0 = arith.constant 0 : i32
    %c0_i32_1 = arith.constant 0 : i32
    return %arg0, %c0_i32, %c0_i32_0 : i32, i32, i32
  }
  func.func @transform_1(%arg0: i32) -> (i32, i32, i32) {
    %c0_i32 = arith.constant 0 : i32
    %c0_i32_0 = arith.constant 0 : i32
    %c0_i32_1 = arith.constant 0 : i32
    return %arg0, %c0_i32, %c0_i32_0 : i32, i32, i32
  }
  func.func @transform_2(%arg0: i32) -> (i32, i32, i32) {
    %c0_i32 = arith.constant 0 : i32
    %c0_i32_0 = arith.constant 0 : i32
    %c0_i32_1 = arith.constant 0 : i32
    %c0_i32_2 = arith.constant 0 : i32
    return %c0_i32, %c0_i32_0, %c0_i32_1 : i32, i32, i32
  }
  func.func @transform_3(%arg0: i32) -> (i32, i32, i32) {
    %c0_i32 = arith.constant 0 : i32
    %c0_i32_0 = arith.constant 0 : i32
    %c0_i32_1 = arith.constant 0 : i32
    %c0_i32_2 = arith.constant 0 : i32
    return %c0_i32, %c0_i32_0, %c0_i32_1 : i32, i32, i32
  }
  func.func @transform_4(%arg0: i32) -> (i32, i32) {
    %c0_i32 = arith.constant 0 : i32
    %c0_i32_0 = arith.constant 0 : i32
    %c0_i32_1 = arith.constant 0 : i32
    return %c0_i32, %c0_i32_0 : i32, i32
  }
  func.func @transform_5(%arg0: i32) -> (i32, i32, i32) {
    %c0_i32 = arith.constant 0 : i32
    %c0_i32_0 = arith.constant 0 : i32
    %c0_i32_1 = arith.constant 0 : i32
    return %arg0, %c0_i32, %c0_i32_0 : i32, i32, i32
  }
}

module attributes {stable_mosaic.version = 11 : i64} {
  func.func @_conv_frame_kernel(%arg0: i32, %arg1: memref<1x110x32xbf16, #tpu.memory_space<vmem>>, %arg2: memref<9x32x32xbf16, #tpu.memory_space<vmem>>, %arg3: memref<1x32xf32, #tpu.memory_space<vmem>>, %arg4: memref<1x64x32xbf16, #tpu.memory_space<vmem>>) attributes {dimension_semantics = [#tpu.dimension_semantics<parallel>], iteration_bounds = array<i64: 2>, scalar_prefetch = 0 : i64, scratch_operands = 0 : i64, tpu.core_type = #tpu.core_type<tc>, window_params = [{transform_indices = @transform_0, window_bounds = array<i64: 1, 110, 32>}, {pipeline_mode = #tpu.pipeline_mode<synchronous>, transform_indices = @transform_1, window_bounds = array<i64: 9, 32, 32>}, {pipeline_mode = #tpu.pipeline_mode<synchronous>, transform_indices = @transform_2, window_bounds = array<i64: 1, 32>}, {transform_indices = @transform_3, window_bounds = array<i64: 1, 64, 32>}]} {
    %c0 = arith.constant 0 : index
    %c0_0 = arith.constant 0 : index
    %c0_1 = arith.constant 0 : index
    %0 = vector.load %arg1[%c0, %c0_0, %c0_1] : memref<1x110x32xbf16, #tpu.memory_space<vmem>>, vector<1x110x32xbf16>
    %1 = vector.shape_cast %0 : vector<1x110x32xbf16> to vector<110x32xbf16>
    %2 = arith.extf %1 : vector<110x32xbf16> to vector<110x32xf32>
    %cst = arith.constant 0.000000e+00 : f32
    %3 = vector.broadcast %cst : f32 to vector<80x32xf32>
    %4 = vector.extract_strided_slice %2 {offsets = [0, 0], sizes = [80, 32], strides = [1, 1]} : vector<110x32xf32> to vector<80x32xf32>
    %5 = arith.truncf %4 : vector<80x32xf32> to vector<80x32xbf16>
    %c0_2 = arith.constant 0 : index
    %c0_3 = arith.constant 0 : index
    %c0_4 = arith.constant 0 : index
    %6 = vector.load %arg2[%c0_2, %c0_3, %c0_4] : memref<9x32x32xbf16, #tpu.memory_space<vmem>>, vector<1x32x32xbf16>
    %7 = vector.shape_cast %6 : vector<1x32x32xbf16> to vector<32x32xbf16>
    %cst_5 = arith.constant dense<0.000000e+00> : vector<80x32xf32>
    %8 = tpu.matmul %5, %7, %cst_5 {dimension_numbers = #tpu.dot_dimension_numbers<[1], [0], [0], [1], [0, 0, 1, 1], [], []>} : vector<80x32xbf16>, vector<32x32xbf16>, vector<80x32xf32> -> vector<80x32xf32>
    %9 = arith.addf %3, %8 : vector<80x32xf32>
    %10 = vector.extract_strided_slice %2 {offsets = [1, 0], sizes = [80, 32], strides = [1, 1]} : vector<110x32xf32> to vector<80x32xf32>
    %11 = arith.truncf %10 : vector<80x32xf32> to vector<80x32xbf16>
    %c1 = arith.constant 1 : index
    %c0_6 = arith.constant 0 : index
    %c0_7 = arith.constant 0 : index
    %12 = vector.load %arg2[%c1, %c0_6, %c0_7] : memref<9x32x32xbf16, #tpu.memory_space<vmem>>, vector<1x32x32xbf16>
    %13 = vector.shape_cast %12 : vector<1x32x32xbf16> to vector<32x32xbf16>
    %cst_8 = arith.constant dense<0.000000e+00> : vector<80x32xf32>
    %14 = tpu.matmul %11, %13, %cst_8 {dimension_numbers = #tpu.dot_dimension_numbers<[1], [0], [0], [1], [0, 0, 1, 1], [], []>} : vector<80x32xbf16>, vector<32x32xbf16>, vector<80x32xf32> -> vector<80x32xf32>
    %15 = arith.addf %9, %14 : vector<80x32xf32>
    %16 = vector.extract_strided_slice %2 {offsets = [2, 0], sizes = [80, 32], strides = [1, 1]} : vector<110x32xf32> to vector<80x32xf32>
    %17 = arith.truncf %16 : vector<80x32xf32> to vector<80x32xbf16>
    %c2 = arith.constant 2 : index
    %c0_9 = arith.constant 0 : index
    %c0_10 = arith.constant 0 : index
    %18 = vector.load %arg2[%c2, %c0_9, %c0_10] : memref<9x32x32xbf16, #tpu.memory_space<vmem>>, vector<1x32x32xbf16>
    %19 = vector.shape_cast %18 : vector<1x32x32xbf16> to vector<32x32xbf16>
    %cst_11 = arith.constant dense<0.000000e+00> : vector<80x32xf32>
    %20 = tpu.matmul %17, %19, %cst_11 {dimension_numbers = #tpu.dot_dimension_numbers<[1], [0], [0], [1], [0, 0, 1, 1], [], []>} : vector<80x32xbf16>, vector<32x32xbf16>, vector<80x32xf32> -> vector<80x32xf32>
    %21 = arith.addf %15, %20 : vector<80x32xf32>
    %22 = vector.extract_strided_slice %2 {offsets = [10, 0], sizes = [80, 32], strides = [1, 1]} : vector<110x32xf32> to vector<80x32xf32>
    %23 = arith.truncf %22 : vector<80x32xf32> to vector<80x32xbf16>
    %c3 = arith.constant 3 : index
    %c0_12 = arith.constant 0 : index
    %c0_13 = arith.constant 0 : index
    %24 = vector.load %arg2[%c3, %c0_12, %c0_13] : memref<9x32x32xbf16, #tpu.memory_space<vmem>>, vector<1x32x32xbf16>
    %25 = vector.shape_cast %24 : vector<1x32x32xbf16> to vector<32x32xbf16>
    %cst_14 = arith.constant dense<0.000000e+00> : vector<80x32xf32>
    %26 = tpu.matmul %23, %25, %cst_14 {dimension_numbers = #tpu.dot_dimension_numbers<[1], [0], [0], [1], [0, 0, 1, 1], [], []>} : vector<80x32xbf16>, vector<32x32xbf16>, vector<80x32xf32> -> vector<80x32xf32>
    %27 = arith.addf %21, %26 : vector<80x32xf32>
    %28 = vector.extract_strided_slice %2 {offsets = [11, 0], sizes = [80, 32], strides = [1, 1]} : vector<110x32xf32> to vector<80x32xf32>
    %29 = arith.truncf %28 : vector<80x32xf32> to vector<80x32xbf16>
    %c4 = arith.constant 4 : index
    %c0_15 = arith.constant 0 : index
    %c0_16 = arith.constant 0 : index
    %30 = vector.load %arg2[%c4, %c0_15, %c0_16] : memref<9x32x32xbf16, #tpu.memory_space<vmem>>, vector<1x32x32xbf16>
    %31 = vector.shape_cast %30 : vector<1x32x32xbf16> to vector<32x32xbf16>
    %cst_17 = arith.constant dense<0.000000e+00> : vector<80x32xf32>
    %32 = tpu.matmul %29, %31, %cst_17 {dimension_numbers = #tpu.dot_dimension_numbers<[1], [0], [0], [1], [0, 0, 1, 1], [], []>} : vector<80x32xbf16>, vector<32x32xbf16>, vector<80x32xf32> -> vector<80x32xf32>
    %33 = arith.addf %27, %32 : vector<80x32xf32>
    %34 = vector.extract_strided_slice %2 {offsets = [12, 0], sizes = [80, 32], strides = [1, 1]} : vector<110x32xf32> to vector<80x32xf32>
    %35 = arith.truncf %34 : vector<80x32xf32> to vector<80x32xbf16>
    %c5 = arith.constant 5 : index
    %c0_18 = arith.constant 0 : index
    %c0_19 = arith.constant 0 : index
    %36 = vector.load %arg2[%c5, %c0_18, %c0_19] : memref<9x32x32xbf16, #tpu.memory_space<vmem>>, vector<1x32x32xbf16>
    %37 = vector.shape_cast %36 : vector<1x32x32xbf16> to vector<32x32xbf16>
    %cst_20 = arith.constant dense<0.000000e+00> : vector<80x32xf32>
    %38 = tpu.matmul %35, %37, %cst_20 {dimension_numbers = #tpu.dot_dimension_numbers<[1], [0], [0], [1], [0, 0, 1, 1], [], []>} : vector<80x32xbf16>, vector<32x32xbf16>, vector<80x32xf32> -> vector<80x32xf32>
    %39 = arith.addf %33, %38 : vector<80x32xf32>
    %40 = vector.extract_strided_slice %2 {offsets = [20, 0], sizes = [80, 32], strides = [1, 1]} : vector<110x32xf32> to vector<80x32xf32>
    %41 = arith.truncf %40 : vector<80x32xf32> to vector<80x32xbf16>
    %c6 = arith.constant 6 : index
    %c0_21 = arith.constant 0 : index
    %c0_22 = arith.constant 0 : index
    %42 = vector.load %arg2[%c6, %c0_21, %c0_22] : memref<9x32x32xbf16, #tpu.memory_space<vmem>>, vector<1x32x32xbf16>
    %43 = vector.shape_cast %42 : vector<1x32x32xbf16> to vector<32x32xbf16>
    %cst_23 = arith.constant dense<0.000000e+00> : vector<80x32xf32>
    %44 = tpu.matmul %41, %43, %cst_23 {dimension_numbers = #tpu.dot_dimension_numbers<[1], [0], [0], [1], [0, 0, 1, 1], [], []>} : vector<80x32xbf16>, vector<32x32xbf16>, vector<80x32xf32> -> vector<80x32xf32>
    %45 = arith.addf %39, %44 : vector<80x32xf32>
    %46 = vector.extract_strided_slice %2 {offsets = [21, 0], sizes = [80, 32], strides = [1, 1]} : vector<110x32xf32> to vector<80x32xf32>
    %47 = arith.truncf %46 : vector<80x32xf32> to vector<80x32xbf16>
    %c7 = arith.constant 7 : index
    %c0_24 = arith.constant 0 : index
    %c0_25 = arith.constant 0 : index
    %48 = vector.load %arg2[%c7, %c0_24, %c0_25] : memref<9x32x32xbf16, #tpu.memory_space<vmem>>, vector<1x32x32xbf16>
    %49 = vector.shape_cast %48 : vector<1x32x32xbf16> to vector<32x32xbf16>
    %cst_26 = arith.constant dense<0.000000e+00> : vector<80x32xf32>
    %50 = tpu.matmul %47, %49, %cst_26 {dimension_numbers = #tpu.dot_dimension_numbers<[1], [0], [0], [1], [0, 0, 1, 1], [], []>} : vector<80x32xbf16>, vector<32x32xbf16>, vector<80x32xf32> -> vector<80x32xf32>
    %51 = arith.addf %45, %50 : vector<80x32xf32>
    %52 = vector.extract_strided_slice %2 {offsets = [22, 0], sizes = [80, 32], strides = [1, 1]} : vector<110x32xf32> to vector<80x32xf32>
    %53 = arith.truncf %52 : vector<80x32xf32> to vector<80x32xbf16>
    %c8 = arith.constant 8 : index
    %c0_27 = arith.constant 0 : index
    %c0_28 = arith.constant 0 : index
    %54 = vector.load %arg2[%c8, %c0_27, %c0_28] : memref<9x32x32xbf16, #tpu.memory_space<vmem>>, vector<1x32x32xbf16>
    %55 = vector.shape_cast %54 : vector<1x32x32xbf16> to vector<32x32xbf16>
    %cst_29 = arith.constant dense<0.000000e+00> : vector<80x32xf32>
    %56 = tpu.matmul %53, %55, %cst_29 {dimension_numbers = #tpu.dot_dimension_numbers<[1], [0], [0], [1], [0, 0, 1, 1], [], []>} : vector<80x32xbf16>, vector<32x32xbf16>, vector<80x32xf32> -> vector<80x32xf32>
    %57 = arith.addf %51, %56 : vector<80x32xf32>
    %c0_30 = arith.constant 0 : index
    %c0_31 = arith.constant 0 : index
    %58 = vector.load %arg3[%c0_30, %c0_31] : memref<1x32xf32, #tpu.memory_space<vmem>>, vector<1x32xf32>
    %59 = vector.broadcast %58 : vector<1x32xf32> to vector<80x32xf32>
    %60 = arith.addf %57, %59 : vector<80x32xf32>
    %cst_32 = arith.constant 0.000000e+00 : f32
    %61 = vector.broadcast %cst_32 : f32 to vector<80x32xf32>
    %62 = arith.cmpf oge, %60, %61 : vector<80x32xf32>
    %cst_33 = arith.constant 2.000000e-01 : f32
    %63 = vector.broadcast %cst_33 : f32 to vector<80x32xf32>
    %64 = arith.mulf %63, %60 : vector<80x32xf32>
    %65 = arith.select %62, %60, %64 : vector<80x32xi1>, vector<80x32xf32>
    %66 = vector.extract_strided_slice %65 {offsets = [0, 0], sizes = [8, 32], strides = [1, 1]} : vector<80x32xf32> to vector<8x32xf32>
    %67 = arith.truncf %66 : vector<8x32xf32> to vector<8x32xbf16>
    %c0_34 = arith.constant 0 : index
    %c0_35 = arith.constant 0 : index
    %c0_36 = arith.constant 0 : index
    %68 = vector.load %arg4[%c0_34, %c0_35, %c0_36] : memref<1x64x32xbf16, #tpu.memory_space<vmem>>, vector<1x8x32xbf16>
    %69 = vector.shape_cast %68 : vector<1x8x32xbf16> to vector<8x32xbf16>
    %70 = vector.shape_cast %67 : vector<8x32xbf16> to vector<1x8x32xbf16>
    tpu.vector_store %arg4[%c0_34, %c0_35, %c0_36], %70 {strides = array<i32>} : memref<1x64x32xbf16, #tpu.memory_space<vmem>>, vector<1x8x32xbf16>,
    %71 = vector.extract_strided_slice %65 {offsets = [10, 0], sizes = [8, 32], strides = [1, 1]} : vector<80x32xf32> to vector<8x32xf32>
    %72 = arith.truncf %71 : vector<8x32xf32> to vector<8x32xbf16>
    %c0_37 = arith.constant 0 : index
    %c8_38 = arith.constant 8 : index
    %c0_39 = arith.constant 0 : index
    %73 = vector.load %arg4[%c0_37, %c8_38, %c0_39] : memref<1x64x32xbf16, #tpu.memory_space<vmem>>, vector<1x8x32xbf16>
    %74 = vector.shape_cast %73 : vector<1x8x32xbf16> to vector<8x32xbf16>
    %75 = vector.shape_cast %72 : vector<8x32xbf16> to vector<1x8x32xbf16>
    tpu.vector_store %arg4[%c0_37, %c8_38, %c0_39], %75 {strides = array<i32>} : memref<1x64x32xbf16, #tpu.memory_space<vmem>>, vector<1x8x32xbf16>,
    %76 = vector.extract_strided_slice %65 {offsets = [20, 0], sizes = [8, 32], strides = [1, 1]} : vector<80x32xf32> to vector<8x32xf32>
    %77 = arith.truncf %76 : vector<8x32xf32> to vector<8x32xbf16>
    %c0_40 = arith.constant 0 : index
    %c16 = arith.constant 16 : index
    %c0_41 = arith.constant 0 : index
    %78 = vector.load %arg4[%c0_40, %c16, %c0_41] : memref<1x64x32xbf16, #tpu.memory_space<vmem>>, vector<1x8x32xbf16>
    %79 = vector.shape_cast %78 : vector<1x8x32xbf16> to vector<8x32xbf16>
    %80 = vector.shape_cast %77 : vector<8x32xbf16> to vector<1x8x32xbf16>
    tpu.vector_store %arg4[%c0_40, %c16, %c0_41], %80 {strides = array<i32>} : memref<1x64x32xbf16, #tpu.memory_space<vmem>>, vector<1x8x32xbf16>,
    %81 = vector.extract_strided_slice %65 {offsets = [30, 0], sizes = [8, 32], strides = [1, 1]} : vector<80x32xf32> to vector<8x32xf32>
    %82 = arith.truncf %81 : vector<8x32xf32> to vector<8x32xbf16>
    %c0_42 = arith.constant 0 : index
    %c24 = arith.constant 24 : index
    %c0_43 = arith.constant 0 : index
    %83 = vector.load %arg4[%c0_42, %c24, %c0_43] : memref<1x64x32xbf16, #tpu.memory_space<vmem>>, vector<1x8x32xbf16>
    %84 = vector.shape_cast %83 : vector<1x8x32xbf16> to vector<8x32xbf16>
    %85 = vector.shape_cast %82 : vector<8x32xbf16> to vector<1x8x32xbf16>
    tpu.vector_store %arg4[%c0_42, %c24, %c0_43], %85 {strides = array<i32>} : memref<1x64x32xbf16, #tpu.memory_space<vmem>>, vector<1x8x32xbf16>,
    %86 = vector.extract_strided_slice %65 {offsets = [40, 0], sizes = [8, 32], strides = [1, 1]} : vector<80x32xf32> to vector<8x32xf32>
    %87 = arith.truncf %86 : vector<8x32xf32> to vector<8x32xbf16>
    %c0_44 = arith.constant 0 : index
    %c32 = arith.constant 32 : index
    %c0_45 = arith.constant 0 : index
    %88 = vector.load %arg4[%c0_44, %c32, %c0_45] : memref<1x64x32xbf16, #tpu.memory_space<vmem>>, vector<1x8x32xbf16>
    %89 = vector.shape_cast %88 : vector<1x8x32xbf16> to vector<8x32xbf16>
    %90 = vector.shape_cast %87 : vector<8x32xbf16> to vector<1x8x32xbf16>
    tpu.vector_store %arg4[%c0_44, %c32, %c0_45], %90 {strides = array<i32>} : memref<1x64x32xbf16, #tpu.memory_space<vmem>>, vector<1x8x32xbf16>,
    %91 = vector.extract_strided_slice %65 {offsets = [50, 0], sizes = [8, 32], strides = [1, 1]} : vector<80x32xf32> to vector<8x32xf32>
    %92 = arith.truncf %91 : vector<8x32xf32> to vector<8x32xbf16>
    %c0_46 = arith.constant 0 : index
    %c40 = arith.constant 40 : index
    %c0_47 = arith.constant 0 : index
    %93 = vector.load %arg4[%c0_46, %c40, %c0_47] : memref<1x64x32xbf16, #tpu.memory_space<vmem>>, vector<1x8x32xbf16>
    %94 = vector.shape_cast %93 : vector<1x8x32xbf16> to vector<8x32xbf16>
    %95 = vector.shape_cast %92 : vector<8x32xbf16> to vector<1x8x32xbf16>
    tpu.vector_store %arg4[%c0_46, %c40, %c0_47], %95 {strides = array<i32>} : memref<1x64x32xbf16, #tpu.memory_space<vmem>>, vector<1x8x32xbf16>,
    %96 = vector.extract_strided_slice %65 {offsets = [60, 0], sizes = [8, 32], strides = [1, 1]} : vector<80x32xf32> to vector<8x32xf32>
    %97 = arith.truncf %96 : vector<8x32xf32> to vector<8x32xbf16>
    %c0_48 = arith.constant 0 : index
    %c48 = arith.constant 48 : index
    %c0_49 = arith.constant 0 : index
    %98 = vector.load %arg4[%c0_48, %c48, %c0_49] : memref<1x64x32xbf16, #tpu.memory_space<vmem>>, vector<1x8x32xbf16>
    %99 = vector.shape_cast %98 : vector<1x8x32xbf16> to vector<8x32xbf16>
    %100 = vector.shape_cast %97 : vector<8x32xbf16> to vector<1x8x32xbf16>
    tpu.vector_store %arg4[%c0_48, %c48, %c0_49], %100 {strides = array<i32>} : memref<1x64x32xbf16, #tpu.memory_space<vmem>>, vector<1x8x32xbf16>,
    %101 = vector.extract_strided_slice %65 {offsets = [70, 0], sizes = [8, 32], strides = [1, 1]} : vector<80x32xf32> to vector<8x32xf32>
    %102 = arith.truncf %101 : vector<8x32xf32> to vector<8x32xbf16>
    %c0_50 = arith.constant 0 : index
    %c56 = arith.constant 56 : index
    %c0_51 = arith.constant 0 : index
    %103 = vector.load %arg4[%c0_50, %c56, %c0_51] : memref<1x64x32xbf16, #tpu.memory_space<vmem>>, vector<1x8x32xbf16>
    %104 = vector.shape_cast %103 : vector<1x8x32xbf16> to vector<8x32xbf16>
    %105 = vector.shape_cast %102 : vector<8x32xbf16> to vector<1x8x32xbf16>
    tpu.vector_store %arg4[%c0_50, %c56, %c0_51], %105 {strides = array<i32>} : memref<1x64x32xbf16, #tpu.memory_space<vmem>>, vector<1x8x32xbf16>,
    return
  }
  func.func @transform_0(%arg0: i32) -> (i32, i32, i32) {
    %c0_i32 = arith.constant 0 : i32
    %c0_i32_0 = arith.constant 0 : i32
    %c0_i32_1 = arith.constant 0 : i32
    return %arg0, %c0_i32, %c0_i32_0 : i32, i32, i32
  }
  func.func @transform_1(%arg0: i32) -> (i32, i32, i32) {
    %c0_i32 = arith.constant 0 : i32
    %c0_i32_0 = arith.constant 0 : i32
    %c0_i32_1 = arith.constant 0 : i32
    %c0_i32_2 = arith.constant 0 : i32
    return %c0_i32, %c0_i32_0, %c0_i32_1 : i32, i32, i32
  }
  func.func @transform_2(%arg0: i32) -> (i32, i32) {
    %c0_i32 = arith.constant 0 : i32
    %c0_i32_0 = arith.constant 0 : i32
    %c0_i32_1 = arith.constant 0 : i32
    return %c0_i32, %c0_i32_0 : i32, i32
  }
  func.func @transform_3(%arg0: i32) -> (i32, i32, i32) {
    %c0_i32 = arith.constant 0 : i32
    %c0_i32_0 = arith.constant 0 : i32
    %c0_i32_1 = arith.constant 0 : i32
    return %arg0, %c0_i32, %c0_i32_0 : i32, i32, i32
  }
}

module attributes {stable_mosaic.version = 11 : i64} {
  func.func @_resdown_kernel(%arg0: i32, %arg1: memref<1x42x128xbf16, #tpu.memory_space<vmem>>, %arg2: memref<1x30x128xbf16, #tpu.memory_space<vmem>>, %arg3: memref<9x128x32xbf16, #tpu.memory_space<vmem>>, %arg4: memref<4x128x32xbf16, #tpu.memory_space<vmem>>, %arg5: memref<1x32xf32, #tpu.memory_space<vmem>>, %arg6: memref<1x16x32xbf16, #tpu.memory_space<vmem>>) attributes {dimension_semantics = [#tpu.dimension_semantics<parallel>], iteration_bounds = array<i64: 2>, scalar_prefetch = 0 : i64, scratch_operands = 0 : i64, tpu.core_type = #tpu.core_type<tc>, window_params = [{transform_indices = @transform_0, window_bounds = array<i64: 1, 42, 128>}, {transform_indices = @transform_1, window_bounds = array<i64: 1, 30, 128>}, {pipeline_mode = #tpu.pipeline_mode<synchronous>, transform_indices = @transform_2, window_bounds = array<i64: 9, 128, 32>}, {pipeline_mode = #tpu.pipeline_mode<synchronous>, transform_indices = @transform_3, window_bounds = array<i64: 4, 128, 32>}, {pipeline_mode = #tpu.pipeline_mode<synchronous>, transform_indices = @transform_4, window_bounds = array<i64: 1, 32>}, {transform_indices = @transform_5, window_bounds = array<i64: 1, 16, 32>}]} {
    %c0 = arith.constant 0 : index
    %c0_0 = arith.constant 0 : index
    %c0_1 = arith.constant 0 : index
    %0 = vector.load %arg1[%c0, %c0_0, %c0_1] : memref<1x42x128xbf16, #tpu.memory_space<vmem>>, vector<1x42x128xbf16>
    %1 = vector.shape_cast %0 : vector<1x42x128xbf16> to vector<42x128xbf16>
    %2 = arith.extf %1 : vector<42x128xbf16> to vector<42x128xf32>
    %c0_2 = arith.constant 0 : index
    %c0_3 = arith.constant 0 : index
    %c0_4 = arith.constant 0 : index
    %3 = vector.load %arg2[%c0_2, %c0_3, %c0_4] : memref<1x30x128xbf16, #tpu.memory_space<vmem>>, vector<1x30x128xbf16>
    %4 = vector.shape_cast %3 : vector<1x30x128xbf16> to vector<30x128xbf16>
    %5 = arith.extf %4 : vector<30x128xbf16> to vector<30x128xf32>
    %cst = arith.constant 0.000000e+00 : f32
    %6 = vector.broadcast %cst : f32 to vector<24x32xf32>
    %7 = vector.extract_strided_slice %2 {offsets = [0, 0], sizes = [24, 128], strides = [1, 1]} : vector<42x128xf32> to vector<24x128xf32>
    %8 = arith.truncf %7 : vector<24x128xf32> to vector<24x128xbf16>
    %c0_5 = arith.constant 0 : index
    %c0_6 = arith.constant 0 : index
    %c0_7 = arith.constant 0 : index
    %9 = vector.load %arg3[%c0_5, %c0_6, %c0_7] : memref<9x128x32xbf16, #tpu.memory_space<vmem>>, vector<1x128x32xbf16>
    %10 = vector.shape_cast %9 : vector<1x128x32xbf16> to vector<128x32xbf16>
    %cst_8 = arith.constant dense<0.000000e+00> : vector<24x32xf32>
    %11 = tpu.matmul %8, %10, %cst_8 {dimension_numbers = #tpu.dot_dimension_numbers<[1], [0], [0], [1], [0, 0, 1, 1], [], []>} : vector<24x128xbf16>, vector<128x32xbf16>, vector<24x32xf32> -> vector<24x32xf32>
    %12 = arith.addf %6, %11 : vector<24x32xf32>
    %13 = vector.extract_strided_slice %2 {offsets = [1, 0], sizes = [24, 128], strides = [1, 1]} : vector<42x128xf32> to vector<24x128xf32>
    %14 = arith.truncf %13 : vector<24x128xf32> to vector<24x128xbf16>
    %c1 = arith.constant 1 : index
    %c0_9 = arith.constant 0 : index
    %c0_10 = arith.constant 0 : index
    %15 = vector.load %arg3[%c1, %c0_9, %c0_10] : memref<9x128x32xbf16, #tpu.memory_space<vmem>>, vector<1x128x32xbf16>
    %16 = vector.shape_cast %15 : vector<1x128x32xbf16> to vector<128x32xbf16>
    %cst_11 = arith.constant dense<0.000000e+00> : vector<24x32xf32>
    %17 = tpu.matmul %14, %16, %cst_11 {dimension_numbers = #tpu.dot_dimension_numbers<[1], [0], [0], [1], [0, 0, 1, 1], [], []>} : vector<24x128xbf16>, vector<128x32xbf16>, vector<24x32xf32> -> vector<24x32xf32>
    %18 = arith.addf %12, %17 : vector<24x32xf32>
    %19 = vector.extract_strided_slice %2 {offsets = [2, 0], sizes = [24, 128], strides = [1, 1]} : vector<42x128xf32> to vector<24x128xf32>
    %20 = arith.truncf %19 : vector<24x128xf32> to vector<24x128xbf16>
    %c2 = arith.constant 2 : index
    %c0_12 = arith.constant 0 : index
    %c0_13 = arith.constant 0 : index
    %21 = vector.load %arg3[%c2, %c0_12, %c0_13] : memref<9x128x32xbf16, #tpu.memory_space<vmem>>, vector<1x128x32xbf16>
    %22 = vector.shape_cast %21 : vector<1x128x32xbf16> to vector<128x32xbf16>
    %cst_14 = arith.constant dense<0.000000e+00> : vector<24x32xf32>
    %23 = tpu.matmul %20, %22, %cst_14 {dimension_numbers = #tpu.dot_dimension_numbers<[1], [0], [0], [1], [0, 0, 1, 1], [], []>} : vector<24x128xbf16>, vector<128x32xbf16>, vector<24x32xf32> -> vector<24x32xf32>
    %24 = arith.addf %18, %23 : vector<24x32xf32>
    %25 = vector.extract_strided_slice %2 {offsets = [6, 0], sizes = [24, 128], strides = [1, 1]} : vector<42x128xf32> to vector<24x128xf32>
    %26 = arith.truncf %25 : vector<24x128xf32> to vector<24x128xbf16>
    %c3 = arith.constant 3 : index
    %c0_15 = arith.constant 0 : index
    %c0_16 = arith.constant 0 : index
    %27 = vector.load %arg3[%c3, %c0_15, %c0_16] : memref<9x128x32xbf16, #tpu.memory_space<vmem>>, vector<1x128x32xbf16>
    %28 = vector.shape_cast %27 : vector<1x128x32xbf16> to vector<128x32xbf16>
    %cst_17 = arith.constant dense<0.000000e+00> : vector<24x32xf32>
    %29 = tpu.matmul %26, %28, %cst_17 {dimension_numbers = #tpu.dot_dimension_numbers<[1], [0], [0], [1], [0, 0, 1, 1], [], []>} : vector<24x128xbf16>, vector<128x32xbf16>, vector<24x32xf32> -> vector<24x32xf32>
    %30 = arith.addf %24, %29 : vector<24x32xf32>
    %31 = vector.extract_strided_slice %2 {offsets = [7, 0], sizes = [24, 128], strides = [1, 1]} : vector<42x128xf32> to vector<24x128xf32>
    %32 = arith.truncf %31 : vector<24x128xf32> to vector<24x128xbf16>
    %c4 = arith.constant 4 : index
    %c0_18 = arith.constant 0 : index
    %c0_19 = arith.constant 0 : index
    %33 = vector.load %arg3[%c4, %c0_18, %c0_19] : memref<9x128x32xbf16, #tpu.memory_space<vmem>>, vector<1x128x32xbf16>
    %34 = vector.shape_cast %33 : vector<1x128x32xbf16> to vector<128x32xbf16>
    %cst_20 = arith.constant dense<0.000000e+00> : vector<24x32xf32>
    %35 = tpu.matmul %32, %34, %cst_20 {dimension_numbers = #tpu.dot_dimension_numbers<[1], [0], [0], [1], [0, 0, 1, 1], [], []>} : vector<24x128xbf16>, vector<128x32xbf16>, vector<24x32xf32> -> vector<24x32xf32>
    %36 = arith.addf %30, %35 : vector<24x32xf32>
    %37 = vector.extract_strided_slice %2 {offsets = [8, 0], sizes = [24, 128], strides = [1, 1]} : vector<42x128xf32> to vector<24x128xf32>
    %38 = arith.truncf %37 : vector<24x128xf32> to vector<24x128xbf16>
    %c5 = arith.constant 5 : index
    %c0_21 = arith.constant 0 : index
    %c0_22 = arith.constant 0 : index
    %39 = vector.load %arg3[%c5, %c0_21, %c0_22] : memref<9x128x32xbf16, #tpu.memory_space<vmem>>, vector<1x128x32xbf16>
    %40 = vector.shape_cast %39 : vector<1x128x32xbf16> to vector<128x32xbf16>
    %cst_23 = arith.constant dense<0.000000e+00> : vector<24x32xf32>
    %41 = tpu.matmul %38, %40, %cst_23 {dimension_numbers = #tpu.dot_dimension_numbers<[1], [0], [0], [1], [0, 0, 1, 1], [], []>} : vector<24x128xbf16>, vector<128x32xbf16>, vector<24x32xf32> -> vector<24x32xf32>
    %42 = arith.addf %36, %41 : vector<24x32xf32>
    %43 = vector.extract_strided_slice %2 {offsets = [12, 0], sizes = [24, 128], strides = [1, 1]} : vector<42x128xf32> to vector<24x128xf32>
    %44 = arith.truncf %43 : vector<24x128xf32> to vector<24x128xbf16>
    %c6 = arith.constant 6 : index
    %c0_24 = arith.constant 0 : index
    %c0_25 = arith.constant 0 : index
    %45 = vector.load %arg3[%c6, %c0_24, %c0_25] : memref<9x128x32xbf16, #tpu.memory_space<vmem>>, vector<1x128x32xbf16>
    %46 = vector.shape_cast %45 : vector<1x128x32xbf16> to vector<128x32xbf16>
    %cst_26 = arith.constant dense<0.000000e+00> : vector<24x32xf32>
    %47 = tpu.matmul %44, %46, %cst_26 {dimension_numbers = #tpu.dot_dimension_numbers<[1], [0], [0], [1], [0, 0, 1, 1], [], []>} : vector<24x128xbf16>, vector<128x32xbf16>, vector<24x32xf32> -> vector<24x32xf32>
    %48 = arith.addf %42, %47 : vector<24x32xf32>
    %49 = vector.extract_strided_slice %2 {offsets = [13, 0], sizes = [24, 128], strides = [1, 1]} : vector<42x128xf32> to vector<24x128xf32>
    %50 = arith.truncf %49 : vector<24x128xf32> to vector<24x128xbf16>
    %c7 = arith.constant 7 : index
    %c0_27 = arith.constant 0 : index
    %c0_28 = arith.constant 0 : index
    %51 = vector.load %arg3[%c7, %c0_27, %c0_28] : memref<9x128x32xbf16, #tpu.memory_space<vmem>>, vector<1x128x32xbf16>
    %52 = vector.shape_cast %51 : vector<1x128x32xbf16> to vector<128x32xbf16>
    %cst_29 = arith.constant dense<0.000000e+00> : vector<24x32xf32>
    %53 = tpu.matmul %50, %52, %cst_29 {dimension_numbers = #tpu.dot_dimension_numbers<[1], [0], [0], [1], [0, 0, 1, 1], [], []>} : vector<24x128xbf16>, vector<128x32xbf16>, vector<24x32xf32> -> vector<24x32xf32>
    %54 = arith.addf %48, %53 : vector<24x32xf32>
    %55 = vector.extract_strided_slice %2 {offsets = [14, 0], sizes = [24, 128], strides = [1, 1]} : vector<42x128xf32> to vector<24x128xf32>
    %56 = arith.truncf %55 : vector<24x128xf32> to vector<24x128xbf16>
    %c8 = arith.constant 8 : index
    %c0_30 = arith.constant 0 : index
    %c0_31 = arith.constant 0 : index
    %57 = vector.load %arg3[%c8, %c0_30, %c0_31] : memref<9x128x32xbf16, #tpu.memory_space<vmem>>, vector<1x128x32xbf16>
    %58 = vector.shape_cast %57 : vector<1x128x32xbf16> to vector<128x32xbf16>
    %cst_32 = arith.constant dense<0.000000e+00> : vector<24x32xf32>
    %59 = tpu.matmul %56, %58, %cst_32 {dimension_numbers = #tpu.dot_dimension_numbers<[1], [0], [0], [1], [0, 0, 1, 1], [], []>} : vector<24x128xbf16>, vector<128x32xbf16>, vector<24x32xf32> -> vector<24x32xf32>
    %60 = arith.addf %54, %59 : vector<24x32xf32>
    %c0_33 = arith.constant 0 : index
    %c0_34 = arith.constant 0 : index
    %61 = vector.load %arg5[%c0_33, %c0_34] : memref<1x32xf32, #tpu.memory_space<vmem>>, vector<1x32xf32>
    %62 = vector.broadcast %61 : vector<1x32xf32> to vector<24x32xf32>
    %63 = arith.addf %60, %62 : vector<24x32xf32>
    %cst_35 = arith.constant 0.000000e+00 : f32
    %64 = vector.broadcast %cst_35 : f32 to vector<24x32xf32>
    %65 = arith.cmpf oge, %63, %64 : vector<24x32xf32>
    %cst_36 = arith.constant 2.000000e-01 : f32
    %66 = vector.broadcast %cst_36 : f32 to vector<24x32xf32>
    %67 = arith.mulf %66, %63 : vector<24x32xf32>
    %68 = arith.select %65, %63, %67 : vector<24x32xi1>, vector<24x32xf32>
    %cst_37 = arith.constant 0.000000e+00 : f32
    %69 = vector.broadcast %cst_37 : f32 to vector<20x32xf32>
    %70 = vector.extract_strided_slice %5 {offsets = [0, 0], sizes = [20, 128], strides = [1, 1]} : vector<30x128xf32> to vector<20x128xf32>
    %71 = arith.truncf %70 : vector<20x128xf32> to vector<20x128xbf16>
    %c0_38 = arith.constant 0 : index
    %c0_39 = arith.constant 0 : index
    %c0_40 = arith.constant 0 : index
    %72 = vector.load %arg4[%c0_38, %c0_39, %c0_40] : memref<4x128x32xbf16, #tpu.memory_space<vmem>>, vector<1x128x32xbf16>
    %73 = vector.shape_cast %72 : vector<1x128x32xbf16> to vector<128x32xbf16>
    %cst_41 = arith.constant dense<0.000000e+00> : vector<20x32xf32>
    %74 = tpu.matmul %71, %73, %cst_41 {dimension_numbers = #tpu.dot_dimension_numbers<[1], [0], [0], [1], [0, 0, 1, 1], [], []>} : vector<20x128xbf16>, vector<128x32xbf16>, vector<20x32xf32> -> vector<20x32xf32>
    %75 = arith.addf %69, %74 : vector<20x32xf32>
    %76 = vector.extract_strided_slice %5 {offsets = [1, 0], sizes = [20, 128], strides = [1, 1]} : vector<30x128xf32> to vector<20x128xf32>
    %77 = arith.truncf %76 : vector<20x128xf32> to vector<20x128xbf16>
    %c1_42 = arith.constant 1 : index
    %c0_43 = arith.constant 0 : index
    %c0_44 = arith.constant 0 : index
    %78 = vector.load %arg4[%c1_42, %c0_43, %c0_44] : memref<4x128x32xbf16, #tpu.memory_space<vmem>>, vector<1x128x32xbf16>
    %79 = vector.shape_cast %78 : vector<1x128x32xbf16> to vector<128x32xbf16>
    %cst_45 = arith.constant dense<0.000000e+00> : vector<20x32xf32>
    %80 = tpu.matmul %77, %79, %cst_45 {dimension_numbers = #tpu.dot_dimension_numbers<[1], [0], [0], [1], [0, 0, 1, 1], [], []>} : vector<20x128xbf16>, vector<128x32xbf16>, vector<20x32xf32> -> vector<20x32xf32>
    %81 = arith.addf %75, %80 : vector<20x32xf32>
    %82 = vector.extract_strided_slice %5 {offsets = [5, 0], sizes = [20, 128], strides = [1, 1]} : vector<30x128xf32> to vector<20x128xf32>
    %83 = arith.truncf %82 : vector<20x128xf32> to vector<20x128xbf16>
    %c2_46 = arith.constant 2 : index
    %c0_47 = arith.constant 0 : index
    %c0_48 = arith.constant 0 : index
    %84 = vector.load %arg4[%c2_46, %c0_47, %c0_48] : memref<4x128x32xbf16, #tpu.memory_space<vmem>>, vector<1x128x32xbf16>
    %85 = vector.shape_cast %84 : vector<1x128x32xbf16> to vector<128x32xbf16>
    %cst_49 = arith.constant dense<0.000000e+00> : vector<20x32xf32>
    %86 = tpu.matmul %83, %85, %cst_49 {dimension_numbers = #tpu.dot_dimension_numbers<[1], [0], [0], [1], [0, 0, 1, 1], [], []>} : vector<20x128xbf16>, vector<128x32xbf16>, vector<20x32xf32> -> vector<20x32xf32>
    %87 = arith.addf %81, %86 : vector<20x32xf32>
    %88 = vector.extract_strided_slice %5 {offsets = [6, 0], sizes = [20, 128], strides = [1, 1]} : vector<30x128xf32> to vector<20x128xf32>
    %89 = arith.truncf %88 : vector<20x128xf32> to vector<20x128xbf16>
    %c3_50 = arith.constant 3 : index
    %c0_51 = arith.constant 0 : index
    %c0_52 = arith.constant 0 : index
    %90 = vector.load %arg4[%c3_50, %c0_51, %c0_52] : memref<4x128x32xbf16, #tpu.memory_space<vmem>>, vector<1x128x32xbf16>
    %91 = vector.shape_cast %90 : vector<1x128x32xbf16> to vector<128x32xbf16>
    %cst_53 = arith.constant dense<0.000000e+00> : vector<20x32xf32>
    %92 = tpu.matmul %89, %91, %cst_53 {dimension_numbers = #tpu.dot_dimension_numbers<[1], [0], [0], [1], [0, 0, 1, 1], [], []>} : vector<20x128xbf16>, vector<128x32xbf16>, vector<20x32xf32> -> vector<20x32xf32>
    %93 = arith.addf %87, %92 : vector<20x32xf32>
    %94 = vector.extract_strided_slice %68 {offsets = [0, 0], sizes = [4, 32], strides = [1, 1]} : vector<24x32xf32> to vector<4x32xf32>
    %95 = vector.extract_strided_slice %93 {offsets = [0, 0], sizes = [4, 32], strides = [1, 1]} : vector<20x32xf32> to vector<4x32xf32>
    %96 = arith.addf %94, %95 : vector<4x32xf32>
    %cst_54 = arith.constant 0.707106769 : f32
    %97 = vector.broadcast %cst_54 : f32 to vector<4x32xf32>
    %98 = arith.mulf %96, %97 : vector<4x32xf32>
    %99 = arith.truncf %98 : vector<4x32xf32> to vector<4x32xbf16>
    %c0_55 = arith.constant 0 : index
    %c0_56 = arith.constant 0 : index
    %c0_57 = arith.constant 0 : index
    %100 = vector.load %arg6[%c0_55, %c0_56, %c0_57] : memref<1x16x32xbf16, #tpu.memory_space<vmem>>, vector<1x4x32xbf16>
    %101 = vector.shape_cast %100 : vector<1x4x32xbf16> to vector<4x32xbf16>
    %102 = vector.shape_cast %99 : vector<4x32xbf16> to vector<1x4x32xbf16>
    tpu.vector_store %arg6[%c0_55, %c0_56, %c0_57], %102 {strides = array<i32>} : memref<1x16x32xbf16, #tpu.memory_space<vmem>>, vector<1x4x32xbf16>,
    %103 = vector.extract_strided_slice %68 {offsets = [6, 0], sizes = [4, 32], strides = [1, 1]} : vector<24x32xf32> to vector<4x32xf32>
    %104 = vector.extract_strided_slice %93 {offsets = [5, 0], sizes = [4, 32], strides = [1, 1]} : vector<20x32xf32> to vector<4x32xf32>
    %105 = arith.addf %103, %104 : vector<4x32xf32>
    %cst_58 = arith.constant 0.707106769 : f32
    %106 = vector.broadcast %cst_58 : f32 to vector<4x32xf32>
    %107 = arith.mulf %105, %106 : vector<4x32xf32>
    %108 = arith.truncf %107 : vector<4x32xf32> to vector<4x32xbf16>
    %c0_59 = arith.constant 0 : index
    %c4_60 = arith.constant 4 : index
    %c0_61 = arith.constant 0 : index
    %109 = vector.load %arg6[%c0_59, %c4_60, %c0_61] : memref<1x16x32xbf16, #tpu.memory_space<vmem>>, vector<1x4x32xbf16>
    %110 = vector.shape_cast %109 : vector<1x4x32xbf16> to vector<4x32xbf16>
    %111 = vector.shape_cast %108 : vector<4x32xbf16> to vector<1x4x32xbf16>
    tpu.vector_store %arg6[%c0_59, %c4_60, %c0_61], %111 {strides = array<i32>} : memref<1x16x32xbf16, #tpu.memory_space<vmem>>, vector<1x4x32xbf16>,
    %112 = vector.extract_strided_slice %68 {offsets = [12, 0], sizes = [4, 32], strides = [1, 1]} : vector<24x32xf32> to vector<4x32xf32>
    %113 = vector.extract_strided_slice %93 {offsets = [10, 0], sizes = [4, 32], strides = [1, 1]} : vector<20x32xf32> to vector<4x32xf32>
    %114 = arith.addf %112, %113 : vector<4x32xf32>
    %cst_62 = arith.constant 0.707106769 : f32
    %115 = vector.broadcast %cst_62 : f32 to vector<4x32xf32>
    %116 = arith.mulf %114, %115 : vector<4x32xf32>
    %117 = arith.truncf %116 : vector<4x32xf32> to vector<4x32xbf16>
    %c0_63 = arith.constant 0 : index
    %c8_64 = arith.constant 8 : index
    %c0_65 = arith.constant 0 : index
    %118 = vector.load %arg6[%c0_63, %c8_64, %c0_65] : memref<1x16x32xbf16, #tpu.memory_space<vmem>>, vector<1x4x32xbf16>
    %119 = vector.shape_cast %118 : vector<1x4x32xbf16> to vector<4x32xbf16>
    %120 = vector.shape_cast %117 : vector<4x32xbf16> to vector<1x4x32xbf16>
    tpu.vector_store %arg6[%c0_63, %c8_64, %c0_65], %120 {strides = array<i32>} : memref<1x16x32xbf16, #tpu.memory_space<vmem>>, vector<1x4x32xbf16>,
    %121 = vector.extract_strided_slice %68 {offsets = [18, 0], sizes = [4, 32], strides = [1, 1]} : vector<24x32xf32> to vector<4x32xf32>
    %122 = vector.extract_strided_slice %93 {offsets = [15, 0], sizes = [4, 32], strides = [1, 1]} : vector<20x32xf32> to vector<4x32xf32>
    %123 = arith.addf %121, %122 : vector<4x32xf32>
    %cst_66 = arith.constant 0.707106769 : f32
    %124 = vector.broadcast %cst_66 : f32 to vector<4x32xf32>
    %125 = arith.mulf %123, %124 : vector<4x32xf32>
    %126 = arith.truncf %125 : vector<4x32xf32> to vector<4x32xbf16>
    %c0_67 = arith.constant 0 : index
    %c12 = arith.constant 12 : index
    %c0_68 = arith.constant 0 : index
    %127 = vector.load %arg6[%c0_67, %c12, %c0_68] : memref<1x16x32xbf16, #tpu.memory_space<vmem>>, vector<1x4x32xbf16>
    %128 = vector.shape_cast %127 : vector<1x4x32xbf16> to vector<4x32xbf16>
    %129 = vector.shape_cast %126 : vector<4x32xbf16> to vector<1x4x32xbf16>
    tpu.vector_store %arg6[%c0_67, %c12, %c0_68], %129 {strides = array<i32>} : memref<1x16x32xbf16, #tpu.memory_space<vmem>>, vector<1x4x32xbf16>,
    return
  }
  func.func @transform_0(%arg0: i32) -> (i32, i32, i32) {
    %c0_i32 = arith.constant 0 : i32
    %c0_i32_0 = arith.constant 0 : i32
    %c0_i32_1 = arith.constant 0 : i32
    return %arg0, %c0_i32, %c0_i32_0 : i32, i32, i32
  }
  func.func @transform_1(%arg0: i32) -> (i32, i32, i32) {
    %c0_i32 = arith.constant 0 : i32
    %c0_i32_0 = arith.constant 0 : i32
    %c0_i32_1 = arith.constant 0 : i32
    return %arg0, %c0_i32, %c0_i32_0 : i32, i32, i32
  }
  func.func @transform_2(%arg0: i32) -> (i32, i32, i32) {
    %c0_i32 = arith.constant 0 : i32
    %c0_i32_0 = arith.constant 0 : i32
    %c0_i32_1 = arith.constant 0 : i32
    %c0_i32_2 = arith.constant 0 : i32
    return %c0_i32, %c0_i32_0, %c0_i32_1 : i32, i32, i32
  }
  func.func @transform_3(%arg0: i32) -> (i32, i32, i32) {
    %c0_i32 = arith.constant 0 : i32
    %c0_i32_0 = arith.constant 0 : i32
    %c0_i32_1 = arith.constant 0 : i32
    %c0_i32_2 = arith.constant 0 : i32
    return %c0_i32, %c0_i32_0, %c0_i32_1 : i32, i32, i32
  }
  func.func @transform_4(%arg0: i32) -> (i32, i32) {
    %c0_i32 = arith.constant 0 : i32
    %c0_i32_0 = arith.constant 0 : i32
    %c0_i32_1 = arith.constant 0 : i32
    return %c0_i32, %c0_i32_0 : i32, i32
  }
  func.func @transform_5(%arg0: i32) -> (i32, i32, i32) {
    %c0_i32 = arith.constant 0 : i32
    %c0_i32_0 = arith.constant 0 : i32
    %c0_i32_1 = arith.constant 0 : i32
    return %arg0, %c0_i32, %c0_i32_0 : i32, i32, i32
  }
}

module attributes {stable_mosaic.version = 11 : i64} {
  func.func @_conv_frame_kernel(%arg0: i32, %arg1: memref<1x42x33xbf16, #tpu.memory_space<vmem>>, %arg2: memref<9x33x32xbf16, #tpu.memory_space<vmem>>, %arg3: memref<1x32xf32, #tpu.memory_space<vmem>>, %arg4: memref<1x16x32xbf16, #tpu.memory_space<vmem>>) attributes {dimension_semantics = [#tpu.dimension_semantics<parallel>], iteration_bounds = array<i64: 2>, scalar_prefetch = 0 : i64, scratch_operands = 0 : i64, tpu.core_type = #tpu.core_type<tc>, window_params = [{transform_indices = @transform_0, window_bounds = array<i64: 1, 42, 33>}, {pipeline_mode = #tpu.pipeline_mode<synchronous>, transform_indices = @transform_1, window_bounds = array<i64: 9, 33, 32>}, {pipeline_mode = #tpu.pipeline_mode<synchronous>, transform_indices = @transform_2, window_bounds = array<i64: 1, 32>}, {transform_indices = @transform_3, window_bounds = array<i64: 1, 16, 32>}]} {
    %c0 = arith.constant 0 : index
    %c0_0 = arith.constant 0 : index
    %c0_1 = arith.constant 0 : index
    %0 = vector.load %arg1[%c0, %c0_0, %c0_1] : memref<1x42x33xbf16, #tpu.memory_space<vmem>>, vector<1x42x33xbf16>
    %1 = vector.shape_cast %0 : vector<1x42x33xbf16> to vector<42x33xbf16>
    %2 = arith.extf %1 : vector<42x33xbf16> to vector<42x33xf32>
    %cst = arith.constant 0.000000e+00 : f32
    %3 = vector.broadcast %cst : f32 to vector<24x32xf32>
    %4 = vector.extract_strided_slice %2 {offsets = [0, 0], sizes = [24, 33], strides = [1, 1]} : vector<42x33xf32> to vector<24x33xf32>
    %5 = arith.truncf %4 : vector<24x33xf32> to vector<24x33xbf16>
    %c0_2 = arith.constant 0 : index
    %c0_3 = arith.constant 0 : index
    %c0_4 = arith.constant 0 : index
    %6 = vector.load %arg2[%c0_2, %c0_3, %c0_4] : memref<9x33x32xbf16, #tpu.memory_space<vmem>>, vector<1x33x32xbf16>
    %7 = vector.shape_cast %6 : vector<1x33x32xbf16> to vector<33x32xbf16>
    %cst_5 = arith.constant dense<0.000000e+00> : vector<24x32xf32>
    %8 = tpu.matmul %5, %7, %cst_5 {dimension_numbers = #tpu.dot_dimension_numbers<[1], [0], [0], [1], [0, 0, 1, 1], [], []>} : vector<24x33xbf16>, vector<33x32xbf16>, vector<24x32xf32> -> vector<24x32xf32>
    %9 = arith.addf %3, %8 : vector<24x32xf32>
    %10 = vector.extract_strided_slice %2 {offsets = [1, 0], sizes = [24, 33], strides = [1, 1]} : vector<42x33xf32> to vector<24x33xf32>
    %11 = arith.truncf %10 : vector<24x33xf32> to vector<24x33xbf16>
    %c1 = arith.constant 1 : index
    %c0_6 = arith.constant 0 : index
    %c0_7 = arith.constant 0 : index
    %12 = vector.load %arg2[%c1, %c0_6, %c0_7] : memref<9x33x32xbf16, #tpu.memory_space<vmem>>, vector<1x33x32xbf16>
    %13 = vector.shape_cast %12 : vector<1x33x32xbf16> to vector<33x32xbf16>
    %cst_8 = arith.constant dense<0.000000e+00> : vector<24x32xf32>
    %14 = tpu.matmul %11, %13, %cst_8 {dimension_numbers = #tpu.dot_dimension_numbers<[1], [0], [0], [1], [0, 0, 1, 1], [], []>} : vector<24x33xbf16>, vector<33x32xbf16>, vector<24x32xf32> -> vector<24x32xf32>
    %15 = arith.addf %9, %14 : vector<24x32xf32>
    %16 = vector.extract_strided_slice %2 {offsets = [2, 0], sizes = [24, 33], strides = [1, 1]} : vector<42x33xf32> to vector<24x33xf32>
    %17 = arith.truncf %16 : vector<24x33xf32> to vector<24x33xbf16>
    %c2 = arith.constant 2 : index
    %c0_9 = arith.constant 0 : index
    %c0_10 = arith.constant 0 : index
    %18 = vector.load %arg2[%c2, %c0_9, %c0_10] : memref<9x33x32xbf16, #tpu.memory_space<vmem>>, vector<1x33x32xbf16>
    %19 = vector.shape_cast %18 : vector<1x33x32xbf16> to vector<33x32xbf16>
    %cst_11 = arith.constant dense<0.000000e+00> : vector<24x32xf32>
    %20 = tpu.matmul %17, %19, %cst_11 {dimension_numbers = #tpu.dot_dimension_numbers<[1], [0], [0], [1], [0, 0, 1, 1], [], []>} : vector<24x33xbf16>, vector<33x32xbf16>, vector<24x32xf32> -> vector<24x32xf32>
    %21 = arith.addf %15, %20 : vector<24x32xf32>
    %22 = vector.extract_strided_slice %2 {offsets = [6, 0], sizes = [24, 33], strides = [1, 1]} : vector<42x33xf32> to vector<24x33xf32>
    %23 = arith.truncf %22 : vector<24x33xf32> to vector<24x33xbf16>
    %c3 = arith.constant 3 : index
    %c0_12 = arith.constant 0 : index
    %c0_13 = arith.constant 0 : index
    %24 = vector.load %arg2[%c3, %c0_12, %c0_13] : memref<9x33x32xbf16, #tpu.memory_space<vmem>>, vector<1x33x32xbf16>
    %25 = vector.shape_cast %24 : vector<1x33x32xbf16> to vector<33x32xbf16>
    %cst_14 = arith.constant dense<0.000000e+00> : vector<24x32xf32>
    %26 = tpu.matmul %23, %25, %cst_14 {dimension_numbers = #tpu.dot_dimension_numbers<[1], [0], [0], [1], [0, 0, 1, 1], [], []>} : vector<24x33xbf16>, vector<33x32xbf16>, vector<24x32xf32> -> vector<24x32xf32>
    %27 = arith.addf %21, %26 : vector<24x32xf32>
    %28 = vector.extract_strided_slice %2 {offsets = [7, 0], sizes = [24, 33], strides = [1, 1]} : vector<42x33xf32> to vector<24x33xf32>
    %29 = arith.truncf %28 : vector<24x33xf32> to vector<24x33xbf16>
    %c4 = arith.constant 4 : index
    %c0_15 = arith.constant 0 : index
    %c0_16 = arith.constant 0 : index
    %30 = vector.load %arg2[%c4, %c0_15, %c0_16] : memref<9x33x32xbf16, #tpu.memory_space<vmem>>, vector<1x33x32xbf16>
    %31 = vector.shape_cast %30 : vector<1x33x32xbf16> to vector<33x32xbf16>
    %cst_17 = arith.constant dense<0.000000e+00> : vector<24x32xf32>
    %32 = tpu.matmul %29, %31, %cst_17 {dimension_numbers = #tpu.dot_dimension_numbers<[1], [0], [0], [1], [0, 0, 1, 1], [], []>} : vector<24x33xbf16>, vector<33x32xbf16>, vector<24x32xf32> -> vector<24x32xf32>
    %33 = arith.addf %27, %32 : vector<24x32xf32>
    %34 = vector.extract_strided_slice %2 {offsets = [8, 0], sizes = [24, 33], strides = [1, 1]} : vector<42x33xf32> to vector<24x33xf32>
    %35 = arith.truncf %34 : vector<24x33xf32> to vector<24x33xbf16>
    %c5 = arith.constant 5 : index
    %c0_18 = arith.constant 0 : index
    %c0_19 = arith.constant 0 : index
    %36 = vector.load %arg2[%c5, %c0_18, %c0_19] : memref<9x33x32xbf16, #tpu.memory_space<vmem>>, vector<1x33x32xbf16>
    %37 = vector.shape_cast %36 : vector<1x33x32xbf16> to vector<33x32xbf16>
    %cst_20 = arith.constant dense<0.000000e+00> : vector<24x32xf32>
    %38 = tpu.matmul %35, %37, %cst_20 {dimension_numbers = #tpu.dot_dimension_numbers<[1], [0], [0], [1], [0, 0, 1, 1], [], []>} : vector<24x33xbf16>, vector<33x32xbf16>, vector<24x32xf32> -> vector<24x32xf32>
    %39 = arith.addf %33, %38 : vector<24x32xf32>
    %40 = vector.extract_strided_slice %2 {offsets = [12, 0], sizes = [24, 33], strides = [1, 1]} : vector<42x33xf32> to vector<24x33xf32>
    %41 = arith.truncf %40 : vector<24x33xf32> to vector<24x33xbf16>
    %c6 = arith.constant 6 : index
    %c0_21 = arith.constant 0 : index
    %c0_22 = arith.constant 0 : index
    %42 = vector.load %arg2[%c6, %c0_21, %c0_22] : memref<9x33x32xbf16, #tpu.memory_space<vmem>>, vector<1x33x32xbf16>
    %43 = vector.shape_cast %42 : vector<1x33x32xbf16> to vector<33x32xbf16>
    %cst_23 = arith.constant dense<0.000000e+00> : vector<24x32xf32>
    %44 = tpu.matmul %41, %43, %cst_23 {dimension_numbers = #tpu.dot_dimension_numbers<[1], [0], [0], [1], [0, 0, 1, 1], [], []>} : vector<24x33xbf16>, vector<33x32xbf16>, vector<24x32xf32> -> vector<24x32xf32>
    %45 = arith.addf %39, %44 : vector<24x32xf32>
    %46 = vector.extract_strided_slice %2 {offsets = [13, 0], sizes = [24, 33], strides = [1, 1]} : vector<42x33xf32> to vector<24x33xf32>
    %47 = arith.truncf %46 : vector<24x33xf32> to vector<24x33xbf16>
    %c7 = arith.constant 7 : index
    %c0_24 = arith.constant 0 : index
    %c0_25 = arith.constant 0 : index
    %48 = vector.load %arg2[%c7, %c0_24, %c0_25] : memref<9x33x32xbf16, #tpu.memory_space<vmem>>, vector<1x33x32xbf16>
    %49 = vector.shape_cast %48 : vector<1x33x32xbf16> to vector<33x32xbf16>
    %cst_26 = arith.constant dense<0.000000e+00> : vector<24x32xf32>
    %50 = tpu.matmul %47, %49, %cst_26 {dimension_numbers = #tpu.dot_dimension_numbers<[1], [0], [0], [1], [0, 0, 1, 1], [], []>} : vector<24x33xbf16>, vector<33x32xbf16>, vector<24x32xf32> -> vector<24x32xf32>
    %51 = arith.addf %45, %50 : vector<24x32xf32>
    %52 = vector.extract_strided_slice %2 {offsets = [14, 0], sizes = [24, 33], strides = [1, 1]} : vector<42x33xf32> to vector<24x33xf32>
    %53 = arith.truncf %52 : vector<24x33xf32> to vector<24x33xbf16>
    %c8 = arith.constant 8 : index
    %c0_27 = arith.constant 0 : index
    %c0_28 = arith.constant 0 : index
    %54 = vector.load %arg2[%c8, %c0_27, %c0_28] : memref<9x33x32xbf16, #tpu.memory_space<vmem>>, vector<1x33x32xbf16>
    %55 = vector.shape_cast %54 : vector<1x33x32xbf16> to vector<33x32xbf16>
    %cst_29 = arith.constant dense<0.000000e+00> : vector<24x32xf32>
    %56 = tpu.matmul %53, %55, %cst_29 {dimension_numbers = #tpu.dot_dimension_numbers<[1], [0], [0], [1], [0, 0, 1, 1], [], []>} : vector<24x33xbf16>, vector<33x32xbf16>, vector<24x32xf32> -> vector<24x32xf32>
    %57 = arith.addf %51, %56 : vector<24x32xf32>
    %c0_30 = arith.constant 0 : index
    %c0_31 = arith.constant 0 : index
    %58 = vector.load %arg3[%c0_30, %c0_31] : memref<1x32xf32, #tpu.memory_space<vmem>>, vector<1x32xf32>
    %59 = vector.broadcast %58 : vector<1x32xf32> to vector<24x32xf32>
    %60 = arith.addf %57, %59 : vector<24x32xf32>
    %cst_32 = arith.constant 0.000000e+00 : f32
    %61 = vector.broadcast %cst_32 : f32 to vector<24x32xf32>
    %62 = arith.cmpf oge, %60, %61 : vector<24x32xf32>
    %cst_33 = arith.constant 2.000000e-01 : f32
    %63 = vector.broadcast %cst_33 : f32 to vector<24x32xf32>
    %64 = arith.mulf %63, %60 : vector<24x32xf32>
    %65 = arith.select %62, %60, %64 : vector<24x32xi1>, vector<24x32xf32>
    %66 = vector.extract_strided_slice %65 {offsets = [0, 0], sizes = [4, 32], strides = [1, 1]} : vector<24x32xf32> to vector<4x32xf32>
    %67 = arith.truncf %66 : vector<4x32xf32> to vector<4x32xbf16>
    %c0_34 = arith.constant 0 : index
    %c0_35 = arith.constant 0 : index
    %c0_36 = arith.constant 0 : index
    %68 = vector.load %arg4[%c0_34, %c0_35, %c0_36] : memref<1x16x32xbf16, #tpu.memory_space<vmem>>, vector<1x4x32xbf16>
    %69 = vector.shape_cast %68 : vector<1x4x32xbf16> to vector<4x32xbf16>
    %70 = vector.shape_cast %67 : vector<4x32xbf16> to vector<1x4x32xbf16>
    tpu.vector_store %arg4[%c0_34, %c0_35, %c0_36], %70 {strides = array<i32>} : memref<1x16x32xbf16, #tpu.memory_space<vmem>>, vector<1x4x32xbf16>,
    %71 = vector.extract_strided_slice %65 {offsets = [6, 0], sizes = [4, 32], strides = [1, 1]} : vector<24x32xf32> to vector<4x32xf32>
    %72 = arith.truncf %71 : vector<4x32xf32> to vector<4x32xbf16>
    %c0_37 = arith.constant 0 : index
    %c4_38 = arith.constant 4 : index
    %c0_39 = arith.constant 0 : index
    %73 = vector.load %arg4[%c0_37, %c4_38, %c0_39] : memref<1x16x32xbf16, #tpu.memory_space<vmem>>, vector<1x4x32xbf16>
    %74 = vector.shape_cast %73 : vector<1x4x32xbf16> to vector<4x32xbf16>
    %75 = vector.shape_cast %72 : vector<4x32xbf16> to vector<1x4x32xbf16>
    tpu.vector_store %arg4[%c0_37, %c4_38, %c0_39], %75 {strides = array<i32>} : memref<1x16x32xbf16, #tpu.memory_space<vmem>>, vector<1x4x32xbf16>,
    %76 = vector.extract_strided_slice %65 {offsets = [12, 0], sizes = [4, 32], strides = [1, 1]} : vector<24x32xf32> to vector<4x32xf32>
    %77 = arith.truncf %76 : vector<4x32xf32> to vector<4x32xbf16>
    %c0_40 = arith.constant 0 : index
    %c8_41 = arith.constant 8 : index
    %c0_42 = arith.constant 0 : index
    %78 = vector.load %arg4[%c0_40, %c8_41, %c0_42] : memref<1x16x32xbf16, #tpu.memory_space<vmem>>, vector<1x4x32xbf16>
    %79 = vector.shape_cast %78 : vector<1x4x32xbf16> to vector<4x32xbf16>
    %80 = vector.shape_cast %77 : vector<4x32xbf16> to vector<1x4x32xbf16>
    tpu.vector_store %arg4[%c0_40, %c8_41, %c0_42], %80 {strides = array<i32>} : memref<1x16x32xbf16, #tpu.memory_space<vmem>>, vector<1x4x32xbf16>,
    %81 = vector.extract_strided_slice %65 {offsets = [18, 0], sizes = [4, 32], strides = [1, 1]} : vector<24x32xf32> to vector<4x32xf32>
    %82 = arith.truncf %81 : vector<4x32xf32> to vector<4x32xbf16>
    %c0_43 = arith.constant 0 : index
    %c12 = arith.constant 12 : index
    %c0_44 = arith.constant 0 : index
    %83 = vector.load %arg4[%c0_43, %c12, %c0_44] : memref<1x16x32xbf16, #tpu.memory_space<vmem>>, vector<1x4x32xbf16>
    %84 = vector.shape_cast %83 : vector<1x4x32xbf16> to vector<4x32xbf16>
    %85 = vector.shape_cast %82 : vector<4x32xbf16> to vector<1x4x32xbf16>
    tpu.vector_store %arg4[%c0_43, %c12, %c0_44], %85 {strides = array<i32>} : memref<1x16x32xbf16, #tpu.memory_space<vmem>>, vector<1x4x32xbf16>,
    return
  }
  func.func @transform_0(%arg0: i32) -> (i32, i32, i32) {
    %c0_i32 = arith.constant 0 : i32
    %c0_i32_0 = arith.constant 0 : i32
    %c0_i32_1 = arith.constant 0 : i32
    return %arg0, %c0_i32, %c0_i32_0 : i32, i32, i32
  }
  func.func @transform_1(%arg0: i32) -> (i32, i32, i32) {
    %c0_i32 = arith.constant 0 : i32
    %c0_i32_0 = arith.constant 0 : i32
    %c0_i32_1 = arith.constant 0 : i32
    %c0_i32_2 = arith.constant 0 : i32
    return %c0_i32, %c0_i32_0, %c0_i32_1 : i32, i32, i32
  }
  func.func @transform_2(%arg0: i32) -> (i32, i32) {
    %c0_i32 = arith.constant 0 : i32
    %c0_i32_0 = arith.constant 0 : i32
    %c0_i32_1 = arith.constant 0 : i32
    return %c0_i32, %c0_i32_0 : i32, i32
  }
  func.func @transform_3(%arg0: i32) -> (i32, i32, i32) {
    %c0_i32 = arith.constant 0 : i32
    %c0_i32_0 = arith.constant 0 : i32
    %c0_i32_1 = arith.constant 0 : i32
    return %arg0, %c0_i32, %c0_i32_0 : i32, i32, i32
  }
}

module attributes {stable_mosaic.version = 11 : i64} {
  func.func @_fc_head_kernel(%arg0: i32, %arg1: memref<2x512xbf16, #tpu.memory_space<vmem>>, %arg2: memref<512x32xbf16, #tpu.memory_space<vmem>>, %arg3: memref<1x32xf32, #tpu.memory_space<vmem>>, %arg4: memref<32x1xbf16, #tpu.memory_space<vmem>>, %arg5: memref<1x1xf32, #tpu.memory_space<vmem>>, %arg6: memref<2x1xf32, #tpu.memory_space<vmem>>) attributes {dimension_semantics = [#tpu.dimension_semantics<arbitrary>], iteration_bounds = array<i64: 1>, scalar_prefetch = 0 : i64, scratch_operands = 0 : i64, tpu.core_type = #tpu.core_type<tc>, window_params = [{pipeline_mode = #tpu.pipeline_mode<synchronous>, transform_indices = @transform_0, window_bounds = array<i64: 2, 512>}, {pipeline_mode = #tpu.pipeline_mode<synchronous>, transform_indices = @transform_1, window_bounds = array<i64: 512, 32>}, {pipeline_mode = #tpu.pipeline_mode<synchronous>, transform_indices = @transform_2, window_bounds = array<i64: 1, 32>}, {pipeline_mode = #tpu.pipeline_mode<synchronous>, transform_indices = @transform_3, window_bounds = array<i64: 32, 1>}, {pipeline_mode = #tpu.pipeline_mode<synchronous>, transform_indices = @transform_4, window_bounds = array<i64: 1, 1>}, {pipeline_mode = #tpu.pipeline_mode<synchronous>, transform_indices = @transform_5, window_bounds = array<i64: 2, 1>}]} {
    %c0 = arith.constant 0 : index
    %c0_0 = arith.constant 0 : index
    %0 = vector.load %arg1[%c0, %c0_0] : memref<2x512xbf16, #tpu.memory_space<vmem>>, vector<2x512xbf16>
    %c0_1 = arith.constant 0 : index
    %c0_2 = arith.constant 0 : index
    %1 = vector.load %arg2[%c0_1, %c0_2] : memref<512x32xbf16, #tpu.memory_space<vmem>>, vector<512x32xbf16>
    %cst = arith.constant dense<0.000000e+00> : vector<2x32xf32>
    %2 = tpu.matmul %0, %1, %cst {dimension_numbers = #tpu.dot_dimension_numbers<[1], [0], [0], [1], [0, 0, 1, 1], [], []>} : vector<2x512xbf16>, vector<512x32xbf16>, vector<2x32xf32> -> vector<2x32xf32>
    %c0_3 = arith.constant 0 : index
    %c0_4 = arith.constant 0 : index
    %3 = vector.load %arg3[%c0_3, %c0_4] : memref<1x32xf32, #tpu.memory_space<vmem>>, vector<1x32xf32>
    %4 = vector.broadcast %3 : vector<1x32xf32> to vector<2x32xf32>
    %5 = arith.addf %2, %4 : vector<2x32xf32>
    %cst_5 = arith.constant 0.000000e+00 : f32
    %6 = vector.broadcast %cst_5 : f32 to vector<2x32xf32>
    %7 = arith.cmpf oge, %5, %6 : vector<2x32xf32>
    %cst_6 = arith.constant 2.000000e-01 : f32
    %8 = vector.broadcast %cst_6 : f32 to vector<2x32xf32>
    %9 = arith.mulf %8, %5 : vector<2x32xf32>
    %10 = arith.select %7, %5, %9 : vector<2x32xi1>, vector<2x32xf32>
    %11 = arith.truncf %10 : vector<2x32xf32> to vector<2x32xbf16>
    %c0_7 = arith.constant 0 : index
    %c0_8 = arith.constant 0 : index
    %12 = vector.load %arg4[%c0_7, %c0_8] : memref<32x1xbf16, #tpu.memory_space<vmem>>, vector<32x1xbf16>
    %cst_9 = arith.constant dense<0.000000e+00> : vector<2x1xf32>
    %13 = tpu.matmul %11, %12, %cst_9 {dimension_numbers = #tpu.dot_dimension_numbers<[1], [0], [0], [1], [0, 0, 1, 1], [], []>} : vector<2x32xbf16>, vector<32x1xbf16>, vector<2x1xf32> -> vector<2x1xf32>
    %c0_10 = arith.constant 0 : index
    %c0_11 = arith.constant 0 : index
    %14 = vector.load %arg5[%c0_10, %c0_11] : memref<1x1xf32, #tpu.memory_space<vmem>>, vector<1x1xf32>
    %15 = vector.broadcast %14 : vector<1x1xf32> to vector<2x1xf32>
    %16 = arith.addf %13, %15 : vector<2x1xf32>
    %c0_12 = arith.constant 0 : index
    %c0_13 = arith.constant 0 : index
    %17 = vector.load %arg6[%c0_12, %c0_13] : memref<2x1xf32, #tpu.memory_space<vmem>>, vector<2x1xf32>
    tpu.vector_store %arg6[%c0_12, %c0_13], %16 {strides = array<i32>} : memref<2x1xf32, #tpu.memory_space<vmem>>, vector<2x1xf32>,
    return
  }
  func.func @transform_0(%arg0: i32) -> (i32, i32) {
    %c0_i32 = arith.constant 0 : i32
    %c0_i32_0 = arith.constant 0 : i32
    %c0_i32_1 = arith.constant 0 : i32
    return %c0_i32, %c0_i32_0 : i32, i32
  }
  func.func @transform_1(%arg0: i32) -> (i32, i32) {
    %c0_i32 = arith.constant 0 : i32
    %c0_i32_0 = arith.constant 0 : i32
    %c0_i32_1 = arith.constant 0 : i32
    return %c0_i32, %c0_i32_0 : i32, i32
  }
  func.func @transform_2(%arg0: i32) -> (i32, i32) {
    %c0_i32 = arith.constant 0 : i32
    %c0_i32_0 = arith.constant 0 : i32
    %c0_i32_1 = arith.constant 0 : i32
    return %c0_i32, %c0_i32_0 : i32, i32
  }
  func.func @transform_3(%arg0: i32) -> (i32, i32) {
    %c0_i32 = arith.constant 0 : i32
    %c0_i32_0 = arith.constant 0 : i32
    %c0_i32_1 = arith.constant 0 : i32
    return %c0_i32, %c0_i32_0 : i32, i32
  }
  func.func @transform_4(%arg0: i32) -> (i32, i32) {
    %c0_i32 = arith.constant 0 : i32
    %c0_i32_0 = arith.constant 0 : i32
    %c0_i32_1 = arith.constant 0 : i32
    return %c0_i32, %c0_i32_0 : i32, i32
  }
  func.func @transform_5(%arg0: i32) -> (i32, i32) {
    %c0_i32 = arith.constant 0 : i32
    %c0_i32_0 = arith.constant 0 : i32
    %c0_i32_1 = arith.constant 0 : i32
    return %c0_i32, %c0_i32_0 : i32, i32
  }
}

</mosaic_0001>

<bundles_post_ra>
// kernel: forward.7
= control target key start
LH: loop header
LB: loop body
LE: loop exit
PB: predicated region body
PF: predicated region fallthrough
CT: control target
= control target key end

     0   :  { %s1005_s12 = smov 0   ;;  %s1168_s0 = inlined_call_operand.vmem [shape: bf16[2,272,3], index: 0, kind: input, shape index: {}]   ;;  %s1169_s1 = inlined_call_operand.vmem [shape: bf16[1,3,32], index: 1, kind: input, shape index: {}]   ;;  %s1170_s2 = inlined_call_operand.vmem [shape: f32[1,32], index: 2, kind: input, shape index: {}]   ;;  %s1171_s3 = inlined_call_operand.vmem [shape: bf16[2,256,32], index: 3, kind: output, shape index: {}]  }
   0x1 LB: > { %s789_s13 = sadd.s32 4294967295, %s982_s12   ;;  %p793_p0 = scmp.ge.s32.totalorder %s982_s12, 1  ;;  %s982_s12 = sphi %s1005_s12, %s13_s12  }
   0x2   : > { %p137_p1 = scmp.lt.s32.totalorder %s982_s12, 3 }
   0x4   : > { %p138_p2 = pnand %p793_p0, %p137_p1 }
   0x5   : > { %v252_v0 = vld [vmem:[%s1169_s1] sm:$0x3] (!%p138_p2)  ;;  %vm309_vm0 = vcmask (!%p138_p2), 1040384   ;;  %vm310_vm1 = vcmask (!%p138_p2), 1041408   ;;  %p161_p3 = scmp.lt.s32.totalorder (!%p138_p2), %s789_s13, 1  ;;  %v984_v1 = vmov (!%p138_p2), 65535  }
   0x6   : > { %141 = sbr.rel (%p138_p2) target bundleno = 277 (0x115), region = 32  ;;  %v311_v2 = vsel (!%p138_p2), %vm309_vm0, 4294967295, %v984_v1  ;;  %vm260_vm2 = vcmask (!%p138_p2), 23552   ;;  %v1059_v21 = vld [vmem:[%s1170_s2] ss:$0 sm:$0xff] (!%p138_p2)  ;;  %vm701_vm3 = vcmask (!%p138_p2), 257024  }
   0x7   : > { %v312_v3 = vsel (!%p138_p2), %vm310_vm1, %v311_v2, 0 }
   0x8   : > { %v314_v4 = vand.u32 (!%p138_p2), %v312_v3, %v252_v0 }
   0xa   : > { %914 = vmatprep.subr.bf16.mxu0 (!%p138_p2), %v314_v4  ;;  %948 = vmatprep.subr.bf16.mxu1 (!%p138_p2), %v314_v4 }
   0xb   : > { %915 = vmatpush3.bf16.msra.mxu0 (!%p138_p2), %v314_v4  ;;  %949 = vmatpush3.bf16.msra.mxu1 (!%p138_p2), %v314_v4 }
   0xd   : > { %s1173_s13 = smov (!%p161_p3, %s789_s13), 1 }
   0xe   : > { %s950_s16 = smul.u32 136, %s1173_s13  ;;  %s864_s22 = sshll.u32 %s1173_s13, 7 }
   0xf   : > { %s1070_s25 = scalar_lea.vmem %s1171_s3, %s864_s22 }
  0x10   : > { %s1022_s19 = scalar_lea.vmem %s1168_s0, %s950_s16 }
  0x11   : > { %v960_v5 = vld [vmem:[%s1022_s19] sm:$0xff]   ;;  %v962_v7 = vld [vmem:[%s1022_s19 + $0x8] sm:$0xff]   ;;  %v964_v9 = vld [vmem:[%s1022_s19 + $0x10] sm:$0xff]  }
  0x12   : > { %v961_v6 = vld [vmem:[%s1022_s19 + $0x40] sm:$0xff]   ;;  %916 = vmatprep.mubr.msk.bf16.mxu0 %vm260_vm2, %v960_v5  ;;  %v963_v8 = vld [vmem:[%s1022_s19 + $0x48] sm:$0xff]   ;;  %v965_v10 = vld [vmem:[%s1022_s19 + $0x50] sm:$0xff]  }
  0x13   : > { %932 = vmatprep.mubr.msk.bf16.mxu1 %vm260_vm2, %v961_v6  ;;  %917 = vmatmul.mubr.msk.bf16.vlgmr.msra.gmra.mrb[0].mxu0 %vm260_vm2, %v962_v7  ;;  %v966_v11 = vld [vmem:[%s1022_s19 + $0x18] sm:$0xff]   ;;  %v968_v13 = vld [vmem:[%s1022_s19 + $0x20] sm:$0xff]   ;;  %v970_v15 = vld [vmem:[%s1022_s19 + $0x28] sm:$0xff]  }
  0x14   : > { %933 = vmatmul.mubr.msk.bf16.vlgmr.msra.gmra.mrb[0].mxu1 %vm260_vm2, %v963_v8  ;;  %920 = vmatprep.mubr.msk.bf16.mxu0 %vm260_vm2, %v964_v9  ;;  %v967_v12 = vld [vmem:[%s1022_s19 + $0x58] sm:$0xff]   ;;  %v969_v14 = vld [vmem:[%s1022_s19 + $0x60] sm:$0xff]   ;;  %v971_v16 = vld [vmem:[%s1022_s19 + $0x68] sm:$0xff]  }
  0x15   : > { %936 = vmatprep.mubr.msk.bf16.mxu1 %vm260_vm2, %v965_v10  ;;  %v972_v17 = vld [vmem:[%s1022_s19 + $0x30] sm:$0xff]   ;;  %v974_v19 = vld [vmem:[%s1022_s19 + $0x38] sm:$0xff]  }
  0x16   : > { %v973_v18 = vld [vmem:[%s1022_s19 + $0x70] sm:$0xff]   ;;  %v975_v20 = vld [vmem:[%s1022_s19 + $0x78] sm:$0xff]  }
  0x1b   : > { %921 = vmatmul.mubr.msk.bf16.gmra.mrb[4].mxu0 %vm260_vm2, %v966_v11 }
  0x1c   : > { %937 = vmatmul.mubr.msk.bf16.gmra.mrb[4].mxu1 %vm260_vm2, %v967_v12  ;;  %924 = vmatprep.mubr.msk.bf16.mxu0 %vm260_vm2, %v968_v13 }
  0x1d   : > { %940 = vmatprep.mubr.msk.bf16.mxu1 %vm260_vm2, %v969_v14 }
  0x23   : > { %925 = vmatmul.mubr.msk.bf16.gmra.mrb[8].mxu0 %vm260_vm2, %v970_v15 }
  0x24   : > { %941 = vmatmul.mubr.msk.bf16.gmra.mrb[8].mxu1 %vm260_vm2, %v971_v16  ;;  %928 = vmatprep.mubr.msk.bf16.mxu0 %vm260_vm2, %v972_v17 }
  0x25   : > { %944 = vmatprep.mubr.msk.bf16.mxu1 %vm260_vm2, %v973_v18 }
  0x2b   : > { %929 = vmatmul.mubr.msk.bf16.gmra.mrb[12].mxu0 %vm260_vm2, %v974_v19 }
  0x2c   : > { %945 = vmatmul.mubr.msk.bf16.gmra.mrb[12].mxu1 %vm260_vm2, %v975_v20 }
  0xe6   : > { %v918_v22 = vpop.f32.mrb[0].mxu0 }
  0xe7   : > { %v359_v23 = vadd.f32 %v918_v22, %v1059_v21  ;;  %v934_v24 = vpop.f32.mrb[0].mxu1  ;;  %v350_v25 = vpop.f32.mrb[1].mxu0 }
  0xe8   : > { %v423_v26 = vadd.f32 %v934_v24, %v1059_v21  ;;  %v351_v27 = vadd.f32 %v1059_v21, %v350_v25  ;;  %v414_v28 = vpop.f32.mrb[1].mxu1  ;;  %v919_v29 = vpop.f32.mrb[2].mxu0 }
  0xe9   : > { %vm479_vm4 = vcmp.ge.f32.partialorder %v359_v23, 0.0  ;;  %v511_v30 = vmul.f32 0.2, %v359_v23  ;;  %v415_v31 = vadd.f32 %v1059_v21, %v414_v28  ;;  %v362_v32 = vadd.f32 %v919_v29, %v1059_v21  ;;  %v935_v33 = vpop.f32.mrb[2].mxu1  ;;  %v353_v34 = vpop.f32.mrb[3].mxu0 }
  0xea   : > { %vm495_vm5 = vcmp.ge.f32.partialorder %v423_v26, 0.0  ;;  %v527_v35 = vmul.f32 0.2, %v423_v26  ;;  %vm477_vm6 = vcmp.ge.f32.partialorder %v351_v27, 0.0  ;;  %v509_v36 = vmul.f32 0.2, %v351_v27 }
  0xeb   : > { %v543_v37 = vsel %vm479_vm4, %v359_v23, %v511_v30  ;;  %vm493_vm7 = vcmp.ge.f32.partialorder %v415_v31, 0.0  ;;  %v525_v38 = vmul.f32 0.2, %v415_v31  ;;  %vm480_vm8 = vcmp.ge.f32.partialorder %v362_v32, 0.0  ;;  %v417_v39 = vpop.f32.mrb[3].mxu1 }
  0xec   : > { %v867_v40 = vpack.c.bf16 %v543_v37, %v543_v37  ;;  %v559_v41 = vsel %vm495_vm5, %v423_v26, %v527_v35  ;;  %v541_v42 = vsel %vm477_vm6, %v351_v27, %v509_v36  ;;  %v512_v43 = vmul.f32 0.2, %v362_v32 }
  0xed   : > { %v883_v44 = vpack.c.bf16 %v559_v41, %v559_v41  ;;  %v865_v45 = vpack.c.bf16 %v541_v42, %v541_v42  ;;  %v557_v46 = vsel %vm493_vm7, %v415_v31, %v525_v38  ;;  %v426_v47 = vadd.f32 %v935_v33, %v1059_v21 }
  0xee   : > { %704 = vst.msk [vmem:[%s1070_s25 + $0x8] sm:$0xf] %vm701_vm3, %v867_v40  ;;  %v881_v48 = vpack.c.bf16 %v557_v46, %v557_v46  ;;  %v544_v49 = vsel %vm480_vm8, %v362_v32, %v512_v43  ;;  %v354_v50 = vadd.f32 %v1059_v21, %v353_v34  ;;  %v418_v51 = vadd.f32 %v1059_v21, %v417_v39  ;;  %v922_v52 = vpop.f32.mrb[4].mxu0 }
  0xef   : > { %720 = vst.msk [vmem:[%s1070_s25 + $0x48] sm:$0xf] %vm701_vm3, %v883_v44  ;;  %702 = vst.msk [vmem:[%s1070_s25] sm:$0xf] %vm701_vm3, %v865_v45  ;;  %v868_v53 = vpack.c.bf16 %v544_v49, %v544_v49  ;;  %vm496_vm9 = vcmp.ge.f32.partialorder %v426_v47, 0.0  ;;  %v375_v55 = vadd.f32 %v922_v52, %v1059_v21  ;;  %v938_v56 = vpop.f32.mrb[4].mxu1 }
  0xf0   : > { %v528_v54 = vmul.f32 0.2, %v426_v47  ;;  %v366_v57 = vpop.f32.mrb[5].mxu0  ;;  %718 = vst.msk [vmem:[%s1070_s25 + $0x40] sm:$0xf] %vm701_vm3, %v881_v48  ;;  %vm478_vm10 = vcmp.ge.f32.partialorder %v354_v50, 0.0  ;;  %v439_v62 = vadd.f32 %v938_v56, %v1059_v21 }
  0xf1   : > { %v510_v58 = vmul.f32 0.2, %v354_v50  ;;  %vm494_vm11 = vcmp.ge.f32.partialorder %v418_v51, 0.0  ;;  %v526_v59 = vmul.f32 0.2, %v418_v51  ;;  %vm483_vm12 = vcmp.ge.f32.partialorder %v375_v55, 0.0 }
  0xf2   : > { %705 = vst.msk [vmem:[%s1070_s25 + $0xc] sm:$0xf] %vm701_vm3, %v868_v53  ;;  %v560_v60 = vsel %vm496_vm9, %v426_v47, %v528_v54  ;;  %v515_v61 = vmul.f32 0.2, %v375_v55  ;;  %v430_v63 = vpop.f32.mrb[5].mxu1  ;;  %v923_v0 = vpop.f32.mrb[6].mxu0  ;;  %v367_v4 = vadd.f32 %v1059_v21, %v366_v57 }
  0xf3   : > { %v884_v1 = vpack.c.bf16 %v560_v60, %v560_v60  ;;  %v542_v2 = vsel %vm478_vm10, %v354_v50, %v510_v58  ;;  %v558_v3 = vsel %vm494_vm11, %v418_v51, %v526_v59  ;;  %v939_v5 = vpop.f32.mrb[6].mxu1  ;;  %v369_v6 = vpop.f32.mrb[7].mxu0  ;;  %vm499_vm13 = vcmp.ge.f32.partialorder %v439_v62, 0.0 }
  0xf4   : > { %v866_v7 = vpack.c.bf16 %v542_v2, %v542_v2  ;;  %v882_v8 = vpack.c.bf16 %v558_v3, %v558_v3  ;;  %v547_v9 = vsel %vm483_vm12, %v375_v55, %v515_v61  ;;  %v433_v10 = vpop.f32.mrb[7].mxu1  ;;  %v531_v12 = vmul.f32 0.2, %v439_v62 }
  0xf5   : > { %721 = vst.msk [vmem:[%s1070_s25 + $0x4c] sm:$0xf] %vm701_vm3, %v884_v1  ;;  %v871_v11 = vpack.c.bf16 %v547_v9, %v547_v9  ;;  %vm481_vm14 = vcmp.ge.f32.partialorder %v367_v4, 0.0  ;;  %v513_v13 = vmul.f32 0.2, %v367_v4  ;;  %v431_v14 = vadd.f32 %v1059_v21, %v430_v63 }
  0xf6   : > { %703 = vst.msk [vmem:[%s1070_s25 + $0x4] sm:$0xf] %vm701_vm3, %v866_v7  ;;  %719 = vst.msk [vmem:[%s1070_s25 + $0x44] sm:$0xf] %vm701_vm3, %v882_v8  ;;  %v378_v15 = vadd.f32 %v923_v0, %v1059_v21  ;;  %v442_v16 = vadd.f32 %v939_v5, %v1059_v21  ;;  %v370_v17 = vadd.f32 %v1059_v21, %v369_v6  ;;  %v926_v22 = vpop.f32.mrb[8].mxu0 }
  0xf7   : > { %708 = vst.msk [vmem:[%s1070_s25 + $0x18] sm:$0xf] %vm701_vm3, %v871_v11  ;;  %v563_v18 = vsel %vm499_vm13, %v439_v62, %v531_v12  ;;  %v545_v19 = vsel %vm481_vm14, %v367_v4, %v513_v13  ;;  %v434_v20 = vadd.f32 %v1059_v21, %v433_v10  ;;  %vm497_vm15 = vcmp.ge.f32.partialorder %v431_v14, 0.0  ;;  %v942_v26 = vpop.f32.mrb[8].mxu1  ;;  %v382_v27 = vpop.f32.mrb[9].mxu0 }
  0xf8   : > { %v887_v23 = vpack.c.bf16 %v563_v18, %v563_v18  ;;  %v869_v24 = vpack.c.bf16 %v545_v19, %v545_v19  ;;  %v529_v25 = vmul.f32 0.2, %v431_v14  ;;  %vm484_vm0 = vcmp.ge.f32.partialorder %v378_v15, 0.0  ;;  %v446_v32 = vpop.f32.mrb[9].mxu1  ;;  %v927_v33 = vpop.f32.mrb[10].mxu0 }
  0xf9   : > { %v516_v28 = vmul.f32 0.2, %v378_v15  ;;  %vm500_vm1 = vcmp.ge.f32.partialorder %v442_v16, 0.0  ;;  %v532_v29 = vmul.f32 0.2, %v442_v16  ;;  %vm482_vm2 = vcmp.ge.f32.partialorder %v370_v17, 0.0 }
  0xfa   : > { %724 = vst.msk [vmem:[%s1070_s25 + $0x58] sm:$0xf] %vm701_vm3, %v887_v23  ;;  %706 = vst.msk [vmem:[%s1070_s25 + $0x10] sm:$0xf] %vm701_vm3, %v869_v24  ;;  %v561_v30 = vsel %vm497_vm15, %v431_v14, %v529_v25  ;;  %v514_v31 = vmul.f32 0.2, %v370_v17  ;;  %v391_v43 = vadd.f32 %v926_v22, %v1059_v21  ;;  %v455_v47 = vadd.f32 %v942_v26, %v1059_v21 }
  0xfb   : > { %vm498_vm4 = vcmp.ge.f32.partialorder %v434_v20, 0.0  ;;  %v885_v34 = vpack.c.bf16 %v561_v30, %v561_v30  ;;  %v548_v35 = vsel %vm484_vm0, %v378_v15, %v516_v28  ;;  %v564_v36 = vsel %vm500_vm1, %v442_v16, %v532_v29  ;;  %v943_v38 = vpop.f32.mrb[10].mxu1  ;;  %v385_v39 = vpop.f32.mrb[11].mxu0 }
  0xfc   : > { %v530_v37 = vmul.f32 0.2, %v434_v20  ;;  %v872_v40 = vpack.c.bf16 %v548_v35, %v548_v35  ;;  %v888_v41 = vpack.c.bf16 %v564_v36, %v564_v36  ;;  %v546_v42 = vsel %vm482_vm2, %v370_v17, %v514_v31  ;;  %v449_v44 = vpop.f32.mrb[11].mxu1 }
  0xfd   : > { %722 = vst.msk [vmem:[%s1070_s25 + $0x50] sm:$0xf] %vm701_vm3, %v885_v34  ;;  %v870_v45 = vpack.c.bf16 %v546_v42, %v546_v42  ;;  %v383_v48 = vadd.f32 %v1059_v21, %v382_v27  ;;  %vm487_vm5 = vcmp.ge.f32.partialorder %v391_v43, 0.0  ;;  %v519_v50 = vmul.f32 0.2, %v391_v43 }
  0xfe   : > { %v562_v46 = vsel %vm498_vm4, %v434_v20, %v530_v37  ;;  %709 = vst.msk [vmem:[%s1070_s25 + $0x1c] sm:$0xf] %vm701_vm3, %v872_v40  ;;  %725 = vst.msk [vmem:[%s1070_s25 + $0x5c] sm:$0xf] %vm701_vm3, %v888_v41  ;;  %v447_v51 = vadd.f32 %v1059_v21, %v446_v32  ;;  %vm503_vm6 = vcmp.ge.f32.partialorder %v455_v47, 0.0  ;;  %v394_v56 = vadd.f32 %v927_v33, %v1059_v21  ;;  %v930_v57 = vpop.f32.mrb[12].mxu0 }
  0xff   : > { %v886_v49 = vpack.c.bf16 %v562_v46, %v562_v46  ;;  %707 = vst.msk [vmem:[%s1070_s25 + $0x14] sm:$0xf] %vm701_vm3, %v870_v45  ;;  %v535_v52 = vmul.f32 0.2, %v455_v47  ;;  %vm485_vm7 = vcmp.ge.f32.partialorder %v383_v48, 0.0  ;;  %v551_v54 = vsel %vm487_vm5, %v391_v43, %v519_v50  ;;  %v946_v58 = vpop.f32.mrb[12].mxu1 }
 0x100   : > { %v517_v53 = vmul.f32 0.2, %v383_v48  ;;  %vm501_vm8 = vcmp.ge.f32.partialorder %v447_v51, 0.0  ;;  %v533_v55 = vmul.f32 0.2, %v447_v51  ;;  %v875_v59 = vpack.c.bf16 %v551_v54, %v551_v54  ;;  %v398_v63 = vpop.f32.mrb[13].mxu0 }
 0x101   : > { %723 = vst.msk [vmem:[%s1070_s25 + $0x54] sm:$0xf] %vm701_vm3, %v886_v49  ;;  %v567_v60 = vsel %vm503_vm6, %v455_v47, %v535_v52  ;;  %v458_v62 = vadd.f32 %v943_v38, %v1059_v21  ;;  %v462_v0 = vpop.f32.mrb[13].mxu1  ;;  %vm488_vm9 = vcmp.ge.f32.partialorder %v394_v56, 0.0  ;;  %v931_v4 = vpop.f32.mrb[14].mxu0  ;;  %v386_v10 = vadd.f32 %v1059_v21, %v385_v39 }
 0x102   : > { %v549_v61 = vsel %vm485_vm7, %v383_v48, %v517_v53  ;;  %v891_v1 = vpack.c.bf16 %v567_v60, %v567_v60  ;;  %v565_v3 = vsel %vm501_vm8, %v447_v51, %v533_v55  ;;  %v947_v5 = vpop.f32.mrb[14].mxu1  ;;  %712 = vst.msk [vmem:[%s1070_s25 + $0x28] sm:$0xf] %vm701_vm3, %v875_v59  ;;  %v520_v7 = vmul.f32 0.2, %v394_v56  ;;  %v401_v9 = vpop.f32.mrb[15].mxu0 }
 0x103   : > { %v873_v2 = vpack.c.bf16 %v549_v61, %v549_v61  ;;  %v889_v6 = vpack.c.bf16 %v565_v3, %v565_v3  ;;  %vm504_vm10 = vcmp.ge.f32.partialorder %v458_v62, 0.0  ;;  %v536_v8 = vmul.f32 0.2, %v458_v62  ;;  %v465_v14 = vpop.f32.mrb[15].mxu1 }
 0x104   : > { %728 = vst.msk [vmem:[%s1070_s25 + $0x68] sm:$0xf] %vm701_vm3, %v891_v1  ;;  %v450_v11 = vadd.f32 %v1059_v21, %v449_v44  ;;  %v407_v12 = vadd.f32 %v930_v57, %v1059_v21  ;;  %v471_v13 = vadd.f32 %v946_v58, %v1059_v21  ;;  %v552_v15 = vsel %vm488_vm9, %v394_v56, %v520_v7 }
 0x105   : > { %710 = vst.msk [vmem:[%s1070_s25 + $0x20] sm:$0xf] %vm701_vm3, %v873_v2  ;;  %726 = vst.msk [vmem:[%s1070_s25 + $0x60] sm:$0xf] %vm701_vm3, %v889_v6  ;;  %v568_v16 = vsel %vm504_vm10, %v458_v62, %v536_v8  ;;  %v399_v17 = vadd.f32 %v1059_v21, %v398_v63  ;;  %v463_v18 = vadd.f32 %v1059_v21, %v462_v0  ;;  %vm486_vm11 = vcmp.ge.f32.partialorder %v386_v10, 0.0 }
 0x106   : > { %v876_v19 = vpack.c.bf16 %v552_v15, %v552_v15  ;;  %v892_v20 = vpack.c.bf16 %v568_v16, %v568_v16  ;;  %v518_v22 = vmul.f32 0.2, %v386_v10  ;;  %vm502_vm12 = vcmp.ge.f32.partialorder %v450_v11, 0.0 }
 0x107   : > { %v534_v23 = vmul.f32 0.2, %v450_v11  ;;  %vm491_vm13 = vcmp.ge.f32.partialorder %v407_v12, 0.0  ;;  %v523_v24 = vmul.f32 0.2, %v407_v12  ;;  %vm507_vm14 = vcmp.ge.f32.partialorder %v471_v13, 0.0 }
 0x108   : > { %713 = vst.msk [vmem:[%s1070_s25 + $0x2c] sm:$0xf] %vm701_vm3, %v876_v19  ;;  %729 = vst.msk [vmem:[%s1070_s25 + $0x6c] sm:$0xf] %vm701_vm3, %v892_v20  ;;  %v550_v25 = vsel %vm486_vm11, %v386_v10, %v518_v22  ;;  %v539_v26 = vmul.f32 0.2, %v471_v13  ;;  %v410_v37 = vadd.f32 %v931_v4, %v1059_v21  ;;  %v474_v39 = vadd.f32 %v947_v5, %v1059_v21 }
 0x109   : > { %vm489_vm15 = vcmp.ge.f32.partialorder %v399_v17, 0.0  ;;  %v874_v27 = vpack.c.bf16 %v550_v25, %v550_v25  ;;  %v566_v28 = vsel %vm502_vm12, %v450_v11, %v534_v23  ;;  %v555_v29 = vsel %vm491_vm13, %v407_v12, %v523_v24 }
 0x10a   : > { %v521_v30 = vmul.f32 0.2, %v399_v17  ;;  %v890_v31 = vpack.c.bf16 %v566_v28, %v566_v28  ;;  %v879_v32 = vpack.c.bf16 %v555_v29, %v555_v29  ;;  %v571_v33 = vsel %vm507_vm14, %v471_v13, %v539_v26 }
 0x10b   : > { %vm505_vm0 = vcmp.ge.f32.partialorder %v463_v18, 0.0  ;;  %711 = vst.msk [vmem:[%s1070_s25 + $0x24] sm:$0xf] %vm701_vm3, %v874_v27  ;;  %v895_v34 = vpack.c.bf16 %v571_v33, %v571_v33  ;;  %v537_v36 = vmul.f32 0.2, %v463_v18  ;;  %v402_v40 = vadd.f32 %v1059_v21, %v401_v9 }
 0x10c   : > { %v553_v35 = vsel %vm489_vm15, %v399_v17, %v521_v30  ;;  %727 = vst.msk [vmem:[%s1070_s25 + $0x64] sm:$0xf] %vm701_vm3, %v890_v31  ;;  %716 = vst.msk [vmem:[%s1070_s25 + $0x38] sm:$0xf] %vm701_vm3, %v879_v32  ;;  %v466_v41 = vadd.f32 %v1059_v21, %v465_v14  ;;  %vm492_vm1 = vcmp.ge.f32.partialorder %v410_v37, 0.0  ;;  %vm508_vm2 = vcmp.ge.f32.partialorder %v474_v39, 0.0 }
 0x10d   : > { %v877_v38 = vpack.c.bf16 %v553_v35, %v553_v35  ;;  %732 = vst.msk [vmem:[%s1070_s25 + $0x78] sm:$0xf] %vm701_vm3, %v895_v34  ;;  %v569_v42 = vsel %vm505_vm0, %v463_v18, %v537_v36  ;;  %v524_v43 = vmul.f32 0.2, %v410_v37  ;;  %v540_v45 = vmul.f32 0.2, %v474_v39 }
 0x10e   : > { %v893_v44 = vpack.c.bf16 %v569_v42, %v569_v42  ;;  %vm490_vm4 = vcmp.ge.f32.partialorder %v402_v40, 0.0  ;;  %v522_v47 = vmul.f32 0.2, %v402_v40  ;;  %vm506_vm5 = vcmp.ge.f32.partialorder %v466_v41, 0.0 }
 0x10f   : > { %714 = vst.msk [vmem:[%s1070_s25 + $0x30] sm:$0xf] %vm701_vm3, %v877_v38  ;;  %v556_v46 = vsel %vm492_vm1, %v410_v37, %v524_v43  ;;  %v538_v48 = vmul.f32 0.2, %v466_v41  ;;  %v572_v49 = vsel %vm508_vm2, %v474_v39, %v540_v45 }
 0x110   : > { %730 = vst.msk [vmem:[%s1070_s25 + $0x70] sm:$0xf] %vm701_vm3, %v893_v44  ;;  %v880_v21 = vpack.c.bf16 %v556_v46, %v556_v46  ;;  %v896_v50 = vpack.c.bf16 %v572_v49, %v572_v49  ;;  %v554_v51 = vsel %vm490_vm4, %v402_v40, %v522_v47 }
 0x111   : > { %v570_v52 = vsel %vm506_vm5, %v466_v41, %v538_v48  ;;  %v878_v53 = vpack.c.bf16 %v554_v51, %v554_v51 }
 0x112   : > { %717 = vst.msk [vmem:[%s1070_s25 + $0x3c] sm:$0xf] %vm701_vm3, %v880_v21  ;;  %v894_v54 = vpack.c.bf16 %v570_v52, %v570_v52  ;;  %733 = vst.msk [vmem:[%s1070_s25 + $0x7c] sm:$0xf] %vm701_vm3, %v896_v50 }
 0x113   : > { %715 = vst.msk [vmem:[%s1070_s25 + $0x34] sm:$0xf] %vm701_vm3, %v878_v53 }
 0x114   : > { %731 = vst.msk [vmem:[%s1070_s25 + $0x74] sm:$0xf] %vm701_vm3, %v894_v54 }
 0x115 PF: > { %s13_s12 = sadd.s32 1, %s982_s12  }
 0x116   : > { %p10_p4 = scmp.ge.s32.totalorder %s13_s12, 4  }
 0x118   :  { %12 = sbr.rel (!%p10_p4) target bundleno = 1 (0x1), region = 62 }

// kernel: forward.8
= control target key start
LH: loop header
LB: loop body
LE: loop exit
PB: predicated region body
PF: predicated region fallthrough
CT: control target
= control target key end

     0   :  { %s4886_s12 = smov 0   ;;  %s6078_s0 = inlined_call_operand.vmem [shape: bf16[2,342,32], index: 0, kind: input, shape index: {}]   ;;  %s6079_s1 = inlined_call_operand.vmem [shape: bf16[9,32,32], index: 1, kind: input, shape index: {}]   ;;  %s6080_s2 = inlined_call_operand.vmem [shape: f32[1,32], index: 2, kind: input, shape index: {}]   ;;  %s6081_s3 = inlined_call_operand.vmem [shape: bf16[2,256,32], index: 3, kind: output, shape index: {}]  }
   0x1 LB: > { %s3621_s13 = sadd.s32 4294967295, %s4864_s12   ;;  %p3625_p0 = scmp.ge.s32.totalorder %s4864_s12, 1  ;;  %s4864_s12 = sphi %s4886_s12, %s13_s12  }
   0x2   : > { %p137_p1 = scmp.lt.s32.totalorder %s4864_s12, 3 }
   0x4   : > { %p138_p2 = pnand %p3625_p0, %p137_p1 }
   0x6   : > { %141 = sbr.rel (%p138_p2) target bundleno = 580 (0x244), region = 32 }
   0xd   : > { %v4897_v0 = vld [vmem:[%s6079_s1 + $0x40] sm:$0xff]   ;;  %p161_p3 = scmp.lt.s32.totalorder %s3621_s13, 1  ;;  %v4810_v1 = vld [vmem:[%s6079_s1 + $0x10] sm:$0xff]   ;;  %v4811_v2 = vld [vmem:[%s6079_s1 + $0x48] sm:$0xff]   ;;  %vm282_vm0 = vsmask.f32 7424 }
   0xe   : > { %4308 = vmatprep.subr.bf16.mxu0 %v4897_v0  ;;  %4148 = vmatprep.subr.bf16.mxu1 %v4810_v1  ;;  %v4812_v3 = vld [vmem:[%s6079_s1 + $0x18] sm:$0xff]   ;;  %v4916_v4 = vld [vmem:[%s6079_s1 + $0x50] sm:$0xff]   ;;  %v4818_v5 = vld [vmem:[%s6079_s1] sm:$0xff]   ;;  %vm1490_vm1 = vsmask.f32 6400  ;;  %vm443_vm2 = vcmask 261120  }
   0xf   : > { %s6153_s13 = smov (!%p161_p3, %s3621_s13), 1  ;;  %4309 = vmatpush3.bf16.msra.mxu0 %v4897_v0  ;;  %4149 = vmatpush3.bf16.msra.mxu1 %v4810_v1  ;;  %v4823_v48 = vld [vmem:[%s6079_s1 + $0x58] sm:$0xff]   ;;  %vm1860_vm3 = vcmask 1045504   ;;  %vm2426_vm4 = vsmask.f32 5376  ;;  %vm924_vm5 = vcmask 1046528  }
  0x10   : > { %4310 = vmatprep.subr.bf16.mxu0 %v4811_v2  ;;  %s4800_s22 = smul.u32 172, %s6153_s13  ;;  %4150 = vmatprep.subr.bf16.mxu1 %v4812_v3  ;;  %vm2796_vm6 = vcmask 1044480   ;;  %s3923_s8 = sshll.u32 %s6153_s13, 7  ;;  %vm3272_vm8 = vcmask 257024   ;;  %vm3285_vm10 = vcmask 1042432   ;;  %vm3286_vm12 = vcmask 1046532  }
  0x11   : > { %s5852_s11 = scalar_lea.vmem %s6081_s3, %s3923_s8  ;;  %vm5858_vm14 = vmor %vm3285_vm10, %vm3286_vm12 }
  0x12   : > { %s4921_s27 = scalar_lea.vmem %s6078_s0, %s4800_s22 }
  0x13   : > { %4311 = vmatpush3.bf16.msra.mxu0 %v4811_v2  ;;  %4151 = vmatpush3.bf16.msra.mxu1 %v4812_v3  ;;  %v4927_v6 = vld [vmem:[%s4921_s27] sm:$0xff]   ;;  %v4930_v7 = vld [vmem:[%s4921_s27 + $0x8] sm:$0xff]   ;;  %v4934_v8 = vld [vmem:[%s4921_s27 + $0x10] sm:$0xff]  }
  0x14   : > { %4348 = vmatprep.subr.bf16.mxu0 %v4916_v4  ;;  %4188 = vmatprep.subr.bf16.mxu1 %v4818_v5  ;;  %v284_v9 = vshrl.u32 %v4927_v6, 16  ;;  %v286_v10 = vshll.u32 %v4927_v6, 16  ;;  %v291_v11 = vshll.u32 %v4930_v7, 16  ;;  %v295_v12 = vshrl.u32 %v4930_v7, 16  ;;  %v4947_v15 = vld [vmem:[%s4921_s27 + $0x18] sm:$0xff]   ;;  %v4950_v16 = vld [vmem:[%s4921_s27 + $0x20] sm:$0xff]  }
  0x15   : > { %v4941_v13 = vshll.u32 %v4934_v8, 16  ;;  %v4944_v14 = vshrl.u32 %v4934_v8, 16  ;;  %v4956_v24 = vshll.u32 %v4947_v15, 16  ;;  %v4959_v28 = vshrl.u32 %v4947_v15, 16  ;;  %v4962_v29 = vld [vmem:[%s4921_s27 + $0x28] sm:$0xff]   ;;  %v4974_v38 = vld [vmem:[%s4921_s27 + $0x30] sm:$0xff]  }
  0x16   : > { %v288_v17 = vrot.slane %v286_v10, 1  ;;  %v293_v18 = vrot.slane %v291_v11, 1  ;;  %v1491_v19 = vrot.slane %v295_v12, 1  ;;  %v1492_v20 = vrot.slane %v291_v11, 2  ;;  %v4984_v43 = vld [vmem:[%s4921_s27 + $0x38] sm:$0xff]   ;;  %v5015_v60 = vld [vmem:[%s4921_s27 + $0x40] sm:$0xff]  }
  0x17   : > { %v1494_v21 = vrot.slane %v4944_v14, 1  ;;  %v1495_v22 = vrot.slane %v4941_v13, 2  ;;  %v301_v23 = vrot.slane %v4941_v13, 1  ;;  %v1499_v31 = vrot.slane %v4956_v24, 2 }
  0x18   : > { %v289_v25 = vor.u32 %v288_v17, %v284_v9  ;;  %v297_v26 = vor.u32 %v295_v12, %v293_v18  ;;  %v1493_v27 = vor.u32 %v1492_v20, %v1491_v19  ;;  %v309_v33 = vrot.slane %v4956_v24, 1  ;;  %v5030_v9 = vld [vmem:[%s4921_s27 + $0x48] sm:$0xff]   ;;  %v5040_v17 = vld [vmem:[%s6079_s1 + $0x60] sm:$0xff]  }
  0x19   : > { %v1496_v30 = vor.u32 %v1495_v22, %v1494_v21  ;;  %v305_v32 = vor.u32 %v4944_v14, %v301_v23  ;;  %v1498_v36 = vrot.slane %v4959_v28, 1  ;;  %v4971_v37 = vshll.u32 %v4950_v16, 16 }
  0x1a   : > { %v294_v34 = vsel %vm282_vm0, %v289_v25, %v293_v18  ;;  %v302_v35 = vsel %vm282_vm0, %v297_v26, %v301_v23  ;;  %v4980_v41 = vshrl.u32 %v4950_v16, 16  ;;  %v313_v42 = vor.u32 %v4959_v28, %v309_v33  ;;  %v5053_v25 = vld [vmem:[%s4921_s27 + $0x50] sm:$0xff]   ;;  %v4830_v26 = vld [vmem:[%s6079_s1 + $0x8] sm:$0xff]  }
  0x1b   : > { %4152 = vmatprep.mubr.msk.bf16.mxu1 %vm443_vm2, %v294_v34  ;;  %v1497_v39 = vsel %vm1490_vm1, %v1493_v27, %v1496_v30  ;;  %v310_v40 = vsel %vm282_vm0, %v305_v32, %v309_v33  ;;  %v1500_v44 = vor.u32 %v1499_v31, %v1498_v36  ;;  %v1503_v45 = vrot.slane %v4971_v37, 2 }
  0x1c   : > { %4312 = vmatprep.mubr.msk.bf16.mxu0 %vm443_vm2, %v1497_v39  ;;  %4153 = vmatmul.mubr.msk.bf16.vlgmr.msra.gmra.mrb[0].mxu1 %vm443_vm2, %v302_v35  ;;  %v317_v46 = vrot.slane %v4971_v37, 1  ;;  %v4991_v47 = vshll.u32 %v4962_v29, 16  ;;  %v1502_v49 = vrot.slane %v4980_v41, 1  ;;  %v4999_v50 = vshrl.u32 %v4962_v29, 16 }
  0x1d   : > { %4156 = vmatprep.mubr.msk.bf16.mxu1 %vm443_vm2, %v310_v40  ;;  %4189 = vmatpush3.bf16.msra.mxu1 %v4818_v5  ;;  %v5002_v51 = vshll.u32 %v4974_v38, 16  ;;  %v5005_v52 = vshrl.u32 %v4974_v38, 16  ;;  %v1501_v53 = vsel %vm1490_vm1, %v1496_v30, %v1500_v44  ;;  %v5020_v62 = vshll.u32 %v4984_v43, 16 }
  0x1e   : > { %v1507_v54 = vrot.slane %v4991_v47, 2  ;;  %v321_v55 = vor.u32 %v4980_v41, %v317_v46  ;;  %4313 = vmatmul.mubr.msk.bf16.vlgmr.msra.gmra.mrb[0].mxu0 %vm443_vm2, %v1501_v53  ;;  %v1504_v56 = vor.u32 %v1503_v45, %v1502_v49  ;;  %v1506_v57 = vrot.slane %v4999_v50, 1  ;;  %4190 = vmatprep.subr.bf16.mxu1 %v4830_v26  ;;  %v5084_v49 = vld [vmem:[%s4921_s27 + $0x58] sm:$0xff]  }
  0x1f   : > { %v325_v58 = vrot.slane %v4991_v47, 1  ;;  %v1510_v59 = vrot.slane %v5005_v52, 1  ;;  %4349 = vmatpush3.bf16.msra.mxu0 %v4916_v4  ;;  %v1511_v61 = vrot.slane %v5002_v51, 2  ;;  %v5023_v63 = vshrl.u32 %v4984_v43, 16 }
  0x20   : > { %v1505_v1 = vsel %vm1490_vm1, %v1500_v44, %v1504_v56  ;;  %v318_v2 = vsel %vm282_vm0, %v313_v42, %v317_v46  ;;  %v1508_v3 = vor.u32 %v1507_v54, %v1506_v57  ;;  %4350 = vmatprep.subr.bf16.mxu0 %v4823_v48  ;;  %v333_v10 = vrot.slane %v5002_v51, 1 }
  0x21   : > { %4316 = vmatprep.mubr.msk.bf16.mxu0 %vm443_vm2, %v1505_v1  ;;  %v326_v5 = vsel %vm282_vm0, %v321_v55, %v325_v58  ;;  %v1512_v4 = vor.u32 %v1511_v61, %v1510_v59  ;;  %v1514_v11 = vrot.slane %v5023_v63, 1  ;;  %v5035_v12 = vshll.u32 %v5015_v60, 16  ;;  %4191 = vmatpush3.bf16.msra.mxu1 %v4830_v26  ;;  %v5096_v59 = vld [vmem:[%s6079_s1 + $0x20] sm:$0xff]  }
  0x22   : > { %v1509_v18 = vsel %vm1490_vm1, %v1504_v56, %v1508_v3  ;;  %v1515_v19 = vrot.slane %v5020_v62, 2  ;;  %v5046_v20 = vshrl.u32 %v5015_v60, 16  ;;  %v329_v22 = vor.u32 %v4999_v50, %v325_v58  ;;  %4228 = vmatprep.subr.bf16.mxu1 %v5096_v59 }
  0x23   : > { %4351 = vmatpush3.bf16.msra.mxu0 %v4823_v48  ;;  %v1513_v21 = vsel %vm1490_vm1, %v1508_v3, %v1512_v4  ;;  %v1519_v23 = vrot.slane %v5035_v12, 2  ;;  %v337_v27 = vor.u32 %v5005_v52, %v333_v10  ;;  %v341_v30 = vrot.slane %v5020_v62, 1 }
  0x24   : > { %4157 = vmatmul.mubr.msk.bf16.gmra.mrb[4].mxu1 %vm443_vm2, %v318_v2  ;;  %4388 = vmatprep.subr.bf16.mxu0 %v5040_v17  ;;  %v1518_v31 = vrot.slane %v5046_v20, 1  ;;  %v1516_v32 = vor.u32 %v1515_v19, %v1514_v11  ;;  %v5065_v33 = vshll.u32 %v5030_v9, 16  ;;  %v5068_v34 = vshrl.u32 %v5030_v9, 16 }
  0x25   : > { %4160 = vmatprep.mubr.msk.bf16.mxu1 %vm443_vm2, %v326_v5  ;;  %v334_v35 = vsel %vm282_vm0, %v329_v22, %v333_v10  ;;  %v5072_v39 = vshll.u32 %v5053_v25, 16  ;;  %v5075_v40 = vshrl.u32 %v5053_v25, 16  ;;  %v342_v42 = vsel %vm282_vm0, %v337_v27, %v341_v30  ;;  %v5110_v10 = vld [vmem:[%s4921_s27 + $0x88] sm:$0xff]  }
  0x26   : > { %4317 = vmatmul.mubr.msk.bf16.gmra.mrb[4].mxu0 %vm443_vm2, %v1509_v18  ;;  %v1520_v36 = vor.u32 %v1519_v23, %v1518_v31  ;;  %v1517_v44 = vsel %vm1490_vm1, %v1512_v4, %v1516_v32  ;;  %v349_v45 = vrot.slane %v5035_v12, 1  ;;  %v1522_v46 = vrot.slane %v5068_v34, 1  ;;  %v5114_v18 = vld [vmem:[%s4921_s27 + $0x60] sm:$0xff]   ;;  %v208_v23 = vld [vmem:[%s4921_s27 + $0x90] sm:$0xf] }
  0x27   : > { %4320 = vmatprep.mubr.msk.bf16.mxu0 %vm443_vm2, %v1513_v21  ;;  %v1523_v48 = vrot.slane %v5065_v33, 2  ;;  %v345_v54 = vor.u32 %v5023_v63, %v341_v30  ;;  %v1526_v55 = vrot.slane %v5075_v40, 1  ;;  %v1527_v56 = vrot.slane %v5072_v39, 2  ;;  %v5125_v30 = vld [vmem:[%s4921_s27 + $0x68] sm:$0xff]  }
  0x28   : > { %v1521_v53 = vsel %vm1490_vm1, %v1516_v32, %v1520_v36  ;;  %v353_v57 = vor.u32 %v5046_v20, %v349_v45  ;;  %v357_v58 = vrot.slane %v5065_v33, 1  ;;  %v5101_v1 = vshll.u32 %v5084_v49, 16 }
  0x29   : > { %v1524_v61 = vor.u32 %v1523_v48, %v1522_v46  ;;  %v5104_v2 = vshrl.u32 %v5084_v49, 16  ;;  %v350_v3 = vsel %vm282_vm0, %v345_v54, %v349_v45  ;;  %v1528_v5 = vor.u32 %v1527_v56, %v1526_v55 }
  0x2a   : > { %6112 = vst [vmem:[#allocation2_spill] sm:$0xff] %v5101_v1  ;;  %v358_v4 = vsel %vm282_vm0, %v353_v57, %v357_v58  ;;  %v365_v11 = vrot.slane %v5072_v39, 1  ;;  %v1531_v22 = vrot.slane %v5101_v1, 2  ;;  %v361_v27 = vor.u32 %v5068_v34, %v357_v58 }
  0x2b   : > { %6113 = vst [vmem:[#allocation3_spill] sm:$0xff] %v5104_v2  ;;  %v1525_v19 = vsel %vm1490_vm1, %v1520_v36, %v1524_v61  ;;  %v1530_v21 = vrot.slane %v5104_v2, 1  ;;  %v1529_v26 = vsel %vm1490_vm1, %v1524_v61, %v1528_v5  ;;  %v373_v32 = vrot.slane %v5101_v1, 1 }
  0x2c   : > { %4161 = vmatmul.mubr.msk.bf16.gmra.mrb[8].mxu1 %vm443_vm2, %v334_v35  ;;  %v369_v31 = vor.u32 %v5075_v40, %v365_v11  ;;  %v5130_v35 = vshll.u32 %v5110_v10, 16  ;;  %v5133_v36 = vcombine.low %v208_v23, %v208_v23  ;;  %v5142_v45 = vshll.u32 %v5114_v18, 16 }
  0x2d   : > { %4164 = vmatprep.mubr.msk.bf16.mxu1 %vm443_vm2, %v342_v42  ;;  %v5136_v42 = vshrl.u32 %v5110_v10, 16  ;;  %v366_v48 = vsel %vm282_vm0, %v361_v27, %v365_v11  ;;  %v1862_v54 = vrot.slane %v4934_v8, 2  ;;  %v5151_v57 = vshrl.u32 %v5114_v18, 16 }
  0x2e   : > { %4321 = vmatmul.mubr.msk.bf16.gmra.mrb[8].mxu0 %vm443_vm2, %v1517_v44  ;;  %6114 = vst [vmem:[#allocation4_spill] sm:$0xff] %v5133_v36  ;;  %v5139_v44 = vor.u32 %v1531_v22, %v1530_v21  ;;  %6117 = vst [vmem:[#allocation7_spill] sm:$0xff] %v5142_v45  ;;  %v6082_v46 = vrot.slane %v5130_v35, 1  ;;  %v427_v55 = vshll.u32 %v5133_v36, 16  ;;  %v374_v56 = vsel %vm282_vm0, %v369_v31, %v373_v32 }
  0x2f   : > { %4324 = vmatprep.mubr.msk.bf16.mxu0 %vm443_vm2, %v1521_v53  ;;  %6115 = vst [vmem:[#allocation5_spill] sm:$0xff] %v5136_v42  ;;  %v1861_v53 = vrot.slane %v4930_v7, 2  ;;  %6118 = vst [vmem:[#allocation8_spill] sm:$0xff] %v5151_v57  ;;  %v5154_v58 = vshll.u32 %v5125_v30, 16  ;;  %v381_v11 = vrot.slane %v5142_v45, 1  ;;  %v377_v22 = vor.u32 %v5104_v2, %v373_v32 }
  0x30   : > { %6116 = vst [vmem:[#allocation6_spill] sm:$0xff] %v5139_v44  ;;  %v425_v61 = vor.u32 %v5136_v42, %v6082_v46  ;;  %v5202_v46 = vld [vmem:[%s4921_s27 + $0x80] sm:$0xff]   ;;  %v4838_v42 = vld [vmem:[%s6079_s1 + $0x68] sm:$0xff]   ;;  %v2434_v2 = vrot.slane %v4980_v41, 2  ;;  %v2435_v36 = vrot.slane %v4971_v37, 3  ;;  %v1876_v37 = vrot.slane %v5030_v9, 2 }
  0x31   : > { %6119 = vst [vmem:[#allocation9_spill] sm:$0xff] %v5154_v58  ;;  %v1863_v21 = vsel %vm1860_vm3, %v1861_v53, %v1862_v54  ;;  %v385_v27 = vor.u32 %v5151_v57, %v381_v11  ;;  %v389_v31 = vrot.slane %v5154_v58, 1  ;;  %v382_v32 = vsel %vm282_vm0, %v377_v22, %v381_v11 }
  0x32   : > { %v5244_v45 = vshrl.u32 %v5202_v46, 16  ;;  %v2438_v41 = vrot.slane %v4999_v50, 2 }
  0x34   : > { %4165 = vmatmul.mubr.msk.bf16.gmra.mrb[12].mxu1 %vm443_vm2, %v350_v3  ;;  %v429_v3 = vrot.slane %v427_v55, 1  ;;  %v1866_v55 = vrot.slane %v4950_v16, 2  ;;  %6127 = vst [vmem:[#allocation17_spill] sm:$0xff] %v5244_v45 }
  0x35   : > { %4168 = vmatprep.mubr.msk.bf16.mxu1 %vm443_vm2, %v358_v4  ;;  %v1533_v4 = vsel %vm1490_vm1, %v1528_v5, %v5139_v44  ;;  %v5175_v5 = vld [vmem:[%s4921_s27 + $0x78] sm:$0xff]  }
  0x36   : > { %4325 = vmatmul.mubr.msk.bf16.gmra.mrb[12].mxu0 %vm443_vm2, %v1525_v19  ;;  %v5164_v19 = vld [vmem:[%s4921_s27 + $0x70] sm:$0xff]  }
  0x37   : > { %4328 = vmatprep.mubr.msk.bf16.mxu0 %vm443_vm2, %v1529_v26  ;;  %v5170_v26 = vsel %vm282_vm0, %v425_v61, %v429_v3  ;;  %v5181_v53 = vshll.u32 %v5164_v19, 16  ;;  %v390_v61 = vsel %vm282_vm0, %v385_v27, %v389_v31  ;;  %v5190_v3 = vshrl.u32 %v5164_v19, 16 }
  0x39   : > { %6120 = vst [vmem:[#allocation10_spill] sm:$0xff] %v5181_v53  ;;  %6122 = vst [vmem:[#allocation12_spill] sm:$0xff] %v5190_v3  ;;  %v397_v22 = vrot.slane %v5181_v53, 1  ;;  %v5219_v53 = vld [vmem:[%s4921_s27 + $0x98] sm:$0xf] }
  0x3c   : > { %4169 = vmatmul.mubr.msk.bf16.gmra.mrb[16].mxu1 %vm443_vm2, %v366_v48  ;;  %v1864_v48 = vrot.slane %v4947_v15, 2 }
  0x3d   : > { %4172 = vmatprep.mubr.msk.bf16.mxu1 %vm443_vm2, %v374_v56  ;;  %v5186_v56 = vshrl.u32 %v5125_v30, 16 }
  0x3e   : > { %4329 = vmatmul.mubr.msk.bf16.gmra.mrb[16].mxu0 %vm443_vm2, %v1533_v4  ;;  %v5193_v4 = vshll.u32 %v5175_v5, 16  ;;  %v5198_v11 = vsel %vm1860_vm3, %v1862_v54, %v1864_v48  ;;  %v5206_v27 = vsel %vm1860_vm3, %v1864_v48, %v1866_v55  ;;  %v5227_v48 = vshll.u32 %v5202_v46, 16 }
  0x3f   : > { %4352 = vmatprep.mubr.msk.bf16.mxu0 %vm443_vm2, %v1863_v21  ;;  %6121 = vst [vmem:[#allocation11_spill] sm:$0xff] %v5186_v56  ;;  %v209_v21 = vld [vmem:[%s4921_s27 + $0x94] sm:$0xf]  ;;  %v393_v44 = vor.u32 %v5186_v56, %v389_v31  ;;  %v1868_v31 = vrot.slane %v4962_v29, 2 }
  0x40   : > { %6123 = vst [vmem:[#allocation13_spill] sm:$0xff] %v5193_v4  ;;  %v405_v54 = vrot.slane %v5193_v4, 1  ;;  %v5214_v58 = vcombine.low %v208_v23, %v209_v21  ;;  %6125 = vst [vmem:[#allocation15_spill] sm:$0xff] %v5227_v48  ;;  %v1870_v21 = vrot.slane %v4974_v38, 2  ;;  %v413_v57 = vrot.slane %v5227_v48, 1 }
  0x41   : > { %v398_v23 = vsel %vm282_vm0, %v393_v44, %v397_v22  ;;  %v1874_v48 = vrot.slane %v5015_v60, 2 }
  0x42   : > { %6124 = vst [vmem:[#allocation14_spill] sm:$0xff] %v5214_v58 }
  0x44   : > { %4173 = vmatmul.mubr.msk.bf16.gmra.mrb[20].mxu1 %vm443_vm2, %v382_v32  ;;  %v401_v32 = vor.u32 %v5190_v3, %v397_v22  ;;  %v5235_v3 = vshrl.u32 %v5175_v5, 16  ;;  %v5252_v22 = vsel %vm1860_vm3, %v1866_v55, %v1868_v31  ;;  %v417_v55 = vor.u32 %v5244_v45, %v413_v57 }
  0x45   : > { %4176 = vmatprep.mubr.msk.bf16.mxu1 %vm443_vm2, %v390_v61  ;;  %v211_v61 = vld [vmem:[%s4921_s27 + $0x9c] sm:$0xf] }
  0x46   : > { %4353 = vmatmul.mubr.msk.bf16.vlgmr.msra.gmra.mrb[0].mxu0 %vm443_vm2, %v5198_v11  ;;  %v5230_v4 = vcombine.low %v5219_v53, %v211_v61  ;;  %6126 = vst [vmem:[#allocation16_spill] sm:$0xff] %v5235_v3  ;;  %v406_v56 = vsel %vm282_vm0, %v401_v32, %v405_v54  ;;  %v5247_v61 = vrot.slane %v5214_v58, 2  ;;  %v5263_v58 = vsel %vm1860_vm3, %v1868_v31, %v1870_v21 }
  0x47   : > { %4389 = vmatpush3.bf16.msra.mxu0 %v5040_v17  ;;  %4356 = vmatprep.mubr.msk.bf16.mxu0 %vm443_vm2, %v5206_v27  ;;  %v5240_v17 = vld [vmem:[%s6079_s1 + $0x70] sm:$0xff]   ;;  %v409_v1 = vor.u32 %v5235_v3, %v405_v54  ;;  %v2430_v31 = vrot.slane %v4959_v28, 2  ;;  %v2431_v54 = vrot.slane %v4956_v24, 3  ;;  %v6128_v3 = vrot.slane %v5130_v35, 1 }
  0x48   : > { %4390 = vmatprep.subr.bf16.mxu0 %v4838_v42  ;;  %v6103_v44 = vrot.slane %v5230_v4, 2 }
  0x4a   : > { %v5259_v32 = vsel %vm1860_vm3, %v5247_v61, %v6103_v44  ;;  %v414_v44 = vsel %vm282_vm0, %v409_v1, %v413_v57  ;;  %v2436_v1 = vor.u32 %v2435_v36, %v2434_v2  ;;  %v2439_v2 = vrot.slane %v4991_v47, 3 }
  0x4b   : > { %4391 = vmatpush3.bf16.msra.mxu0 %v4838_v42  ;;  %v2427_v42 = vrot.slane %v4944_v14, 2  ;;  %v422_v14 = vsel %vm282_vm0, %v417_v55, %v6128_v3  ;;  %v1878_v36 = vrot.slane %v5053_v25, 2  ;;  %v5311_v55 = vsel %vm1860_vm3, %v1874_v48, %v1876_v37 }
  0x4c   : > { %4177 = vmatmul.mubr.msk.bf16.gmra.mrb[24].mxu1 %vm443_vm2, %v398_v23  ;;  %4428 = vmatprep.subr.bf16.mxu0 %v5240_v17  ;;  %v2428_v23 = vrot.slane %v4941_v13, 3  ;;  %v2432_v13 = vor.u32 %v2431_v54, %v2430_v31  ;;  %v4842_v31 = vld [vmem:[%s6079_s1 + $0x28] sm:$0xff]   ;;  %v2450_v54 = vrot.slane %v5046_v20, 2 }
  0x4d   : > { %4180 = vmatprep.mubr.msk.bf16.mxu1 %vm443_vm2, %v406_v56  ;;  %v1872_v56 = vrot.slane %v4984_v43, 2  ;;  %v5319_v47 = vsel %vm1860_vm3, %v1876_v37, %v1878_v36  ;;  %v2454_v37 = vrot.slane %v5068_v34, 2 }
  0x4e   : > { %4357 = vmatmul.mubr.msk.bf16.gmra.mrb[4].mxu0 %vm443_vm2, %v5252_v22  ;;  %v2429_v45 = vor.u32 %v2428_v23, %v2427_v42  ;;  %v5296_v3 = vsel %vm2426_vm4, %v2432_v13, %v2436_v1  ;;  %v1882_v23 = vrot.slane %v5114_v18, 2 }
  0x4f   : > { %4360 = vmatprep.mubr.msk.bf16.mxu0 %vm443_vm2, %v5263_v58  ;;  %v5286_v28 = vsel %vm1860_vm3, %v1870_v21, %v1872_v56  ;;  %v5293_v57 = vsel %vm1860_vm3, %v1872_v56, %v1874_v48  ;;  %v2442_v21 = vrot.slane %v5005_v52, 2  ;;  %v2446_v52 = vrot.slane %v5023_v63, 2 }
  0x50   : > { %v5289_v24 = vsel %vm2426_vm4, %v2429_v45, %v2432_v13  ;;  %v2440_v45 = vor.u32 %v2439_v2, %v2438_v41  ;;  %v1880_v48 = vrot.slane %v5084_v49, 2  ;;  %v2455_v41 = vrot.slane %v5065_v33, 3 }
  0x51   : > { %v1886_v2 = vrot.slane %v5164_v19, 2 }
  0x52   : > { %v5314_v42 = vsel %vm2426_vm4, %v2436_v1, %v2440_v45  ;;  %v5348_v1 = vsel %vm1860_vm3, %v1880_v48, %v1882_v23 }
  0x54   : > { %4181 = vmatmul.mubr.msk.bf16.gmra.mrb[28].mxu1 %vm443_vm2, %v414_v44  ;;  %v2443_v44 = vrot.slane %v5002_v51, 3 }
  0x55   : > { %4184 = vmatprep.mubr.msk.bf16.mxu1 %vm443_vm2, %v422_v14  ;;  %v2451_v14 = vrot.slane %v5035_v12, 3  ;;  %v5354_v12 = vld [vmem:[%s6079_s1 + $0x30] sm:$0xff]  }
  0x56   : > { %4361 = vmatmul.mubr.msk.bf16.gmra.mrb[8].mxu0 %vm443_vm2, %v5286_v28  ;;  %v2444_v50 = vor.u32 %v2443_v44, %v2442_v21  ;;  %v2459_v21 = vrot.slane %v5072_v39, 3 }
  0x57   : > { %4364 = vmatprep.mubr.msk.bf16.mxu0 %vm443_vm2, %v5293_v57  ;;  %v2452_v13 = vor.u32 %v2451_v14, %v2450_v54 }
  0x58   : > { %v5324_v51 = vsel %vm2426_vm4, %v2440_v45, %v2444_v50  ;;  %v2458_v45 = vrot.slane %v5075_v40, 2  ;;  %v1888_v40 = vrot.slane %v5175_v5, 2 }
  0x5a   : > { %v5378_v34 = vor.u32 %v2459_v21, %v2458_v45  ;;  %v6129_v45 = vrot.slane %v5230_v4, 2 }
  0x5c   : > { %4185 = vmatmul.mubr.msk.bf16.gmra.mrb[32].mxu1 %vm443_vm2, %v5170_v26  ;;  %v2447_v26 = vrot.slane %v5020_v62, 3  ;;  %v5343_v62 = vsel %vm1860_vm3, %v1878_v36, %v1880_v48  ;;  %v2456_v36 = vor.u32 %v2455_v41, %v2454_v37  ;;  %v944_v37 = vrot.slane %v5053_v25, 1 }
  0x5d   : > { %4192 = vmatprep.mubr.msk.bf16.mxu1 %vm443_vm2, %v4927_v6  ;;  %v946_v41 = vrot.slane %v5084_v49, 1 }
  0x5e   : > { %4365 = vmatmul.mubr.msk.bf16.gmra.mrb[12].mxu0 %vm443_vm2, %v5311_v55  ;;  %v2448_v56 = vor.u32 %v2447_v26, %v2446_v52  ;;  %v5371_v44 = vsel %vm2426_vm4, %v2452_v13, %v2456_v36  ;;  %v5387_v39 = vsel %vm2426_vm4, %v2456_v36, %v5378_v34  ;;  %v1890_v52 = vrot.slane %v5202_v46, 2 }
  0x5f   : > { %4368 = vmatprep.mubr.msk.bf16.mxu0 %vm443_vm2, %v5319_v47  ;;  %v5398_v26 = vsel %vm1860_vm3, %v1886_v2, %v1888_v40  ;;  %v5562_v36 = vsel %vm924_vm5, %v944_v37, %v946_v41 }
  0x60   : > { %v5338_v63 = vsel %vm2426_vm4, %v2444_v50, %v2448_v56  ;;  %v5357_v20 = vsel %vm2426_vm4, %v2448_v56, %v2452_v13  ;;  %v5403_v48 = vsel %vm1860_vm3, %v1888_v40, %v1890_v52  ;;  %v4843_v13 = vld [vmem:[%s6079_s1 + $0x78] sm:$0xff]  }
  0x64   : > { %4193 = vmatmul.mubr.msk.bf16.vlgmr.msra.gmra.mrb[0].mxu1 %vm443_vm2, %v4930_v7 }
  0x65   : > { %4196 = vmatprep.mubr.msk.bf16.mxu1 %vm443_vm2, %v4934_v8  ;;  %4229 = vmatpush3.bf16.msra.mxu1 %v5096_v59  ;;  %v1884_v59 = vrot.slane %v5125_v30, 2 }
  0x66   : > { %4230 = vmatprep.subr.bf16.mxu1 %v4842_v31  ;;  %4369 = vmatmul.mubr.msk.bf16.gmra.mrb[16].mxu0 %vm443_vm2, %v5343_v62 }
  0x67   : > { %4372 = vmatprep.mubr.msk.bf16.mxu0 %vm443_vm2, %v5348_v1  ;;  %v5376_v33 = vsel %vm1860_vm3, %v1882_v23, %v1884_v59  ;;  %v5383_v50 = vsel %vm1860_vm3, %v1884_v59, %v1886_v2  ;;  %v1892_v23 = vrot.slane %v5110_v10, 2 }
  0x69   : > { %4231 = vmatpush3.bf16.msra.mxu1 %v4842_v31  ;;  %v5413_v56 = vsel %vm1860_vm3, %v1890_v52, %v1892_v23  ;;  %v5417_v31 = vcombine.low %v5219_v53, %v5219_v53  ;;  %v5423_v54 = vsel %vm1860_vm3, %v1892_v23, %v5247_v61  ;;  %v952_v52 = vrot.slane %v5164_v19, 1 }
  0x6a   : > { %4268 = vmatprep.subr.bf16.mxu1 %v5354_v12 }
  0x6b   : > { %v1896_v14 = vrot.slane %v5417_v31, 2 }
  0x6c   : > { %4197 = vmatmul.mubr.msk.bf16.gmra.mrb[4].mxu1 %vm443_vm2, %v4947_v15 }
  0x6d   : > { %4200 = vmatprep.mubr.msk.bf16.mxu1 %vm443_vm2, %v4950_v16  ;;  %v1897_v53 = vsel %vm1860_vm3, %v5247_v61, %v1896_v14  ;;  %v928_v61 = vrot.slane %v4934_v8, 1  ;;  %v932_v8 = vrot.slane %v4950_v16, 1  ;;  %v936_v16 = vrot.slane %v4974_v38, 1  ;;  %v6130_v14 = vld [vmem:[#allocation4_spill] sm:$0xff] }
  0x6e   : > { %4373 = vmatmul.mubr.msk.bf16.gmra.mrb[20].mxu0 %vm443_vm2, %v5376_v33 }
  0x6f   : > { %4376 = vmatprep.mubr.msk.bf16.mxu0 %vm443_vm2, %v5383_v50 }
  0x74   : > { %4201 = vmatmul.mubr.msk.bf16.gmra.mrb[8].mxu1 %vm443_vm2, %v4962_v29 }
  0x75   : > { %4204 = vmatprep.mubr.msk.bf16.mxu1 %vm443_vm2, %v4974_v38  ;;  %v940_v38 = vrot.slane %v5015_v60, 1 }
  0x76   : > { %4377 = vmatmul.mubr.msk.bf16.gmra.mrb[24].mxu0 %vm443_vm2, %v5398_v26 }
  0x77   : > { %4380 = vmatprep.mubr.msk.bf16.mxu0 %vm443_vm2, %v5403_v48 }
  0x7c   : > { %4205 = vmatmul.mubr.msk.bf16.gmra.mrb[12].mxu1 %vm443_vm2, %v4984_v43 }
  0x7d   : > { %4208 = vmatprep.mubr.msk.bf16.mxu1 %vm443_vm2, %v5015_v60 }
  0x7e   : > { %4381 = vmatmul.mubr.msk.bf16.gmra.mrb[28].mxu0 %vm443_vm2, %v5413_v56 }
  0x7f   : > { %4384 = vmatprep.mubr.msk.bf16.mxu0 %vm443_vm2, %v5423_v54 }
  0x84   : > { %4209 = vmatmul.mubr.msk.bf16.gmra.mrb[16].mxu1 %vm443_vm2, %v5030_v9 }
  0x85   : > { %4212 = vmatprep.mubr.msk.bf16.mxu1 %vm443_vm2, %v5053_v25 }
  0x86   : > { %4385 = vmatmul.mubr.msk.bf16.gmra.mrb[32].mxu0 %vm443_vm2, %v1897_v53  ;;  %v960_v53 = vrot.slane %v6130_v14, 1  ;;  %v6142_v14 = vld [vmem:[#allocation15_spill] sm:$0xff] }
  0x87   : > { %4392 = vmatprep.mubr.msk.bf16.mxu0 %vm443_vm2, %v5198_v11  ;;  %v5454_v11 = vld [vmem:[%s6079_s1 + $0x80] sm:$0xff]  }
  0x8c   : > { %4213 = vmatmul.mubr.msk.bf16.gmra.mrb[20].mxu1 %vm443_vm2, %v5084_v49 }
  0x8d   : > { %4216 = vmatprep.mubr.msk.bf16.mxu1 %vm443_vm2, %v5114_v18 }
  0x8e   : > { %4393 = vmatmul.mubr.msk.bf16.vlgmr.msra.gmra.mrb[0].mxu0 %vm443_vm2, %v5206_v27  ;;  %v925_v27 = vrot.slane %v4927_v6, 1  ;;  %v930_v6 = vrot.slane %v4947_v15, 1  ;;  %v934_v15 = vrot.slane %v4962_v29, 1  ;;  %v938_v29 = vrot.slane %v4984_v43, 1 }
  0x8f   : > { %4429 = vmatpush3.bf16.msra.mxu0 %v5240_v17  ;;  %4396 = vmatprep.mubr.msk.bf16.mxu0 %vm443_vm2, %v5252_v22  ;;  %v926_v17 = vrot.slane %v4930_v7, 1  ;;  %v942_v43 = vrot.slane %v5030_v9, 1 }
  0x90   : > { %4430 = vmatprep.subr.bf16.mxu0 %v4843_v13  ;;  %v5489_v22 = vsel %vm924_vm5, %v928_v61, %v930_v6 }
  0x91   : > { %v5486_v7 = vsel %vm924_vm5, %v926_v17, %v928_v61  ;;  %v5559_v2 = vsel %vm924_vm5, %v942_v43, %v944_v37 }
  0x93   : > { %4431 = vmatpush3.bf16.msra.mxu0 %v4843_v13  ;;  %v6131_v13 = vld [vmem:[#allocation3_spill] sm:$0xff] }
  0x94   : > { %4217 = vmatmul.mubr.msk.bf16.gmra.mrb[24].mxu1 %vm443_vm2, %v5125_v30  ;;  %4468 = vmatprep.subr.bf16.mxu0 %v5454_v11 }
  0x95   : > { %4220 = vmatprep.mubr.msk.bf16.mxu1 %vm443_vm2, %v5164_v19 }
  0x96   : > { %4397 = vmatmul.mubr.msk.bf16.gmra.mrb[4].mxu0 %vm443_vm2, %v5263_v58  ;;  %v927_v58 = vsel %vm924_vm5, %v925_v27, %v926_v17 }
  0x97   : > { %4400 = vmatprep.mubr.msk.bf16.mxu0 %vm443_vm2, %v5286_v28  ;;  %v4848_v28 = vld [vmem:[%s6079_s1 + $0x38] sm:$0xff]  }
  0x9c   : > { %4221 = vmatmul.mubr.msk.bf16.gmra.mrb[28].mxu1 %vm443_vm2, %v5175_v5 }
  0x9d   : > { %4224 = vmatprep.mubr.msk.bf16.mxu1 %vm443_vm2, %v5202_v46 }
  0x9e   : > { %4401 = vmatmul.mubr.msk.bf16.gmra.mrb[8].mxu0 %vm443_vm2, %v5293_v57  ;;  %v5506_v57 = vsel %vm924_vm5, %v930_v6, %v932_v8  ;;  %v6134_v6 = vld [vmem:[#allocation7_spill] sm:$0xff] }
  0x9f   : > { %4404 = vmatprep.mubr.msk.bf16.mxu0 %vm443_vm2, %v5311_v55  ;;  %v5509_v55 = vsel %vm924_vm5, %v932_v8, %v934_v15 }
  0xa4   : > { %4225 = vmatmul.mubr.msk.bf16.gmra.mrb[32].mxu1 %vm443_vm2, %v5110_v10 }
  0xa5   : > { %4232 = vmatprep.mubr.msk.bf16.mxu1 %vm443_vm2, %v927_v58  ;;  %v6133_v58 = vld [vmem:[#allocation8_spill] sm:$0xff] }
  0xa6   : > { %4405 = vmatmul.mubr.msk.bf16.gmra.mrb[12].mxu0 %vm443_vm2, %v5319_v47  ;;  %v5523_v47 = vsel %vm924_vm5, %v934_v15, %v936_v16  ;;  %v2466_v61 = vrot.slane %v6133_v58, 2 }
  0xa7   : > { %4408 = vmatprep.mubr.msk.bf16.mxu0 %vm443_vm2, %v5343_v62  ;;  %v5539_v62 = vsel %vm924_vm5, %v938_v29, %v940_v38 }
  0xac   : > { %4233 = vmatmul.mubr.msk.bf16.vlgmr.msra.gmra.mrb[0].mxu1 %vm443_vm2, %v5486_v7 }
  0xad   : > { %4236 = vmatprep.mubr.msk.bf16.mxu1 %vm443_vm2, %v5489_v22  ;;  %4269 = vmatpush3.bf16.msra.mxu1 %v5354_v12  ;;  %v5547_v12 = vld [vmem:[%s4921_s27 + $0xa0] ss:$0 sps:$4 sm:$0xff]  }
  0xae   : > { %4270 = vmatprep.subr.bf16.mxu1 %v4848_v28  ;;  %4409 = vmatmul.mubr.msk.bf16.gmra.mrb[16].mxu0 %vm443_vm2, %v5348_v1  ;;  %v5542_v1 = vsel %vm924_vm5, %v940_v38, %v942_v43  ;;  %v2188_v59 = vrot.slane %v5547_v12, 2 }
  0xaf   : > { %4412 = vmatprep.mubr.msk.bf16.mxu0 %vm443_vm2, %v5376_v33  ;;  %v950_v33 = vrot.slane %v5125_v30, 1 }
  0xb0   : > { %v2189_v21 = vsel %vm1860_vm3, %v6129_v45, %v2188_v59  ;;  %v6139_v45 = vld [vmem:[#allocation16_spill] sm:$0xff]  ;;  %vm3334_vm3 = vcmask 1044484  }
  0xb1   : > { %4271 = vmatpush3.bf16.msra.mxu1 %v4848_v28  ;;  %v2467_v28 = vrot.slane %v6134_v6, 3 }
  0xb2   : > { %4508 = vmatprep.subr.bf16.mxu1 %v4897_v0  ;;  %v5526_v0 = vsel %vm924_vm5, %v936_v16, %v938_v29  ;;  %v6136_v16 = vld [vmem:[#allocation9_spill] sm:$0xff] }
  0xb3   : > { %v2468_v29 = vor.u32 %v2467_v28, %v2466_v61 }
  0xb4   : > { %4237 = vmatmul.mubr.msk.bf16.gmra.mrb[4].mxu1 %vm443_vm2, %v5506_v57 }
  0xb5   : > { %4240 = vmatprep.mubr.msk.bf16.mxu1 %vm443_vm2, %v5509_v55 }
  0xb6   : > { %4413 = vmatmul.mubr.msk.bf16.gmra.mrb[20].mxu0 %vm443_vm2, %v5383_v50 }
  0xb7   : > { %4416 = vmatprep.mubr.msk.bf16.mxu0 %vm443_vm2, %v5398_v26  ;;  %v4849_v26 = vld [vmem:[%s6079_s1 + $0x88] sm:$0xff]  }
  0xbc   : > { %4241 = vmatmul.mubr.msk.bf16.gmra.mrb[8].mxu1 %vm443_vm2, %v5523_v47 }
  0xbd   : > { %4244 = vmatprep.mubr.msk.bf16.mxu1 %vm443_vm2, %v5526_v0 }
  0xbe   : > { %4417 = vmatmul.mubr.msk.bf16.gmra.mrb[24].mxu0 %vm443_vm2, %v5403_v48  ;;  %v5597_v48 = vsel %vm924_vm5, %v950_v33, %v952_v52 }
  0xbf   : > { %4420 = vmatprep.mubr.msk.bf16.mxu0 %vm443_vm2, %v5413_v56  ;;  %v5608_v56 = vrot.slane %v5110_v10, 1 }
  0xc4   : > { %4245 = vmatmul.mubr.msk.bf16.gmra.mrb[12].mxu1 %vm443_vm2, %v5539_v62 }
  0xc5   : > { %4248 = vmatprep.mubr.msk.bf16.mxu1 %vm443_vm2, %v5542_v1 }
  0xc6   : > { %4421 = vmatmul.mubr.msk.bf16.gmra.mrb[28].mxu0 %vm443_vm2, %v5423_v54 }
  0xc7   : > { %4424 = vmatprep.mubr.msk.bf16.mxu0 %vm443_vm2, %v5259_v32  ;;  %v948_v32 = vrot.slane %v5114_v18, 1 }
  0xc9   : > { %v5577_v50 = vsel %vm924_vm5, %v946_v41, %v948_v32  ;;  %v5580_v40 = vsel %vm924_vm5, %v948_v32, %v950_v33  ;;  %v6138_v41 = vld [vmem:[#allocation10_spill] sm:$0xff]  ;;  %v6140_v32 = vld [vmem:[#allocation13_spill] sm:$0xff]  ;;  %v4851_v33 = vld [vmem:[%s6079_s1 + $0x48] sm:$0xff]  }
  0xcc   : > { %4249 = vmatmul.mubr.msk.bf16.gmra.mrb[16].mxu1 %vm443_vm2, %v5559_v2 }
  0xcd   : > { %4252 = vmatprep.mubr.msk.bf16.mxu1 %vm443_vm2, %v5562_v36 }
  0xce   : > { %4425 = vmatmul.mubr.msk.bf16.gmra.mrb[32].mxu0 %vm443_vm2, %v2189_v21  ;;  %v2478_v21 = vrot.slane %v6139_v45, 2 }
  0xcf   : > { %4432 = vmatprep.mubr.msk.bf16.mxu0 %vm443_vm2, %v5289_v24  ;;  %v954_v24 = vrot.slane %v5175_v5, 1 }
  0xd1   : > { %v5600_v23 = vsel %vm924_vm5, %v952_v52, %v954_v24 }
  0xd4   : > { %4253 = vmatmul.mubr.msk.bf16.gmra.mrb[20].mxu1 %vm443_vm2, %v5577_v50 }
  0xd5   : > { %4256 = vmatprep.mubr.msk.bf16.mxu1 %vm443_vm2, %v5580_v40 }
  0xd6   : > { %4433 = vmatmul.mubr.msk.bf16.vlgmr.msra.gmra.mrb[0].mxu0 %vm443_vm2, %v5296_v3  ;;  %v956_v3 = vrot.slane %v5202_v46, 1 }
  0xd7   : > { %4469 = vmatpush3.bf16.msra.mxu0 %v5454_v11  ;;  %4436 = vmatprep.mubr.msk.bf16.mxu0 %vm443_vm2, %v5314_v42  ;;  %v6132_v11 = vld [vmem:[#allocation2_spill] sm:$0xff] }
  0xd8   : > { %4470 = vmatprep.subr.bf16.mxu0 %v4849_v26  ;;  %v5615_v42 = vsel %vm924_vm5, %v954_v24, %v956_v3  ;;  %v5619_v54 = vsel %vm924_vm5, %v956_v3, %v5608_v56  ;;  %v2463_v27 = vrot.slane %v6132_v11, 3  ;;  %v6141_v24 = vld [vmem:[#allocation17_spill] sm:$0xff] }
  0xd9   : > { %v2482_v3 = vrot.slane %v6141_v24, 2 }
  0xdb   : > { %4471 = vmatpush3.bf16.msra.mxu0 %v4849_v26 }
  0xdc   : > { %4257 = vmatmul.mubr.msk.bf16.gmra.mrb[24].mxu1 %vm443_vm2, %v5597_v48 }
  0xdd   : > { %4260 = vmatprep.mubr.msk.bf16.mxu1 %vm443_vm2, %v5600_v23 }
  0xde   : > { %4437 = vmatmul.mubr.msk.bf16.gmra.mrb[4].mxu0 %vm443_vm2, %v5324_v51  ;;  %v2462_v51 = vrot.slane %v6131_v13, 2 }
  0xdf   : > { %4440 = vmatprep.mubr.msk.bf16.mxu0 %vm443_vm2, %v5338_v63  ;;  %v961_v63 = vsel %vm924_vm5, %v5608_v56, %v960_v53  ;;  %v2483_v53 = vrot.slane %v6142_v14, 3 }
  0xe0   : > { %v2464_v17 = vor.u32 %v2463_v27, %v2462_v51  ;;  %v6143_v51 = vld [vmem:[#allocation5_spill] sm:$0xff]  ;;  %v2487_v27 = vrot.slane %v5130_v35, 3 }
  0xe1   : > { %v2486_v11 = vrot.slane %v6143_v51, 2 }
  0xe2   : > { %v2465_v8 = vsel %vm2426_vm4, %v5378_v34, %v2464_v17  ;;  %v2469_v43 = vsel %vm2426_vm4, %v2464_v17, %v2468_v29  ;;  %v2475_v34 = vrot.slane %v6138_v41, 3 }
  0xe3   : > { %v2488_v28 = vor.u32 %v2487_v27, %v2486_v11  ;;  %v4855_v27 = vld [vmem:[%s4921_s27 + $0x28] sm:$0xff]  }
  0xe4   : > { %4261 = vmatmul.mubr.msk.bf16.gmra.mrb[28].mxu1 %vm443_vm2, %v5615_v42 }
  0xe5   : > { %4264 = vmatprep.mubr.msk.bf16.mxu1 %vm443_vm2, %v5619_v54 }
  0xe6   : > { %4441 = vmatmul.mubr.msk.bf16.gmra.mrb[8].mxu0 %vm443_vm2, %v5357_v20  ;;  %v6135_v20 = vld [vmem:[#allocation11_spill] sm:$0xff] }
  0xe7   : > { %4444 = vmatprep.mubr.msk.bf16.mxu0 %vm443_vm2, %v5371_v44  ;;  %v2470_v15 = vrot.slane %v6135_v20, 2  ;;  %v2471_v44 = vrot.slane %v6136_v16, 3 }
  0xe9   : > { %v2472_v38 = vor.u32 %v2471_v44, %v2470_v15 }
  0xeb   : > { %v2473_v59 = vsel %vm2426_vm4, %v2468_v29, %v2472_v38 }
  0xec   : > { %4265 = vmatmul.mubr.msk.bf16.gmra.mrb[32].mxu1 %vm443_vm2, %v961_v63  ;;  %v6144_v63 = vld [vmem:[#allocation14_spill] sm:$0xff] }
  0xed   : > { %4272 = vmatprep.mubr.msk.bf16.mxu1 %vm443_vm2, %v5486_v7  ;;  %v6137_v7 = vld [vmem:[#allocation12_spill] sm:$0xff]  ;;  %v1559_v17 = vshrl.u32 %v6144_v63, 16  ;;  %v1562_v61 = vshll.u32 %v6144_v63, 16 }
  0xee   : > { %4445 = vmatmul.mubr.msk.bf16.gmra.mrb[12].mxu0 %vm443_vm2, %v5387_v39  ;;  %v2474_v37 = vrot.slane %v6137_v7, 2  ;;  %v4850_v39 = vld [vmem:[%s6079_s1 + $0x40] sm:$0xff]  }
  0xef   : > { %4448 = vmatprep.mubr.msk.bf16.mxu0 %vm443_vm2, %v2465_v8  ;;  %v2495_v8 = vshrl.u32 %v5230_v4, 16  ;;  %v2490_v44 = vrot.slane %v1559_v17, 2  ;;  %v2491_v29 = vrot.slane %v1562_v61, 3 }
  0xf4   : > { %4273 = vmatmul.mubr.msk.bf16.vlgmr.msra.gmra.mrb[0].mxu1 %vm443_vm2, %v5489_v22  ;;  %v2479_v22 = vrot.slane %v6140_v32, 3 }
  0xf5   : > { %4276 = vmatprep.mubr.msk.bf16.mxu1 %vm443_vm2, %v5506_v57  ;;  %4510 = vmatpush3.bf16.msra.mxu1 %v4850_v39  ;;  %v2476_v57 = vor.u32 %v2475_v34, %v2474_v37  ;;  %v2504_v34 = vshrl.u32 %v5547_v12, 16 }
  0xf6   : > { %4509 = vmatprep.subr.bf16.mxu1 %v4851_v33  ;;  %4449 = vmatmul.mubr.msk.bf16.gmra.mrb[16].mxu0 %vm443_vm2, %v2469_v43  ;;  %v2480_v52 = vor.u32 %v2479_v22, %v2478_v21  ;;  %v2497_v43 = vrot.slane %v2495_v8, 2 }
  0xf7   : > { %4452 = vmatprep.mubr.msk.bf16.mxu0 %vm443_vm2, %v2473_v59  ;;  %v2477_v26 = vsel %vm2426_vm4, %v2472_v38, %v2476_v57  ;;  %v2507_v59 = vshll.u32 %v5547_v12, 16  ;;  %v2506_v21 = vrot.slane %v2504_v34, 2 }
  0xf8   : > { %v2481_v13 = vsel %vm2426_vm4, %v2476_v57, %v2480_v52 }
  0xf9   : > { %4511 = vmatpush3.bf16.msra.mxu1 %v4851_v33  ;;  %v2509_v22 = vrot.slane %v2507_v59, 3  ;;  %v6145_v59 = vld [vmem:[#allocation6_spill] sm:$0xff] }
  0xfb   : > { %v2510_v57 = vor.u32 %v2509_v22, %v2506_v21  ;;  %v1543_v21 = vrot.slane %v6138_v41, 2  ;;  %v1546_v41 = vrot.slane %v6139_v45, 1  ;;  %v2820_v45 = vrot.slane %v5164_v19, 3 }
  0xfc   : > { %4277 = vmatmul.mubr.msk.bf16.gmra.mrb[4].mxu1 %vm443_vm2, %v5509_v55  ;;  %v2484_v55 = vor.u32 %v2483_v53, %v2482_v3  ;;  %v4853_v3 = vld [vmem:[%s4921_s27 + $0x18] sm:$0xff]  }
  0xfd   : > { %4280 = vmatprep.mubr.msk.bf16.mxu1 %vm443_vm2, %v5523_v47  ;;  %v2498_v47 = vshll.u32 %v5230_v4, 16 }
  0xfe   : > { %4453 = vmatmul.mubr.msk.bf16.gmra.mrb[20].mxu0 %vm443_vm2, %v2477_v26  ;;  %v2485_v15 = vsel %vm2426_vm4, %v2480_v52, %v2484_v55  ;;  %v2489_v38 = vsel %vm2426_vm4, %v2484_v55, %v2488_v28  ;;  %v4852_v52 = vld [vmem:[%s4921_s27 + $0x10] sm:$0xff]   ;;  %v2802_v55 = vrot.slane %v4855_v27, 3  ;;  %v1564_v27 = vrot.slane %v1562_v61, 2 }
  0xff   : > { %4456 = vmatprep.mubr.msk.bf16.mxu0 %vm443_vm2, %v2481_v13  ;;  %v2500_v37 = vrot.slane %v2498_v47, 3  ;;  %v2797_v26 = vrot.slane %v4852_v52, 3  ;;  %v4854_v13 = vld [vmem:[%s4921_s27 + $0x20] sm:$0xff]   ;;  %v4857_v47 = vld [vmem:[%s4921_s27 + $0x38] sm:$0xff]  }
 0x100   : > { %v2800_v11 = vrot.slane %v4854_v13, 3 }
 0x101   : > { %v2501_v39 = vor.u32 %v2500_v37, %v2497_v43  ;;  %v1534_v43 = vrot.slane %v6133_v58, 1  ;;  %v1535_v37 = vrot.slane %v6134_v6, 2  ;;  %v2814_v58 = vrot.slane %v5084_v49, 3 }
 0x102   : > { %v1539_v6 = vrot.slane %v6136_v16, 2 }
 0x103   : > { %v1536_v34 = vor.u32 %v1535_v37, %v1534_v43 }
 0x104   : > { %4281 = vmatmul.mubr.msk.bf16.gmra.mrb[8].mxu1 %vm443_vm2, %v5526_v0  ;;  %v2492_v0 = vor.u32 %v2491_v29, %v2490_v44  ;;  %v1250_v44 = vrot.slane %v6144_v63, 1  ;;  %v2808_v29 = vrot.slane %v5015_v60, 3  ;;  %v1252_v60 = vrot.slane %v5417_v31, 1 }
 0x105   : > { %4284 = vmatprep.mubr.msk.bf16.mxu1 %vm443_vm2, %v5539_v62 }
 0x106   : > { %4457 = vmatmul.mubr.msk.bf16.gmra.mrb[24].mxu0 %vm443_vm2, %v2485_v15  ;;  %v2493_v62 = vsel %vm2426_vm4, %v2488_v28, %v2492_v0  ;;  %v2502_v33 = vsel %vm2426_vm4, %v2492_v0, %v2501_v39  ;;  %v4856_v28 = vld [vmem:[%s4921_s27 + $0x30] sm:$0xff]   ;;  %v2806_v15 = vrot.slane %v4857_v47, 3 }
 0x107   : > { %4460 = vmatprep.mubr.msk.bf16.mxu0 %vm443_vm2, %v2489_v38  ;;  %v2804_v8 = vrot.slane %v4856_v28, 3  ;;  %v2810_v38 = vrot.slane %v5030_v9, 3  ;;  %v2812_v9 = vrot.slane %v5053_v25, 3 }
 0x109   : > { %v2811_v0 = vsel %vm2796_vm6, %v2808_v29, %v2810_v38  ;;  %v2813_v22 = vsel %vm2796_vm6, %v2810_v38, %v2812_v9  ;;  %v2815_v25 = vsel %vm2796_vm6, %v2812_v9, %v2814_v58  ;;  %v2832_v38 = vrot.slane %v5547_v12, 3 }
 0x10c   : > { %4285 = vmatmul.mubr.msk.bf16.gmra.mrb[12].mxu1 %vm443_vm2, %v5542_v1  ;;  %v2798_v1 = vrot.slane %v4853_v3, 3  ;;  %v1551_v3 = vrot.slane %v6142_v14, 2  ;;  %v1554_v14 = vrot.slane %v6143_v51, 1  ;;  %v1568_v51 = vshrl.u32 %v5417_v31, 16 }
 0x10d   : > { %4288 = vmatprep.mubr.msk.bf16.mxu1 %vm443_vm2, %v5559_v2  ;;  %v2511_v2 = vsel %vm2426_vm4, %v2501_v39, %v2510_v57  ;;  %v1537_v39 = vsel %vm1490_vm1, %v6145_v59, %v1536_v34  ;;  %v1547_v57 = vrot.slane %v6140_v32, 2  ;;  %vm3309_vm4 = vcmask 1041408  }
 0x10e   : > { %4461 = vmatmul.mubr.msk.bf16.gmra.mrb[28].mxu0 %vm443_vm2, %v2493_v62  ;;  %v2799_v53 = vsel %vm2796_vm6, %v2797_v26, %v2798_v1  ;;  %v1542_v62 = vrot.slane %v6137_v7, 1  ;;  %v2818_v7 = vrot.slane %v5125_v30, 3  ;;  %v1550_v26 = vrot.slane %v6141_v24, 1 }
 0x10f   : > { %4464 = vmatprep.mubr.msk.bf16.mxu0 %vm443_vm2, %v2502_v33  ;;  %v2822_v24 = vrot.slane %v5175_v5, 3  ;;  %v1570_v28 = vrot.slane %v1568_v51, 1 }
 0x110   : > { %v1544_v33 = vor.u32 %v1543_v21, %v1542_v62  ;;  %v1552_v30 = vor.u32 %v1551_v3, %v1550_v26  ;;  %v2821_v19 = vsel %vm2796_vm6, %v2818_v7, %v2820_v45 }
 0x111   : > { %v2823_v5 = vsel %vm2796_vm6, %v2820_v45, %v2822_v24 }
 0x114   : > { %4289 = vmatmul.mubr.msk.bf16.gmra.mrb[16].mxu1 %vm443_vm2, %v5562_v36  ;;  %v2801_v36 = vsel %vm2796_vm6, %v2798_v1, %v2800_v11 }
 0x115   : > { %4292 = vmatprep.mubr.msk.bf16.mxu1 %vm443_vm2, %v5577_v50  ;;  %v2803_v50 = vsel %vm2796_vm6, %v2800_v11, %v2802_v55  ;;  %v1561_v11 = vrot.slane %v1559_v17, 1  ;;  %v2824_v17 = vrot.slane %v5202_v46, 3  ;;  %v2828_v46 = vrot.slane %v6144_v63, 3 }
 0x116   : > { %4465 = vmatmul.mubr.msk.bf16.gmra.mrb[32].mxu0 %vm443_vm2, %v2511_v2  ;;  %v1548_v2 = vor.u32 %v1547_v57, %v1546_v41 }
 0x117   : > { %4472 = vmatprep.mubr.msk.bf16.mxu0 %vm443_vm2, %v2799_v53  ;;  %v1555_v53 = vrot.slane %v5130_v35, 2  ;;  %v1571_v35 = vshll.u32 %v5417_v31, 16 }
 0x118   : > { %v1549_v32 = vsel %vm1490_vm1, %v1544_v33, %v1548_v2  ;;  %v1553_v13 = vsel %vm1490_vm1, %v1548_v2, %v1552_v30 }
 0x11c   : > { %4293 = vmatmul.mubr.msk.bf16.gmra.mrb[20].mxu1 %vm443_vm2, %v5580_v40  ;;  %v2805_v40 = vsel %vm2796_vm6, %v2802_v55, %v2804_v8  ;;  %v1556_v55 = vor.u32 %v1555_v53, %v1554_v14 }
 0x11d   : > { %4296 = vmatprep.mubr.msk.bf16.mxu1 %vm443_vm2, %v5597_v48  ;;  %v2807_v48 = vsel %vm2796_vm6, %v2804_v8, %v2806_v15  ;;  %v1573_v8 = vrot.slane %v1571_v35, 2 }
 0x11e   : > { %4473 = vmatmul.mubr.msk.bf16.vlgmr.msra.gmra.mrb[0].mxu0 %vm443_vm2, %v2801_v36  ;;  %v1565_v36 = vor.u32 %v1564_v27, %v1561_v11  ;;  %v1557_v61 = vsel %vm1490_vm1, %v1552_v30, %v1556_v55 }
 0x11f   : > { %4476 = vmatprep.mubr.msk.bf16.mxu0 %vm443_vm2, %v2803_v50  ;;  %v2826_v50 = vrot.slane %v5110_v10, 3 }
 0x120   : > { %v1566_v47 = vsel %vm1490_vm1, %v1556_v55, %v1565_v36 }
 0x121   : > { %v2827_v31 = vsel %vm2796_vm6, %v2824_v17, %v2826_v50 }
 0x124   : > { %4297 = vmatmul.mubr.msk.bf16.gmra.mrb[24].mxu1 %vm443_vm2, %v5600_v23  ;;  %v1251_v23 = vsel %vm924_vm5, %v5608_v56, %v1250_v44  ;;  %v1253_v56 = vsel %vm924_vm5, %v1250_v44, %v1252_v60  ;;  %v2829_v44 = vsel %vm2796_vm6, %v2826_v50, %v2828_v46 }
 0x125   : > { %4300 = vmatprep.mubr.msk.bf16.mxu1 %vm443_vm2, %v5615_v42  ;;  %v2809_v42 = vsel %vm2796_vm6, %v2806_v15, %v2808_v29  ;;  %v2825_v15 = vsel %vm2796_vm6, %v2822_v24, %v2824_v17 }
 0x126   : > { %4477 = vmatmul.mubr.msk.bf16.gmra.mrb[4].mxu0 %vm443_vm2, %v2805_v40  ;;  %v1574_v40 = vor.u32 %v1573_v8, %v1570_v28 }
 0x127   : > { %4480 = vmatprep.mubr.msk.bf16.mxu0 %vm443_vm2, %v2807_v48  ;;  %v2830_v48 = vrot.slane %v5230_v4, 3 }
 0x128   : > { %v1575_v10 = vsel %vm1490_vm1, %v1565_v36, %v1574_v40 }
 0x129   : > { %v2831_v29 = vsel %vm2796_vm6, %v2828_v46, %v2830_v48 }
 0x12c   : > { %4301 = vmatmul.mubr.msk.bf16.gmra.mrb[28].mxu1 %vm443_vm2, %v5619_v54  ;;  %v1538_v54 = vrot.slane %v6135_v20, 1  ;;  %v2816_v20 = vrot.slane %v5114_v18, 3 }
 0x12d   : > { %4304 = vmatprep.mubr.msk.bf16.mxu1 %vm443_vm2, %v1251_v23  ;;  %v2833_v23 = vsel %vm2796_vm6, %v2830_v48, %v2832_v38 }
 0x12e   : > { %4481 = vmatmul.mubr.msk.bf16.gmra.mrb[8].mxu0 %vm443_vm2, %v2809_v42  ;;  %v1540_v49 = vor.u32 %v1539_v6, %v1538_v54  ;;  %v2817_v1 = vsel %vm2796_vm6, %v2814_v58, %v2816_v20  ;;  %v2819_v18 = vsel %vm2796_vm6, %v2816_v20, %v2818_v7  ;;  %vm3310_vm6 = vcmask 1045508  }
 0x12f   : > { %4484 = vmatprep.mubr.msk.bf16.mxu0 %vm443_vm2, %v2811_v0 }
 0x130   : > { %v1541_v16 = vsel %vm1490_vm1, %v1536_v34, %v1540_v49  ;;  %v1545_v52 = vsel %vm1490_vm1, %v1540_v49, %v1544_v33  ;;  %v5842_v33 = vld [vmem:[%s6080_s2] ss:$0 sm:$0xff]  ;;  %vm3333_vm1 = vcmask 1040384  }
 0x134   : > { %4305 = vmatmul.mubr.msk.bf16.gmra.mrb[32].mxu1 %vm443_vm2, %v1253_v56 }
 0x135   : > { %4332 = vmatprep.mubr.msk.bf16.mxu1 %vm443_vm2, %v1537_v39 }
 0x136   : > { %4485 = vmatmul.mubr.msk.bf16.gmra.mrb[12].mxu0 %vm443_vm2, %v2813_v22 }
 0x137   : > { %4488 = vmatprep.mubr.msk.bf16.mxu0 %vm443_vm2, %v2815_v25 }
 0x13c   : > { %4333 = vmatmul.mubr.msk.bf16.vlgmr.msra.gmra.mrb[20].mxu1 %vm443_vm2, %v1541_v16 }
 0x13d   : > { %4336 = vmatprep.mubr.msk.bf16.mxu1 %vm443_vm2, %v1545_v52 }
 0x13e   : > { %4489 = vmatmul.mubr.msk.bf16.gmra.mrb[16].mxu0 %vm443_vm2, %v2817_v1 }
 0x13f   : > { %4492 = vmatprep.mubr.msk.bf16.mxu0 %vm443_vm2, %v2819_v18 }
 0x144   : > { %4337 = vmatmul.mubr.msk.bf16.gmra.mrb[24].mxu1 %vm443_vm2, %v1549_v32 }
 0x145   : > { %4340 = vmatprep.mubr.msk.bf16.mxu1 %vm443_vm2, %v1553_v13 }
 0x146   : > { %4493 = vmatmul.mubr.msk.bf16.gmra.mrb[20].mxu0 %vm443_vm2, %v2821_v19 }
 0x147   : > { %4496 = vmatprep.mubr.msk.bf16.mxu0 %vm443_vm2, %v2823_v5 }
 0x14c   : > { %4341 = vmatmul.mubr.msk.bf16.gmra.mrb[28].mxu1 %vm443_vm2, %v1557_v61 }
 0x14d   : > { %4344 = vmatprep.mubr.msk.bf16.mxu1 %vm443_vm2, %v1566_v47 }
 0x14e   : > { %4497 = vmatmul.mubr.msk.bf16.gmra.mrb[24].mxu0 %vm443_vm2, %v2825_v15 }
 0x14f   : > { %4500 = vmatprep.mubr.msk.bf16.mxu0 %vm443_vm2, %v2827_v31 }
 0x154   : > { %4345 = vmatmul.mubr.msk.bf16.gmra.mrb[32].mxu1 %vm443_vm2, %v1575_v10 }
 0x156   : > { %4501 = vmatmul.mubr.msk.bf16.gmra.mrb[28].mxu0 %vm443_vm2, %v2829_v44 }
 0x157   : > { %4504 = vmatprep.mubr.msk.bf16.mxu0 %vm443_vm2, %v2831_v29 }
 0x15e   : > { %4505 = vmatmul.mubr.msk.bf16.gmra.mrb[32].mxu0 %vm443_vm2, %v2833_v23 }
 0x1c7   : > { %v4274_v63 = vpop.f32.mrb[0].mxu1 }
 0x1c8   : > { %v1306_v43 = vpop.f32.mrb[1].mxu1 }
 0x1c9   : > { %v4275_v37 = vpop.f32.mrb[2].mxu1 }
 0x1ca   : > { %v1309_v4 = vpop.f32.mrb[3].mxu1 }
 0x1cf   : > { %v4278_v42 = vpop.f32.mrb[4].mxu1 }
 0x1d0   : > { %v1322_v0 = vpop.f32.mrb[5].mxu1 }
 0x1d1   : > { %v4279_v60 = vpop.f32.mrb[6].mxu1 }
 0x1d2   : > { %v1325_v34 = vpop.f32.mrb[7].mxu1 }
 0x1d7   : > { %v5815_v9 = vpop.f32.mrb[8].mxu1 }
 0x1d8   : > { %v5817_v56 = vpop.f32.mrb[9].mxu1 }
 0x1d9   : > { %v5819_v58 = vpop.f32.mrb[10].mxu1 }
 0x1da   : > { %v5821_v54 = vpop.f32.mrb[11].mxu1 }
 0x1df   : > { %v5823_v12 = vpop.f32.mrb[12].mxu1 }
 0x1e0   : > { %v5825_v6 = vpop.f32.mrb[13].mxu1 }
 0x1e1   : > { %v5827_v59 = vpop.f32.mrb[14].mxu1 }
 0x1e2   : > { %v5829_v39 = vpop.f32.mrb[15].mxu1 }
 0x1e7   : > { %v5831_v62 = vpop.f32.mrb[16].mxu1 }
 0x1e8   : > { %v5833_v21 = vpop.f32.mrb[17].mxu1 }
 0x1e9   : > { %v5835_v22 = vpop.f32.mrb[18].mxu1 }
 0x1ea   : > { %v5837_v25 = vpop.f32.mrb[19].mxu1 }
 0x1f1   : > { %v4474_v49 = vpop.f32.mrb[0].mxu0 }
 0x1f2   : > { %v4512_v20 = vadd.f32 %v4474_v49, %v4274_v63  ;;  %v2934_v16 = vpop.f32.mrb[1].mxu0 }
 0x1f3   : > { %v4513_v7 = vadd.f32 %v2934_v16, %v1306_v43  ;;  %v4475_v41 = vpop.f32.mrb[2].mxu0 }
 0x1f4   : > { %v3122_v57 = vadd.f32 %v4512_v20, %v5842_v33  ;;  %v4514_v52 = vadd.f32 %v4475_v41, %v4275_v37  ;;  %v2937_v26 = vpop.f32.mrb[3].mxu0 }
 0x1f5   : > { %v3120_v3 = vadd.f32 %v4513_v7, %v5842_v33  ;;  %v4515_v1 = vadd.f32 %v2937_v26, %v1309_v4 }
 0x1f6   : > { %vm3158_vm7 = vcmp.ge.f32.partialorder %v3122_v57, 0.0  ;;  %v3194_v18 = vmul.f32 0.2, %v3122_v57  ;;  %v3123_v2 = vadd.f32 %v4514_v52, %v5842_v33 }
 0x1f7   : > { %vm3156_vm9 = vcmp.ge.f32.partialorder %v3120_v3, 0.0  ;;  %v3192_v30 = vmul.f32 0.2, %v3120_v3  ;;  %v3121_v45 = vadd.f32 %v4515_v1, %v5842_v33 }
 0x1f8   : > { %v3230_v32 = vsel %vm3158_vm7, %v3122_v57, %v3194_v18  ;;  %vm3159_vm11 = vcmp.ge.f32.partialorder %v3123_v2, 0.0  ;;  %v3195_v24 = vmul.f32 0.2, %v3123_v2  ;;  %vm5875_vm7 = vmor %vm3333_vm1, %vm3334_vm3 }
 0x1f9   : > { %v3926_v14 = vpack.c.bf16 %v3230_v32, %v3230_v32  ;;  %v3228_v53 = vsel %vm3156_vm9, %v3120_v3, %v3192_v30  ;;  %vm3157_vm13 = vcmp.ge.f32.partialorder %v3121_v45, 0.0  ;;  %v3193_v13 = vmul.f32 0.2, %v3121_v45  ;;  %v4478_v11 = vpop.f32.mrb[4].mxu0  ;;  %vm5885_vm9 = vmor %vm3309_vm4, %vm3310_vm6 }
 0x1fa   : > { %v3924_v27 = vpack.c.bf16 %v3228_v53, %v3228_v53  ;;  %v3231_v19 = vsel %vm3159_vm11, %v3123_v2, %v3195_v24  ;;  %v4516_v5 = vadd.f32 %v4478_v11, %v4278_v42  ;;  %v2950_v55 = vpop.f32.mrb[5].mxu0 }
 0x1fb   : > { %v3927_v51 = vpack.c.bf16 %v3231_v19, %v3231_v19  ;;  %v3229_v35 = vsel %vm3157_vm13, %v3121_v45, %v3193_v13  ;;  %v4517_v36 = vadd.f32 %v2950_v55, %v1322_v0  ;;  %v4479_v17 = vpop.f32.mrb[6].mxu0  ;;  %v3870_v15 = vrot.slane %v3926_v14, 9 }
 0x1fc   : > { %3273 = vst.msk [vmem:[%s5852_s11] sm:$0xf] %vm3272_vm8, %v3924_v27  ;;  %v3925_v50 = vpack.c.bf16 %v3229_v35, %v3229_v35  ;;  %v3126_v28 = vadd.f32 %v4516_v5, %v5842_v33  ;;  %v4518_v8 = vadd.f32 %v4479_v17, %v4279_v60  ;;  %v2953_v47 = vpop.f32.mrb[7].mxu0 }
 0x1fd   : > { %v3290_v31 = vrot.slane %v3927_v51, 5  ;;  %v3124_v40 = vadd.f32 %v4517_v36, %v5842_v33  ;;  %v4519_v46 = vadd.f32 %v2953_v47, %v1325_v34 }
 0x1fe   : > { %3274 = vst.msk [vmem:[%s5852_s11 + $0x4] sm:$0xf] %vm3272_vm8, %v3925_v50  ;;  %vm3162_vm15 = vcmp.ge.f32.partialorder %v3126_v28, 0.0  ;;  %v3198_v10 = vmul.f32 0.2, %v3126_v28  ;;  %v3127_v48 = vadd.f32 %v4518_v8, %v5842_v33 }
 0x1ff   : > { %v3291_v44 = vsel %vm5858_vm14, %v3870_v15, %v3290_v31  ;;  %vm3160_vm0 = vcmp.ge.f32.partialorder %v3124_v40, 0.0  ;;  %v3196_v29 = vmul.f32 0.2, %v3124_v40  ;;  %v3125_v63 = vadd.f32 %v4519_v46, %v5842_v33 }
 0x200   : > { %3297 = vst.msk [vmem:[%s5852_s11 + $0x8] sm:$0xf] %vm3272_vm8, %v3291_v44  ;;  %v3234_v38 = vsel %vm3162_vm15, %v3126_v28, %v3198_v10  ;;  %vm3163_vm2 = vcmp.ge.f32.partialorder %v3127_v48, 0.0  ;;  %v3199_v23 = vmul.f32 0.2, %v3127_v48  ;;  %v3292_v49 = vrot.slane %v3290_v31, 4 }
 0x201   : > { %v3931_v43 = vpack.c.bf16 %v3234_v38, %v3234_v38  ;;  %v3232_v37 = vsel %vm3160_vm0, %v3124_v40, %v3196_v29  ;;  %v4482_v4 = vpop.f32.mrb[8].mxu0  ;;  %vm3161_vm5 = vcmp.ge.f32.partialorder %v3125_v63, 0.0  ;;  %v3197_v60 = vmul.f32 0.2, %v3125_v63 }
 0x202   : > { %v3928_v42 = vpack.c.bf16 %v3232_v37, %v3232_v37  ;;  %v3235_v0 = vsel %vm3163_vm2, %v3127_v48, %v3199_v23  ;;  %v2966_v34 = vpop.f32.mrb[9].mxu0  ;;  %v4520_v16 = vadd.f32 %v4482_v4, %v5815_v9 }
 0x203   : > { %v3933_v20 = vpack.c.bf16 %v3235_v0, %v3235_v0  ;;  %v4483_v7 = vpop.f32.mrb[10].mxu0  ;;  %v3878_v41 = vrot.slane %v3931_v43, 11  ;;  %v3233_v26 = vsel %vm3161_vm5, %v3125_v63, %v3197_v60  ;;  %v4521_v3 = vadd.f32 %v2966_v34, %v5817_v56 }
 0x204   : > { %v3293_v57 = vrot.slane %v3928_v42, 5  ;;  %v2969_v1 = vpop.f32.mrb[11].mxu0  ;;  %v3930_v2 = vpack.c.bf16 %v3233_v26, %v3233_v26  ;;  %v3130_v30 = vadd.f32 %v4520_v16, %v5842_v33  ;;  %v4522_v9 = vadd.f32 %v4483_v7, %v5819_v58 }
 0x205   : > { %v3338_v18 = vrot.slane %v3933_v20, 7  ;;  %v3128_v24 = vadd.f32 %v4521_v3, %v5842_v33  ;;  %v4523_v14 = vadd.f32 %v2969_v1, %v5821_v54  ;;  %v3874_v56 = vrot.slane %v3928_v42, 10 }
 0x206   : > { %v3294_v45 = vsel %vm5858_vm14, %v3292_v49, %v3293_v57  ;;  %v3314_v58 = vrot.slane %v3930_v2, 6  ;;  %vm3166_vm10 = vcmp.ge.f32.partialorder %v3130_v30, 0.0  ;;  %v3202_v13 = vmul.f32 0.2, %v3130_v30 }
 0x207   : > { %3298 = vst.msk [vmem:[%s5852_s11 + $0xc] sm:$0xf] %vm3272_vm8, %v3294_v45  ;;  %v3339_v53 = vsel %vm5875_vm7, %v3878_v41, %v3338_v18  ;;  %vm3164_vm11 = vcmp.ge.f32.partialorder %v3128_v24, 0.0  ;;  %v3200_v11 = vmul.f32 0.2, %v3128_v24  ;;  %v3131_v27 = vadd.f32 %v4522_v9, %v5842_v33 }
 0x208   : > { %3345 = vst.msk [vmem:[%s5852_s11 + $0x18] sm:$0xf] %vm3272_vm8, %v3339_v53  ;;  %v3317_v19 = vrot.slane %v3931_v43, 6  ;;  %v3315_v54 = vsel %vm5885_vm9, %v3874_v56, %v3314_v58  ;;  %v3316_v5 = vrot.slane %v3314_v58, 4  ;;  %v3129_v55 = vadd.f32 %v4523_v14, %v5842_v33 }
 0x209   : > { %v4486_v51 = vpop.f32.mrb[12].mxu0  ;;  %3321 = vst.msk [vmem:[%s5852_s11 + $0x10] sm:$0xf] %vm3272_vm8, %v3315_v54  ;;  %v3238_v35 = vsel %vm3166_vm10, %v3130_v30, %v3202_v13  ;;  %v3236_v36 = vsel %vm3164_vm11, %v3128_v24, %v3200_v11  ;;  %vm3167_vm12 = vcmp.ge.f32.partialorder %v3131_v27, 0.0  ;;  %v3203_v17 = vmul.f32 0.2, %v3131_v27 }
 0x20a   : > { %v2982_v50 = vpop.f32.mrb[13].mxu0  ;;  %v3318_v28 = vsel %vm5885_vm9, %v3316_v5, %v3317_v19  ;;  %v3936_v8 = vpack.c.bf16 %v3238_v35, %v3238_v35  ;;  %v3934_v47 = vpack.c.bf16 %v3236_v36, %v3236_v36  ;;  %vm3165_vm13 = vcmp.ge.f32.partialorder %v3129_v55, 0.0 }
 0x20b   : > { %v4487_v15 = vpop.f32.mrb[14].mxu0  ;;  %3322 = vst.msk [vmem:[%s5852_s11 + $0x14] sm:$0xf] %vm3272_vm8, %v3318_v28  ;;  %v3239_v31 = vsel %vm3167_vm12, %v3131_v27, %v3203_v17  ;;  %v3201_v40 = vmul.f32 0.2, %v3129_v55  ;;  %v4524_v46 = vadd.f32 %v4486_v51, %v5823_v12  ;;  %v4525_v10 = vadd.f32 %v2982_v50, %v5825_v6 }
 0x20c   : > { %v2985_v48 = vpop.f32.mrb[15].mxu0  ;;  %v3340_v44 = vrot.slane %v3338_v18, 4  ;;  %3356 = vst.msk [vmem:[%s5852_s11 + $0x24] sm:$0xf] %vm3272_vm8, %v3936_v8  ;;  %v3341_v29 = vrot.slane %v3934_v47, 7  ;;  %v4526_v38 = vadd.f32 %v4487_v15, %v5827_v59  ;;  %v3937_v63 = vpack.c.bf16 %v3239_v31, %v3239_v31 }
 0x20d   : > { %v4527_v23 = vadd.f32 %v2985_v48, %v5829_v39  ;;  %v3237_v43 = vsel %vm3165_vm13, %v3129_v55, %v3201_v40  ;;  %v3134_v37 = vadd.f32 %v4524_v46, %v5842_v33  ;;  %v3132_v4 = vadd.f32 %v4525_v10, %v5842_v33 }
 0x20e   : > { %v3342_v6 = vsel %vm5875_vm7, %v3340_v44, %v3341_v29  ;;  %v3935_v42 = vpack.c.bf16 %v3237_v43, %v3237_v43  ;;  %v3135_v0 = vadd.f32 %v4526_v38, %v5842_v33  ;;  %v3884_v7 = vrot.slane %v3937_v63, 9 }
 0x20f   : > { %v5915_v12 = vpop.f32.mrb[20].mxu1  ;;  %3346 = vst.msk [vmem:[%s5852_s11 + $0x1c] sm:$0xf] %vm3272_vm8, %v3342_v6  ;;  %vm3170_vm15 = vcmp.ge.f32.partialorder %v3134_v37, 0.0  ;;  %v3206_v59 = vmul.f32 0.2, %v3134_v37  ;;  %v3133_v49 = vadd.f32 %v4527_v23, %v5842_v33 }
 0x210   : > { %v5920_v60 = vpop.f32.mrb[21].mxu1  ;;  %vm3168_vm0 = vcmp.ge.f32.partialorder %v3132_v4, 0.0  ;;  %v3204_v39 = vmul.f32 0.2, %v3132_v4  ;;  %3355 = vst.msk [vmem:[%s5852_s11 + $0x20] sm:$0xf] %vm3272_vm8, %v3935_v42 }
 0x211   : > { %vm3171_vm1 = vcmp.ge.f32.partialorder %v3135_v0, 0.0  ;;  %v3207_v34 = vmul.f32 0.2, %v3135_v0  ;;  %v4490_v20 = vpop.f32.mrb[16].mxu0  ;;  %v5927_v16 = vpop.f32.mrb[22].mxu1  ;;  %v3242_v41 = vsel %vm3170_vm15, %v3134_v37, %v3206_v59  ;;  %vm3169_vm2 = vcmp.ge.f32.partialorder %v3133_v49, 0.0 }
 0x212   : > { %v3240_v57 = vsel %vm3168_vm0, %v3132_v4, %v3204_v39  ;;  %v4528_v26 = vadd.f32 %v4490_v20, %v5831_v62  ;;  %v2998_v3 = vpop.f32.mrb[17].mxu0  ;;  %v1759_v1 = vpop.f32.mrb[23].mxu1  ;;  %v3941_v18 = vpack.c.bf16 %v3242_v41, %v3242_v41  ;;  %v3205_v24 = vmul.f32 0.2, %v3133_v49 }
 0x213   : > { %v3938_v2 = vpack.c.bf16 %v3240_v57, %v3240_v57  ;;  %v3243_v30 = vsel %vm3171_vm1, %v3135_v0, %v3207_v34  ;;  %v4491_v9 = vpop.f32.mrb[18].mxu0  ;;  %v4529_v56 = vadd.f32 %v2998_v3, %v5833_v21 }
 0x214   : > { %v5930_v45 = vpack.c.bf16 %v3243_v30, %v3243_v30  ;;  %v3138_v14 = vadd.f32 %v4528_v26, %v5842_v33  ;;  %v3001_v53 = vpop.f32.mrb[19].mxu0  ;;  %v3390_v58 = vrot.slane %v3941_v18, 6  ;;  %v4530_v62 = vadd.f32 %v4491_v9, %v5835_v22 }
 0x215   : > { %v3369_v13 = vrot.slane %v3938_v2, 5  ;;  %v4531_v11 = vadd.f32 %v3001_v53, %v5837_v25  ;;  %v3241_v19 = vsel %vm3169_vm2, %v3133_v49, %v3205_v24  ;;  %v3136_v25 = vadd.f32 %v4529_v56, %v5842_v33 }
 0x216   : > { %v3393_v27 = vrot.slane %v5930_v45, 6  ;;  %vm3174_vm3 = vcmp.ge.f32.partialorder %v3138_v14, 0.0  ;;  %v3392_v5 = vrot.slane %v3390_v58, 4  ;;  %v3939_v21 = vpack.c.bf16 %v3241_v19, %v3241_v19 }
 0x217   : > { %v5937_v54 = vpop.f32.mrb[24].mxu1  ;;  %v3370_v55 = vsel %vm5858_vm14, %v3884_v7, %v3369_v13  ;;  %v3371_v51 = vrot.slane %v3369_v13, 4  ;;  %v3210_v22 = vmul.f32 0.2, %v3138_v14  ;;  %v3139_v36 = vadd.f32 %v4530_v62, %v5842_v33 }
 0x218   : > { %v5941_v35 = vpop.f32.mrb[25].mxu1  ;;  %3376 = vst.msk [vmem:[%s5852_s11 + $0x28] sm:$0xf] %vm3272_vm8, %v3370_v55  ;;  %v3137_v17 = vadd.f32 %v4531_v11, %v5842_v33  ;;  %v3394_v28 = vsel %vm5885_vm9, %v3392_v5, %v3393_v27  ;;  %v3892_v8 = vrot.slane %v5930_v45, 11  ;;  %v3372_v47 = vrot.slane %v3939_v21, 5 }
 0x219   : > { %v5948_v50 = vpop.f32.mrb[26].mxu1  ;;  %v3888_v15 = vrot.slane %v3939_v21, 10  ;;  %v4494_v31 = vpop.f32.mrb[20].mxu0  ;;  %3398 = vst.msk [vmem:[%s5852_s11 + $0x34] sm:$0xf] %vm3272_vm8, %v3394_v28  ;;  %v3246_v46 = vsel %vm3174_vm3, %v3138_v14, %v3210_v22  ;;  %vm3172_vm4 = vcmp.ge.f32.partialorder %v3136_v25, 0.0 }
 0x21a   : > { %v5953_v40 = vpop.f32.mrb[27].mxu1  ;;  %v3208_v10 = vmul.f32 0.2, %v3136_v25  ;;  %vm3175_vm5 = vcmp.ge.f32.partialorder %v3139_v36, 0.0  ;;  %v3014_v48 = vpop.f32.mrb[21].mxu0  ;;  %v3373_v44 = vsel %vm5858_vm14, %v3371_v51, %v3372_v47  ;;  %v3946_v38 = vpack.c.bf16 %v3246_v46, %v3246_v46 }
 0x21b   : > { %v3391_v29 = vsel %vm5885_vm9, %v3888_v15, %v3390_v58  ;;  %v3211_v23 = vmul.f32 0.2, %v3139_v36  ;;  %v4495_v63 = vpop.f32.mrb[22].mxu0  ;;  %3377 = vst.msk [vmem:[%s5852_s11 + $0x2c] sm:$0xf] %vm3272_vm8, %v3373_v44  ;;  %vm3173_vm6 = vcmp.ge.f32.partialorder %v3137_v17, 0.0  ;;  %v4532_v4 = vadd.f32 %v4494_v31, %v5915_v12 }
 0x21c   : > { %3397 = vst.msk [vmem:[%s5852_s11 + $0x30] sm:$0xf] %vm3272_vm8, %v3391_v29  ;;  %v3244_v43 = vsel %vm3172_vm4, %v3136_v25, %v3208_v10  ;;  %v3209_v37 = vmul.f32 0.2, %v3137_v17  ;;  %v3017_v6 = vpop.f32.mrb[23].mxu0  ;;  %v4533_v59 = vadd.f32 %v3014_v48, %v5920_v60  ;;  %v4534_v39 = vadd.f32 %v4495_v63, %v5927_v16 }
 0x21d   : > { %3428 = vst.msk [vmem:[%s5852_s11 + $0x40] sm:$0xf] %vm3272_vm8, %v3946_v38  ;;  %v3944_v42 = vpack.c.bf16 %v3244_v43, %v3244_v43  ;;  %v3247_v0 = vsel %vm3175_vm5, %v3139_v36, %v3211_v23  ;;  %v3142_v20 = vadd.f32 %v4532_v4, %v5842_v33  ;;  %v4535_v7 = vadd.f32 %v3017_v6, %v1759_v1 }
 0x21e   : > { %v3947_v34 = vpack.c.bf16 %v3247_v0, %v3247_v0  ;;  %v3245_v49 = vsel %vm3173_vm6, %v3137_v17, %v3209_v37  ;;  %v3140_v26 = vadd.f32 %v4533_v59, %v5842_v33  ;;  %v3143_v3 = vadd.f32 %v4534_v39, %v5842_v33 }
 0x21f   : > { %v4342_v41 = vpop.f32.mrb[28].mxu1  ;;  %v3411_v57 = vrot.slane %v3944_v42, 7  ;;  %v3945_v12 = vpack.c.bf16 %v3245_v49, %v3245_v49  ;;  %vm3178_vm10 = vcmp.ge.f32.partialorder %v3142_v20, 0.0  ;;  %v3214_v60 = vmul.f32 0.2, %v3142_v20 }
 0x220   : > { %v5975_v18 = vpop.f32.mrb[29].mxu1  ;;  %3429 = vst.msk [vmem:[%s5852_s11 + $0x44] sm:$0xf] %vm3272_vm8, %v3947_v34  ;;  %v3141_v16 = vadd.f32 %v4535_v7, %v5842_v33  ;;  %vm3176_vm11 = vcmp.ge.f32.partialorder %v3140_v26, 0.0  ;;  %v3212_v56 = vmul.f32 0.2, %v3140_v26 }
 0x221   : > { %v5980_v2 = vpop.f32.mrb[30].mxu1  ;;  %v3412_v1 = vsel %vm5875_vm7, %v3892_v8, %v3411_v57  ;;  %v3413_v30 = vrot.slane %v3411_v57, 4  ;;  %v3414_v9 = vrot.slane %v3945_v12, 7  ;;  %v4498_v45 = vpop.f32.mrb[24].mxu0  ;;  %v3250_v14 = vsel %vm3178_vm10, %v3142_v20, %v3214_v60 }
 0x222   : > { %v5984_v24 = vpop.f32.mrb[31].mxu1  ;;  %3418 = vst.msk [vmem:[%s5852_s11 + $0x38] sm:$0xf] %vm3272_vm8, %v3412_v1  ;;  %vm3179_vm12 = vcmp.ge.f32.partialorder %v3143_v3, 0.0  ;;  %v3215_v53 = vmul.f32 0.2, %v3143_v3  ;;  %v3950_v62 = vpack.c.bf16 %v3250_v14, %v3250_v14  ;;  %v3248_v19 = vsel %vm3176_vm11, %v3140_v26, %v3212_v56 }
 0x223   : > { %v3030_v58 = vpop.f32.mrb[25].mxu0  ;;  %v3415_v13 = vsel %vm5875_vm7, %v3413_v30, %v3414_v9  ;;  %vm3177_vm13 = vcmp.ge.f32.partialorder %v3141_v16, 0.0  ;;  %v3213_v11 = vmul.f32 0.2, %v3141_v16  ;;  %v4536_v55 = vadd.f32 %v4498_v45, %v5937_v54 }
 0x224   : > { %v4499_v27 = vpop.f32.mrb[26].mxu0  ;;  %3419 = vst.msk [vmem:[%s5852_s11 + $0x3c] sm:$0xf] %vm3272_vm8, %v3415_v13  ;;  %v3251_v5 = vsel %vm3179_vm12, %v3143_v3, %v3215_v53  ;;  %v4537_v51 = vadd.f32 %v3030_v58, %v5941_v35  ;;  %v3948_v22 = vpack.c.bf16 %v3248_v19, %v3248_v19  ;;  %v3902_v15 = vrot.slane %v3950_v62, 10 }
 0x225   : > { %v3033_v21 = vpop.f32.mrb[27].mxu0  ;;  %v3952_v25 = vpack.c.bf16 %v3251_v5, %v3251_v5  ;;  %v3249_v36 = vsel %vm3177_vm13, %v3141_v16, %v3213_v11  ;;  %v3146_v17 = vadd.f32 %v4536_v55, %v5842_v33  ;;  %v4538_v8 = vadd.f32 %v4499_v27, %v5948_v50 }
 0x226   : > { %v3144_v28 = vadd.f32 %v4537_v51, %v5842_v33  ;;  %v3949_v46 = vpack.c.bf16 %v3249_v36, %v3249_v36  ;;  %v4539_v54 = vadd.f32 %v3033_v21, %v5953_v40  ;;  %v3898_v44 = vrot.slane %v3948_v22, 9 }
 0x227   : > { %v5997_v47 = vpop.f32.mrb[32].mxu1  ;;  %v3463_v31 = vrot.slane %v3952_v25, 6  ;;  %vm3182_vm15 = vcmp.ge.f32.partialorder %v3146_v17, 0.0  ;;  %v3218_v35 = vmul.f32 0.2, %v3146_v17  ;;  %v3147_v50 = vadd.f32 %v4538_v8, %v5842_v33 }
 0x228   : > { %v6000_v10 = vpop.f32.mrb[33].mxu1  ;;  %vm3180_vm0 = vcmp.ge.f32.partialorder %v3144_v28, 0.0  ;;  %v3216_v48 = vmul.f32 0.2, %v3144_v28  ;;  %v3442_v38 = vrot.slane %v3949_v46, 5  ;;  %v3145_v37 = vadd.f32 %v4539_v54, %v5842_v33 }
 0x229   : > { %v3464_v29 = vsel %vm5885_vm9, %v3902_v15, %v3463_v31  ;;  %v4502_v23 = vpop.f32.mrb[28].mxu0  ;;  %v6005_v63 = vpop.f32.mrb[34].mxu1  ;;  %v3254_v40 = vsel %vm3182_vm15, %v3146_v17, %v3218_v35  ;;  %v3445_v0 = vrot.slane %v3950_v62, 5  ;;  %vm3183_vm1 = vcmp.ge.f32.partialorder %v3147_v50, 0.0 }
 0x22a   : > { %3470 = vst.msk [vmem:[%s5852_s11 + $0x50] sm:$0xf] %vm3272_vm8, %v3464_v29  ;;  %v3252_v43 = vsel %vm3180_vm0, %v3144_v28, %v3216_v48  ;;  %v4540_v4 = vadd.f32 %v4502_v23, %v4342_v41  ;;  %v3046_v6 = vpop.f32.mrb[29].mxu0  ;;  %v6010_v42 = vpop.f32.mrb[35].mxu1  ;;  %v3443_v59 = vsel %vm5858_vm14, %v3898_v44, %v3442_v38  ;;  %v3444_v39 = vrot.slane %v3442_v38, 4 }
 0x22b   : > { %v3953_v34 = vpack.c.bf16 %v3252_v43, %v3252_v43  ;;  %v4503_v49 = vpop.f32.mrb[30].mxu0  ;;  %3449 = vst.msk [vmem:[%s5852_s11 + $0x48] sm:$0xf] %vm3272_vm8, %v3443_v59  ;;  %v3219_v20 = vmul.f32 0.2, %v3147_v50  ;;  %vm3181_vm2 = vcmp.ge.f32.partialorder %v3145_v37, 0.0  ;;  %v3956_v12 = vpack.c.bf16 %v3254_v40, %v3254_v40 }
 0x22c   : > { %v3217_v7 = vmul.f32 0.2, %v3145_v37  ;;  %v3465_v57 = vrot.slane %v3463_v31, 4  ;;  %v3446_v41 = vsel %vm5858_vm14, %v3444_v39, %v3445_v0  ;;  %v3049_v3 = vpop.f32.mrb[31].mxu0  ;;  %v3150_v1 = vadd.f32 %v4540_v4, %v5842_v33 }
 0x22d   : > { %v3466_v26 = vrot.slane %v3953_v34, 6  ;;  %3450 = vst.msk [vmem:[%s5852_s11 + $0x4c] sm:$0xf] %vm3272_vm8, %v3446_v41  ;;  %v3255_v60 = vsel %vm3183_vm1, %v3147_v50, %v3219_v20  ;;  %v4541_v30 = vadd.f32 %v3046_v6, %v5975_v18  ;;  %v4542_v56 = vadd.f32 %v4503_v49, %v5980_v2 }
 0x22e   : > { %v3253_v16 = vsel %vm3181_vm2, %v3145_v37, %v3217_v7  ;;  %v3957_v45 = vpack.c.bf16 %v3255_v60, %v3255_v60  ;;  %vm3186_vm3 = vcmp.ge.f32.partialorder %v3150_v1, 0.0  ;;  %v3222_v53 = vmul.f32 0.2, %v3150_v1 }
 0x22f   : > { %v3467_v9 = vsel %vm5885_vm9, %v3465_v57, %v3466_v26  ;;  %v3955_v14 = vpack.c.bf16 %v3253_v16, %v3253_v16  ;;  %v3148_v58 = vadd.f32 %v4541_v30, %v5842_v33  ;;  %v4543_v13 = vadd.f32 %v3049_v3, %v5984_v24 }
 0x230   : > { %3471 = vst.msk [vmem:[%s5852_s11 + $0x54] sm:$0xf] %vm3272_vm8, %v3467_v9  ;;  %v3487_v62 = vrot.slane %v3956_v12, 7  ;;  %v3906_v11 = vrot.slane %v3953_v34, 11  ;;  %3501 = vst.msk [vmem:[%s5852_s11 + $0x60] sm:$0xf] %vm3272_vm8, %v3957_v45  ;;  %v3151_v27 = vadd.f32 %v4542_v56, %v5842_v33  ;;  %v3258_v5 = vsel %vm3186_vm3, %v3150_v1, %v3222_v53 }
 0x231   : > { %v3484_v18 = vrot.slane %v3955_v14, 7  ;;  %v4506_v19 = vpop.f32.mrb[32].mxu0  ;;  %vm3184_vm4 = vcmp.ge.f32.partialorder %v3148_v58, 0.0  ;;  %v3220_v2 = vmul.f32 0.2, %v3148_v58  ;;  %v3149_v55 = vadd.f32 %v4543_v13, %v5842_v33 }
 0x232   : > { %v3062_v51 = vpop.f32.mrb[33].mxu0  ;;  %v3960_v22 = vpack.c.bf16 %v3258_v5, %v3258_v5  ;;  %vm3187_vm5 = vcmp.ge.f32.partialorder %v3151_v27, 0.0  ;;  %v3223_v17 = vmul.f32 0.2, %v3151_v27  ;;  %v4544_v54 = vadd.f32 %v4506_v19, %v5997_v47 }
 0x233   : > { %v3485_v21 = vsel %vm5875_vm7, %v3906_v11, %v3484_v18  ;;  %v3486_v24 = vrot.slane %v3484_v18, 4  ;;  %v4507_v25 = vpop.f32.mrb[34].mxu0  ;;  %v3256_v36 = vsel %vm3184_vm4, %v3148_v58, %v3220_v2  ;;  %vm3185_vm6 = vcmp.ge.f32.partialorder %v3149_v55, 0.0 }
 0x234   : > { %3491 = vst.msk [vmem:[%s5852_s11 + $0x58] sm:$0xf] %vm3272_vm8, %v3485_v21  ;;  %v3221_v28 = vmul.f32 0.2, %v3149_v55  ;;  %v3065_v8 = vpop.f32.mrb[35].mxu0  ;;  %v3515_v31 = vrot.slane %v3960_v22, 5  ;;  %v3958_v46 = vpack.c.bf16 %v3256_v36, %v3256_v36  ;;  %v3259_v35 = vsel %vm3187_vm5, %v3151_v27, %v3223_v17 }
 0x235   : > { %v3488_v15 = vsel %vm5875_vm7, %v3486_v24, %v3487_v62  ;;  %v4545_v44 = vadd.f32 %v3062_v51, %v6000_v10  ;;  %v4546_v29 = vadd.f32 %v4507_v25, %v6005_v63  ;;  %v3961_v50 = vpack.c.bf16 %v3259_v35, %v3259_v35 }
 0x236   : > { %3492 = vst.msk [vmem:[%s5852_s11 + $0x5c] sm:$0xf] %vm3272_vm8, %v3488_v15  ;;  %v3257_v48 = vsel %vm3185_vm6, %v3149_v55, %v3221_v28  ;;  %v3517_v38 = vrot.slane %v3515_v31, 4  ;;  %3502 = vst.msk [vmem:[%s5852_s11 + $0x64] sm:$0xf] %vm3272_vm8, %v3958_v46  ;;  %v3154_v40 = vadd.f32 %v4544_v54, %v5842_v33  ;;  %v4547_v37 = vadd.f32 %v3065_v8, %v6010_v42 }
 0x237   : > { %v3959_v23 = vpack.c.bf16 %v3257_v48, %v3257_v48  ;;  %v3152_v43 = vadd.f32 %v4545_v44, %v5842_v33  ;;  %v3155_v47 = vadd.f32 %v4546_v29, %v5842_v33  ;;  %v3518_v4 = vrot.slane %v3961_v50, 5 }
 0x238   : > { %vm3190_vm10 = vcmp.ge.f32.partialorder %v3154_v40, 0.0  ;;  %v3226_v10 = vmul.f32 0.2, %v3154_v40  ;;  %v3153_v34 = vadd.f32 %v4547_v37, %v5842_v33  ;;  %v3916_v26 = vrot.slane %v3961_v50, 10 }
 0x239   : > { %v3912_v6 = vrot.slane %v3959_v23, 9  ;;  %vm3188_vm11 = vcmp.ge.f32.partialorder %v3152_v43, 0.0  ;;  %v3224_v63 = vmul.f32 0.2, %v3152_v43  ;;  %vm3191_vm12 = vcmp.ge.f32.partialorder %v3155_v47, 0.0 }
 0x23a   : > { %v3519_v0 = vsel %vm5858_vm14, %v3517_v38, %v3518_v4  ;;  %v3227_v39 = vmul.f32 0.2, %v3155_v47  ;;  %v3262_v42 = vsel %vm3190_vm10, %v3154_v40, %v3226_v10  ;;  %vm3189_vm13 = vcmp.ge.f32.partialorder %v3153_v34, 0.0 }
 0x23b   : > { %v3516_v59 = vsel %vm5858_vm14, %v3912_v6, %v3515_v31  ;;  %3523 = vst.msk [vmem:[%s5852_s11 + $0x6c] sm:$0xf] %vm3272_vm8, %v3519_v0  ;;  %v3260_v49 = vsel %vm3188_vm11, %v3152_v43, %v3224_v63  ;;  %v3966_v20 = vpack.c.bf16 %v3262_v42, %v3262_v42  ;;  %v3225_v12 = vmul.f32 0.2, %v3153_v34 }
 0x23c   : > { %3522 = vst.msk [vmem:[%s5852_s11 + $0x68] sm:$0xf] %vm3272_vm8, %v3516_v59  ;;  %v3963_v7 = vpack.c.bf16 %v3260_v49, %v3260_v49  ;;  %v3263_v57 = vsel %vm3191_vm12, %v3155_v47, %v3227_v39 }
 0x23d   : > { %v3967_v41 = vpack.c.bf16 %v3263_v57, %v3263_v57  ;;  %v3557_v61 = vrot.slane %v3966_v20, 7  ;;  %v3261_v60 = vsel %vm3189_vm13, %v3153_v34, %v3225_v12 }
 0x23e   : > { %v3536_v3 = vrot.slane %v3963_v7, 6  ;;  %v3964_v9 = vpack.c.bf16 %v3261_v60, %v3261_v60 }
 0x23f   : > { %v3560_v33 = vrot.slane %v3967_v41, 7  ;;  %v3559_v16 = vrot.slane %v3557_v61, 4 }
 0x240   : > { %v3537_v1 = vsel %vm5885_vm9, %v3916_v26, %v3536_v3  ;;  %v3538_v30 = vrot.slane %v3536_v3, 4  ;;  %v3539_v14 = vrot.slane %v3964_v9, 6  ;;  %v3920_v56 = vrot.slane %v3964_v9, 11 }
 0x241   : > { %3543 = vst.msk [vmem:[%s5852_s11 + $0x70] sm:$0xf] %vm3272_vm8, %v3537_v1  ;;  %v3561_v45 = vsel %vm5875_vm7, %v3559_v16, %v3560_v33 }
 0x242   : > { %3565 = vst.msk [vmem:[%s5852_s11 + $0x7c] sm:$0xf] %vm3272_vm8, %v3561_v45  ;;  %v3540_v53 = vsel %vm5885_vm9, %v3538_v30, %v3539_v14  ;;  %v3558_v58 = vsel %vm5875_vm7, %v3920_v56, %v3557_v61 }
 0x243   : > { %3544 = vst.msk [vmem:[%s5852_s11 + $0x74] sm:$0xf] %vm3272_vm8, %v3540_v53  ;;  %3564 = vst.msk [vmem:[%s5852_s11 + $0x78] sm:$0xf] %vm3272_vm8, %v3558_v58 }
 0x244 PF: > { %s13_s12 = sadd.s32 1, %s4864_s12  }
 0x245   : > { %p10_p4 = scmp.ge.s32.totalorder %s13_s12, 4  }
 0x247   :  { %12 = sbr.rel (!%p10_p4) target bundleno = 1 (0x1), region = 70 }

// kernel: forward.10
= control target key start
LH: loop header
LB: loop body
LE: loop exit
PB: predicated region body
PF: predicated region fallthrough
CT: control target
= control target key end

     0   :  { %s2122_s12 = smov 0   ;;  %s2697_s0 = inlined_call_operand.vmem [shape: bf16[2,110,32], index: 0, kind: input, shape index: {}]   ;;  %s2698_s1 = inlined_call_operand.vmem [shape: bf16[9,32,32], index: 1, kind: input, shape index: {}]   ;;  %s2699_s2 = inlined_call_operand.vmem [shape: f32[1,32], index: 2, kind: input, shape index: {}]   ;;  %s2700_s3 = inlined_call_operand.vmem [shape: bf16[2,64,32], index: 3, kind: output, shape index: {}]  }
   0x1 LB: > { %s1615_s13 = sadd.s32 4294967295, %s2098_s12   ;;  %p1619_p0 = scmp.ge.s32.totalorder %s2098_s12, 1  ;;  %s2098_s12 = sphi %s2122_s12, %s13_s12  }
   0x2   : > { %p137_p1 = scmp.lt.s32.totalorder %s2098_s12, 3 }
   0x4   : > { %p138_p2 = pnand %p1619_p0, %p137_p1 }
   0x5   : > { %v2060_v0 = vld [vmem:[%s2698_s1 + $0x10] sm:$0xff] (!%p138_p2)   ;;  %v2100_v1 = vmov (!%p138_p2), 0.0   ;;  %v2061_v2 = vld [vmem:[%s2698_s1 + $0x18] sm:$0xff] (!%p138_p2)   ;;  %p161_p3 = scmp.lt.s32.totalorder (!%p138_p2), %s1615_s13, 1  ;;  %vm2101_vm0 = vmmov (!%p138_p2), 0   ;;  %vm270_vm2 = vcmask (!%p138_p2), 261120  }
   0x6   : > { %141 = sbr.rel (%p138_p2) target bundleno = 430 (0x1ae), region = 32  ;;  %1829 = vmatprep.subr.bf16.mxu0 (!%p138_p2), %v2100_v1  ;;  %2045 = vmatprep.subr.bf16.mxu1 (!%p138_p2), %v2100_v1  ;;  %vm213_vm1 = vsmask.f32 (!%p138_p2), 7424  ;;  %v2067_v31 = vld [vmem:[%s2698_s1 + $0x20] sm:$0xff] (!%p138_p2)   ;;  %v2073_v45 = vld [vmem:[%s2698_s1 + $0x28] sm:$0xff] (!%p138_p2)   ;;  %vm465_vm3 = vcmask (!%p138_p2), 1046528  }
   0x7   : > { %1830 = vmatpush3.bf16.msra.mxu0 (!%p138_p2), %v2060_v0  ;;  %2047 = vmatpush3.bf16.msra.mxu1 (!%p138_p2), %v2060_v0  ;;  %v2068_v36 = vld [vmem:[%s2698_s1] sm:$0xff] (!%p138_p2)   ;;  %v2074_v48 = vld [vmem:[%s2698_s1 + $0x8] sm:$0xff] (!%p138_p2)   ;;  %vm899_vm4 = vcmask (!%p138_p2), 1045504   ;;  %vm730_vm5 = vsmask.f32 (!%p138_p2), 6400  ;;  %vm1305_vm7 = vcmask (!%p138_p2), 1044480  }
   0x8   : > { %1831 = vmatprep.subr.bf16.mxu0 (!%p138_p2), %v2100_v1  ;;  %2046 = vmatprep.subr.bf16.mxu1 (!%p138_p2), %v2100_v1  ;;  %vm1156_vm6 = vsmask.f32 (!%p138_p2), 5376  ;;  %vm1475_vm9 = vcmask (!%p138_p2), 257024   ;;  %vm1483_vm12 = vcmask (!%p138_p2), 1042432   ;;  %vm1484_vm13 = vcmask (!%p138_p2), 1046532  }
   0x9   : > { %1833 = vmatprep.mubr.msk.bf16.mxu0 (!%p138_p2), %vm2101_vm0, %v2100_v1  ;;  %1845 = vmatprep.mubr.msk.bf16.mxu1 (!%p138_p2), %vm2101_vm0, %v2100_v1  ;;  %vm1498_vm15 = vcmask (!%p138_p2), 1041408  }
   0xb   : > { %1832 = vmatpush3.bf16.msra.mxu0 (!%p138_p2), %v2061_v2  ;;  %2048 = vmatpush3.bf16.msra.mxu1 (!%p138_p2), %v2061_v2 }
   0xc   : > { %1877 = vmatprep.subr.bf16.mxu0 (!%p138_p2), %v2100_v1  ;;  %1853 = vmatprep.subr.bf16.mxu1 (!%p138_p2), %v2100_v1 }
   0xd   : > { %s2708_s13 = smov (!%p161_p3, %s1615_s13), 1 }
   0xe   : > { %s2049_s18 = smul.u32 56, %s2708_s13  ;;  %s1753_s4 = sshll.u32 %s2708_s13, 5 }
   0xf   : > { %s2638_s7 = scalar_lea.vmem %s2700_s3, %s1753_s4 }
  0x10   : > { %s2152_s21 = scalar_lea.vmem %s2697_s0, %s2049_s18 }
  0x11   : > { %v172_v3 = vld [vmem:[%s2152_s21] sm:$0xf]  ;;  %v2156_v4 = vld [vmem:[%s2152_s21 + $0x4] sm:$0xf]  ;;  %v2159_v5 = vld [vmem:[%s2152_s21 + $0x8] sm:$0xf] }
  0x12   : > { %v2162_v6 = vld [vmem:[%s2152_s21 + $0xc] sm:$0xf]  ;;  %v2165_v7 = vcombine.low %v172_v3, %v2156_v4  ;;  %v178_v8 = vld [vmem:[%s2152_s21 + $0x18] sm:$0xf]  ;;  %v179_v9 = vld [vmem:[%s2152_s21 + $0x1c] sm:$0xf] }
  0x13   : > { %v2171_v10 = vcombine.low %v2159_v5, %v2162_v6  ;;  %v180_v11 = vld [vmem:[%s2152_s21 + $0x20] sm:$0xf]  ;;  %v181_v12 = vld [vmem:[%s2152_s21 + $0x24] sm:$0xf]  ;;  %v2175_v13 = vcombine.low %v178_v8, %v179_v9  ;;  %v2178_v14 = vld [vmem:[%s2152_s21 + $0x10] sm:$0xf] }
  0x14   : > { %v215_v15 = vshrl.u32 %v2165_v7, 16  ;;  %v217_v16 = vshll.u32 %v2165_v7, 16  ;;  %v2182_v17 = vcombine.low %v180_v11, %v181_v12  ;;  %v177_v18 = vld [vmem:[%s2152_s21 + $0x14] sm:$0xf]  ;;  %v182_v19 = vld [vmem:[%s2152_s21 + $0x28] sm:$0xf]  ;;  %v2244_v53 = vcombine.low %v179_v9, %v180_v11 }
  0x15   : > { %v222_v20 = vshll.u32 %v2171_v10, 16  ;;  %v238_v21 = vshll.u32 %v2175_v13, 16  ;;  %v242_v22 = vshrl.u32 %v2175_v13, 16  ;;  %v2190_v23 = vcombine.low %v2178_v14, %v177_v18  ;;  %v183_v34 = vld [vmem:[%s2152_s21 + $0x2c] sm:$0xf] }
  0x16   : > { %v219_v24 = vrot.slane %v217_v16, 1  ;;  %v246_v25 = vshll.u32 %v2182_v17, 16  ;;  %v2193_v26 = vcombine.low %v182_v19, %v182_v19  ;;  %v226_v32 = vshrl.u32 %v2171_v10, 16 }
  0x17   : > { %v224_v27 = vrot.slane %v222_v20, 1  ;;  %v2197_v28 = vrot.slane %v238_v21, 1  ;;  %v230_v33 = vshll.u32 %v2190_v23, 16  ;;  %v250_v37 = vshrl.u32 %v2182_v17, 16 }
  0x18   : > { %v220_v29 = vor.u32 %v219_v24, %v215_v15  ;;  %v248_v30 = vrot.slane %v246_v25, 1  ;;  %v254_v39 = vshll.u32 %v2193_v26, 16  ;;  %v2216_v40 = vcombine.low %v181_v12, %v182_v19 }
  0x19   : > { %v244_v35 = vor.u32 %v242_v22, %v2197_v28  ;;  %v2220_v42 = vcombine.low %v182_v19, %v183_v34  ;;  %v228_v43 = vor.u32 %v226_v32, %v224_v27  ;;  %v232_v44 = vrot.slane %v230_v33, 1 }
  0x1a   : > { %v225_v38 = vsel %vm213_vm1, %v220_v29, %v224_v27  ;;  %v252_v46 = vor.u32 %v250_v37, %v248_v30  ;;  %v256_v47 = vrot.slane %v254_v39, 1  ;;  %v234_v50 = vshrl.u32 %v2190_v23, 16  ;;  %v2075_v29 = vld [vmem:[%s2698_s1 + $0x30] sm:$0xff]  }
  0x1b   : > { %1834 = vmatmul.mubr.msk.bf16.vlgmr.msra.gmra.mrb[0].mxu0 %vm270_vm2, %v225_v38  ;;  %v249_v41 = vsel %vm213_vm1, %v244_v35, %v248_v30  ;;  %v233_v49 = vsel %vm213_vm1, %v228_v43, %v232_v44  ;;  %v2239_v51 = vcombine.low %v177_v18, %v178_v8  ;;  %v2247_v55 = vrot.slane %v222_v20, 3 }
  0x1c   : > { %1846 = vmatmul.mubr.msk.bf16.vlgmr.msra.gmra.mrb[0].mxu1 %vm270_vm2, %v249_v41  ;;  %1878 = vmatpush3.bf16.msra.mxu0 %v2067_v31  ;;  %v257_v52 = vsel %vm213_vm1, %v252_v46, %v256_v47  ;;  %v2250_v56 = vrot.slane %v226_v32, 2  ;;  %v2252_v57 = vrot.slane %v230_v33, 3  ;;  %v236_v58 = vor.u32 %v234_v50, %v232_v44  ;;  %v2300_v47 = vld [vmem:[%s2152_s21 + $0x30] ss:$0 sps:$4 sm:$0xff]  }
  0x1d   : > { %1854 = vmatpush3.bf16.msra.mxu1 %v2068_v36  ;;  %1837 = vmatprep.mubr.msk.bf16.mxu0 %vm2101_vm0, %v2100_v1  ;;  %v749_v54 = vshrl.u32 %v2239_v51, 16  ;;  %v607_v59 = vrot.slane %v2239_v51, 1  ;;  %v609_v60 = vrot.slane %v2244_v53, 1  ;;  %v752_v61 = vshll.u32 %v2239_v51, 16 }
  0x1e   : > { %1849 = vmatprep.mubr.msk.bf16.mxu1 %vm2101_vm0, %v2100_v1  ;;  %1879 = vmatprep.subr.bf16.mxu0 %v2100_v1  ;;  %v466_v62 = vrot.slane %v2165_v7, 1  ;;  %v611_v0 = vrot.slane %v2216_v40, 1  ;;  %v758_v2 = vshrl.u32 %v2244_v53, 16  ;;  %v761_v9 = vshll.u32 %v2244_v53, 16 }
  0x1f   : > { %1855 = vmatprep.subr.bf16.mxu1 %v2100_v1  ;;  %v751_v63 = vrot.slane %v749_v54, 1  ;;  %v2268_v3 = vsel %vm465_vm3, %v607_v59, %v609_v60  ;;  %v754_v8 = vrot.slane %v752_v61, 2  ;;  %v1663_v11 = vcombine.low %v183_v34, %v183_v34 }
  0x20   : > { %1880 = vmatpush3.bf16.msra.mxu0 %v2073_v45  ;;  %v467_v12 = vrot.slane %v2171_v10, 1  ;;  %v2273_v15 = vsel %vm465_vm3, %v609_v60, %v611_v0  ;;  %v760_v16 = vrot.slane %v758_v2, 1  ;;  %v767_v18 = vshrl.u32 %v2216_v40, 16  ;;  %v2076_v2 = vld [vmem:[%s2698_s1 + $0x40] sm:$0xff]  }
  0x21   : > { %1856 = vmatpush3.bf16.msra.mxu1 %v2074_v48  ;;  %1925 = vmatprep.subr.bf16.mxu0 %v2100_v1  ;;  %v241_v19 = vsel %vm213_vm1, %v236_v58, %v2197_v28  ;;  %v763_v20 = vrot.slane %v761_v9, 2  ;;  %v613_v24 = vrot.slane %v1663_v11, 1  ;;  %v770_v27 = vshll.u32 %v2216_v40, 16  ;;  %v2077_v48 = vld [vmem:[%s2698_s1 + $0x38] sm:$0xff]   ;;  %vm2646_vm1 = vmor %vm1483_vm12, %vm1484_vm13 }
  0x22   : > { %1901 = vmatprep.subr.bf16.mxu1 %v2100_v1  ;;  %v469_v30 = vrot.slane %v2190_v23, 1  ;;  %v769_v31 = vrot.slane %v767_v18, 1  ;;  %v776_v32 = vshrl.u32 %v1663_v11, 16  ;;  %v779_v33 = vshll.u32 %v1663_v11, 16 }
  0x23   : > { %1838 = vmatmul.mubr.msk.bf16.gmra.mrb[4].mxu0 %vm270_vm2, %v233_v49  ;;  %v2283_v34 = vor.u32 %v754_v8, %v751_v63  ;;  %v764_v35 = vor.u32 %v763_v20, %v760_v16  ;;  %v2286_v36 = vsel %vm465_vm3, %v611_v0, %v613_v24  ;;  %v772_v28 = vrot.slane %v770_v27, 2 }
  0x24   : > { %1850 = vmatmul.mubr.msk.bf16.gmra.mrb[4].mxu1 %vm270_vm2, %v257_v52  ;;  %1841 = vmatprep.mubr.msk.bf16.mxu0 %vm2101_vm0, %v2100_v1  ;;  %v1160_v38 = vrot.slane %v234_v50, 2  ;;  %v778_v39 = vrot.slane %v776_v32, 1  ;;  %v781_v41 = vrot.slane %v779_v33, 2  ;;  %v1030_v45 = vrot.slane %v2171_v10, 2 }
  0x25   : > { %1857 = vmatprep.mubr.msk.bf16.mxu1 %vm2101_vm0, %v2100_v1  ;;  %v2295_v43 = vsel %vm730_vm5, %v2283_v34, %v764_v35  ;;  %v773_v44 = vor.u32 %v772_v28, %v769_v31  ;;  %v1031_v46 = vrot.slane %v2190_v23, 2  ;;  %v903_v50 = vrot.slane %v2239_v51, 2 }
  0x26   : > { %v782_v49 = vor.u32 %v781_v41, %v778_v39  ;;  %v905_v52 = vrot.slane %v2244_v53, 2  ;;  %v1033_v60 = vrot.slane %v2175_v13, 2  ;;  %v907_v61 = vrot.slane %v2216_v40, 2 }
  0x27   : > { %v2314_v54 = vsel %vm730_vm5, %v764_v35, %v773_v44  ;;  %v2317_v58 = vsel %vm899_vm4, %v1030_v45, %v1031_v46  ;;  %v1035_v53 = vrot.slane %v2182_v17, 2  ;;  %v909_v0 = vrot.slane %v1663_v11, 2 }
  0x28   : > { %v2327_v63 = vsel %vm899_vm4, %v903_v50, %v905_v52  ;;  %v2334_v8 = vsel %vm899_vm4, %v1031_v46, %v1033_v60  ;;  %v2337_v40 = vsel %vm899_vm4, %v905_v52, %v907_v61  ;;  %v1037_v9 = vrot.slane %v2220_v42, 2 }
  0x29   : > { %v1039_v16 = vrot.slane %v2300_v47, 2  ;;  %v2342_v18 = vsel %vm899_vm4, %v1033_v60, %v1035_v53  ;;  %v2345_v11 = vsel %vm899_vm4, %v907_v61, %v909_v0  ;;  %v1162_v27 = vor.u32 %v2252_v57, %v1160_v38  ;;  %v2078_v57 = vld [vmem:[%s2698_s1 + $0x48] sm:$0xff]  }
  0x2a   : > { %v2351_v20 = vsel %vm899_vm4, %v1035_v53, %v1037_v9  ;;  %v1165_v31 = vrot.slane %v238_v21, 3  ;;  %v1168_v32 = vrot.slane %v250_v37, 2  ;;  %v1169_v21 = vrot.slane %v246_v25, 3 }
  0x2b   : > { %1842 = vmatmul.mubr.msk.bf16.gmra.mrb[8].mxu0 %vm270_vm2, %v241_v19  ;;  %v1159_v19 = vor.u32 %v2247_v55, %v2250_v56  ;;  %v2354_v24 = vsel %vm899_vm4, %v1037_v9, %v1039_v16  ;;  %v1306_v55 = vrot.slane %v2171_v10, 3  ;;  %v1307_v56 = vrot.slane %v2190_v23, 3 }
  0x2c   : > { %1858 = vmatmul.mubr.msk.bf16.vlgmr.msra.gmra.mrb[8].mxu1 %vm270_vm2, %v2165_v7  ;;  %1881 = vmatprep.mubr.msk.bf16.mxu0 %vm2101_vm0, %v2100_v1  ;;  %v468_v7 = vsel %vm465_vm3, %v466_v62, %v467_v12  ;;  %v2322_v62 = vsel %vm730_vm5, %v773_v44, %v782_v49  ;;  %v1309_v33 = vrot.slane %v2175_v13, 3  ;;  %v1173_v38 = vshrl.u32 %v2220_v42, 16 }
  0x2d   : > { %1902 = vmatpush3.bf16.msra.mxu1 %v2075_v29  ;;  %1861 = vmatprep.mubr.msk.bf16.mxu1 %vm2101_vm0, %v2100_v1  ;;  %v1164_v29 = vrot.slane %v242_v22, 2  ;;  %v2370_v22 = vsel %vm1156_vm6, %v1159_v19, %v1162_v27  ;;  %v2382_v28 = vsel %vm1305_vm7, %v1306_v55, %v1307_v56  ;;  %v1176_v39 = vshll.u32 %v2220_v42, 16 }
  0x2e   : > { %1903 = vmatprep.subr.bf16.mxu1 %v2100_v1  ;;  %v1170_v37 = vor.u32 %v1169_v21, %v1168_v32  ;;  %v2388_v25 = vsel %vm1305_vm7, %v1307_v56, %v1309_v33  ;;  %v1175_v44 = vrot.slane %v1173_v38, 2  ;;  %v470_v46 = vsel %vm465_vm3, %v467_v12, %v469_v30 }
  0x2f   : > { %v1166_v35 = vor.u32 %v1165_v31, %v1164_v29  ;;  %v1178_v45 = vrot.slane %v1176_v39, 3  ;;  %v1311_v49 = vrot.slane %v2182_v17, 3  ;;  %v1182_v12 = vshrl.u32 %v2300_v47, 16 }
  0x30   : > { %v1185_v61 = vshll.u32 %v2300_v47, 16  ;;  %v1313_v16 = vrot.slane %v2220_v42, 3  ;;  %v1658_v31 = vcombine.low %v2156_v4, %v2159_v5  ;;  %v475_v55 = vrot.slane %v2193_v26, 1 }
  0x31   : > { %1904 = vmatpush3.bf16.msra.mxu1 %v2077_v48  ;;  %v2391_v41 = vsel %vm1156_vm6, %v1162_v27, %v1166_v35  ;;  %v1179_v48 = vor.u32 %v1178_v45, %v1175_v44  ;;  %v2408_v60 = vsel %vm1305_vm7, %v1309_v33, %v1311_v49  ;;  %v1184_v53 = vrot.slane %v1182_v12, 2  ;;  %v2082_v45 = vld [vmem:[%s2698_s1 + $0x60] sm:$0xff]  }
  0x32   : > { %1949 = vmatprep.subr.bf16.mxu1 %v2100_v1  ;;  %v1187_v0 = vrot.slane %v1185_v61, 3  ;;  %v2428_v27 = vsel %vm1305_vm7, %v1311_v49, %v1313_v16  ;;  %v735_v56 = vshll.u32 %v1658_v31, 16  ;;  %v604_v5 = vrot.slane %v1658_v31, 1  ;;  %v2090_v49 = vld [vmem:[%s2698_s1 + $0x88] sm:$0xff]  }
  0x33   : > { %1882 = vmatmul.mubr.msk.bf16.vlgmr.msra.gmra.mrb[12].mxu0 %vm270_vm2, %v468_v7  ;;  %v2399_v7 = vsel %vm1156_vm6, %v1166_v35, %v1170_v37  ;;  %v2405_v52 = vsel %vm1156_vm6, %v1170_v37, %v1179_v48  ;;  %v2080_v35 = vld [vmem:[%s2698_s1 + $0x50] sm:$0xff]   ;;  %v2084_v37 = vld [vmem:[%s2698_s1 + $0x58] sm:$0xff]  }
  0x34   : > { %1862 = vmatmul.mubr.msk.bf16.gmra.mrb[12].mxu1 %vm270_vm2, %v2171_v10  ;;  %1926 = vmatpush3.bf16.msra.mxu0 %v2076_v2  ;;  %v471_v10 = vrot.slane %v2175_v13, 1  ;;  %v1188_v9 = vor.u32 %v1187_v0, %v1184_v53  ;;  %v737_v32 = vrot.slane %v735_v56, 2 }
  0x35   : > { %1865 = vmatprep.mubr.msk.bf16.mxu1 %vm2101_vm0, %v2100_v1  ;;  %1885 = vmatprep.mubr.msk.bf16.mxu0 %vm2101_vm0, %v2100_v1 }
  0x36   : > { %1927 = vmatprep.subr.bf16.mxu0 %v2100_v1  ;;  %v472_v2 = vsel %vm465_vm3, %v469_v30, %v471_v10  ;;  %v2425_v19 = vsel %vm1156_vm6, %v1179_v48, %v1188_v9  ;;  %v1315_v30 = vrot.slane %v2300_v47, 3  ;;  %v732_v47 = vshrl.u32 %v1658_v31, 16  ;;  %v2085_v48 = vld [vmem:[%s2698_s1 + $0x68] sm:$0xff]  }
  0x38   : > { %1928 = vmatpush3.bf16.msra.mxu0 %v2078_v57  ;;  %v2439_v42 = vsel %vm1305_vm7, %v1313_v16, %v1315_v30  ;;  %v734_v26 = vrot.slane %v732_v47, 1 }
  0x39   : > { %1973 = vmatprep.subr.bf16.mxu0 %v2100_v1 }
  0x3a   : > { %v738_v38 = vor.u32 %v737_v32, %v734_v26 }
  0x3b   : > { %1886 = vmatmul.mubr.msk.bf16.gmra.mrb[16].mxu0 %vm270_vm2, %v470_v46 }
  0x3c   : > { %1866 = vmatmul.mubr.msk.bf16.gmra.mrb[16].mxu1 %vm270_vm2, %v2190_v23  ;;  %1889 = vmatprep.mubr.msk.bf16.mxu0 %vm2101_vm0, %v2100_v1  ;;  %v473_v23 = vrot.slane %v2182_v17, 1 }
  0x3d   : > { %1869 = vmatprep.mubr.msk.bf16.mxu1 %vm2101_vm0, %v2100_v1 }
  0x3e   : > { %v474_v29 = vsel %vm465_vm3, %v471_v10, %v473_v23 }
  0x43   : > { %1890 = vmatmul.mubr.msk.bf16.gmra.mrb[20].mxu0 %vm270_vm2, %v472_v2 }
  0x44   : > { %1870 = vmatmul.mubr.msk.bf16.gmra.mrb[20].mxu1 %vm270_vm2, %v2175_v13  ;;  %1893 = vmatprep.mubr.msk.bf16.mxu0 %vm2101_vm0, %v2100_v1  ;;  %v2446_v13 = vcombine.low %v2162_v6, %v2178_v14  ;;  %v476_v14 = vsel %vm465_vm3, %v473_v23, %v475_v55 }
  0x45   : > { %1873 = vmatprep.mubr.msk.bf16.mxu1 %vm2101_vm0, %v2100_v1 }
  0x46   : > { %v740_v57 = vshrl.u32 %v2446_v13, 16  ;;  %v743_v4 = vshll.u32 %v2446_v13, 16  ;;  %v605_v6 = vrot.slane %v2446_v13, 1 }
  0x48   : > { %v745_v21 = vrot.slane %v743_v4, 2  ;;  %v606_v33 = vsel %vm465_vm3, %v604_v5, %v605_v6  ;;  %v608_v46 = vsel %vm465_vm3, %v605_v6, %v607_v59 }
  0x4b   : > { %1894 = vmatmul.mubr.msk.bf16.gmra.mrb[24].mxu0 %vm270_vm2, %v474_v29 }
  0x4c   : > { %1874 = vmatmul.mubr.msk.bf16.gmra.mrb[24].mxu1 %vm270_vm2, %v2182_v17  ;;  %1897 = vmatprep.mubr.msk.bf16.mxu0 %vm2101_vm0, %v2100_v1  ;;  %v742_v17 = vrot.slane %v740_v57, 1 }
  0x4d   : > { %1905 = vmatprep.mubr.msk.bf16.mxu1 %vm2101_vm0, %v2100_v1 }
  0x4e   : > { %v746_v39 = vor.u32 %v745_v21, %v742_v17 }
  0x50   : > { %v747_v44 = vsel %vm730_vm5, %v738_v38, %v746_v39  ;;  %v756_v59 = vsel %vm730_vm5, %v746_v39, %v2283_v34  ;;  %vm1514_vm5 = vcmask 1044484  }
  0x53   : > { %1898 = vmatmul.mubr.msk.bf16.gmra.mrb[28].mxu0 %vm270_vm2, %v476_v14 }
  0x54   : > { %1906 = vmatmul.mubr.msk.bf16.vlgmr.msra.gmra.mrb[28].mxu1 %vm270_vm2, %v606_v33  ;;  %1929 = vmatprep.mubr.msk.bf16.mxu0 %vm2101_vm0, %v2100_v1 }
  0x55   : > { %1950 = vmatpush3.bf16.msra.mxu1 %v2080_v35  ;;  %1909 = vmatprep.mubr.msk.bf16.mxu1 %vm2101_vm0, %v2100_v1 }
  0x56   : > { %1951 = vmatprep.subr.bf16.mxu1 %v2100_v1 }
  0x59   : > { %1952 = vmatpush3.bf16.msra.mxu1 %v2084_v37 }
  0x5a   : > { %1997 = vmatprep.subr.bf16.mxu1 %v2100_v1 }
  0x5b   : > { %1930 = vmatmul.mubr.msk.bf16.vlgmr.msra.gmra.mrb[32].mxu0 %vm270_vm2, %v747_v44 }
  0x5c   : > { %1910 = vmatmul.mubr.msk.bf16.gmra.mrb[32].mxu1 %vm270_vm2, %v608_v46  ;;  %1974 = vmatpush3.bf16.msra.mxu0 %v2082_v45 }
  0x5d   : > { %1913 = vmatprep.mubr.msk.bf16.mxu1 %vm2101_vm0, %v2100_v1  ;;  %1933 = vmatprep.mubr.msk.bf16.mxu0 %vm2101_vm0, %v2100_v1 }
  0x5e   : > { %1975 = vmatprep.subr.bf16.mxu0 %v2100_v1 }
  0x60   : > { %1976 = vmatpush3.bf16.msra.mxu0 %v2085_v48 }
  0x61   : > { %2021 = vmatprep.subr.bf16.mxu0 %v2100_v1 }
  0x63   : > { %1934 = vmatmul.mubr.msk.bf16.gmra.mrb[36].mxu0 %vm270_vm2, %v756_v59 }
  0x64   : > { %1914 = vmatmul.mubr.msk.bf16.gmra.mrb[36].mxu1 %vm270_vm2, %v2268_v3  ;;  %1937 = vmatprep.mubr.msk.bf16.mxu0 %vm2101_vm0, %v2100_v1  ;;  %v900_v3 = vrot.slane %v1658_v31, 2 }
  0x65   : > { %1917 = vmatprep.mubr.msk.bf16.mxu1 %vm2101_vm0, %v2100_v1 }
  0x6b   : > { %1938 = vmatmul.mubr.msk.bf16.gmra.mrb[40].mxu0 %vm270_vm2, %v2295_v43  ;;  %v2087_v43 = vld [vmem:[%s2698_s1 + $0x70] sm:$0xff]  }
  0x6c   : > { %1918 = vmatmul.mubr.msk.bf16.gmra.mrb[40].mxu1 %vm270_vm2, %v2273_v15  ;;  %1941 = vmatprep.mubr.msk.bf16.mxu0 %vm2101_vm0, %v2100_v1  ;;  %v901_v15 = vrot.slane %v2446_v13, 2 }
  0x6d   : > { %1921 = vmatprep.mubr.msk.bf16.mxu1 %vm2101_vm0, %v2100_v1 }
  0x6e   : > { %v902_v34 = vsel %vm899_vm4, %v900_v3, %v901_v15 }
  0x73   : > { %1942 = vmatmul.mubr.msk.bf16.gmra.mrb[44].mxu0 %vm270_vm2, %v2314_v54  ;;  %v2088_v54 = vld [vmem:[%s2698_s1 + $0x80] sm:$0xff]  }
  0x74   : > { %1922 = vmatmul.mubr.msk.bf16.gmra.mrb[44].mxu1 %vm270_vm2, %v2286_v36  ;;  %1945 = vmatprep.mubr.msk.bf16.mxu0 %vm2101_vm0, %v2100_v1  ;;  %v2089_v36 = vld [vmem:[%s2698_s1 + $0x78] sm:$0xff]  }
  0x75   : > { %1953 = vmatprep.mubr.msk.bf16.mxu1 %vm2101_vm0, %v2100_v1 }
  0x7b   : > { %1946 = vmatmul.mubr.msk.bf16.gmra.mrb[48].mxu0 %vm270_vm2, %v2322_v62  ;;  %v904_v62 = vsel %vm899_vm4, %v901_v15, %v903_v50  ;;  %vm1513_vm4 = vcmask 1040384  }
  0x7c   : > { %1954 = vmatmul.mubr.msk.bf16.vlgmr.msra.gmra.mrb[48].mxu1 %vm270_vm2, %v902_v34  ;;  %1977 = vmatprep.mubr.msk.bf16.mxu0 %vm2101_vm0, %v2100_v1  ;;  %vm2666_vm7 = vmor %vm1513_vm4, %vm1514_vm5 }
  0x7d   : > { %1998 = vmatpush3.bf16.msra.mxu1 %v2087_v43  ;;  %1957 = vmatprep.mubr.msk.bf16.mxu1 %vm2101_vm0, %v2100_v1 }
  0x7e   : > { %1999 = vmatprep.subr.bf16.mxu1 %v2100_v1 }
  0x81   : > { %2000 = vmatpush3.bf16.msra.mxu1 %v2089_v36 }
  0x83   : > { %1978 = vmatmul.mubr.msk.bf16.vlgmr.msra.gmra.mrb[52].mxu0 %vm270_vm2, %v2317_v58 }
  0x84   : > { %1958 = vmatmul.mubr.msk.bf16.gmra.mrb[52].mxu1 %vm270_vm2, %v904_v62  ;;  %2022 = vmatpush3.bf16.msra.mxu0 %v2088_v54 }
  0x85   : > { %1961 = vmatprep.mubr.msk.bf16.mxu1 %vm2101_vm0, %v2100_v1  ;;  %1981 = vmatprep.mubr.msk.bf16.mxu0 %vm2101_vm0, %v2100_v1 }
  0x86   : > { %2023 = vmatprep.subr.bf16.mxu0 %v2100_v1 }
  0x88   : > { %2024 = vmatpush3.bf16.msra.mxu0 %v2090_v49 }
  0x8b   : > { %1982 = vmatmul.mubr.msk.bf16.gmra.mrb[56].mxu0 %vm270_vm2, %v2334_v8 }
  0x8c   : > { %1962 = vmatmul.mubr.msk.bf16.gmra.mrb[56].mxu1 %vm270_vm2, %v2327_v63  ;;  %1985 = vmatprep.mubr.msk.bf16.mxu0 %vm2101_vm0, %v2100_v1 }
  0x8d   : > { %1965 = vmatprep.mubr.msk.bf16.mxu1 %vm2101_vm0, %v2100_v1 }
  0x93   : > { %1986 = vmatmul.mubr.msk.bf16.gmra.mrb[60].mxu0 %vm270_vm2, %v2342_v18 }
  0x94   : > { %1966 = vmatmul.mubr.msk.bf16.gmra.mrb[60].mxu1 %vm270_vm2, %v2337_v40  ;;  %1989 = vmatprep.mubr.msk.bf16.mxu0 %vm2101_vm0, %v2100_v1 }
  0x95   : > { %1969 = vmatprep.mubr.msk.bf16.mxu1 %vm2101_vm0, %v2100_v1 }
  0x9b   : > { %1990 = vmatmul.mubr.msk.bf16.gmra.mrb[64].mxu0 %vm270_vm2, %v2351_v20 }
  0x9c   : > { %1970 = vmatmul.mubr.msk.bf16.gmra.mrb[64].mxu1 %vm270_vm2, %v2345_v11  ;;  %1993 = vmatprep.mubr.msk.bf16.mxu0 %vm2101_vm0, %v2100_v1 }
  0x9d   : > { %2001 = vmatprep.mubr.msk.bf16.mxu1 %vm2101_vm0, %v2100_v1 }
  0xa3   : > { %1994 = vmatmul.mubr.msk.bf16.gmra.mrb[68].mxu0 %vm270_vm2, %v2354_v24 }
  0xa4   : > { %2002 = vmatmul.mubr.msk.bf16.vlgmr.msra.gmra.mrb[68].mxu1 %vm270_vm2, %v2370_v22  ;;  %2025 = vmatprep.mubr.msk.bf16.mxu0 %vm2101_vm0, %v2100_v1 }
  0xa5   : > { %2005 = vmatprep.mubr.msk.bf16.mxu1 %vm2101_vm0, %v2100_v1 }
  0xab   : > { %2026 = vmatmul.mubr.msk.bf16.vlgmr.msra.gmra.mrb[72].mxu0 %vm270_vm2, %v2382_v28 }
  0xac   : > { %2006 = vmatmul.mubr.msk.bf16.gmra.mrb[72].mxu1 %vm270_vm2, %v2391_v41  ;;  %2029 = vmatprep.mubr.msk.bf16.mxu0 %vm2101_vm0, %v2100_v1 }
  0xad   : > { %2009 = vmatprep.mubr.msk.bf16.mxu1 %vm2101_vm0, %v2100_v1 }
  0xb3   : > { %2030 = vmatmul.mubr.msk.bf16.gmra.mrb[76].mxu0 %vm270_vm2, %v2388_v25 }
  0xb4   : > { %2010 = vmatmul.mubr.msk.bf16.gmra.mrb[76].mxu1 %vm270_vm2, %v2399_v7  ;;  %2033 = vmatprep.mubr.msk.bf16.mxu0 %vm2101_vm0, %v2100_v1 }
  0xb5   : > { %2013 = vmatprep.mubr.msk.bf16.mxu1 %vm2101_vm0, %v2100_v1 }
  0xbb   : > { %2034 = vmatmul.mubr.msk.bf16.gmra.mrb[80].mxu0 %vm270_vm2, %v2408_v60 }
  0xbc   : > { %2014 = vmatmul.mubr.msk.bf16.gmra.mrb[80].mxu1 %vm270_vm2, %v2405_v52  ;;  %2037 = vmatprep.mubr.msk.bf16.mxu0 %vm2101_vm0, %v2100_v1 }
  0xbd   : > { %2017 = vmatprep.mubr.msk.bf16.mxu1 %vm2101_vm0, %v2100_v1 }
  0xc3   : > { %2038 = vmatmul.mubr.msk.bf16.gmra.mrb[84].mxu0 %vm270_vm2, %v2428_v27 }
  0xc4   : > { %2018 = vmatmul.mubr.msk.bf16.gmra.mrb[84].mxu1 %vm270_vm2, %v2425_v19  ;;  %2041 = vmatprep.mubr.msk.bf16.mxu0 %vm2101_vm0, %v2100_v1  ;;  %vm1499_vm0 = vcmask 1045508  }
  0xcb   : > { %2042 = vmatmul.mubr.msk.bf16.gmra.mrb[88].mxu0 %vm270_vm2, %v2439_v42  ;;  %vm2651_vm2 = vmor %vm1498_vm15, %vm1499_vm0 }
  0xee   : > { %v320_v51 = vpop.f32.mrb[0].mxu0 }
  0xef   : > { %v1835_v50 = vpop.f32.mrb[1].mxu0  ;;  %v344_v58 = vpop.f32.mrb[0].mxu1 }
  0xf0   : > { %v323_v63 = vpop.f32.mrb[2].mxu0  ;;  %v1847_v8 = vpop.f32.mrb[1].mxu1 }
  0xf1   : > { %v1836_v40 = vpop.f32.mrb[3].mxu0  ;;  %v347_v18 = vpop.f32.mrb[2].mxu1 }
  0xf2   : > { %v1848_v11 = vpop.f32.mrb[3].mxu1 }
  0xf6   : > { %v328_v20 = vpop.f32.mrb[4].mxu0 }
  0xf7   : > { %v1839_v24 = vpop.f32.mrb[5].mxu0  ;;  %v352_v22 = vpop.f32.mrb[4].mxu1 }
  0xf8   : > { %v331_v28 = vpop.f32.mrb[6].mxu0  ;;  %v1851_v25 = vpop.f32.mrb[5].mxu1 }
  0xf9   : > { %v1840_v41 = vpop.f32.mrb[7].mxu0  ;;  %v355_v7 = vpop.f32.mrb[6].mxu1 }
  0xfa   : > { %v1852_v52 = vpop.f32.mrb[7].mxu1 }
  0xfe   : > { %v336_v1 = vpop.f32.mrb[8].mxu0 }
  0xff   : > { %v415_v60 = vpop.f32.mrb[8].mxu1  ;;  %v1843_v10 = vpop.f32.mrb[9].mxu0 }
 0x100   : > { %v416_v12 = vadd.f32 %v415_v60, %v320_v51  ;;  %v1859_v61 = vpop.f32.mrb[9].mxu1  ;;  %v339_v53 = vpop.f32.mrb[10].mxu0 }
 0x101   : > { %v418_v0 = vpop.f32.mrb[10].mxu1  ;;  %v1844_v2 = vpop.f32.mrb[11].mxu0 }
 0x102   : > { %v419_v9 = vadd.f32 %v418_v0, %v323_v63  ;;  %v1860_v16 = vpop.f32.mrb[11].mxu1 }
 0x106   : > { %v538_v19 = vpop.f32.mrb[12].mxu0 }
 0x107   : > { %v423_v27 = vpop.f32.mrb[12].mxu1  ;;  %v577_v23 = vadd.f32 %v538_v19, %v416_v12  ;;  %v1883_v30 = vpop.f32.mrb[13].mxu0 }
 0x108   : > { %v424_v42 = vadd.f32 %v423_v27, %v328_v20  ;;  %v1863_v29 = vpop.f32.mrb[13].mxu1  ;;  %v541_v31 = vpop.f32.mrb[14].mxu0 }
 0x109   : > { %v426_v13 = vpop.f32.mrb[14].mxu1  ;;  %v578_v55 = vadd.f32 %v541_v31, %v419_v9  ;;  %v1884_v47 = vpop.f32.mrb[15].mxu0 }
 0x10a   : > { %v427_v56 = vadd.f32 %v426_v13, %v331_v28  ;;  %v1864_v57 = vpop.f32.mrb[15].mxu1 }
 0x10e   : > { %v546_v4 = vpop.f32.mrb[16].mxu0 }
 0x10f   : > { %v431_v5 = vpop.f32.mrb[16].mxu1  ;;  %v579_v6 = vadd.f32 %v546_v4, %v424_v42  ;;  %v1887_v14 = vpop.f32.mrb[17].mxu0 }
 0x110   : > { %v432_v26 = vadd.f32 %v431_v5, %v336_v1  ;;  %v1867_v32 = vpop.f32.mrb[17].mxu1  ;;  %v549_v17 = vpop.f32.mrb[18].mxu0 }
 0x111   : > { %v434_v21 = vpop.f32.mrb[18].mxu1  ;;  %v580_v33 = vadd.f32 %v549_v17, %v427_v56  ;;  %v1888_v35 = vpop.f32.mrb[19].mxu0 }
 0x112   : > { %v435_v38 = vadd.f32 %v434_v21, %v339_v53  ;;  %v1868_v39 = vpop.f32.mrb[19].mxu1 }
 0x116   : > { %v554_v37 = vpop.f32.mrb[20].mxu0 }
 0x117   : > { %v439_v44 = vpop.f32.mrb[20].mxu1  ;;  %v581_v45 = vadd.f32 %v554_v37, %v432_v26  ;;  %v1891_v46 = vpop.f32.mrb[21].mxu0 }
 0x118   : > { %v440_v48 = vadd.f32 %v439_v44, %v344_v58  ;;  %v1871_v59 = vpop.f32.mrb[21].mxu1  ;;  %v557_v3 = vpop.f32.mrb[22].mxu0 }
 0x119   : > { %v442_v15 = vpop.f32.mrb[22].mxu1  ;;  %v582_v34 = vadd.f32 %v557_v3, %v435_v38  ;;  %v1892_v43 = vpop.f32.mrb[23].mxu0 }
 0x11a   : > { %v443_v36 = vadd.f32 %v442_v15, %v347_v18  ;;  %v1872_v54 = vpop.f32.mrb[23].mxu1 }
 0x11e   : > { %v562_v62 = vpop.f32.mrb[24].mxu0 }
 0x11f   : > { %v447_v49 = vpop.f32.mrb[24].mxu1  ;;  %v583_v51 = vadd.f32 %v562_v62, %v440_v48  ;;  %v1895_v50 = vpop.f32.mrb[25].mxu0 }
 0x120   : > { %v448_v63 = vadd.f32 %v447_v49, %v352_v22  ;;  %v1875_v8 = vpop.f32.mrb[25].mxu1  ;;  %v565_v40 = vpop.f32.mrb[26].mxu0 }
 0x121   : > { %v450_v11 = vpop.f32.mrb[26].mxu1  ;;  %v584_v20 = vadd.f32 %v565_v40, %v443_v36  ;;  %v1896_v24 = vpop.f32.mrb[27].mxu0 }
 0x122   : > { %v451_v28 = vadd.f32 %v450_v11, %v355_v7  ;;  %v1876_v25 = vpop.f32.mrb[27].mxu1 }
 0x126   : > { %v570_v58 = vpop.f32.mrb[28].mxu0 }
 0x127   : > { %v585_v41 = vadd.f32 %v570_v58, %v448_v63  ;;  %v676_v52 = vpop.f32.mrb[28].mxu1  ;;  %v1899_v1 = vpop.f32.mrb[29].mxu0 }
 0x128   : > { %v715_v60 = vadd.f32 %v676_v52, %v577_v23  ;;  %v1907_v10 = vpop.f32.mrb[29].mxu1  ;;  %v573_v18 = vpop.f32.mrb[30].mxu0 }
 0x129   : > { %v586_v12 = vadd.f32 %v573_v18, %v451_v28  ;;  %v679_v61 = vpop.f32.mrb[30].mxu1  ;;  %v1900_v53 = vpop.f32.mrb[31].mxu0 }
 0x12a   : > { %v716_v0 = vadd.f32 %v679_v61, %v578_v55  ;;  %v1908_v2 = vpop.f32.mrb[31].mxu1 }
 0x12e   : > { %v845_v22 = vpop.f32.mrb[32].mxu0 }
 0x12f   : > { %v684_v9 = vpop.f32.mrb[32].mxu1  ;;  %v884_v16 = vadd.f32 %v845_v22, %v715_v60  ;;  %v1931_v19 = vpop.f32.mrb[33].mxu0 }
 0x130   : > { %v717_v27 = vadd.f32 %v684_v9, %v579_v6  ;;  %v1911_v30 = vpop.f32.mrb[33].mxu1  ;;  %v848_v7 = vpop.f32.mrb[34].mxu0 }
 0x131   : > { %v687_v42 = vpop.f32.mrb[34].mxu1  ;;  %v885_v29 = vadd.f32 %v848_v7, %v716_v0  ;;  %v1932_v31 = vpop.f32.mrb[35].mxu0 }
 0x132   : > { %v718_v13 = vadd.f32 %v687_v42, %v580_v33  ;;  %v1912_v47 = vpop.f32.mrb[35].mxu1 }
 0x136   : > { %v853_v23 = vpop.f32.mrb[36].mxu0 }
 0x137   : > { %v692_v56 = vpop.f32.mrb[36].mxu1  ;;  %v886_v57 = vadd.f32 %v853_v23, %v717_v27  ;;  %v1935_v4 = vpop.f32.mrb[37].mxu0 }
 0x138   : > { %v719_v5 = vadd.f32 %v692_v56, %v581_v45  ;;  %v1915_v14 = vpop.f32.mrb[37].mxu1  ;;  %v856_v55 = vpop.f32.mrb[38].mxu0 }
 0x139   : > { %v695_v26 = vpop.f32.mrb[38].mxu1  ;;  %v887_v32 = vadd.f32 %v856_v55, %v718_v13  ;;  %v1936_v17 = vpop.f32.mrb[39].mxu0 }
 0x13a   : > { %v720_v21 = vadd.f32 %v695_v26, %v582_v34  ;;  %v1916_v35 = vpop.f32.mrb[39].mxu1 }
 0x13e   : > { %v861_v6 = vpop.f32.mrb[40].mxu0 }
 0x13f   : > { %v700_v38 = vpop.f32.mrb[40].mxu1  ;;  %v888_v39 = vadd.f32 %v861_v6, %v719_v5  ;;  %v1939_v37 = vpop.f32.mrb[41].mxu0 }
 0x140   : > { %v721_v44 = vadd.f32 %v700_v38, %v583_v51  ;;  %v1919_v46 = vpop.f32.mrb[41].mxu1  ;;  %v864_v33 = vpop.f32.mrb[42].mxu0 }
 0x141   : > { %v703_v48 = vpop.f32.mrb[42].mxu1  ;;  %v889_v59 = vadd.f32 %v864_v33, %v720_v21  ;;  %v1940_v3 = vpop.f32.mrb[43].mxu0 }
 0x142   : > { %v722_v15 = vadd.f32 %v703_v48, %v584_v20  ;;  %v1920_v43 = vpop.f32.mrb[43].mxu1 }
 0x146   : > { %v869_v45 = vpop.f32.mrb[44].mxu0 }
 0x147   : > { %v708_v36 = vpop.f32.mrb[44].mxu1  ;;  %v890_v54 = vadd.f32 %v869_v45, %v721_v44  ;;  %v1943_v62 = vpop.f32.mrb[45].mxu0 }
 0x148   : > { %v723_v49 = vadd.f32 %v708_v36, %v585_v41  ;;  %v1923_v50 = vpop.f32.mrb[45].mxu1  ;;  %v872_v34 = vpop.f32.mrb[46].mxu0 }
 0x149   : > { %v711_v63 = vpop.f32.mrb[46].mxu1  ;;  %v891_v8 = vadd.f32 %v872_v34, %v722_v15  ;;  %v1944_v40 = vpop.f32.mrb[47].mxu0 }
 0x14a   : > { %v724_v11 = vadd.f32 %v711_v63, %v586_v12  ;;  %v1924_v24 = vpop.f32.mrb[47].mxu1 }
 0x14e   : > { %v877_v51 = vpop.f32.mrb[48].mxu0 }
 0x14f   : > { %v892_v28 = vadd.f32 %v877_v51, %v723_v49  ;;  %v972_v25 = vpop.f32.mrb[48].mxu1  ;;  %v1947_v58 = vpop.f32.mrb[49].mxu0 }
 0x150   : > { %v1011_v52 = vadd.f32 %v972_v25, %v884_v16  ;;  %v1955_v1 = vpop.f32.mrb[49].mxu1  ;;  %v880_v20 = vpop.f32.mrb[50].mxu0 }
 0x151   : > { %v893_v60 = vadd.f32 %v880_v20, %v724_v11  ;;  %v975_v10 = vpop.f32.mrb[50].mxu1  ;;  %v1948_v18 = vpop.f32.mrb[51].mxu0 }
 0x152   : > { %v1012_v61 = vadd.f32 %v975_v10, %v885_v29  ;;  %v1956_v53 = vpop.f32.mrb[51].mxu1 }
 0x156   : > { %v1102_v41 = vpop.f32.mrb[52].mxu0 }
 0x157   : > { %v980_v0 = vpop.f32.mrb[52].mxu1  ;;  %v1141_v2 = vadd.f32 %v1102_v41, %v1011_v52  ;;  %v1979_v22 = vpop.f32.mrb[53].mxu0 }
 0x158   : > { %v1013_v9 = vadd.f32 %v980_v0, %v886_v57  ;;  %v1959_v19 = vpop.f32.mrb[53].mxu1  ;;  %v1105_v12 = vpop.f32.mrb[54].mxu0 }
 0x159   : > { %v983_v27 = vpop.f32.mrb[54].mxu1  ;;  %v1142_v30 = vadd.f32 %v1105_v12, %v1012_v61  ;;  %v1980_v7 = vpop.f32.mrb[55].mxu0 }
 0x15a   : > { %v1014_v42 = vadd.f32 %v983_v27, %v887_v32  ;;  %v1960_v31 = vpop.f32.mrb[55].mxu1 }
 0x15e   : > { %v1110_v16 = vpop.f32.mrb[56].mxu0 }
 0x15f   : > { %v988_v13 = vpop.f32.mrb[56].mxu1  ;;  %v1143_v47 = vadd.f32 %v1110_v16, %v1013_v9  ;;  %v1983_v23 = vpop.f32.mrb[57].mxu0 }
 0x160   : > { %v1015_v56 = vadd.f32 %v988_v13, %v888_v39  ;;  %v1963_v4 = vpop.f32.mrb[57].mxu1  ;;  %v1113_v29 = vpop.f32.mrb[58].mxu0 }
 0x161   : > { %v991_v5 = vpop.f32.mrb[58].mxu1  ;;  %v1144_v14 = vadd.f32 %v1113_v29, %v1014_v42  ;;  %v1984_v55 = vpop.f32.mrb[59].mxu0 }
 0x162   : > { %v1016_v26 = vadd.f32 %v991_v5, %v889_v59  ;;  %v1964_v17 = vpop.f32.mrb[59].mxu1 }
 0x166   : > { %v1118_v57 = vpop.f32.mrb[60].mxu0 }
 0x167   : > { %v996_v21 = vpop.f32.mrb[60].mxu1  ;;  %v2615_v35 = vadd.f32 %v1118_v57, %v1015_v56  ;;  %v1987_v6 = vpop.f32.mrb[61].mxu0 }
 0x168   : > { %v1017_v38 = vadd.f32 %v996_v21, %v890_v54  ;;  %v1967_v32 = vpop.f32.mrb[61].mxu1  ;;  %v1121_v37 = vpop.f32.mrb[62].mxu0 }
 0x169   : > { %v999_v44 = vpop.f32.mrb[62].mxu1  ;;  %v2617_v46 = vadd.f32 %v1121_v37, %v1016_v26  ;;  %v1988_v33 = vpop.f32.mrb[63].mxu0 }
 0x16a   : > { %v1018_v39 = vadd.f32 %v999_v44, %v891_v8  ;;  %v1968_v48 = vpop.f32.mrb[63].mxu1 }
 0x16e   : > { %v1126_v3 = vpop.f32.mrb[64].mxu0 }
 0x16f   : > { %v1004_v15 = vpop.f32.mrb[64].mxu1  ;;  %v2619_v43 = vadd.f32 %v1126_v3, %v1017_v38  ;;  %v1991_v59 = vpop.f32.mrb[65].mxu0 }
 0x170   : > { %v1019_v45 = vadd.f32 %v1004_v15, %v892_v28  ;;  %v1971_v36 = vpop.f32.mrb[65].mxu1  ;;  %v1129_v62 = vpop.f32.mrb[66].mxu0 }
 0x171   : > { %v1007_v49 = vpop.f32.mrb[66].mxu1  ;;  %v2621_v50 = vadd.f32 %v1129_v62, %v1018_v39  ;;  %v1992_v54 = vpop.f32.mrb[67].mxu0 }
 0x172   : > { %v1020_v34 = vadd.f32 %v1007_v49, %v893_v60  ;;  %v1972_v63 = vpop.f32.mrb[67].mxu1  ;;  %v2630_v60 = vld [vmem:[%s2699_s2] ss:$0 sm:$0xff] }
 0x176   : > { %v1134_v40 = vpop.f32.mrb[68].mxu0 }
 0x177   : > { %v2623_v11 = vadd.f32 %v1134_v40, %v1019_v45  ;;  %v1251_v24 = vpop.f32.mrb[68].mxu1  ;;  %v1995_v8 = vpop.f32.mrb[69].mxu0 }
 0x178   : > { %v1290_v51 = vadd.f32 %v1251_v24, %v1141_v2  ;;  %v2003_v25 = vpop.f32.mrb[69].mxu1  ;;  %v1137_v58 = vpop.f32.mrb[70].mxu0 }
 0x179   : > { %v2625_v52 = vadd.f32 %v1137_v58, %v1020_v34  ;;  %v1254_v1 = vpop.f32.mrb[70].mxu1  ;;  %v1996_v28 = vpop.f32.mrb[71].mxu0 }
 0x17a   : > { %v1291_v20 = vadd.f32 %v1254_v1, %v1142_v30  ;;  %v2004_v10 = vpop.f32.mrb[71].mxu1 }
 0x17e   : > { %v1378_v18 = vpop.f32.mrb[72].mxu0 }
 0x17f   : > { %v1259_v61 = vpop.f32.mrb[72].mxu1  ;;  %v1417_v53 = vadd.f32 %v1378_v18, %v1290_v51  ;;  %v2027_v41 = vpop.f32.mrb[73].mxu0 }
 0x180   : > { %v1292_v0 = vadd.f32 %v1259_v61, %v1143_v47  ;;  %v2007_v2 = vpop.f32.mrb[73].mxu1  ;;  %v1381_v22 = vpop.f32.mrb[74].mxu0 }
 0x181   : > { %v1434_v9 = vadd.f32 %v2630_v60, %v1417_v53  ;;  %v1262_v19 = vpop.f32.mrb[74].mxu1  ;;  %v1418_v12 = vadd.f32 %v1381_v22, %v1291_v20  ;;  %v2028_v27 = vpop.f32.mrb[75].mxu0 }
 0x182   : > { %v1293_v30 = vadd.f32 %v1262_v19, %v1144_v14  ;;  %v2008_v7 = vpop.f32.mrb[75].mxu1 }
 0x183   : > { %vm1444_vm8 = vcmp.ge.f32.partialorder %v1434_v9, 0.0  ;;  %v1454_v42 = vmul.f32 0.2, %v1434_v9  ;;  %v1435_v31 = vadd.f32 %v2630_v60, %v1418_v12 }
 0x185   : > { %v1464_v16 = vsel %vm1444_vm8, %v1434_v9, %v1454_v42  ;;  %v1455_v13 = vmul.f32 0.2, %v1435_v31  ;;  %vm1445_vm10 = vcmp.ge.f32.partialorder %v1435_v31, 0.0 }
 0x186   : > { %v1474_v47 = vpack.c.bf16 %v1464_v16, %v1464_v16  ;;  %v1386_v23 = vpop.f32.mrb[76].mxu0 }
 0x187   : > { %v1267_v56 = vpop.f32.mrb[76].mxu1  ;;  %v1419_v4 = vadd.f32 %v1386_v23, %v1292_v0  ;;  %v2031_v29 = vpop.f32.mrb[77].mxu0  ;;  %v1465_v26 = vsel %vm1445_vm10, %v1435_v31, %v1455_v13 }
 0x188   : > { %1476 = vst.msk [vmem:[%s2638_s7] sm:$0xf] %vm1475_vm9, %v1474_v47  ;;  %v1294_v5 = vadd.f32 %v1267_v56, %v2615_v35  ;;  %v2011_v14 = vpop.f32.mrb[77].mxu1  ;;  %v1389_v55 = vpop.f32.mrb[78].mxu0  ;;  %v1754_v33 = vpack.c.bf16 %v1465_v26, %v1465_v26 }
 0x189   : > { %v1436_v17 = vadd.f32 %v2630_v60, %v1419_v4  ;;  %v1270_v57 = vpop.f32.mrb[78].mxu1  ;;  %v1420_v21 = vadd.f32 %v1389_v55, %v1293_v30  ;;  %v2032_v6 = vpop.f32.mrb[79].mxu0 }
 0x18a   : > { %v1295_v38 = vadd.f32 %v1270_v57, %v2617_v46  ;;  %v2012_v32 = vpop.f32.mrb[79].mxu1  ;;  %v1735_v62 = vrot.slane %v1754_v33, 9 }
 0x18b   : > { %vm1446_vm11 = vcmp.ge.f32.partialorder %v1436_v17, 0.0  ;;  %v1456_v37 = vmul.f32 0.2, %v1436_v17  ;;  %v1437_v44 = vadd.f32 %v2630_v60, %v1420_v21 }
 0x18d   : > { %v1466_v39 = vsel %vm1446_vm11, %v1436_v17, %v1456_v37  ;;  %vm1447_vm14 = vcmp.ge.f32.partialorder %v1437_v44, 0.0  ;;  %v1457_v35 = vmul.f32 0.2, %v1437_v44 }
 0x18e   : > { %v1755_v48 = vpack.c.bf16 %v1466_v39, %v1466_v39  ;;  %v1394_v3 = vpop.f32.mrb[80].mxu0 }
 0x18f   : > { %v1467_v46 = vsel %vm1447_vm14, %v1437_v44, %v1457_v35  ;;  %v1275_v59 = vpop.f32.mrb[80].mxu1  ;;  %v1421_v45 = vadd.f32 %v1394_v3, %v1294_v5  ;;  %v2035_v36 = vpop.f32.mrb[81].mxu0 }
 0x190   : > { %v1488_v49 = vrot.slane %v1755_v48, 5  ;;  %v1757_v54 = vpack.c.bf16 %v1467_v46, %v1467_v46  ;;  %v1296_v34 = vadd.f32 %v1275_v59, %v2619_v43  ;;  %v2015_v63 = vpop.f32.mrb[81].mxu1  ;;  %v1397_v40 = vpop.f32.mrb[82].mxu0  ;;  %v1738_v28 = vrot.slane %v1755_v48, 10 }
 0x191   : > { %v1438_v8 = vadd.f32 %v2630_v60, %v1421_v45  ;;  %v1278_v51 = vpop.f32.mrb[82].mxu1  ;;  %v1422_v25 = vadd.f32 %v1397_v40, %v1295_v38  ;;  %v2036_v58 = vpop.f32.mrb[83].mxu0 }
 0x192   : > { %v1489_v1 = vsel %vm2646_vm1, %v1735_v62, %v1488_v49  ;;  %v1503_v20 = vrot.slane %v1757_v54, 6  ;;  %v1297_v10 = vadd.f32 %v1278_v51, %v2621_v50  ;;  %v2016_v43 = vpop.f32.mrb[83].mxu1  ;;  %v1741_v30 = vrot.slane %v1757_v54, 11 }
 0x193   : > { %1491 = vst.msk [vmem:[%s2638_s7 + $0x4] sm:$0xf] %vm1475_vm9, %v1489_v1  ;;  %vm1448_vm3 = vcmp.ge.f32.partialorder %v1438_v8, 0.0  ;;  %v1458_v18 = vmul.f32 0.2, %v1438_v8  ;;  %v1439_v61 = vadd.f32 %v2630_v60, %v1422_v25 }
 0x194   : > { %v1504_v53 = vsel %vm2651_vm2, %v1738_v28, %v1503_v20 }
 0x195   : > { %1506 = vst.msk [vmem:[%s2638_s7 + $0x8] sm:$0xf] %vm1475_vm9, %v1504_v53  ;;  %v1468_v41 = vsel %vm1448_vm3, %v1438_v8, %v1458_v18  ;;  %vm1449_vm6 = vcmp.ge.f32.partialorder %v1439_v61, 0.0  ;;  %v1459_v0 = vmul.f32 0.2, %v1439_v61 }
 0x196   : > { %v1759_v2 = vpack.c.bf16 %v1468_v41, %v1468_v41  ;;  %v1402_v22 = vpop.f32.mrb[84].mxu0 }
 0x197   : > { %v1469_v9 = vsel %vm1449_vm6, %v1439_v61, %v1459_v0  ;;  %v1283_v19 = vpop.f32.mrb[84].mxu1  ;;  %v1423_v12 = vadd.f32 %v1402_v22, %v1296_v34  ;;  %v2039_v27 = vpop.f32.mrb[85].mxu0 }
 0x198   : > { %v1518_v7 = vrot.slane %v1759_v2, 7  ;;  %v1522_v42 = vpack.c.bf16 %v1469_v9, %v1469_v9  ;;  %v1298_v31 = vadd.f32 %v1283_v19, %v2623_v11  ;;  %v2019_v16 = vpop.f32.mrb[85].mxu1  ;;  %v1405_v13 = vpop.f32.mrb[86].mxu0 }
 0x199   : > { %v1440_v47 = vadd.f32 %v2630_v60, %v1423_v12  ;;  %v1286_v23 = vpop.f32.mrb[86].mxu1  ;;  %v1424_v56 = vadd.f32 %v1405_v13, %v1297_v10  ;;  %v2040_v4 = vpop.f32.mrb[87].mxu0 }
 0x19a   : > { %v1519_v29 = vsel %vm2666_vm7, %v1741_v30, %v1518_v7  ;;  %1523 = vst.msk [vmem:[%s2638_s7 + $0x10] sm:$0xf] %vm1475_vm9, %v1522_v42  ;;  %v1299_v5 = vadd.f32 %v1286_v23, %v2625_v52  ;;  %v2020_v14 = vpop.f32.mrb[87].mxu1 }
 0x19b   : > { %1521 = vst.msk [vmem:[%s2638_s7 + $0xc] sm:$0xf] %vm1475_vm9, %v1519_v29  ;;  %vm1450_vm8 = vcmp.ge.f32.partialorder %v1440_v47, 0.0  ;;  %v1460_v55 = vmul.f32 0.2, %v1440_v47  ;;  %v1441_v11 = vadd.f32 %v2630_v60, %v1424_v56 }
 0x19d   : > { %v1470_v26 = vsel %vm1450_vm8, %v1440_v47, %v1460_v55  ;;  %vm1451_vm10 = vcmp.ge.f32.partialorder %v1441_v11, 0.0  ;;  %v1461_v17 = vmul.f32 0.2, %v1441_v11 }
 0x19e   : > { %v1760_v57 = vpack.c.bf16 %v1470_v26, %v1470_v26  ;;  %v1410_v21 = vpop.f32.mrb[88].mxu0 }
 0x19f   : > { %v1471_v6 = vsel %vm1451_vm10, %v1441_v11, %v1461_v17  ;;  %v1425_v38 = vadd.f32 %v1410_v21, %v1298_v31  ;;  %v2043_v32 = vpop.f32.mrb[89].mxu0 }
 0x1a0   : > { %v1761_v37 = vpack.c.bf16 %v1471_v6, %v1471_v6  ;;  %v1413_v44 = vpop.f32.mrb[90].mxu0  ;;  %v1744_v35 = vrot.slane %v1760_v57, 9 }
 0x1a1   : > { %v1442_v52 = vadd.f32 %v2630_v60, %v1425_v38  ;;  %v1426_v33 = vadd.f32 %v1413_v44, %v1299_v5  ;;  %v2044_v39 = vpop.f32.mrb[91].mxu0 }
 0x1a2   : > { %v1532_v48 = vrot.slane %v1761_v37, 5  ;;  %v1747_v54 = vrot.slane %v1761_v37, 10 }
 0x1a3   : > { %vm1452_vm11 = vcmp.ge.f32.partialorder %v1442_v52, 0.0  ;;  %v1462_v3 = vmul.f32 0.2, %v1442_v52  ;;  %v1443_v46 = vadd.f32 %v2630_v60, %v1426_v33 }
 0x1a4   : > { %v1533_v59 = vsel %vm2646_vm1, %v1744_v35, %v1532_v48 }
 0x1a5   : > { %1535 = vst.msk [vmem:[%s2638_s7 + $0x14] sm:$0xf] %vm1475_vm9, %v1533_v59  ;;  %v1472_v45 = vsel %vm1452_vm11, %v1442_v52, %v1462_v3  ;;  %vm1453_vm12 = vcmp.ge.f32.partialorder %v1443_v46, 0.0  ;;  %v1463_v36 = vmul.f32 0.2, %v1443_v46 }
 0x1a6   : > { %v1763_v62 = vpack.c.bf16 %v1472_v45, %v1472_v45 }
 0x1a7   : > { %v1473_v49 = vsel %vm1453_vm12, %v1443_v46, %v1463_v36 }
 0x1a8   : > { %v1544_v34 = vrot.slane %v1763_v62, 6  ;;  %v1765_v63 = vpack.c.bf16 %v1473_v49, %v1473_v49  ;;  %v1750_v8 = vrot.slane %v1763_v62, 11 }
 0x1aa   : > { %v1545_v40 = vsel %vm2651_vm2, %v1747_v54, %v1544_v34  ;;  %v1556_v51 = vrot.slane %v1765_v63, 7 }
 0x1ab   : > { %1547 = vst.msk [vmem:[%s2638_s7 + $0x18] sm:$0xf] %vm1475_vm9, %v1545_v40 }
 0x1ac   : > { %v1557_v60 = vsel %vm2666_vm7, %v1750_v8, %v1556_v51 }
 0x1ad   : > { %1559 = vst.msk [vmem:[%s2638_s7 + $0x1c] sm:$0xf] %vm1475_vm9, %v1557_v60 }
 0x1ae PF: > { %s13_s12 = sadd.s32 1, %s2098_s12  }
 0x1af   : > { %p10_p4 = scmp.ge.s32.totalorder %s13_s12, 4  }
 0x1b1   :  { %12 = sbr.rel (!%p10_p4) target bundleno = 1 (0x1), region = 70 }

// kernel: forward.9
= control target key start
LH: loop header
LB: loop body
LE: loop exit
PB: predicated region body
PF: predicated region fallthrough
CT: control target
= control target key end

     0   :  { %s4052_s18 = smov 0   ;;  %s5153_s0 = inlined_call_operand.vmem [shape: bf16[2,110,128], index: 0, kind: input, shape index: {}]   ;;  %s5154_s1 = inlined_call_operand.vmem [shape: bf16[2,90,128], index: 1, kind: input, shape index: {}]   ;;  %s5155_s2 = inlined_call_operand.vmem [shape: bf16[9,128,32], index: 2, kind: input, shape index: {}]   ;;  %s5156_s3 = inlined_call_operand.vmem [shape: bf16[4,128,32], index: 3, kind: input, shape index: {}]   ;;  %s5157_s4 = inlined_call_operand.vmem [shape: f32[1,32], index: 4, kind: input, shape index: {}]   ;;  %s5158_s5 = inlined_call_operand.vmem [shape: bf16[2,64,32], index: 5, kind: output, shape index: {}]  }
   0x1 LB: > { %s2824_s19 = sadd.s32 4294967295, %s4018_s18   ;;  %p2828_p0 = scmp.ge.s32.totalorder %s4018_s18, 1  ;;  %s4018_s18 = sphi %s4052_s18, %s15_s18  }
   0x2   : > { %p197_p1 = scmp.lt.s32.totalorder %s4018_s18, 3 }
   0x4   : > { %p198_p2 = pnand %p2828_p0, %p197_p1 }
   0x5   : > { %v3883_v0 = vld [vmem:[%s5155_s2 + $0x40] sm:$0xff] (!%p198_p2)   ;;  %v4020_v1 = vmov (!%p198_p2), 0.0   ;;  %v3885_v3 = vld [vmem:[%s5155_s2 + $0x48] sm:$0xff] (!%p198_p2)   ;;  %vm4021_vm0 = vmmov (!%p198_p2), 0   ;;  %p230_p3 = scmp.lt.s32.totalorder (!%p198_p2), %s2824_s19, 1  ;;  %v3887_v5 = vld [vmem:[%s5155_s2 + $0x50] sm:$0xff] (!%p198_p2)  }
   0x6   : > { %201 = sbr.rel (%p198_p2) target bundleno = 525 (0x20d), region = 40  ;;  %3341 = vmatprep.subr.bf16.mxu0 (!%p198_p2), %v4020_v1  ;;  %3449 = vmatprep.subr.bf16.mxu1 (!%p198_p2), %v4020_v1  ;;  %v3884_v2 = vld [vmem:[%s5155_s2 + $0xc0] sm:$0xff] (!%p198_p2)   ;;  %v3886_v4 = vld [vmem:[%s5155_s2 + $0xc8] sm:$0xff] (!%p198_p2)   ;;  %v3888_v6 = vld [vmem:[%s5155_s2 + $0xd0] sm:$0xff] (!%p198_p2)   ;;  %vm333_vm1 = vsmask.f32 (!%p198_p2), 7424 }
   0x7   : > { %3342 = vmatpush3.bf16.msra.mxu0 (!%p198_p2), %v3883_v0  ;;  %3357 = vmatprep.mubr.msk.bf16.mxu0 (!%p198_p2), %vm4021_vm0, %v4020_v1  ;;  %v3889_v7 = vld [vmem:[%s5155_s2 + $0x58] sm:$0xff] (!%p198_p2)   ;;  %v3891_v9 = vld [vmem:[%s5155_s2 + $0x60] sm:$0xff] (!%p198_p2)   ;;  %v3893_v14 = vld [vmem:[%s5155_s2 + $0x68] sm:$0xff] (!%p198_p2)   ;;  %vm648_vm2 = vcmask (!%p198_p2), 1046528   ;;  %vm1529_vm3 = vsmask.f32 (!%p198_p2), 5376 }
   0x8   : > { %3450 = vmatpush3.bf16.msra.mxu1 (!%p198_p2), %v3884_v2  ;;  %3343 = vmatprep.subr.bf16.mxu0 (!%p198_p2), %v4020_v1  ;;  %v3890_v8 = vld [vmem:[%s5155_s2 + $0xd8] sm:$0xff] (!%p198_p2)   ;;  %v3892_v10 = vld [vmem:[%s5155_s2 + $0xe0] sm:$0xff] (!%p198_p2)   ;;  %v3894_v19 = vld [vmem:[%s5155_s2 + $0xe8] sm:$0xff] (!%p198_p2)   ;;  %vm1196_vm4 = vcmask (!%p198_p2), 1045504   ;;  %vm989_vm5 = vsmask.f32 (!%p198_p2), 6400 }
   0x9   : > { %3451 = vmatprep.subr.bf16.mxu1 (!%p198_p2), %v4020_v1  ;;  %3465 = vmatprep.mubr.msk.bf16.mxu1 (!%p198_p2), %vm4021_vm0, %v4020_v1  ;;  %v3895_v25 = vld [vmem:[%s5155_s2 + $0x70] sm:$0xff] (!%p198_p2)   ;;  %v3897_v33 = vld [vmem:[%s5155_s2 + $0x78] sm:$0xff] (!%p198_p2)   ;;  %v3904_v47 = vld [vmem:[%s5155_s2 + $0x140] sm:$0xff] (!%p198_p2)   ;;  %vm1716_vm6 = vcmask (!%p198_p2), 1044480   ;;  %vm2597_vm10 = vcmask (!%p198_p2), 257024   ;;  %vm2679_vm11 = vcmask (!%p198_p2), 1043456  }
   0xa   : > { %v3896_v29 = vld [vmem:[%s5155_s2 + $0xf0] sm:$0xff] (!%p198_p2)   ;;  %v3898_v35 = vld [vmem:[%s5155_s2 + $0xf8] sm:$0xff] (!%p198_p2)   ;;  %v3905_v48 = vld [vmem:[%s5155_s2] sm:$0xff] (!%p198_p2)   ;;  %vm2601_vm14 = vcmask (!%p198_p2), 1040384  }
   0xb   : > { %3344 = vmatpush3.bf16.msra.mxu0 (!%p198_p2), %v3885_v3  ;;  %v3909_v52 = vld [vmem:[%s5155_s2 + $0x8] sm:$0xff] (!%p198_p2)   ;;  %v3910_v62 = vld [vmem:[%s5155_s2 + $0x150] sm:$0xff] (!%p198_p2)  }
   0xc   : > { %3452 = vmatpush3.bf16.msra.mxu1 (!%p198_p2), %v3886_v4  ;;  %3345 = vmatprep.subr.bf16.mxu0 (!%p198_p2), %v4020_v1  ;;  %v3906_v53 = vld [vmem:[%s5155_s2 + $0x148] sm:$0xff] (!%p198_p2)   ;;  %v3911_v0 = vld [vmem:[%s5155_s2 + $0x10] sm:$0xff] (!%p198_p2)  }
   0xd   : > { %s5164_s19 = smov (!%p230_p3, %s2824_s19), 1  ;;  %3453 = vmatprep.subr.bf16.mxu1 %v4020_v1 }
   0xe   : > { %s3871_s7 = smul.u32 56, %s5164_s19  ;;  %s3159_s11 = sshll.u32 %s5164_s19, 5 }
   0xf   : > { %3346 = vmatpush3.bf16.msra.mxu0 %v3887_v5  ;;  %s3872_s25 = smul.u32 48, %s5164_s19 }
  0x10   : > { %3454 = vmatpush3.bf16.msra.mxu1 %v3888_v6  ;;  %3347 = vmatprep.subr.bf16.mxu0 %v4020_v1  ;;  %s4102_s14 = scalar_lea.vmem %s5153_s0, %s3871_s7 }
  0x11   : > { %3455 = vmatprep.subr.bf16.mxu1 %v4020_v1  ;;  %v246_v11 = vld [vmem:[%s4102_s14] sm:$0xf]  ;;  %v247_v12 = vld [vmem:[%s4102_s14 + $0x4] sm:$0xf]  ;;  %v248_v13 = vld [vmem:[%s4102_s14 + $0x8] sm:$0xf]  ;;  %s4349_s7 = scalar_lea.vmem %s5154_s1, %s3872_s25 }
  0x12   : > { %v249_v15 = vld [vmem:[%s4102_s14 + $0xc] sm:$0xf]  ;;  %v4119_v16 = vcombine.low %v246_v11, %v247_v12  ;;  %v251_v18 = vld [vmem:[%s4102_s14 + $0x14] sm:$0xf]  ;;  %v250_v21 = vld [vmem:[%s4102_s14 + $0x10] sm:$0xf]  ;;  %v4145_v30 = vcombine.low %v247_v12, %v248_v13 }
  0x13   : > { %3348 = vmatpush3.bf16.msra.mxu0 %v3889_v7  ;;  %v4121_v17 = vcombine.low %v248_v13, %v249_v15  ;;  %v4132_v23 = vcombine.low %v250_v21, %v251_v18  ;;  %v4147_v31 = vcombine.low %v249_v15, %v250_v21  ;;  %v252_v40 = vld [vmem:[%s4102_s14 + $0x18] sm:$0xf]  ;;  %v253_v51 = vld [vmem:[%s4102_s14 + $0x1c] sm:$0xf]  ;;  %v256_v58 = vld [vmem:[%s4102_s14 + $0x28] sm:$0xf] }
  0x14   : > { %3456 = vmatpush3.bf16.msra.mxu1 %v3890_v8  ;;  %3349 = vmatprep.subr.bf16.mxu0 %v4020_v1  ;;  %v337_v20 = vshll.u32 %v4119_v16, 16  ;;  %v335_v26 = vshrl.u32 %v4119_v16, 16  ;;  %v825_v42 = vrot.slane %v4145_v30, 1  ;;  %v4167_v45 = vcombine.low %v251_v18, %v252_v40  ;;  %v4195_v59 = vld [vmem:[%s4102_s14 + $0x2c] sm:$0xf]  ;;  %v3915_v11 = vld [vmem:[%s5155_s2 + $0x18] sm:$0xff]  }
  0x15   : > { %3457 = vmatprep.subr.bf16.mxu1 %v4020_v1  ;;  %v342_v22 = vshll.u32 %v4121_v17, 16  ;;  %v346_v24 = vshrl.u32 %v4121_v17, 16  ;;  %v350_v34 = vshll.u32 %v4132_v23, 16  ;;  %v354_v41 = vshrl.u32 %v4132_v23, 16  ;;  %v254_v60 = vld [vmem:[%s4102_s14 + $0x20] sm:$0xf] }
  0x16   : > { %v339_v27 = vrot.slane %v337_v20, 1  ;;  %v826_v43 = vrot.slane %v4147_v31, 1  ;;  %v828_v55 = vrot.slane %v4167_v45, 1  ;;  %v4189_v57 = vcombine.low %v252_v40, %v253_v51  ;;  %v255_v3 = vld [vmem:[%s4102_s14 + $0x24] sm:$0xf] }
  0x17   : > { %3350 = vmatpush3.bf16.msra.mxu0 %v3891_v9  ;;  %v4139_v28 = vrot.slane %v342_v22, 3  ;;  %v4149_v32 = vrot.slane %v346_v24, 2  ;;  %v344_v36 = vrot.slane %v342_v22, 1  ;;  %v1534_v39 = vrot.slane %v350_v34, 3  ;;  %v3914_v9 = vld [vmem:[%s5155_s2 + $0x158] sm:$0xff]   ;;  %v3916_v15 = vld [vmem:[%s5155_s2 + $0x160] sm:$0xff]  }
  0x18   : > { %3458 = vmatpush3.bf16.msra.mxu1 %v3892_v10  ;;  %3351 = vmatprep.subr.bf16.mxu0 %v4020_v1  ;;  %v340_v38 = vor.u32 %v339_v27, %v335_v26  ;;  %v1533_v44 = vrot.slane %v354_v41, 2  ;;  %v827_v50 = vsel %vm648_vm2, %v825_v42, %v826_v43  ;;  %v352_v54 = vrot.slane %v350_v34, 1  ;;  %v3918_v20 = vld [vmem:[%s5155_s2 + $0x20] sm:$0xff]   ;;  %v3921_v42 = vld [vmem:[%s5155_s2 + $0x170] sm:$0xff]  }
  0x19   : > { %3459 = vmatprep.subr.bf16.mxu1 %v4020_v1  ;;  %v1532_v37 = vor.u32 %v4139_v28, %v4149_v32  ;;  %v348_v56 = vor.u32 %v346_v24, %v344_v36  ;;  %v4202_v61 = vcombine.low %v256_v58, %v4195_v59  ;;  %v358_v2 = vshll.u32 %v4189_v57, 16 }
  0x1a   : > { %v345_v46 = vsel %vm333_vm1, %v340_v38, %v344_v36  ;;  %v4176_v49 = vor.u32 %v1534_v39, %v1533_v44  ;;  %v829_v4 = vsel %vm648_vm2, %v826_v43, %v828_v55  ;;  %v4216_v5 = vcombine.low %v253_v51, %v254_v60  ;;  %v3920_v38 = vld [vmem:[%s5155_s2 + $0x28] sm:$0xff]   ;;  %v3927_v51 = vld [vmem:[%s5155_s2 + $0x38] sm:$0xff]  }
  0x1b   : > { %3352 = vmatpush3.bf16.msra.mxu0 %v3893_v14  ;;  %v353_v63 = vsel %vm333_vm1, %v348_v56, %v352_v54  ;;  %v4219_v6 = vcombine.low %v254_v60, %v255_v3  ;;  %v356_v7 = vor.u32 %v354_v41, %v352_v54  ;;  %v360_v8 = vrot.slane %v358_v2, 1 }
  0x1c   : > { %3460 = vmatpush3.bf16.msra.mxu1 %v3894_v19  ;;  %3353 = vmatprep.subr.bf16.mxu0 %v4020_v1  ;;  %v830_v10 = vrot.slane %v4216_v5, 1  ;;  %v362_v12 = vshrl.u32 %v4189_v57, 16  ;;  %v4240_v18 = vcombine.low %v255_v3, %v256_v58  ;;  %v1538_v24 = vrot.slane %v358_v2, 3 }
  0x1d   : > { %3461 = vmatprep.subr.bf16.mxu1 %v4020_v1  ;;  %v366_v13 = vshll.u32 %v4219_v6, 16  ;;  %v361_v14 = vsel %vm333_vm1, %v356_v7, %v360_v8  ;;  %v370_v22 = vshrl.u32 %v4219_v6, 16  ;;  %v4249_v26 = vcombine.low %v256_v58, %v256_v58  ;;  %v3929_v7 = vld [vmem:[%s5155_s2 + $0x80] sm:$0xff]  }
  0x1e   : > { %v831_v19 = vsel %vm648_vm2, %v828_v55, %v830_v10  ;;  %v1537_v21 = vrot.slane %v362_v12, 2  ;;  %v364_v27 = vor.u32 %v362_v12, %v360_v8  ;;  %v4274_v44 = vcombine.low %v4195_v59, %v4195_v59 }
  0x1f   : > { %3354 = vmatpush3.bf16.msra.mxu0 %v3895_v25  ;;  %v368_v25 = vrot.slane %v366_v13, 1  ;;  %v1541_v34 = vrot.slane %v370_v22, 2  ;;  %v1542_v36 = vrot.slane %v366_v13, 3  ;;  %v374_v43 = vshll.u32 %v4249_v26, 16  ;;  %v3930_v13 = vld [vmem:[%s5155_s2 + $0x1c8] sm:$0xff]  }
  0x20   : > { %3462 = vmatpush3.bf16.msra.mxu1 %v3896_v29  ;;  %3355 = vmatprep.subr.bf16.mxu0 %v4020_v1  ;;  %v832_v29 = vrot.slane %v4240_v18, 1  ;;  %v999_v59 = vshrl.u32 %v4147_v31, 16  ;;  %v1002_v60 = vshll.u32 %v4147_v31, 16  ;;  %v1008_v8 = vshrl.u32 %v4167_v45, 16 }
  0x21   : > { %3463 = vmatprep.subr.bf16.mxu1 %v4020_v1  ;;  %v4264_v39 = vor.u32 %v1542_v36, %v1541_v34  ;;  %v369_v40 = vsel %vm333_vm1, %v364_v27, %v368_v25  ;;  %v372_v28 = vor.u32 %v370_v22, %v368_v25  ;;  %v376_v32 = vrot.slane %v374_v43, 1  ;;  %v3933_v22 = vld [vmem:[%s5155_s2 + $0x90] sm:$0xff]   ;;  %v4396_v43 = vld [vmem:[%s4349_s7 + $0x24] sm:$0xf] }
  0x22   : > { %v833_v41 = vsel %vm648_vm2, %v830_v10, %v832_v29  ;;  %v1004_v2 = vrot.slane %v1002_v60, 2  ;;  %v3928_v10 = vld [vmem:[%s5155_s2 + $0x1c0] sm:$0xff]   ;;  %v1011_v12 = vshll.u32 %v4167_v45, 16  ;;  %v1020_v34 = vshll.u32 %v4216_v5, 16 }
  0x23   : > { %3356 = vmatpush3.bf16.msra.mxu0 %v3897_v33  ;;  %v1539_v33 = vor.u32 %v1538_v24, %v1537_v21  ;;  %v377_v54 = vsel %vm333_vm1, %v372_v28, %v376_v32  ;;  %v282_v28 = vld [vmem:[%s4349_s7 + $0x28] sm:$0xf] }
  0x24   : > { %3464 = vmatpush3.bf16.msra.mxu1 %v3898_v35  ;;  %3377 = vmatprep.subr.bf16.mxu0 %v4020_v1  ;;  %v3919_v35 = vld [vmem:[%s5155_s2 + $0x168] sm:$0xff]  }
  0x25   : > { %3521 = vmatprep.subr.bf16.mxu1 %v4020_v1 }
  0x26   : > { %3358 = vmatmul.mubr.bf16.vlgmr.msra.gmra.mrb[0].mxu0 %v345_v46  ;;  %v4281_v46 = vsel %vm1529_vm3, %v1532_v37, %v4176_v49  ;;  %v834_v37 = vrot.slane %v4274_v44, 1 }
  0x27   : > { %3466 = vmatmul.mubr.bf16.vlgmr.msra.gmra.mrb[0].mxu1 %v827_v50  ;;  %3378 = vmatpush3.bf16.msra.mxu0 %v3905_v48  ;;  %v4289_v48 = vsel %vm1529_vm3, %v1539_v33, %v4264_v39  ;;  %v3925_v50 = vld [vmem:[%s5155_s2 + $0x30] sm:$0xff]  }
  0x28   : > { %3522 = vmatpush3.bf16.msra.mxu1 %v3904_v47  ;;  %3361 = vmatprep.mubr.msk.bf16.mxu0 %vm4021_vm0, %v4020_v1  ;;  %v4285_v47 = vsel %vm1529_vm3, %v4176_v49, %v1539_v33  ;;  %v3926_v49 = vld [vmem:[%s5155_s2 + $0x178] sm:$0xff]   ;;  %v835_v55 = vsel %vm648_vm2, %v832_v29, %v834_v37  ;;  %v1017_v29 = vshrl.u32 %v4216_v5, 16  ;;  %v1202_v33 = vrot.slane %v4216_v5, 2  ;;  %v3936_v37 = vld [vmem:[%s5155_s2 + $0x1e0] sm:$0xff]  }
  0x29   : > { %3523 = vmatprep.subr.bf16.mxu1 %v4020_v1  ;;  %3469 = vmatprep.mubr.msk.bf16.mxu1 %vm4021_vm0, %v4020_v1  ;;  %v1026_v5 = vshrl.u32 %v4240_v18, 16 }
  0x2a   : > { %3379 = vmatprep.subr.bf16.mxu0 %v4020_v1  ;;  %v1019_v36 = vrot.slane %v1017_v29, 1  ;;  %v650_v29 = vrot.slane %v4121_v17, 1 }
  0x2b   : > { %3380 = vmatpush3.bf16.msra.mxu0 %v3909_v52  ;;  %v991_v52 = vshrl.u32 %v4145_v30, 16 }
  0x2c   : > { %3524 = vmatpush3.bf16.msra.mxu1 %v3906_v53  ;;  %3381 = vmatprep.subr.bf16.mxu0 %v4020_v1  ;;  %v994_v53 = vshll.u32 %v4145_v30, 16 }
  0x2d   : > { %3525 = vmatprep.subr.bf16.mxu1 %v4020_v1  ;;  %v993_v56 = vrot.slane %v991_v52, 1  ;;  %v4407_v52 = vcombine.low %v4396_v43, %v282_v28  ;;  %v3947_v28 = vld [vmem:[%s5155_s2 + $0x108] sm:$0xff]  }
  0x2e   : > { %3362 = vmatmul.mubr.bf16.gmra.mrb[4].mxu0 %v353_v63  ;;  %v996_v58 = vrot.slane %v994_v53, 2  ;;  %v1197_v63 = vrot.slane %v4145_v30, 2  ;;  %v3937_v53 = vld [vmem:[%s5155_s2 + $0xa0] sm:$0xff]  }
  0x2f   : > { %3470 = vmatmul.mubr.bf16.gmra.mrb[4].mxu1 %v829_v4  ;;  %3365 = vmatprep.mubr.msk.bf16.mxu0 %vm4021_vm0, %v4020_v1 }
  0x30   : > { %3526 = vmatpush3.bf16.msra.mxu1 %v3910_v62  ;;  %3382 = vmatpush3.bf16.msra.mxu0 %v3911_v0  ;;  %v1001_v62 = vrot.slane %v999_v59, 1  ;;  %v1198_v0 = vrot.slane %v4147_v31, 2  ;;  %v997_v3 = vor.u32 %v996_v58, %v993_v56  ;;  %v3931_v31 = vld [vmem:[%s5155_s2 + $0x88] sm:$0xff]   ;;  %v1035_v58 = vshrl.u32 %v4274_v44, 16 }
  0x31   : > { %3473 = vmatprep.mubr.msk.bf16.mxu1 %vm4021_vm0, %v4020_v1  ;;  %3527 = vmatprep.subr.bf16.mxu1 %v4020_v1  ;;  %v3938_v56 = vld [vmem:[%s5155_s2 + $0x1e8] sm:$0xff]   ;;  %v1038_v59 = vshll.u32 %v4274_v44, 16 }
  0x32   : > { %3383 = vmatprep.subr.bf16.mxu0 %v4020_v1  ;;  %v1005_v4 = vor.u32 %v1004_v2, %v1001_v62  ;;  %v1037_v62 = vrot.slane %v1035_v58, 1  ;;  %v3941_v2 = vld [vmem:[%s5155_s2 + $0xb0] sm:$0xff]  }
  0x34   : > { %3528 = vmatpush3.bf16.msra.mxu1 %v3914_v9  ;;  %3384 = vmatpush3.bf16.msra.mxu0 %v3915_v11  ;;  %v1199_v9 = vsel %vm1196_vm4, %v1197_v63, %v1198_v0  ;;  %v4333_v30 = vsel %vm989_vm5, %v997_v3, %v1005_v4  ;;  %v1010_v11 = vrot.slane %v1008_v8, 1  ;;  %v1040_v63 = vrot.slane %v1038_v59, 2  ;;  %v4445_v8 = vld [vmem:[%s4349_s7 + $0x8] sm:$0xf]  ;;  %v3948_v59 = vld [vmem:[%s5156_s3 + $0x50] sm:$0xff]  }
  0x35   : > { %3529 = vmatprep.subr.bf16.mxu1 %v4020_v1  ;;  %3385 = vmatprep.subr.bf16.mxu0 %v4020_v1 }
  0x36   : > { %3366 = vmatmul.mubr.bf16.gmra.mrb[8].mxu0 %v361_v14  ;;  %v1200_v14 = vrot.slane %v4167_v45, 2  ;;  %v3932_v45 = vld [vmem:[%s5155_s2 + $0x1d0] sm:$0xff]   ;;  %v1041_v3 = vor.u32 %v1040_v63, %v1037_v62 }
  0x37   : > { %3474 = vmatmul.mubr.bf16.gmra.mrb[8].mxu1 %v831_v19  ;;  %3369 = vmatprep.mubr.msk.bf16.mxu0 %vm4021_vm0, %v4020_v1  ;;  %v1013_v19 = vrot.slane %v1011_v12, 2  ;;  %v3943_v12 = vld [vmem:[%s5155_s2 + $0xb8] sm:$0xff]  }
  0x38   : > { %3530 = vmatpush3.bf16.msra.mxu1 %v3916_v15  ;;  %3477 = vmatprep.mubr.msk.bf16.mxu1 %vm4021_vm0, %v4020_v1  ;;  %v4355_v15 = vld [vmem:[%s4349_s7 + $0xc] sm:$0xf]  ;;  %v1201_v25 = vsel %vm1196_vm4, %v1198_v0, %v1200_v14  ;;  %v1203_v32 = vsel %vm1196_vm4, %v1200_v14, %v1202_v33  ;;  %v3940_v0 = vld [vmem:[%s5155_s2 + $0x1f0] sm:$0xff]  }
  0x39   : > { %3386 = vmatpush3.bf16.msra.mxu0 %v3918_v20  ;;  %3531 = vmatprep.subr.bf16.mxu1 %v4020_v1  ;;  %v4358_v20 = vld [vmem:[%s4349_s7 + $0x10] sm:$0xf]  ;;  %v1014_v24 = vor.u32 %v1013_v19, %v1010_v11  ;;  %v3942_v11 = vld [vmem:[%s5155_s2 + $0x1f8] sm:$0xff]   ;;  %v4474_v19 = vld [vmem:[%s4349_s7 + $0x14] sm:$0xf] }
  0x3a   : > { %3387 = vmatprep.subr.bf16.mxu0 %v4020_v1  ;;  %v4366_v21 = vcombine.low %v4355_v15, %v4358_v20 }
  0x3b   : > { %v4375_v27 = vsel %vm989_vm5, %v1005_v4, %v1014_v24 }
  0x3c   : > { %3532 = vmatpush3.bf16.msra.mxu1 %v3919_v35  ;;  %v3934_v35 = vld [vmem:[%s5155_s2 + $0x1d8] sm:$0xff]  }
  0x3d   : > { %3388 = vmatpush3.bf16.msra.mxu0 %v3920_v38  ;;  %3533 = vmatprep.subr.bf16.mxu1 %v4020_v1  ;;  %v3935_v38 = vld [vmem:[%s5155_s2 + $0x98] sm:$0xff]  }
  0x3e   : > { %3370 = vmatmul.mubr.bf16.gmra.mrb[12].mxu0 %v369_v40  ;;  %3389 = vmatprep.subr.bf16.mxu0 %v4020_v1  ;;  %v1022_v40 = vrot.slane %v1020_v34, 2 }
  0x3f   : > { %3478 = vmatmul.mubr.bf16.gmra.mrb[12].mxu1 %v833_v41  ;;  %3373 = vmatprep.mubr.msk.bf16.mxu0 %vm4021_vm0, %v4020_v1 }
  0x40   : > { %3481 = vmatprep.mubr.msk.bf16.mxu1 %vm4021_vm0, %v4020_v1  ;;  %3534 = vmatpush3.bf16.msra.mxu1 %v3921_v42  ;;  %v1023_v41 = vor.u32 %v1022_v40, %v1019_v36  ;;  %v1029_v42 = vshll.u32 %v4240_v18, 16  ;;  %v2268_v36 = vshrl.u32 %v4366_v21, 16  ;;  %v3945_v40 = vld [vmem:[%s5155_s2 + $0x100] sm:$0xff]  }
  0x41   : > { %3390 = vmatpush3.bf16.msra.mxu0 %v3925_v50  ;;  %3535 = vmatprep.subr.bf16.mxu1 %v4020_v1  ;;  %v1028_v50 = vrot.slane %v1026_v5, 1 }
  0x42   : > { %3391 = vmatprep.subr.bf16.mxu0 %v4020_v1 }
  0x44   : > { %3536 = vmatpush3.bf16.msra.mxu1 %v3926_v49  ;;  %v4404_v49 = vsel %vm989_vm5, %v1014_v24, %v1023_v41  ;;  %v649_v24 = vrot.slane %v4119_v16, 1 }
  0x45   : > { %3392 = vmatpush3.bf16.msra.mxu0 %v3927_v51  ;;  %3593 = vmatprep.subr.bf16.mxu1 %v4020_v1  ;;  %v1031_v51 = vrot.slane %v1029_v42, 2  ;;  %v652_v42 = vrot.slane %v4132_v23, 1 }
  0x46   : > { %3374 = vmatmul.mubr.bf16.gmra.mrb[16].mxu0 %v377_v54  ;;  %3413 = vmatprep.subr.bf16.mxu0 %v4020_v1 }
  0x47   : > { %3482 = vmatmul.mubr.bf16.gmra.mrb[16].mxu1 %v835_v55  ;;  %3393 = vmatprep.mubr.msk.bf16.mxu0 %vm4021_vm0, %v4020_v1  ;;  %v1032_v54 = vor.u32 %v1031_v51, %v1028_v50  ;;  %v1204_v55 = vrot.slane %v4240_v18, 2  ;;  %v3939_v18 = vld [vmem:[%s5155_s2 + $0xa8] sm:$0xff]   ;;  %v653_v58 = vsel %vm648_vm2, %v650_v29, %v652_v42 }
  0x48   : > { %3537 = vmatprep.mubr.msk.bf16.mxu1 %vm4021_vm0, %v4020_v1 }
  0x49   : > { %v4426_v60 = vsel %vm989_vm5, %v1023_v41, %v1032_v54  ;;  %v1205_v4 = vsel %vm1196_vm4, %v1202_v33, %v1204_v55  ;;  %v3944_v41 = vld [vmem:[%s5156_s3 + $0x40] sm:$0xff]  }
  0x4e   : > { %3394 = vmatmul.mubr.bf16.vlgmr.msra.gmra.mrb[20].mxu0 %v4119_v16 }
  0x4f   : > { %3538 = vmatmul.mubr.bf16.vlgmr.msra.gmra.mrb[20].mxu1 %v1199_v9  ;;  %3414 = vmatpush3.bf16.msra.mxu0 %v3929_v7  ;;  %v4441_v7 = vld [vmem:[%s4349_s7 + $0x4] sm:$0xf]  ;;  %v4448_v9 = vsel %vm989_vm5, %v1032_v54, %v1041_v3  ;;  %v3950_v3 = vld [vmem:[%s5156_s3 + $0x58] sm:$0xff]   ;;  %vm2627_vm5 = vcmask 1041408  }
  0x50   : > { %3594 = vmatpush3.bf16.msra.mxu1 %v3928_v10  ;;  %3397 = vmatprep.mubr.msk.bf16.mxu0 %vm4021_vm0, %v4020_v1  ;;  %v4454_v10 = vcombine.low %v4441_v7, %v4445_v8 }
  0x51   : > { %3595 = vmatprep.subr.bf16.mxu1 %v4020_v1  ;;  %3541 = vmatprep.mubr.msk.bf16.mxu1 %vm4021_vm0, %v4020_v1 }
  0x52   : > { %3415 = vmatprep.subr.bf16.mxu0 %v4020_v1  ;;  %v2257_v14 = vshrl.u32 %v4454_v10, 16 }
  0x53   : > { %3416 = vmatpush3.bf16.msra.mxu0 %v3931_v31  ;;  %v1206_v31 = vrot.slane %v4274_v44, 2  ;;  %v2259_v44 = vshll.u32 %v4454_v10, 16 }
  0x54   : > { %3596 = vmatpush3.bf16.msra.mxu1 %v3930_v13  ;;  %3417 = vmatprep.subr.bf16.mxu0 %v4020_v1 }
  0x55   : > { %3597 = vmatprep.subr.bf16.mxu1 %v4020_v1  ;;  %v1207_v13 = vsel %vm1196_vm4, %v1204_v55, %v1206_v31  ;;  %v1546_v31 = vshrl.u32 %v4202_v61, 16 }
  0x56   : > { %3398 = vmatmul.mubr.bf16.gmra.mrb[24].mxu0 %v4121_v17 }
  0x57   : > { %3542 = vmatmul.mubr.bf16.gmra.mrb[24].mxu1 %v1201_v25  ;;  %3401 = vmatprep.mubr.msk.bf16.mxu0 %vm4021_vm0, %v4020_v1  ;;  %v2261_v25 = vrot.slane %v2259_v44, 1  ;;  %v3952_v44 = vld [vmem:[%s5156_s3 + $0x60] sm:$0xff]  }
  0x58   : > { %3598 = vmatpush3.bf16.msra.mxu1 %v3932_v45  ;;  %3418 = vmatpush3.bf16.msra.mxu0 %v3933_v22  ;;  %v4477_v45 = vld [vmem:[%s4349_s7 + $0x18] sm:$0xf]  ;;  %v2264_v22 = vshll.u32 %v4366_v21, 16 }
  0x59   : > { %3545 = vmatprep.mubr.msk.bf16.mxu1 %vm4021_vm0, %v4020_v1  ;;  %3599 = vmatprep.subr.bf16.mxu1 %v4020_v1  ;;  %v2262_v34 = vor.u32 %v2261_v25, %v2257_v14  ;;  %v4565_v14 = vld [vmem:[%s4102_s14 + $0x30] ss:$0 sps:$4 sm:$0xff]  }
  0x5a   : > { %3419 = vmatprep.subr.bf16.mxu0 %v4020_v1  ;;  %v2266_v33 = vrot.slane %v2264_v22, 1  ;;  %v1548_v22 = vrot.slane %v1546_v31, 2  ;;  %v2452_v31 = vrot.slane %v4366_v21, 1 }
  0x5c   : > { %3600 = vmatpush3.bf16.msra.mxu1 %v3934_v35  ;;  %3420 = vmatpush3.bf16.msra.mxu0 %v3935_v38  ;;  %v4490_v35 = vcombine.low %v4474_v19, %v4477_v45  ;;  %v4493_v16 = vsel %vm333_vm1, %v2262_v34, %v2266_v33  ;;  %v651_v38 = vsel %vm648_vm2, %v649_v24, %v650_v29 }
  0x5d   : > { %3601 = vmatprep.subr.bf16.mxu1 %v4020_v1  ;;  %3421 = vmatprep.subr.bf16.mxu0 %v4020_v1  ;;  %v2270_v50 = vor.u32 %v2268_v36, %v2266_v33  ;;  %v3953_v33 = vld [vmem:[%s5155_s2 + $0x120] sm:$0xff]   ;;  %v656_v36 = vrot.slane %v4219_v6, 1 }
  0x5e   : > { %3402 = vmatmul.mubr.bf16.gmra.mrb[28].mxu0 %v4132_v23  ;;  %v2272_v5 = vshll.u32 %v4490_v35, 16 }
  0x5f   : > { %3546 = vmatmul.mubr.bf16.gmra.mrb[28].mxu1 %v1203_v32  ;;  %3405 = vmatprep.mubr.msk.bf16.mxu0 %vm4021_vm0, %v4020_v1  ;;  %v4509_v32 = vld [vmem:[%s4349_s7 + $0x1c] sm:$0xf] }
  0x60   : > { %3602 = vmatpush3.bf16.msra.mxu1 %v3936_v37  ;;  %3549 = vmatprep.mubr.msk.bf16.mxu1 %vm4021_vm0, %v4020_v1  ;;  %v4512_v37 = vld [vmem:[%s4349_s7 + $0x20] sm:$0xf]  ;;  %v2274_v51 = vrot.slane %v2272_v5, 1 }
  0x61   : > { %3422 = vmatpush3.bf16.msra.mxu0 %v3937_v53  ;;  %3603 = vmatprep.subr.bf16.mxu1 %v4020_v1  ;;  %v3946_v53 = vld [vmem:[%s5156_s3 + $0x48] sm:$0xff]   ;;  %v4525_v55 = vcombine.low %v4509_v32, %v4512_v37 }
  0x62   : > { %3423 = vmatprep.subr.bf16.mxu0 %v4020_v1  ;;  %v4519_v54 = vsel %vm333_vm1, %v2270_v50, %v2274_v51 }
  0x64   : > { %3604 = vmatpush3.bf16.msra.mxu1 %v3938_v56  ;;  %v2280_v56 = vshll.u32 %v4525_v55, 16 }
  0x65   : > { %3424 = vmatpush3.bf16.msra.mxu0 %v3939_v18  ;;  %3605 = vmatprep.subr.bf16.mxu1 %v4020_v1  ;;  %v3949_v18 = vld [vmem:[%s5155_s2 + $0x110] sm:$0xff]  }
  0x66   : > { %3406 = vmatmul.mubr.bf16.gmra.mrb[32].mxu0 %v4189_v57  ;;  %3425 = vmatprep.subr.bf16.mxu0 %v4020_v1  ;;  %v2282_v63 = vrot.slane %v2280_v56, 1  ;;  %v3956_v56 = vld [vmem:[%s5156_s3 + $0x70] sm:$0xff]  }
  0x67   : > { %3550 = vmatmul.mubr.bf16.gmra.mrb[32].mxu1 %v1205_v4  ;;  %3409 = vmatprep.mubr.msk.bf16.mxu0 %vm4021_vm0, %v4020_v1  ;;  %v3951_v4 = vld [vmem:[%s5155_s2 + $0x118] sm:$0xff]  }
  0x68   : > { %3553 = vmatprep.mubr.msk.bf16.mxu1 %vm4021_vm0, %v4020_v1  ;;  %3606 = vmatpush3.bf16.msra.mxu1 %v3940_v0 }
  0x69   : > { %3426 = vmatpush3.bf16.msra.mxu0 %v3941_v2  ;;  %3607 = vmatprep.subr.bf16.mxu1 %v4020_v1  ;;  %v654_v2 = vrot.slane %v4189_v57, 1 }
  0x6a   : > { %3427 = vmatprep.subr.bf16.mxu0 %v4020_v1 }
  0x6b   : > { %v657_v50 = vsel %vm648_vm2, %v654_v2, %v656_v36 }
  0x6c   : > { %3608 = vmatpush3.bf16.msra.mxu1 %v3942_v11  ;;  %v1549_v11 = vshll.u32 %v4202_v61, 16 }
  0x6d   : > { %3428 = vmatpush3.bf16.msra.mxu0 %v3943_v12  ;;  %3665 = vmatprep.subr.bf16.mxu1 %v4020_v1  ;;  %v2288_v12 = vshll.u32 %v4407_v52, 16 }
  0x6e   : > { %3410 = vmatmul.mubr.bf16.gmra.mrb[36].mxu0 %v4219_v6  ;;  %3485 = vmatprep.subr.bf16.mxu0 %v4020_v1  ;;  %v1551_v24 = vrot.slane %v1549_v11, 3  ;;  %v2454_v11 = vrot.slane %v4490_v35, 1 }
  0x6f   : > { %3554 = vmatmul.mubr.bf16.gmra.mrb[36].mxu1 %v1207_v13  ;;  %3429 = vmatprep.mubr.msk.bf16.mxu0 %vm4021_vm0, %v4020_v1  ;;  %v655_v13 = vsel %vm648_vm2, %v652_v42, %v654_v2  ;;  %v4570_v29 = vrot.slane %v2288_v12, 1  ;;  %v272_v42 = vld [vmem:[%s4349_s7] sm:$0xf]  ;;  %s5081_s7 = scalar_lea.vmem %s5158_s5, %s3159_s11 }
  0x70   : > { %3609 = vmatprep.mubr.msk.bf16.mxu1 %vm4021_vm0, %v4020_v1  ;;  %v1552_v5 = vor.u32 %v1551_v24, %v1548_v22  ;;  %v3963_v22 = vld [vmem:[%s5156_s3] sm:$0xff]  }
  0x76   : > { %3430 = vmatmul.mubr.bf16.vlgmr.msra.gmra.mrb[40].mxu0 %v651_v38  ;;  %v1555_v38 = vshrl.u32 %v4565_v14, 16 }
  0x77   : > { %3610 = vmatmul.mubr.bf16.vlgmr.msra.gmra.mrb[40].mxu1 %v4281_v46  ;;  %3486 = vmatpush3.bf16.msra.mxu0 %v3945_v40  ;;  %v2276_v46 = vshrl.u32 %v4490_v35, 16  ;;  %v1558_v40 = vshll.u32 %v4565_v14, 16  ;;  %v4652_v35 = vcombine.low %v4358_v20, %v4474_v19  ;;  %v3968_v19 = vld [vmem:[%s5155_s2 + $0x188] sm:$0xff]  }
  0x78   : > { %3666 = vmatpush3.bf16.msra.mxu1 %v3944_v41  ;;  %3433 = vmatprep.mubr.msk.bf16.mxu0 %vm4021_vm0, %v4020_v1  ;;  %v3954_v41 = vld [vmem:[%s5156_s3 + $0x68] sm:$0xff]  }
  0x79   : > { %3667 = vmatprep.subr.bf16.mxu1 %v4020_v1  ;;  %3613 = vmatprep.mubr.msk.bf16.mxu1 %vm4021_vm0, %v4020_v1  ;;  %v2278_v62 = vor.u32 %v2276_v46, %v2274_v51  ;;  %v1560_v51 = vrot.slane %v1558_v40, 3  ;;  %v1553_v46 = vsel %vm1529_vm3, %v4264_v39, %v1552_v5 }
  0x7a   : > { %3487 = vmatprep.subr.bf16.mxu0 %v4020_v1 }
  0x7b   : > { %3488 = vmatpush3.bf16.msra.mxu0 %v3947_v28  ;;  %v4543_v0 = vsel %vm333_vm1, %v2278_v62, %v2282_v63  ;;  %v1557_v28 = vrot.slane %v1555_v38, 2  ;;  %v3960_v62 = vld [vmem:[%s5155_s2 + $0x138] sm:$0xff]   ;;  %v3965_v38 = vld [vmem:[%s5156_s3 + $0x8] sm:$0xff]  }
  0x7c   : > { %3668 = vmatpush3.bf16.msra.mxu1 %v3946_v53  ;;  %3489 = vmatprep.subr.bf16.mxu0 %v4020_v1  ;;  %v4600_v53 = vcombine.low %v272_v42, %v4441_v7  ;;  %v4617_v7 = vcombine.low %v4445_v8, %v4355_v15  ;;  %v3969_v42 = vld [vmem:[%s5156_s3 + $0x10] sm:$0xff]  }
  0x7d   : > { %3669 = vmatprep.subr.bf16.mxu1 %v4020_v1  ;;  %v1561_v39 = vor.u32 %v1560_v51, %v1557_v28  ;;  %v3972_v51 = vld [vmem:[%s5156_s3 + $0x18] sm:$0xff]  }
  0x7e   : > { %3434 = vmatmul.mubr.bf16.gmra.mrb[44].mxu0 %v653_v58  ;;  %v3958_v58 = vld [vmem:[%s5155_s2 + $0x130] sm:$0xff]   ;;  %v1962_v24 = vshrl.u32 %v4617_v7, 16 }
  0x7f   : > { %3614 = vmatmul.mubr.bf16.gmra.mrb[44].mxu1 %v4285_v47  ;;  %3437 = vmatprep.mubr.msk.bf16.mxu0 %vm4021_vm0, %v4020_v1  ;;  %v2284_v47 = vshrl.u32 %v4525_v55, 16  ;;  %v1562_v8 = vsel %vm1529_vm3, %v1552_v5, %v1561_v39  ;;  %v4683_v5 = vcombine.low %v4477_v45, %v4509_v32  ;;  %v3970_v45 = vld [vmem:[%s5155_s2 + $0x190] sm:$0xff]   ;;  %v1970_v32 = vshrl.u32 %v4652_v35, 16 }
  0x80   : > { %3670 = vmatpush3.bf16.msra.mxu1 %v3948_v59  ;;  %3490 = vmatpush3.bf16.msra.mxu0 %v3949_v18  ;;  %v658_v59 = vrot.slane %v4249_v26, 1  ;;  %v1953_v18 = vshll.u32 %v4600_v53, 16  ;;  %v3959_v26 = vld [vmem:[%s5156_s3 + $0x78] sm:$0xff]   ;;  %vm2617_vm3 = vcmask 1042432  }
  0x81   : > { %3617 = vmatprep.mubr.msk.bf16.mxu1 %vm4021_vm0, %v4020_v1  ;;  %3671 = vmatprep.subr.bf16.mxu1 %v4020_v1  ;;  %v2286_v25 = vor.u32 %v2284_v47, %v2282_v63  ;;  %v1951_v63 = vshrl.u32 %v4600_v53, 16  ;;  %v2456_v47 = vrot.slane %v4525_v55, 1  ;;  %v3964_v55 = vld [vmem:[%s5155_s2 + $0x180] sm:$0xff]  }
  0x82   : > { %3491 = vmatprep.subr.bf16.mxu0 %v4020_v1  ;;  %v659_v15 = vsel %vm648_vm2, %v656_v36, %v658_v59  ;;  %v1955_v2 = vrot.slane %v1953_v18, 1  ;;  %v4665_v36 = vsel %vm648_vm2, %v2452_v31, %v2454_v11  ;;  %v1978_v59 = vshrl.u32 %v4683_v5, 16 }
  0x83   : > { %v4579_v34 = vsel %vm333_vm1, %v2286_v25, %v4570_v29  ;;  %v1966_v25 = vshll.u32 %v4652_v35, 16 }
  0x84   : > { %3672 = vmatpush3.bf16.msra.mxu1 %v3950_v3  ;;  %3492 = vmatpush3.bf16.msra.mxu0 %v3951_v4  ;;  %v1958_v3 = vshll.u32 %v4617_v7, 16  ;;  %v2451_v4 = vrot.slane %v4454_v10, 1  ;;  %v1956_v21 = vor.u32 %v1955_v2, %v1951_v63  ;;  %v3981_v63 = vld [vmem:[%s5155_s2 + $0x1b0] sm:$0xff]  }
  0x85   : > { %3673 = vmatprep.subr.bf16.mxu1 %v4020_v1  ;;  %3493 = vmatprep.subr.bf16.mxu0 %v4020_v1  ;;  %v1968_v40 = vrot.slane %v1966_v25, 1  ;;  %v1370_v25 = vrot.slane %v4219_v6, 2 }
  0x86   : > { %3438 = vmatmul.mubr.bf16.gmra.mrb[48].mxu0 %v655_v13  ;;  %v4641_v12 = vsel %vm648_vm2, %v2451_v4, %v2452_v31  ;;  %v4644_v13 = vsel %vm648_vm2, %v2454_v11, %v2456_v47  ;;  %v1960_v10 = vrot.slane %v1958_v3, 1  ;;  %v3982_v3 = vld [vmem:[%s5156_s3 + $0x38] sm:$0xff]   ;;  %v1365_v31 = vrot.slane %v4121_v17, 2 }
  0x87   : > { %3618 = vmatmul.mubr.bf16.gmra.mrb[48].mxu1 %v4289_v48  ;;  %3441 = vmatprep.mubr.msk.bf16.mxu0 %vm4021_vm0, %v4020_v1  ;;  %v3955_v48 = vld [vmem:[%s5155_s2 + $0x128] sm:$0xff]   ;;  %v1366_v11 = vrot.slane %v4132_v23, 2 }
  0x88   : > { %3674 = vmatpush3.bf16.msra.mxu1 %v3952_v44  ;;  %3621 = vmatprep.mubr.msk.bf16.mxu1 %vm4021_vm0, %v4020_v1  ;;  %v1961_v44 = vsel %vm333_vm1, %v1956_v21, %v1960_v10  ;;  %v3985_v21 = vld [vmem:[%s5155_s2 + $0x200] sm:$0xff]  }
  0x89   : > { %3494 = vmatpush3.bf16.msra.mxu0 %v3953_v33  ;;  %3675 = vmatprep.subr.bf16.mxu1 %v4020_v1  ;;  %v2458_v33 = vrot.slane %v4407_v52, 1 }
  0x8a   : > { %3495 = vmatprep.subr.bf16.mxu0 %v4020_v1 }
  0x8b   : > { %v4671_v20 = vsel %vm648_vm2, %v2456_v47, %v2458_v33  ;;  %v1367_v47 = vsel %vm1196_vm4, %v1365_v31, %v1366_v11 }
  0x8c   : > { %3676 = vmatpush3.bf16.msra.mxu1 %v3954_v41 }
  0x8d   : > { %3496 = vmatpush3.bf16.msra.mxu0 %v3955_v48  ;;  %3677 = vmatprep.subr.bf16.mxu1 %v4020_v1  ;;  %v1974_v48 = vshll.u32 %v4683_v5, 16 }
  0x8e   : > { %3442 = vmatmul.mubr.bf16.gmra.mrb[52].mxu0 %v657_v50  ;;  %3497 = vmatprep.subr.bf16.mxu0 %v4020_v1  ;;  %v1972_v50 = vor.u32 %v1970_v32, %v1968_v40  ;;  %v3996_v32 = vld [vmem:[%s5156_s3 + $0xb0] sm:$0xff]  }
  0x8f   : > { %3622 = vmatmul.mubr.bf16.gmra.mrb[52].mxu1 %v1553_v46  ;;  %3445 = vmatprep.mubr.msk.bf16.mxu0 %vm4021_vm0, %v4020_v1  ;;  %v1976_v28 = vrot.slane %v1974_v48, 1  ;;  %v3973_v46 = vld [vmem:[%s5155_s2 + $0x198] sm:$0xff]   ;;  %v3998_v48 = vld [vmem:[%s5155_s2 + $0x230] sm:$0xff]  }
  0x90   : > { %3625 = vmatprep.mubr.msk.bf16.mxu1 %vm4021_vm0, %v4020_v1  ;;  %3678 = vmatpush3.bf16.msra.mxu1 %v3956_v56  ;;  %v3053_v56 = vcombine.low %v4512_v37, %v4396_v43  ;;  %v3977_v43 = vld [vmem:[%s5155_s2 + $0x1a0] sm:$0xff]  }
  0x91   : > { %3498 = vmatpush3.bf16.msra.mxu0 %v3958_v58  ;;  %3679 = vmatprep.subr.bf16.mxu1 %v4020_v1  ;;  %v3974_v58 = vld [vmem:[%s5156_s3 + $0x20] sm:$0xff]   ;;  %v1980_v18 = vor.u32 %v1978_v59, %v1976_v28  ;;  %v4005_v59 = vld [vmem:[%s5156_s3 + $0xd0] sm:$0xff]  }
  0x92   : > { %3499 = vmatprep.subr.bf16.mxu0 %v4020_v1  ;;  %v1982_v39 = vshll.u32 %v3053_v56, 16  ;;  %v1986_v2 = vshrl.u32 %v3053_v56, 16  ;;  %v1717_v56 = vrot.slane %v4121_v17, 3  ;;  %v4003_v17 = vld [vmem:[%s5156_s3 + $0xc8] sm:$0xff]  }
  0x94   : > { %3680 = vmatpush3.bf16.msra.mxu1 %v3959_v26  ;;  %v1984_v26 = vrot.slane %v1982_v39, 1  ;;  %v4007_v39 = vld [vmem:[%s5156_s3 + $0xd8] sm:$0xff]  }
  0x95   : > { %3500 = vmatpush3.bf16.msra.mxu0 %v3960_v62  ;;  %3701 = vmatprep.subr.bf16.mxu1 %v4020_v1  ;;  %v3978_v62 = vld [vmem:[%s5156_s3 + $0x28] sm:$0xff]  }
  0x96   : > { %3446 = vmatmul.mubr.bf16.gmra.mrb[56].mxu0 %v659_v15  ;;  %3557 = vmatprep.subr.bf16.mxu0 %v4020_v1  ;;  %v1985_v15 = vsel %vm333_vm1, %v1980_v18, %v1984_v26  ;;  %v1988_v4 = vor.u32 %v1986_v2, %v1984_v26  ;;  %v1724_v2 = vrot.slane %v4202_v61, 3 }
  0x97   : > { %3626 = vmatmul.mubr.bf16.gmra.mrb[56].mxu1 %v1562_v8  ;;  %3501 = vmatprep.mubr.msk.bf16.mxu0 %vm4021_vm0, %v4020_v1  ;;  %v3980_v8 = vld [vmem:[%s5156_s3 + $0x30] sm:$0xff]  }
  0x98   : > { %3681 = vmatprep.mubr.msk.bf16.mxu1 %vm4021_vm0, %v4020_v1 }
  0x9e   : > { %3502 = vmatmul.mubr.bf16.vlgmr.msra.gmra.mrb[60].mxu0 %v4333_v30  ;;  %v1964_v30 = vor.u32 %v1962_v24, %v1960_v10  ;;  %v1368_v10 = vrot.slane %v4189_v57, 2  ;;  %v3989_v24 = vld [vmem:[%s5155_s2 + $0x210] sm:$0xff]  }
  0x9f   : > { %3682 = vmatmul.mubr.bf16.vlgmr.msra.gmra.mrb[60].mxu1 %v1961_v44  ;;  %3558 = vmatpush3.bf16.msra.mxu0 %v3964_v55  ;;  %v3987_v55 = vld [vmem:[%s5155_s2 + $0x208] sm:$0xff]  }
  0xa0   : > { %3702 = vmatpush3.bf16.msra.mxu1 %v3963_v22  ;;  %3505 = vmatprep.mubr.msk.bf16.mxu0 %vm4021_vm0, %v4020_v1  ;;  %v1969_v41 = vsel %vm333_vm1, %v1964_v30, %v1968_v40  ;;  %v3986_v44 = vld [vmem:[%s5156_s3 + $0x88] sm:$0xff]   ;;  %v3988_v22 = vld [vmem:[%s5156_s3 + $0x90] sm:$0xff]   ;;  %v3992_v30 = vld [vmem:[%s5156_s3 + $0xa0] sm:$0xff]  }
  0xa1   : > { %3703 = vmatprep.subr.bf16.mxu1 %v4020_v1  ;;  %3685 = vmatprep.mubr.msk.bf16.mxu1 %vm4021_vm0, %v4020_v1  ;;  %v3993_v40 = vld [vmem:[%s5155_s2 + $0x220] sm:$0xff]  }
  0xa2   : > { %3559 = vmatprep.subr.bf16.mxu0 %v4020_v1 }
  0xa3   : > { %3560 = vmatpush3.bf16.msra.mxu0 %v3968_v19  ;;  %v3990_v19 = vld [vmem:[%s5156_s3 + $0x98] sm:$0xff]  }
  0xa4   : > { %3704 = vmatpush3.bf16.msra.mxu1 %v3965_v38  ;;  %3561 = vmatprep.subr.bf16.mxu0 %v4020_v1  ;;  %v3991_v38 = vld [vmem:[%s5155_s2 + $0x218] sm:$0xff]  }
  0xa5   : > { %3705 = vmatprep.subr.bf16.mxu1 %v4020_v1 }
  0xa6   : > { %3506 = vmatmul.mubr.bf16.gmra.mrb[64].mxu0 %v4375_v27  ;;  %v1977_v27 = vsel %vm333_vm1, %v1972_v50, %v1976_v28  ;;  %v1374_v50 = vrot.slane %v4565_v14, 2  ;;  %v3999_v28 = vld [vmem:[%s5156_s3 + $0xb8] sm:$0xff]  }
  0xa7   : > { %3686 = vmatmul.mubr.bf16.gmra.mrb[64].mxu1 %v1969_v41  ;;  %3509 = vmatprep.mubr.msk.bf16.mxu0 %vm4021_vm0, %v4020_v1  ;;  %v1372_v41 = vrot.slane %v4202_v61, 2 }
  0xa8   : > { %3706 = vmatpush3.bf16.msra.mxu1 %v3969_v42  ;;  %3562 = vmatpush3.bf16.msra.mxu0 %v3970_v45  ;;  %v3994_v42 = vld [vmem:[%s5156_s3 + $0xa8] sm:$0xff]  }
  0xa9   : > { %3689 = vmatprep.mubr.msk.bf16.mxu1 %vm4021_vm0, %v4020_v1  ;;  %3707 = vmatprep.subr.bf16.mxu1 %v4020_v1  ;;  %v1373_v45 = vsel %vm1196_vm4, %v1370_v25, %v1372_v41 }
  0xaa   : > { %3563 = vmatprep.subr.bf16.mxu0 %v4020_v1 }
  0xac   : > { %3708 = vmatpush3.bf16.msra.mxu1 %v3972_v51  ;;  %3564 = vmatpush3.bf16.msra.mxu0 %v3973_v46  ;;  %v1375_v51 = vsel %vm1196_vm4, %v1372_v41, %v1374_v50  ;;  %v3052_v46 = vcombine.low %v4512_v37, %v4512_v37 }
  0xad   : > { %3709 = vmatprep.subr.bf16.mxu1 %v4020_v1  ;;  %3565 = vmatprep.subr.bf16.mxu0 %v4020_v1 }
  0xae   : > { %3510 = vmatmul.mubr.bf16.gmra.mrb[68].mxu0 %v4404_v49  ;;  %v3979_v49 = vld [vmem:[%s5155_s2 + $0x1a8] sm:$0xff]  }
  0xaf   : > { %3690 = vmatmul.mubr.bf16.gmra.mrb[68].mxu1 %v1977_v27  ;;  %3513 = vmatprep.mubr.msk.bf16.mxu0 %vm4021_vm0, %v4020_v1  ;;  %v1718_v27 = vrot.slane %v4132_v23, 3  ;;  %v1720_v23 = vrot.slane %v4189_v57, 3  ;;  %v1722_v57 = vrot.slane %v4219_v6, 3 }
  0xb0   : > { %3710 = vmatpush3.bf16.msra.mxu1 %v3974_v58  ;;  %3693 = vmatprep.mubr.msk.bf16.mxu1 %vm4021_vm0, %v4020_v1  ;;  %v4002_v58 = vld [vmem:[%s5156_s3 + $0xc0] sm:$0xff]  }
  0xb1   : > { %3566 = vmatpush3.bf16.msra.mxu0 %v3977_v43  ;;  %3711 = vmatprep.subr.bf16.mxu1 %v4020_v1  ;;  %v1719_v37 = vsel %vm1716_vm6, %v1717_v56, %v1718_v27 }
  0xb2   : > { %3567 = vmatprep.subr.bf16.mxu0 %v4020_v1 }
  0xb4   : > { %3712 = vmatpush3.bf16.msra.mxu1 %v3978_v62  ;;  %v1723_v62 = vsel %vm1716_vm6, %v1720_v23, %v1722_v57 }
  0xb5   : > { %3568 = vmatpush3.bf16.msra.mxu0 %v3979_v49  ;;  %3713 = vmatprep.subr.bf16.mxu1 %v4020_v1 }
  0xb6   : > { %3514 = vmatmul.mubr.bf16.gmra.mrb[72].mxu0 %v4426_v60  ;;  %3569 = vmatprep.subr.bf16.mxu0 %v4020_v1  ;;  %v3983_v60 = vld [vmem:[%s5155_s2 + $0x1b8] sm:$0xff]  }
  0xb7   : > { %3694 = vmatmul.mubr.bf16.gmra.mrb[72].mxu1 %v1985_v15  ;;  %3517 = vmatprep.mubr.msk.bf16.mxu0 %vm4021_vm0, %v4020_v1 }
  0xb8   : > { %3697 = vmatprep.mubr.msk.bf16.mxu1 %vm4021_vm0, %v4020_v1  ;;  %3714 = vmatpush3.bf16.msra.mxu1 %v3980_v8  ;;  %v4008_v8 = vld [vmem:[%s5156_s3 + $0xe0] sm:$0xff]  }
  0xb9   : > { %3570 = vmatpush3.bf16.msra.mxu0 %v3981_v63  ;;  %3715 = vmatprep.subr.bf16.mxu1 %v4020_v1 }
  0xba   : > { %3571 = vmatprep.subr.bf16.mxu0 %v4020_v1 }
  0xbc   : > { %3716 = vmatpush3.bf16.msra.mxu1 %v3982_v3  ;;  %v4009_v3 = vld [vmem:[%s5156_s3 + $0xe8] sm:$0xff]  }
  0xbd   : > { %3572 = vmatpush3.bf16.msra.mxu0 %v3983_v60  ;;  %3737 = vmatprep.subr.bf16.mxu1 %v4020_v1 }
  0xbe   : > { %3518 = vmatmul.mubr.bf16.gmra.mrb[76].mxu0 %v4448_v9  ;;  %3629 = vmatprep.subr.bf16.mxu0 %v4020_v1  ;;  %v3984_v9 = vld [vmem:[%s5156_s3 + $0x80] sm:$0xff]  }
  0xbf   : > { %3698 = vmatmul.mubr.bf16.gmra.mrb[76].mxu1 %v1988_v4  ;;  %3573 = vmatprep.mubr.msk.bf16.mxu0 %vm4021_vm0, %v4020_v1 }
  0xc0   : > { %3717 = vmatprep.mubr.msk.bf16.mxu1 %vm4021_vm0, %v4020_v1 }
  0xc6   : > { %3574 = vmatmul.mubr.bf16.vlgmr.msra.gmra.mrb[80].mxu0 %v1367_v47 }
  0xc7   : > { %3718 = vmatmul.mubr.bf16.vlgmr.msra.gmra.mrb[80].mxu1 %v4600_v53  ;;  %3630 = vmatpush3.bf16.msra.mxu0 %v3985_v21  ;;  %v1369_v53 = vsel %vm1196_vm4, %v1366_v11, %v1368_v10  ;;  %v1725_v11 = vsel %vm1716_vm6, %v1722_v57, %v1724_v2 }
  0xc8   : > { %3738 = vmatpush3.bf16.msra.mxu1 %v3984_v9  ;;  %3577 = vmatprep.mubr.msk.bf16.mxu0 %vm4021_vm0, %v4020_v1  ;;  %v4010_v9 = vld [vmem:[%s5156_s3 + $0xf0] sm:$0xff]  }
  0xc9   : > { %3739 = vmatprep.subr.bf16.mxu1 %v4020_v1  ;;  %3721 = vmatprep.mubr.msk.bf16.mxu1 %vm4021_vm0, %v4020_v1 }
  0xca   : > { %3631 = vmatprep.subr.bf16.mxu0 %v4020_v1 }
  0xcb   : > { %3632 = vmatpush3.bf16.msra.mxu0 %v3987_v55  ;;  %v1726_v55 = vrot.slane %v4565_v14, 3 }
  0xcc   : > { %3740 = vmatpush3.bf16.msra.mxu1 %v3986_v44  ;;  %3633 = vmatprep.subr.bf16.mxu0 %v4020_v1  ;;  %v2292_v44 = vshrl.u32 %v4407_v52, 16 }
  0xcd   : > { %3741 = vmatprep.subr.bf16.mxu1 %v4020_v1 }
  0xce   : > { %3578 = vmatmul.mubr.bf16.gmra.mrb[84].mxu0 %v1369_v53  ;;  %v4011_v53 = vld [vmem:[%s5156_s3 + $0xf8] sm:$0xff]  }
  0xcf   : > { %3722 = vmatmul.mubr.bf16.gmra.mrb[64].mxu1 %v4617_v7  ;;  %3581 = vmatprep.mubr.msk.bf16.mxu0 %vm4021_vm0, %v4020_v1  ;;  %v1371_v7 = vsel %vm1196_vm4, %v1368_v10, %v1370_v25 }
  0xd0   : > { %3742 = vmatpush3.bf16.msra.mxu1 %v3988_v22  ;;  %3634 = vmatpush3.bf16.msra.mxu0 %v3989_v24 }
  0xd1   : > { %3725 = vmatprep.mubr.msk.bf16.mxu1 %vm4021_vm0, %v4020_v1  ;;  %3743 = vmatprep.subr.bf16.mxu1 %v4020_v1 }
  0xd2   : > { %3635 = vmatprep.subr.bf16.mxu0 %v4020_v1 }
  0xd4   : > { %3744 = vmatpush3.bf16.msra.mxu1 %v3990_v19  ;;  %3636 = vmatpush3.bf16.msra.mxu0 %v3991_v38  ;;  %v1727_v19 = vsel %vm1716_vm6, %v1724_v2, %v1726_v55  ;;  %v2294_v38 = vor.u32 %v2292_v44, %v4570_v29 }
  0xd5   : > { %3745 = vmatprep.subr.bf16.mxu1 %v4020_v1  ;;  %3637 = vmatprep.subr.bf16.mxu0 %v4020_v1 }
  0xd6   : > { %3582 = vmatmul.mubr.bf16.gmra.mrb[88].mxu0 %v1371_v7 }
  0xd7   : > { %3726 = vmatmul.mubr.bf16.gmra.mrb[68].mxu1 %v4652_v35  ;;  %3585 = vmatprep.mubr.msk.bf16.mxu0 %vm4021_vm0, %v4020_v1  ;;  %v3995_v35 = vld [vmem:[%s5155_s2 + $0x228] sm:$0xff]  }
  0xd8   : > { %3746 = vmatpush3.bf16.msra.mxu1 %v3992_v30  ;;  %3729 = vmatprep.mubr.msk.bf16.mxu1 %vm4021_vm0, %v4020_v1 }
  0xd9   : > { %3638 = vmatpush3.bf16.msra.mxu0 %v3993_v40  ;;  %3747 = vmatprep.subr.bf16.mxu1 %v4020_v1 }
  0xda   : > { %3639 = vmatprep.subr.bf16.mxu0 %v4020_v1 }
  0xdc   : > { %3748 = vmatpush3.bf16.msra.mxu1 %v3994_v42 }
  0xdd   : > { %3640 = vmatpush3.bf16.msra.mxu0 %v3995_v35  ;;  %3749 = vmatprep.subr.bf16.mxu1 %v4020_v1 }
  0xde   : > { %3586 = vmatmul.mubr.bf16.gmra.mrb[92].mxu0 %v1373_v45  ;;  %3641 = vmatprep.subr.bf16.mxu0 %v4020_v1 }
  0xdf   : > { %3730 = vmatmul.mubr.bf16.gmra.mrb[72].mxu1 %v4683_v5  ;;  %3589 = vmatprep.mubr.msk.bf16.mxu0 %vm4021_vm0, %v4020_v1  ;;  %v4000_v5 = vld [vmem:[%s5155_s2 + $0x238] sm:$0xff]  }
  0xe0   : > { %3733 = vmatprep.mubr.msk.bf16.mxu1 %vm4021_vm0, %v4020_v1  ;;  %3750 = vmatpush3.bf16.msra.mxu1 %v3996_v32 }
  0xe1   : > { %3642 = vmatpush3.bf16.msra.mxu0 %v3998_v48  ;;  %3751 = vmatprep.subr.bf16.mxu1 %v4020_v1 }
  0xe2   : > { %3643 = vmatprep.subr.bf16.mxu0 %v4020_v1 }
  0xe4   : > { %3752 = vmatpush3.bf16.msra.mxu1 %v3999_v28 }
  0xe5   : > { %3644 = vmatpush3.bf16.msra.mxu0 %v4000_v5  ;;  %3809 = vmatprep.subr.bf16.mxu1 %v4020_v1 }
  0xe6   : > { %3590 = vmatmul.mubr.bf16.gmra.mrb[96].mxu0 %v1375_v51  ;;  %3773 = vmatprep.subr.bf16.mxu0 %v4020_v1 }
  0xe7   : > { %3734 = vmatmul.mubr.bf16.gmra.mrb[76].mxu1 %v3052_v46  ;;  %3645 = vmatprep.mubr.msk.bf16.mxu0 %vm4021_vm0, %v4020_v1 }
  0xe8   : > { %3753 = vmatprep.mubr.msk.bf16.mxu1 %vm4021_vm0, %v4020_v1 }
  0xee   : > { %3646 = vmatmul.mubr.bf16.vlgmr.msra.gmra.mrb[100].mxu0 %v1719_v37 }
  0xef   : > { %3754 = vmatmul.mubr.bf16.vlgmr.msra.gmra.mrb[84].mxu1 %v4493_v16  ;;  %3774 = vmatpush3.bf16.msra.mxu0 %v4002_v58  ;;  %v1721_v16 = vsel %vm1716_vm6, %v1718_v27, %v1720_v23 }
  0xf0   : > { %3817 = vmatpush3.bf16.msra.mxu1 %v4002_v58  ;;  %3649 = vmatprep.mubr.msk.bf16.mxu0 %vm4021_vm0, %v4020_v1 }
  0xf1   : > { %3810 = vmatprep.subr.bf16.mxu1 %v4020_v1  ;;  %3757 = vmatprep.mubr.msk.bf16.mxu1 %vm4021_vm0, %v4020_v1 }
  0xf2   : > { %3775 = vmatprep.subr.bf16.mxu0 %v4020_v1 }
  0xf3   : > { %3776 = vmatpush3.bf16.msra.mxu0 %v4003_v17 }
  0xf4   : > { %3818 = vmatpush3.bf16.msra.mxu1 %v4003_v17  ;;  %3777 = vmatprep.subr.bf16.mxu0 %v4020_v1 }
  0xf5   : > { %3811 = vmatprep.subr.bf16.mxu1 %v4020_v1 }
  0xf6   : > { %3650 = vmatmul.mubr.bf16.gmra.mrb[104].mxu0 %v1721_v16 }
  0xf7   : > { %3758 = vmatmul.mubr.bf16.gmra.mrb[64].mxu1 %v4519_v54  ;;  %3653 = vmatprep.mubr.msk.bf16.mxu0 %vm4021_vm0, %v4020_v1 }
  0xf8   : > { %3819 = vmatpush3.bf16.msra.mxu1 %v4005_v59  ;;  %3761 = vmatprep.mubr.msk.bf16.mxu1 %vm4021_vm0, %v4020_v1 }
  0xf9   : > { %v4900_v43 = vpop.f32.mrb[0].mxu0  ;;  %3778 = vmatpush3.bf16.msra.mxu0 %v4005_v59  ;;  %3812 = vmatprep.subr.bf16.mxu1 %v4020_v1 }
  0xfa   : > { %v4903_v18 = vpop.f32.mrb[0].mxu1  ;;  %v3359_v54 = vpop.f32.mrb[1].mxu0  ;;  %3779 = vmatprep.subr.bf16.mxu0 %v4020_v1 }
  0xfb   : > { %v3467_v26 = vpop.f32.mrb[1].mxu1  ;;  %v4906_v6 = vpop.f32.mrb[2].mxu0 }
  0xfc   : > { %v4909_v49 = vpop.f32.mrb[2].mxu1  ;;  %v3360_v15 = vpop.f32.mrb[3].mxu0  ;;  %3820 = vmatpush3.bf16.msra.mxu1 %v4007_v39 }
  0xfd   : > { %v3468_v63 = vpop.f32.mrb[3].mxu1  ;;  %3780 = vmatpush3.bf16.msra.mxu0 %v4007_v39  ;;  %3813 = vmatprep.subr.bf16.mxu1 %v4020_v1 }
  0xfe   : > { %3654 = vmatmul.mubr.bf16.gmra.mrb[108].mxu0 %v1723_v62  ;;  %3781 = vmatprep.subr.bf16.mxu0 %v4020_v1 }
  0xff   : > { %3762 = vmatmul.mubr.bf16.gmra.mrb[68].mxu1 %v4543_v0  ;;  %3657 = vmatprep.mubr.msk.bf16.mxu0 %vm4021_vm0, %v4020_v1 }
 0x100   : > { %3821 = vmatpush3.bf16.msra.mxu1 %v4008_v8  ;;  %3765 = vmatprep.mubr.msk.bf16.mxu1 %vm4021_vm0, %v4020_v1 }
 0x101   : > { %v4925_v60 = vpop.f32.mrb[4].mxu0  ;;  %3782 = vmatpush3.bf16.msra.mxu0 %v4008_v8  ;;  %3814 = vmatprep.subr.bf16.mxu1 %v4020_v1 }
 0x102   : > { %v4928_v4 = vpop.f32.mrb[4].mxu1  ;;  %v3363_v0 = vpop.f32.mrb[5].mxu0  ;;  %3783 = vmatprep.subr.bf16.mxu0 %v4020_v1 }
 0x103   : > { %v3471_v31 = vpop.f32.mrb[5].mxu1  ;;  %v4931_v61 = vpop.f32.mrb[6].mxu0 }
 0x104   : > { %v4934_v47 = vpop.f32.mrb[6].mxu1  ;;  %v3364_v21 = vpop.f32.mrb[7].mxu0  ;;  %3822 = vmatpush3.bf16.msra.mxu1 %v4009_v3 }
 0x105   : > { %v3472_v10 = vpop.f32.mrb[7].mxu1  ;;  %3784 = vmatpush3.bf16.msra.mxu0 %v4009_v3  ;;  %3815 = vmatprep.subr.bf16.mxu1 %v4020_v1 }
 0x106   : > { %3658 = vmatmul.mubr.bf16.gmra.mrb[112].mxu0 %v1725_v11  ;;  %3785 = vmatprep.subr.bf16.mxu0 %v4020_v1 }
 0x107   : > { %3766 = vmatmul.mubr.bf16.gmra.mrb[72].mxu1 %v4579_v34  ;;  %3661 = vmatprep.mubr.msk.bf16.mxu0 %vm4021_vm0, %v4020_v1 }
 0x108   : > { %3769 = vmatprep.mubr.msk.bf16.mxu1 %vm4021_vm0, %v4020_v1  ;;  %3823 = vmatpush3.bf16.msra.mxu1 %v4010_v9 }
 0x109   : > { %v4951_v22 = vpop.f32.mrb[8].mxu0  ;;  %3786 = vmatpush3.bf16.msra.mxu0 %v4010_v9  ;;  %3816 = vmatprep.subr.bf16.mxu1 %v4020_v1 }
 0x10a   : > { %v4954_v34 = vpop.f32.mrb[8].mxu1  ;;  %v3367_v24 = vpop.f32.mrb[9].mxu0  ;;  %3787 = vmatprep.subr.bf16.mxu0 %v4020_v1 }
 0x10b   : > { %v3475_v14 = vpop.f32.mrb[9].mxu1  ;;  %v484_v25 = vpop.f32.mrb[10].mxu0 }
 0x10c   : > { %v4959_v7 = vpop.f32.mrb[10].mxu1  ;;  %v3368_v30 = vpop.f32.mrb[11].mxu0  ;;  %3824 = vmatpush3.bf16.msra.mxu1 %v4011_v53 }
 0x10d   : > { %v3476_v40 = vpop.f32.mrb[11].mxu1  ;;  %3788 = vmatpush3.bf16.msra.mxu0 %v4011_v53 }
 0x10e   : > { %3662 = vmatmul.mubr.bf16.gmra.mrb[116].mxu0 %v1727_v19 }
 0x10f   : > { %3770 = vmatmul.mubr.bf16.gmra.mrb[76].mxu1 %v2294_v38  ;;  %3789 = vmatprep.mubr.msk.bf16.mxu0 %vm4021_vm0, %v4020_v1 }
 0x110   : > { %3797 = vmatprep.mubr.msk.bf16.mxu1 %vm4021_vm0, %v4020_v1 }
 0x111   : > { %v489_v41 = vpop.f32.mrb[12].mxu0 }
 0x112   : > { %v4965_v42 = vpop.f32.mrb[12].mxu1  ;;  %v3371_v35 = vpop.f32.mrb[13].mxu0 }
 0x113   : > { %v3479_v45 = vpop.f32.mrb[13].mxu1  ;;  %v492_v29 = vpop.f32.mrb[14].mxu0 }
 0x114   : > { %v4967_v32 = vpop.f32.mrb[14].mxu1  ;;  %v3372_v48 = vpop.f32.mrb[15].mxu0 }
 0x115   : > { %v3480_v50 = vpop.f32.mrb[15].mxu1 }
 0x116   : > { %3790 = vmatmul.mubr.bf16.vlgmr.msra.gmra.mrb[120].mxu0 %v4641_v12 }
 0x117   : > { %3798 = vmatmul.mubr.bf16.vlgmr.msra.gmra.mrb[68].mxu1 %v4644_v13  ;;  %3793 = vmatprep.mubr.msk.bf16.mxu0 %vm4021_vm0, %v4020_v1 }
 0x118   : > { %3801 = vmatprep.mubr.msk.bf16.mxu1 %vm4021_vm0, %v4020_v1 }
 0x119   : > { %v497_v28 = vpop.f32.mrb[16].mxu0 }
 0x11a   : > { %v4975_v5 = vpop.f32.mrb[16].mxu1  ;;  %v3375_v51 = vpop.f32.mrb[17].mxu0 }
 0x11b   : > { %v3483_v46 = vpop.f32.mrb[17].mxu1  ;;  %v500_v56 = vpop.f32.mrb[18].mxu0 }
 0x11c   : > { %v4977_v27 = vpop.f32.mrb[18].mxu1  ;;  %v3376_v37 = vpop.f32.mrb[19].mxu0 }
 0x11d   : > { %v3484_v58 = vpop.f32.mrb[19].mxu1 }
 0x11e   : > { %3794 = vmatmul.mubr.bf16.gmra.mrb[124].mxu0 %v4665_v36 }
 0x11f   : > { %3802 = vmatmul.mubr.bf16.gmra.mrb[72].mxu1 %v4671_v20 }
 0x120   : > { %3805 = vmatprep.mubr.msk.bf16.mxu1 %vm4021_vm0, %v4020_v1 }
 0x121   : > { %v586_v12 = vpop.f32.mrb[20].mxu0 }
 0x122   : > { %v587_v13 = vadd.f32 %v586_v12, %v4900_v43  ;;  %v4984_v17 = vpop.f32.mrb[20].mxu1  ;;  %v3395_v23 = vpop.f32.mrb[21].mxu0 }
 0x123   : > { %v3539_v16 = vpop.f32.mrb[21].mxu1  ;;  %v589_v59 = vpop.f32.mrb[22].mxu0 }
 0x124   : > { %v590_v57 = vadd.f32 %v589_v59, %v4906_v6  ;;  %v4987_v39 = vpop.f32.mrb[22].mxu1  ;;  %v3396_v54 = vpop.f32.mrb[23].mxu0 }
 0x125   : > { %v3540_v26 = vpop.f32.mrb[23].mxu1 }
 0x127   : > { %3806 = vmatmul.mubr.bf16.gmra.mrb[76].mxu1 %v2458_v33 }
 0x129   : > { %v594_v36 = vpop.f32.mrb[24].mxu0 }
 0x12a   : > { %v595_v1 = vadd.f32 %v594_v36, %v4925_v60  ;;  %v4992_v20 = vpop.f32.mrb[24].mxu1  ;;  %v3399_v43 = vpop.f32.mrb[25].mxu0 }
 0x12b   : > { %v3543_v62 = vpop.f32.mrb[25].mxu1  ;;  %v597_v15 = vpop.f32.mrb[26].mxu0 }
 0x12c   : > { %v598_v8 = vadd.f32 %v597_v15, %v4931_v61  ;;  %v4995_v63 = vpop.f32.mrb[26].mxu1  ;;  %v3400_v6 = vpop.f32.mrb[27].mxu0 }
 0x12d   : > { %v3544_v2 = vpop.f32.mrb[27].mxu1 }
 0x131   : > { %v602_v3 = vpop.f32.mrb[28].mxu0 }
 0x132   : > { %v603_v0 = vadd.f32 %v602_v3, %v4951_v22  ;;  %v4998_v31 = vpop.f32.mrb[28].mxu1  ;;  %v3403_v52 = vpop.f32.mrb[29].mxu0 }
 0x133   : > { %v3547_v33 = vpop.f32.mrb[29].mxu1  ;;  %v605_v11 = vpop.f32.mrb[30].mxu0 }
 0x134   : > { %v606_v60 = vadd.f32 %v605_v11, %v484_v25  ;;  %v5000_v21 = vpop.f32.mrb[30].mxu1  ;;  %v3404_v9 = vpop.f32.mrb[31].mxu0 }
 0x135   : > { %v3548_v10 = vpop.f32.mrb[31].mxu1 }
 0x139   : > { %v610_v55 = vpop.f32.mrb[32].mxu0 }
 0x13a   : > { %v611_v44 = vadd.f32 %v610_v55, %v489_v41  ;;  %v5002_v61 = vpop.f32.mrb[32].mxu1  ;;  %v3407_v53 = vpop.f32.mrb[33].mxu0 }
 0x13b   : > { %v3551_v24 = vpop.f32.mrb[33].mxu1  ;;  %v613_v14 = vpop.f32.mrb[34].mxu0 }
 0x13c   : > { %v614_v19 = vadd.f32 %v613_v14, %v492_v29  ;;  %v5004_v38 = vpop.f32.mrb[34].mxu1  ;;  %v3408_v22 = vpop.f32.mrb[35].mxu0 }
 0x13d   : > { %v3552_v30 = vpop.f32.mrb[35].mxu1 }
 0x141   : > { %v618_v40 = vpop.f32.mrb[36].mxu0 }
 0x142   : > { %v619_v35 = vadd.f32 %v618_v40, %v497_v28  ;;  %v5006_v45 = vpop.f32.mrb[36].mxu1  ;;  %v3411_v25 = vpop.f32.mrb[37].mxu0 }
 0x143   : > { %v3555_v48 = vpop.f32.mrb[37].mxu1  ;;  %v621_v50 = vpop.f32.mrb[38].mxu0 }
 0x144   : > { %v622_v51 = vadd.f32 %v621_v50, %v500_v56  ;;  %v5008_v46 = vpop.f32.mrb[38].mxu1  ;;  %v3412_v41 = vpop.f32.mrb[39].mxu0 }
 0x145   : > { %v3556_v37 = vpop.f32.mrb[39].mxu1 }
 0x149   : > { %v747_v58 = vpop.f32.mrb[40].mxu0 }
 0x14a   : > { %v786_v12 = vadd.f32 %v747_v58, %v587_v13  ;;  %v5010_v23 = vpop.f32.mrb[40].mxu1  ;;  %v3431_v29 = vpop.f32.mrb[41].mxu0 }
 0x14b   : > { %v3611_v16 = vpop.f32.mrb[41].mxu1  ;;  %v750_v59 = vpop.f32.mrb[42].mxu0 }
 0x14c   : > { %v787_v54 = vadd.f32 %v750_v59, %v590_v57  ;;  %v5012_v26 = vpop.f32.mrb[42].mxu1  ;;  %v3432_v28 = vpop.f32.mrb[43].mxu0  ;;  %v962_v36 = vadd.f32 %v4903_v18, %v786_v12 }
 0x14d   : > { %v3612_v43 = vpop.f32.mrb[43].mxu1 }
 0x14e   : > { %v963_v56 = vadd.f32 %v4909_v49, %v787_v54 }
 0x151   : > { %v755_v62 = vpop.f32.mrb[44].mxu0 }
 0x152   : > { %v788_v15 = vadd.f32 %v755_v62, %v595_v1  ;;  %v5016_v6 = vpop.f32.mrb[44].mxu1  ;;  %v3435_v2 = vpop.f32.mrb[45].mxu0 }
 0x153   : > { %v3615_v13 = vpop.f32.mrb[45].mxu1  ;;  %v758_v3 = vpop.f32.mrb[46].mxu0 }
 0x154   : > { %v789_v52 = vadd.f32 %v758_v3, %v598_v8  ;;  %v5018_v33 = vpop.f32.mrb[46].mxu1  ;;  %v3436_v11 = vpop.f32.mrb[47].mxu0  ;;  %v964_v57 = vadd.f32 %v4928_v4, %v788_v15 }
 0x155   : > { %v3616_v9 = vpop.f32.mrb[47].mxu1 }
 0x156   : > { %v965_v10 = vadd.f32 %v4934_v47, %v789_v52 }
 0x159   : > { %v763_v18 = vpop.f32.mrb[48].mxu0 }
 0x15a   : > { %v790_v55 = vadd.f32 %v763_v18, %v603_v0  ;;  %v5022_v53 = vpop.f32.mrb[48].mxu1  ;;  %v3439_v49 = vpop.f32.mrb[49].mxu0 }
 0x15b   : > { %v3619_v1 = vpop.f32.mrb[49].mxu1  ;;  %v766_v24 = vpop.f32.mrb[50].mxu0 }
 0x15c   : > { %v791_v14 = vadd.f32 %v766_v24, %v606_v60  ;;  %v5024_v22 = vpop.f32.mrb[50].mxu1  ;;  %v3440_v30 = vpop.f32.mrb[51].mxu0  ;;  %v966_v8 = vadd.f32 %v4954_v34, %v790_v55 }
 0x15d   : > { %v3620_v40 = vpop.f32.mrb[51].mxu1 }
 0x15e   : > { %v967_v25 = vadd.f32 %v4959_v7, %v791_v14 }
 0x161   : > { %v771_v4 = vpop.f32.mrb[52].mxu0 }
 0x162   : > { %v792_v48 = vadd.f32 %v771_v4, %v611_v44  ;;  %v5028_v50 = vpop.f32.mrb[52].mxu1  ;;  %v3443_v47 = vpop.f32.mrb[53].mxu0 }
 0x163   : > { %v3623_v0 = vpop.f32.mrb[53].mxu1  ;;  %v774_v41 = vpop.f32.mrb[54].mxu0 }
 0x164   : > { %v793_v37 = vadd.f32 %v774_v41, %v614_v19  ;;  %v5030_v58 = vpop.f32.mrb[54].mxu1  ;;  %v3444_v12 = vpop.f32.mrb[55].mxu0  ;;  %v968_v60 = vadd.f32 %v4965_v42, %v792_v48 }
 0x165   : > { %v3624_v29 = vpop.f32.mrb[55].mxu1 }
 0x166   : > { %v969_v16 = vadd.f32 %v4967_v32, %v793_v37 }
 0x169   : > { %v779_v34 = vpop.f32.mrb[56].mxu0 }
 0x16a   : > { %v794_v59 = vadd.f32 %v779_v34, %v619_v35  ;;  %v5034_v54 = vpop.f32.mrb[56].mxu1  ;;  %v3447_v7 = vpop.f32.mrb[57].mxu0 }
 0x16b   : > { %v3627_v44 = vpop.f32.mrb[57].mxu1  ;;  %v782_v28 = vpop.f32.mrb[58].mxu0 }
 0x16c   : > { %v795_v43 = vadd.f32 %v782_v28, %v622_v51  ;;  %v5036_v62 = vpop.f32.mrb[58].mxu1  ;;  %v3448_v15 = vpop.f32.mrb[59].mxu0  ;;  %v970_v19 = vadd.f32 %v4975_v5, %v794_v59 }
 0x16d   : > { %v3628_v2 = vpop.f32.mrb[59].mxu1 }
 0x16e   : > { %v971_v13 = vadd.f32 %v4977_v27, %v795_v43 }
 0x171   : > { %v1130_v42 = vpop.f32.mrb[60].mxu0 }
 0x172   : > { %v1169_v3 = vadd.f32 %v1130_v42, %v962_v36  ;;  %v2076_v52 = vpop.f32.mrb[60].mxu1  ;;  %v3503_v32 = vpop.f32.mrb[61].mxu0 }
 0x173   : > { %v3683_v11 = vpop.f32.mrb[61].mxu1  ;;  %v1133_v35 = vpop.f32.mrb[62].mxu0 }
 0x174   : > { %v1170_v9 = vadd.f32 %v1133_v35, %v963_v56  ;;  %v2079_v18 = vpop.f32.mrb[62].mxu1  ;;  %v3504_v55 = vpop.f32.mrb[63].mxu0  ;;  %v1334_v49 = vadd.f32 %v4984_v17, %v1169_v3 }
 0x175   : > { %v3684_v51 = vpop.f32.mrb[63].mxu1 }
 0x176   : > { %v1335_v1 = vadd.f32 %v4987_v39, %v1170_v9 }
 0x179   : > { %v1138_v24 = vpop.f32.mrb[64].mxu0 }
 0x17a   : > { %v1171_v14 = vadd.f32 %v1138_v24, %v964_v57  ;;  %v3507_v5 = vpop.f32.mrb[65].mxu0 }
 0x17b   : > { %v1141_v30 = vpop.f32.mrb[66].mxu0 }
 0x17c   : > { %v1172_v40 = vadd.f32 %v1141_v30, %v965_v10  ;;  %v3508_v27 = vpop.f32.mrb[67].mxu0  ;;  %v1336_v36 = vadd.f32 %v4992_v20, %v1171_v14 }
 0x17e   : > { %v1337_v4 = vadd.f32 %v4995_v63, %v1172_v40 }
 0x181   : > { %v1146_v48 = vpop.f32.mrb[68].mxu0 }
 0x182   : > { %v1173_v47 = vadd.f32 %v1146_v48, %v966_v8  ;;  %v3511_v56 = vpop.f32.mrb[69].mxu0 }
 0x183   : > { %v1149_v0 = vpop.f32.mrb[70].mxu0 }
 0x184   : > { %v1174_v41 = vadd.f32 %v1149_v0, %v967_v25  ;;  %v3512_v37 = vpop.f32.mrb[71].mxu0  ;;  %v1338_v17 = vadd.f32 %v4998_v31, %v1173_v47 }
 0x186   : > { %v1339_v39 = vadd.f32 %v5000_v21, %v1174_v41 }
 0x189   : > { %v1154_v12 = vpop.f32.mrb[72].mxu0 }
 0x18a   : > { %v1175_v57 = vadd.f32 %v1154_v12, %v968_v60  ;;  %v3515_v29 = vpop.f32.mrb[73].mxu0 }
 0x18b   : > { %v1157_v34 = vpop.f32.mrb[74].mxu0 }
 0x18c   : > { %v1176_v10 = vadd.f32 %v1157_v34, %v969_v16  ;;  %v3516_v59 = vpop.f32.mrb[75].mxu0  ;;  %v1340_v20 = vadd.f32 %v5002_v61, %v1175_v57 }
 0x18e   : > { %v1341_v63 = vadd.f32 %v5004_v38, %v1176_v10 }
 0x191   : > { %v1162_v7 = vpop.f32.mrb[76].mxu0 }
 0x192   : > { %v1177_v8 = vadd.f32 %v1162_v7, %v970_v19  ;;  %v3519_v44 = vpop.f32.mrb[77].mxu0 }
 0x193   : > { %v1165_v28 = vpop.f32.mrb[78].mxu0 }
 0x194   : > { %v1178_v25 = vadd.f32 %v1165_v28, %v971_v13  ;;  %v3520_v43 = vpop.f32.mrb[79].mxu0  ;;  %v1342_v31 = vadd.f32 %v5006_v45, %v1177_v8 }
 0x196   : > { %v1343_v21 = vadd.f32 %v5008_v46, %v1178_v25 }
 0x199   : > { %v1463_v15 = vpop.f32.mrb[80].mxu0 }
 0x19a   : > { %v1502_v60 = vadd.f32 %v1463_v15, %v1334_v49  ;;  %v2196_v2 = vpop.f32.mrb[80].mxu1  ;;  %v3575_v42 = vpop.f32.mrb[81].mxu0 }
 0x19b   : > { %v2197_v16 = vadd.f32 %v2196_v2, %v2076_v52  ;;  %v3719_v3 = vpop.f32.mrb[81].mxu1  ;;  %v1466_v32 = vpop.f32.mrb[82].mxu0 }
 0x19c   : > { %v1503_v61 = vadd.f32 %v1466_v32, %v1335_v1  ;;  %v2199_v11 = vpop.f32.mrb[82].mxu1  ;;  %v3576_v38 = vpop.f32.mrb[83].mxu0  ;;  %v1689_v19 = vadd.f32 %v5010_v23, %v1502_v60 }
 0x19d   : > { %v2200_v35 = vadd.f32 %v2199_v11, %v2079_v18  ;;  %v3720_v9 = vpop.f32.mrb[83].mxu1 }
 0x19e   : > { %v1690_v13 = vadd.f32 %v5012_v26, %v1503_v61 }
 0x1a1   : > { %v1471_v55 = vpop.f32.mrb[84].mxu0 }
 0x1a2   : > { %v1504_v45 = vadd.f32 %v1471_v55, %v1336_v36  ;;  %v3579_v51 = vpop.f32.mrb[85].mxu0 }
 0x1a3   : > { %v1474_v46 = vpop.f32.mrb[86].mxu0  ;;  %v3047_v51 = vld [vmem:[%s5157_s4] ss:$0 sm:$0xff] }
 0x1a4   : > { %v1505_v24 = vadd.f32 %v1474_v46, %v1337_v4  ;;  %v3580_v49 = vpop.f32.mrb[87].mxu0  ;;  %v1691_v14 = vadd.f32 %v5016_v6, %v1504_v45 }
 0x1a6   : > { %v1692_v52 = vadd.f32 %v5018_v33, %v1505_v24 }
 0x1a9   : > { %v1479_v5 = vpop.f32.mrb[88].mxu0 }
 0x1aa   : > { %v1506_v1 = vadd.f32 %v1479_v5, %v1338_v17  ;;  %v3583_v30 = vpop.f32.mrb[89].mxu0 }
 0x1ab   : > { %v1482_v40 = vpop.f32.mrb[90].mxu0 }
 0x1ac   : > { %v1507_v27 = vadd.f32 %v1482_v40, %v1339_v39  ;;  %v3584_v23 = vpop.f32.mrb[91].mxu0  ;;  %v1693_v18 = vadd.f32 %v5022_v53, %v1506_v1 }
 0x1ae   : > { %v1694_v26 = vadd.f32 %v5024_v22, %v1507_v27 }
 0x1b1   : > { %v1487_v48 = vpop.f32.mrb[92].mxu0 }
 0x1b2   : > { %v1508_v36 = vadd.f32 %v1487_v48, %v1340_v20  ;;  %v3587_v47 = vpop.f32.mrb[93].mxu0 }
 0x1b3   : > { %v1490_v56 = vpop.f32.mrb[94].mxu0 }
 0x1b4   : > { %v1509_v4 = vadd.f32 %v1490_v56, %v1341_v63  ;;  %v3588_v0 = vpop.f32.mrb[95].mxu0  ;;  %v1695_v6 = vadd.f32 %v5028_v50, %v1508_v36 }
 0x1b6   : > { %v1696_v33 = vadd.f32 %v5030_v58, %v1509_v4 }
 0x1b9   : > { %v1495_v41 = vpop.f32.mrb[96].mxu0 }
 0x1ba   : > { %v1510_v37 = vadd.f32 %v1495_v41, %v1342_v31  ;;  %v3591_v17 = vpop.f32.mrb[97].mxu0 }
 0x1bb   : > { %v1498_v12 = vpop.f32.mrb[98].mxu0 }
 0x1bc   : > { %v1511_v39 = vadd.f32 %v1498_v12, %v1343_v21  ;;  %v3592_v57 = vpop.f32.mrb[99].mxu0  ;;  %v1697_v53 = vadd.f32 %v5034_v54, %v1510_v37 }
 0x1be   : > { %v1698_v22 = vadd.f32 %v5036_v62, %v1511_v39 }
 0x1c1   : > { %v1815_v29 = vpop.f32.mrb[100].mxu0 }
 0x1c2   : > { %v1854_v34 = vadd.f32 %v1815_v29, %v1689_v19  ;;  %v2382_v10 = vpop.f32.mrb[84].mxu1  ;;  %v3647_v59 = vpop.f32.mrb[101].mxu0 }
 0x1c3   : > { %v2420_v20 = vadd.f32 %v2382_v10, %v2197_v16  ;;  %v3755_v63 = vpop.f32.mrb[85].mxu1  ;;  %v1818_v7 = vpop.f32.mrb[102].mxu0 }
 0x1c4   : > { %v1855_v50 = vadd.f32 %v1818_v7, %v1690_v13  ;;  %v2385_v8 = vpop.f32.mrb[86].mxu1  ;;  %v3648_v58 = vpop.f32.mrb[103].mxu0  ;;  %v1871_v46 = vadd.f32 %v3047_v51, %v1854_v34 }
 0x1c5   : > { %v5060_v44 = vadd.f32 %v2385_v8, %v2200_v35  ;;  %v3756_v28 = vpop.f32.mrb[87].mxu1 }
 0x1c6   : > { %v1872_v24 = vadd.f32 %v3047_v51, %v1855_v50  ;;  %v1891_v27 = vmul.f32 0.2, %v1871_v46  ;;  %vm1881_vm7 = vcmp.ge.f32.partialorder %v1871_v46, 0.0 }
 0x1c8   : > { %v1892_v23 = vmul.f32 0.2, %v1872_v24  ;;  %vm1882_vm8 = vcmp.ge.f32.partialorder %v1872_v24, 0.0  ;;  %v1901_v4 = vsel %vm1881_vm7, %v1871_v46, %v1891_v27 }
 0x1c9   : > { %v1823_v25 = vpop.f32.mrb[104].mxu0 }
 0x1ca   : > { %v1856_v43 = vadd.f32 %v1823_v25, %v1691_v14  ;;  %v5062_v31 = vpop.f32.mrb[64].mxu1  ;;  %v3651_v54 = vpop.f32.mrb[105].mxu0 }
 0x1cb   : > { %v3759_v21 = vpop.f32.mrb[65].mxu1  ;;  %v1826_v62 = vpop.f32.mrb[106].mxu0 }
 0x1cc   : > { %v1857_v15 = vadd.f32 %v1826_v62, %v1692_v52  ;;  %v5064_v60 = vpop.f32.mrb[66].mxu1  ;;  %v3652_v2 = vpop.f32.mrb[107].mxu0  ;;  %v1873_v5 = vadd.f32 %v3047_v51, %v1856_v43 }
 0x1cd   : > { %v3760_v42 = vpop.f32.mrb[67].mxu1 }
 0x1ce   : > { %v1893_v48 = vmul.f32 0.2, %v1873_v5  ;;  %vm1883_vm9 = vcmp.ge.f32.partialorder %v1873_v5, 0.0 }
 0x1d0   : > { %v5072_v34 = vsel %vm1883_vm9, %v1873_v5, %v1893_v48 }
 0x1d1   : > { %v1831_v16 = vpop.f32.mrb[108].mxu0 }
 0x1d2   : > { %v1858_v3 = vadd.f32 %v1831_v16, %v1693_v18  ;;  %v3655_v32 = vpop.f32.mrb[109].mxu0  ;;  %v1874_v18 = vadd.f32 %v3047_v51, %v1857_v15 }
 0x1d3   : > { %v1834_v61 = vpop.f32.mrb[110].mxu0 }
 0x1d4   : > { %v1859_v11 = vadd.f32 %v1834_v61, %v1694_v26  ;;  %v3656_v38 = vpop.f32.mrb[111].mxu0  ;;  %v1875_v26 = vadd.f32 %v3047_v51, %v1858_v3  ;;  %vm1884_vm12 = vcmp.ge.f32.partialorder %v1874_v18, 0.0 }
 0x1d6   : > { %v1876_v36 = vadd.f32 %v3047_v51, %v1859_v11  ;;  %vm1885_vm13 = vcmp.ge.f32.partialorder %v1875_v26, 0.0  ;;  %v1895_v39 = vmul.f32 0.2, %v1875_v26 }
 0x1d8   : > { %v1896_v57 = vmul.f32 0.2, %v1876_v36  ;;  %vm1886_vm15 = vcmp.ge.f32.partialorder %v1876_v36, 0.0  ;;  %v1905_v16 = vsel %vm1885_vm13, %v1875_v26, %v1895_v39 }
 0x1d9   : > { %v1839_v19 = vpop.f32.mrb[112].mxu0 }
 0x1da   : > { %v1860_v35 = vadd.f32 %v1839_v19, %v1695_v6  ;;  %v3659_v9 = vpop.f32.mrb[113].mxu0  ;;  %v1902_v6 = vsel %vm1882_vm8, %v1872_v24, %v1892_v23  ;;  %v1906_v21 = vsel %vm1886_vm15, %v1876_v36, %v1896_v57  ;;  %vm2618_vm8 = vcmask 1046532  }
 0x1db   : > { %v1842_v13 = vpop.f32.mrb[114].mxu0 }
 0x1dc   : > { %v1861_v55 = vadd.f32 %v1842_v13, %v1696_v33  ;;  %v3660_v45 = vpop.f32.mrb[115].mxu0  ;;  %v1877_v47 = vadd.f32 %v3047_v51, %v1860_v35  ;;  %v1894_v33 = vmul.f32 0.2, %v1874_v18 }
 0x1de   : > { %v1878_v56 = vadd.f32 %v3047_v51, %v1861_v55  ;;  %v1897_v10 = vmul.f32 0.2, %v1877_v47  ;;  %vm1887_vm0 = vcmp.ge.f32.partialorder %v1877_v47, 0.0  ;;  %v1904_v11 = vsel %vm1884_vm12, %v1874_v18, %v1894_v33 }
 0x1df   : > { %vm2644_vm12 = vcmask 1045508  }
 0x1e0   : > { %v1898_v50 = vmul.f32 0.2, %v1878_v56  ;;  %vm1888_vm1 = vcmp.ge.f32.partialorder %v1878_v56, 0.0  ;;  %v1907_v3 = vsel %vm1887_vm0, %v1877_v47, %v1897_v10  ;;  %vm2645_vm13 = vmor %vm2627_vm5, %vm2644_vm12 }
 0x1e1   : > { %v1847_v49 = vpop.f32.mrb[116].mxu0 }
 0x1e2   : > { %v1862_v14 = vadd.f32 %v1847_v49, %v1697_v53  ;;  %v3663_v52 = vpop.f32.mrb[117].mxu0  ;;  %v1908_v61 = vsel %vm1888_vm1, %v1878_v56, %v1898_v50 }
 0x1e3   : > { %v1850_v1 = vpop.f32.mrb[118].mxu0 }
 0x1e4   : > { %v1863_v30 = vadd.f32 %v1850_v1, %v1698_v22  ;;  %v3664_v40 = vpop.f32.mrb[119].mxu0  ;;  %v1879_v41 = vadd.f32 %v3047_v51, %v1862_v14 }
 0x1e6   : > { %v1880_v53 = vadd.f32 %v3047_v51, %v1863_v30  ;;  %v1899_v25 = vmul.f32 0.2, %v1879_v41  ;;  %vm1889_vm7 = vcmp.ge.f32.partialorder %v1879_v41, 0.0 }
 0x1e8   : > { %v1900_v62 = vmul.f32 0.2, %v1880_v53  ;;  %vm1890_vm9 = vcmp.ge.f32.partialorder %v1880_v53, 0.0  ;;  %v5092_v55 = vsel %vm1889_vm7, %v1879_v41, %v1899_v25 }
 0x1e9   : > { %v2547_v0 = vpop.f32.mrb[120].mxu0 }
 0x1ea   : > { %v2585_v37 = vadd.f32 %v2547_v0, %v2420_v20  ;;  %v5069_v17 = vpop.f32.mrb[68].mxu1  ;;  %v3791_v12 = vpop.f32.mrb[121].mxu0  ;;  %v5096_v14 = vsel %vm1890_vm9, %v1880_v53, %v1900_v62 }
 0x1eb   : > { %v3799_v22 = vpop.f32.mrb[69].mxu1  ;;  %v2550_v29 = vpop.f32.mrb[122].mxu0  ;;  %v2680_v8 = vrot.slane %v5069_v17, 4  ;;  %v2655_v45 = vrot.slane %v5069_v17, 5 }
 0x1ec   : > { %v2594_v59 = vadd.f32 %v2585_v37, %v1901_v4  ;;  %v2586_v63 = vadd.f32 %v2550_v29, %v5060_v44  ;;  %v2566_v7 = vpop.f32.mrb[70].mxu1  ;;  %v3792_v20 = vpop.f32.mrb[123].mxu0 }
 0x1ed   : > { %v2681_v58 = vrot.slane %v2566_v7, 4  ;;  %v3800_v28 = vpop.f32.mrb[71].mxu1  ;;  %v2690_v51 = vrot.slane %v2566_v7, 3 }
 0x1ee   : > { %v2595_v43 = vmul.f32 0.70710677, %v2594_v59  ;;  %v2602_v54 = vrot.slane %v2586_v63, 7 }
 0x1ef   : > { %v2682_v44 = vsel %vm2679_vm11, %v2680_v8, %v2681_v58  ;;  %vm2670_vm11 = vcmask 1044484  }
 0x1f0   : > { %v2596_v15 = vpack.c.bf16 %v2595_v43, %v2595_v43  ;;  %v2607_v2 = vadd.f32 %v2602_v54, %v1902_v6  ;;  %v2684_v42 = vadd.f32 %v2682_v44, %v1906_v21 }
 0x1f1   : > { %v2555_v32 = vpop.f32.mrb[124].mxu0 }
 0x1f2   : > { %2598 = vst.msk [vmem:[%s5081_s7] sm:$0xf] %vm2597_vm10, %v2596_v15  ;;  %v2609_v38 = vmul.f32 0.70710677, %v2607_v2  ;;  %v2685_v19 = vmul.f32 0.70710677, %v2684_v42  ;;  %v3825_v35 = vadd.f32 %v2555_v32, %v5062_v31 }
 0x1f3   : > { %v2571_v9 = vpop.f32.mrb[72].mxu1  ;;  %v3795_v13 = vpop.f32.mrb[125].mxu0 }
 0x1f4   : > { %v2691_v46 = vrot.slane %v2571_v9, 3  ;;  %v3803_v24 = vpop.f32.mrb[73].mxu1  ;;  %v2558_v49 = vpop.f32.mrb[126].mxu0  ;;  %v2686_v52 = vpack.c.bf16 %v2685_v19, %v2685_v19  ;;  %v2603_v5 = vrot.slane %v3825_v35, 7  ;;  %v2628_v1 = vrot.slane %v3825_v35, 6 }
 0x1f5   : > { %v2713_v30 = vrot.slane %v2571_v9, 2  ;;  %v5098_v31 = vpop.f32.mrb[74].mxu1  ;;  %v3796_v40 = vpop.f32.mrb[127].mxu0  ;;  %v3826_v18 = vadd.f32 %v2558_v49, %v5064_v60  ;;  %v3160_v36 = vpack.c.bf16 %v2609_v38, %v2609_v38 }
 0x1f6   : > { %v2692_v27 = vsel %vm1716_vm6, %v2690_v51, %v2691_v46  ;;  %v2696_v23 = vadd.f32 %v2691_v46, %v1908_v61  ;;  %v2714_v26 = vrot.slane %v5098_v31, 2  ;;  %v3804_v48 = vpop.f32.mrb[75].mxu1  ;;  %2687 = vst.msk [vmem:[%s5081_s7 + $0x10] sm:$0xf] %vm2597_vm10, %v2686_v52  ;;  %v2604_v47 = vsel %vm2601_vm14, %v2602_v54, %v2603_v5  ;;  %vm5114_vm6 = vmor %vm2617_vm3, %vm2618_vm8 }
 0x1f7   : > { %v2633_v56 = vadd.f32 %v2628_v1, %v5072_v34  ;;  %v2695_v4 = vadd.f32 %v2692_v27, %v1907_v3  ;;  %v2608_v0 = vadd.f32 %v2604_v47, %v5072_v34  ;;  %v2629_v33 = vrot.slane %v3826_v18, 6 }
 0x1f8   : > { %v2698_v6 = vmul.f32 0.70710677, %v2696_v23  ;;  %v2654_v41 = vrot.slane %v3826_v18, 5  ;;  %v2715_v60 = vsel %vm1196_vm4, %v2713_v30, %v2714_v26  ;;  %v2719_v12 = vadd.f32 %v2714_v26, %v5092_v55  ;;  %vm5127_vm4 = vmor %vm2601_vm14, %vm2670_vm11 }
 0x1f9   : > { %v2635_v37 = vmul.f32 0.70710677, %v2633_v56  ;;  %v2697_v17 = vmul.f32 0.70710677, %v2695_v4  ;;  %v2610_v39 = vmul.f32 0.70710677, %v2608_v0  ;;  %v2630_v53 = vsel %vm2627_vm5, %v2628_v1, %v2629_v33 }
 0x1fa   : > { %v3167_v57 = vpack.c.bf16 %v2698_v6, %v2698_v6  ;;  %v2656_v22 = vsel %vm2617_vm3, %v2654_v41, %v2655_v45  ;;  %v3141_v29 = vrot.slane %v3160_v36, 9  ;;  %v2634_v59 = vadd.f32 %v2630_v53, %v1904_v11  ;;  %v2579_v34 = vpop.f32.mrb[76].mxu1 }
 0x1fb   : > { %v3166_v10 = vpack.c.bf16 %v2697_v17, %v2697_v17  ;;  %v2659_v63 = vadd.f32 %v2654_v41, %v1904_v11  ;;  %v3161_v7 = vpack.c.bf16 %v2610_v39, %v2610_v39  ;;  %v2660_v8 = vadd.f32 %v2656_v22, %v1905_v16  ;;  %v3807_v28 = vpop.f32.mrb[77].mxu1 }
 0x1fc   : > { %v2707_v20 = vrot.slane %v3167_v57, 5  ;;  %v2718_v58 = vadd.f32 %v2715_v60, %v1908_v61  ;;  %v3162_v25 = vpack.c.bf16 %v2635_v37, %v2635_v37  ;;  %v2636_v54 = vmul.f32 0.70710677, %v2634_v59  ;;  %v2582_v16 = vpop.f32.mrb[78].mxu1 }
 0x1fd   : > { %v3150_v43 = vrot.slane %v3166_v10, 9  ;;  %v2661_v21 = vmul.f32 0.70710677, %v2659_v63  ;;  %v2622_v62 = vrot.slane %v3161_v7, 5  ;;  %v2662_v44 = vmul.f32 0.70710677, %v2660_v8 }
 0x1fe   : > { %v2720_v15 = vmul.f32 0.70710677, %v2718_v58  ;;  %v2736_v2 = vrot.slane %v5098_v31, 1  ;;  %v3163_v42 = vpack.c.bf16 %v2636_v54, %v2636_v54  ;;  %v2721_v11 = vmul.f32 0.70710677, %v2719_v12  ;;  %v3808_v9 = vpop.f32.mrb[79].mxu1 }
 0x1ff   : > { %v3164_v3 = vpack.c.bf16 %v2661_v21, %v2661_v21  ;;  %v2708_v32 = vsel %vm5114_vm6, %v3150_v43, %v2707_v20  ;;  %v2623_v61 = vsel %vm5114_vm6, %v3141_v29, %v2622_v62  ;;  %v3165_v38 = vpack.c.bf16 %v2662_v44, %v2662_v44 }
 0x200   : > { %2710 = vst.msk [vmem:[%s5081_s7 + $0x14] sm:$0xf] %vm2597_vm10, %v2708_v32  ;;  %v3168_v19 = vpack.c.bf16 %v2720_v15, %v2720_v15  ;;  %v2737_v35 = vrot.slane %v2579_v34, 1  ;;  %v3144_v13 = vrot.slane %v3162_v25, 10  ;;  %2625 = vst.msk [vmem:[%s5081_s7 + $0x4] sm:$0xf] %vm2597_vm10, %v2623_v61  ;;  %v3169_v24 = vpack.c.bf16 %v2721_v11, %v2721_v11 }
 0x201   : > { %v2648_v51 = vrot.slane %v3163_v42, 6  ;;  %v3147_v46 = vrot.slane %v3164_v3, 11  ;;  %v2674_v49 = vrot.slane %v3165_v38, 7 }
 0x202   : > { %v3153_v52 = vrot.slane %v3168_v19, 10  ;;  %v2738_v5 = vsel %vm648_vm2, %v2736_v2, %v2737_v35  ;;  %v2742_v1 = vadd.f32 %v2737_v35, %v5096_v14  ;;  %v2730_v31 = vrot.slane %v3169_v24, 6 }
 0x203   : > { %v2649_v30 = vsel %vm2645_vm13, %v3144_v13, %v2648_v51  ;;  %v2741_v40 = vadd.f32 %v2738_v5, %v5092_v55  ;;  %v2675_v27 = vsel %vm5127_vm4, %v3147_v46, %v2674_v49 }
 0x204   : > { %2651 = vst.msk [vmem:[%s5081_s7 + $0x8] sm:$0xf] %vm2597_vm10, %v2649_v30  ;;  %v2744_v23 = vmul.f32 0.70710677, %v2742_v1  ;;  %2677 = vst.msk [vmem:[%s5081_s7 + $0xc] sm:$0xf] %vm2597_vm10, %v2675_v27  ;;  %v2731_v18 = vsel %vm2645_vm13, %v3153_v52, %v2730_v31 }
 0x205   : > { %v2743_v26 = vmul.f32 0.70710677, %v2741_v40  ;;  %2733 = vst.msk [vmem:[%s5081_s7 + $0x18] sm:$0xf] %vm2597_vm10, %v2731_v18 }
 0x206   : > { %v3171_v48 = vpack.c.bf16 %v2744_v23, %v2744_v23 }
 0x207   : > { %v3170_v36 = vpack.c.bf16 %v2743_v26, %v2743_v26 }
 0x208   : > { %v2753_v14 = vrot.slane %v3171_v48, 7 }
 0x209   : > { %v3156_v47 = vrot.slane %v3170_v36, 11 }
 0x20b   : > { %v2754_v56 = vsel %vm5127_vm4, %v3156_v47, %v2753_v14 }
 0x20c   : > { %2756 = vst.msk [vmem:[%s5081_s7 + $0x1c] sm:$0xf] %vm2597_vm10, %v2754_v56 }
 0x20d PF: > { %s15_s18 = sadd.s32 1, %s4018_s18  }
 0x20e   : > { %p12_p4 = scmp.ge.s32.totalorder %s15_s18, 4  }
 0x210   :  { %14 = sbr.rel (!%p12_p4) target bundleno = 1 (0x1), region = 84 }

// kernel: forward.11
= control target key start
LH: loop header
LB: loop body
LE: loop exit
PB: predicated region body
PF: predicated region fallthrough
CT: control target
= control target key end

     0   :  { %s2902_s18 = smov 0   ;;  %s3378_s0 = inlined_call_operand.vmem [shape: bf16[2,42,128], index: 0, kind: input, shape index: {}]   ;;  %s3379_s1 = inlined_call_operand.vmem [shape: bf16[2,30,128], index: 1, kind: input, shape index: {}]   ;;  %s3380_s2 = inlined_call_operand.vmem [shape: bf16[9,128,32], index: 2, kind: input, shape index: {}]   ;;  %s3381_s3 = inlined_call_operand.vmem [shape: bf16[4,128,32], index: 3, kind: input, shape index: {}]   ;;  %s3382_s4 = inlined_call_operand.vmem [shape: f32[1,32], index: 4, kind: input, shape index: {}]   ;;  %s3383_s5 = inlined_call_operand.vmem [shape: bf16[2,16,32], index: 5, kind: output, shape index: {}]  }
   0x1 LB: > { %s2026_s19 = sadd.s32 4294967295, %s2870_s18   ;;  %p2030_p0 = scmp.ge.s32.totalorder %s2870_s18, 1  ;;  %s2870_s18 = sphi %s2902_s18, %s15_s18  }
   0x2   : > { %p197_p1 = scmp.lt.s32.totalorder %s2870_s18, 3 }
   0x4   : > { %p198_p2 = pnand %p2030_p0, %p197_p1 }
   0x5   : > { %v2751_v0 = vld [vmem:[%s3380_s2 + $0x40] sm:$0xff] (!%p198_p2)   ;;  %p230_p3 = scmp.lt.s32.totalorder (!%p198_p2), %s2026_s19, 1  ;;  %v2753_v2 = vld [vmem:[%s3380_s2 + $0x48] sm:$0xff] (!%p198_p2)   ;;  %v2755_v4 = vld [vmem:[%s3380_s2 + $0x50] sm:$0xff] (!%p198_p2)   ;;  %vm651_vm0 = vcmask (!%p198_p2), 1044480   ;;  %vm1020_vm2 = vcmask (!%p198_p2), 1045504  }
   0x6   : > { %201 = sbr.rel (%p198_p2) target bundleno = 459 (0x1cb), region = 40  ;;  %v2752_v1 = vld [vmem:[%s3380_s2 + $0xc0] sm:$0xff] (!%p198_p2)   ;;  %2470 = vmatprep.subr.bf16.mxu0 (!%p198_p2), %v2751_v0  ;;  %v2754_v3 = vld [vmem:[%s3380_s2 + $0xc8] sm:$0xff] (!%p198_p2)   ;;  %v2756_v5 = vld [vmem:[%s3380_s2 + $0xd0] sm:$0xff] (!%p198_p2)   ;;  %vm300_vm1 = vsmask.f32 (!%p198_p2), 7424 }
   0x7   : > { %2530 = vmatprep.subr.bf16.mxu1 (!%p198_p2), %v2752_v1  ;;  %2471 = vmatpush3.bf16.msra.mxu0 (!%p198_p2), %v2751_v0  ;;  %v2757_v6 = vld [vmem:[%s3380_s2 + $0x58] sm:$0xff] (!%p198_p2)   ;;  %v2759_v8 = vld [vmem:[%s3380_s2 + $0x60] sm:$0xff] (!%p198_p2)   ;;  %v2761_v10 = vld [vmem:[%s3380_s2 + $0x68] sm:$0xff] (!%p198_p2)   ;;  %vm529_vm3 = vcmask (!%p198_p2), 1046528   ;;  %vm1142_vm4 = vsmask.f32 (!%p198_p2), 5376 }
   0x8   : > { %2531 = vmatpush3.bf16.msra.mxu1 (!%p198_p2), %v2752_v1  ;;  %2472 = vmatprep.subr.bf16.mxu0 (!%p198_p2), %v2753_v2  ;;  %v2758_v7 = vld [vmem:[%s3380_s2 + $0xd8] sm:$0xff] (!%p198_p2)   ;;  %v2760_v9 = vld [vmem:[%s3380_s2 + $0xe0] sm:$0xff] (!%p198_p2)   ;;  %v2762_v14 = vld [vmem:[%s3380_s2 + $0xe8] sm:$0xff] (!%p198_p2)   ;;  %vm773_vm5 = vsmask.f32 (!%p198_p2), 4352  ;;  %vm1906_vm9 = vcmask (!%p198_p2), 1040384  }
   0x9   : > { %2532 = vmatprep.subr.bf16.mxu1 (!%p198_p2), %v2754_v3  ;;  %v2763_v18 = vld [vmem:[%s3380_s2 + $0x70] sm:$0xff] (!%p198_p2)   ;;  %v2765_v29 = vld [vmem:[%s3380_s2 + $0x78] sm:$0xff] (!%p198_p2)   ;;  %v2769_v33 = vld [vmem:[%s3380_s2] sm:$0xff] (!%p198_p2)   ;;  %vm1922_vm10 = vcmask (!%p198_p2), 1042432   ;;  %vm1902_vm11 = vcmask (!%p198_p2), 254976   ;;  %vm1923_vm12 = vcmask (!%p198_p2), 1046532  }
   0xa   : > { %v2764_v24 = vld [vmem:[%s3380_s2 + $0xf0] sm:$0xff] (!%p198_p2)   ;;  %v2766_v30 = vld [vmem:[%s3380_s2 + $0xf8] sm:$0xff] (!%p198_p2)   ;;  %v2770_v34 = vld [vmem:[%s3380_s2 + $0x140] sm:$0xff] (!%p198_p2)   ;;  %vm1930_vm14 = vcmask (!%p198_p2), 257026  }
   0xb   : > { %2473 = vmatpush3.bf16.msra.mxu0 (!%p198_p2), %v2753_v2  ;;  %v2771_v40 = vld [vmem:[%s3380_s2 + $0x8] sm:$0xff] (!%p198_p2)   ;;  %v2773_v45 = vld [vmem:[%s3380_s2 + $0x10] sm:$0xff] (!%p198_p2)   ;;  %v2775_v47 = vld [vmem:[%s3380_s2 + $0x18] sm:$0xff] (!%p198_p2)  }
   0xc   : > { %2533 = vmatpush3.bf16.msra.mxu1 (!%p198_p2), %v2754_v3  ;;  %2474 = vmatprep.subr.bf16.mxu0 (!%p198_p2), %v2755_v4  ;;  %v2772_v42 = vld [vmem:[%s3380_s2 + $0x148] sm:$0xff] (!%p198_p2)   ;;  %v2774_v46 = vld [vmem:[%s3380_s2 + $0x150] sm:$0xff] (!%p198_p2)   ;;  %v2776_v48 = vld [vmem:[%s3380_s2 + $0x158] sm:$0xff] (!%p198_p2)  }
   0xd   : > { %s3385_s19 = smov (!%p230_p3, %s2026_s19), 1  ;;  %2534 = vmatprep.subr.bf16.mxu1 %v2756_v5  ;;  %v2777_v49 = vld [vmem:[%s3380_s2 + $0x20] sm:$0xff]   ;;  %v2779_v51 = vld [vmem:[%s3380_s2 + $0x28] sm:$0xff]   ;;  %v2781_v55 = vld [vmem:[%s3380_s2 + $0x30] sm:$0xff]  }
   0xe   : > { %s2742_s11 = smul.u32 24, %s3385_s19  ;;  %v2778_v50 = vld [vmem:[%s3380_s2 + $0x160] sm:$0xff]   ;;  %v2780_v52 = vld [vmem:[%s3380_s2 + $0x168] sm:$0xff]   ;;  %v2782_v56 = vld [vmem:[%s3380_s2 + $0x170] sm:$0xff]   ;;  %s2334_s24 = sshll.u32 %s3385_s19, 4 }
   0xf   : > { %2475 = vmatpush3.bf16.msra.mxu0 %v2755_v4  ;;  %v2783_v59 = vld [vmem:[%s3380_s2 + $0x38] sm:$0xff]   ;;  %s3103_s8 = scalar_lea.vmem %s3379_s1, %s2334_s24  ;;  %s2335_s7 = sshll.u32 %s3385_s19, 3  ;;  %vm1924_vm13 = vmor %vm1922_vm10, %vm1923_vm12 }
  0x10   : > { %2535 = vmatpush3.bf16.msra.mxu1 %v2756_v5  ;;  %2476 = vmatprep.subr.bf16.mxu0 %v2757_v6  ;;  %s2946_s20 = scalar_lea.vmem %s3378_s0, %s2742_s11  ;;  %v2784_v63 = vld [vmem:[%s3380_s2 + $0x178] sm:$0xff]   ;;  %s244_s11 = scalar_lea.vmem %s3383_s5, %s2335_s7 }
  0x11   : > { %2536 = vmatprep.subr.bf16.mxu1 %v2758_v7  ;;  %v246_v11 = vld [vmem:[%s2946_s20] sm:$0xf]  ;;  %v247_v12 = vld [vmem:[%s2946_s20 + $0x4] sm:$0xf]  ;;  %v2954_v13 = vld [vmem:[%s2946_s20 + $0x8] sm:$0xf] }
  0x12   : > { %v2960_v15 = vld [vmem:[%s2946_s20 + $0xc] sm:$0xf]  ;;  %v2962_v16 = vcombine.low %v246_v11, %v247_v12  ;;  %v3009_v44 = vcombine.low %v247_v12, %v2954_v13  ;;  %v250_v53 = vld [vmem:[%s2946_s20 + $0x10] sm:$0xf] }
  0x13   : > { %2477 = vmatpush3.bf16.msra.mxu0 %v2757_v6  ;;  %v2966_v17 = vcombine.low %v2954_v13, %v2960_v15  ;;  %v3039_v54 = vcombine.low %v2960_v15, %v250_v53  ;;  %v2787_v6 = vld [vmem:[%s3380_s2 + $0x80] sm:$0xff]   ;;  %v2144_v11 = vcombine.low %v2960_v15, %v2960_v15 }
  0x14   : > { %2537 = vmatpush3.bf16.msra.mxu1 %v2758_v7  ;;  %2478 = vmatprep.subr.bf16.mxu0 %v2759_v8  ;;  %v652_v19 = vrot.slane %v2962_v16, 3  ;;  %v302_v20 = vshrl.u32 %v2962_v16, 16  ;;  %v304_v21 = vshll.u32 %v2962_v16, 16  ;;  %v1144_v57 = vshrl.u32 %v3009_v44, 16 }
  0x15   : > { %2538 = vmatprep.subr.bf16.mxu1 %v2760_v9  ;;  %v653_v22 = vrot.slane %v2966_v17, 3  ;;  %v309_v23 = vshll.u32 %v2966_v17, 16  ;;  %v313_v32 = vshrl.u32 %v2966_v17, 16  ;;  %v1147_v58 = vshll.u32 %v3009_v44, 16 }
  0x16   : > { %v306_v25 = vrot.slane %v304_v21, 1  ;;  %v2994_v36 = vrot.slane %v302_v20, 3  ;;  %v2996_v38 = vrot.slane %v304_v21, 4  ;;  %v1152_v60 = vshrl.u32 %v3039_v54, 16  ;;  %v2792_v21 = vld [vmem:[%s3380_s2 + $0x90] sm:$0xff]  }
  0x17   : > { %2479 = vmatpush3.bf16.msra.mxu0 %v2759_v8  ;;  %v654_v26 = vsel %vm651_vm0, %v652_v19, %v653_v22  ;;  %v311_v27 = vrot.slane %v309_v23, 1  ;;  %v777_v35 = vrot.slane %v313_v32, 3  ;;  %v778_v39 = vrot.slane %v309_v23, 4  ;;  %v2789_v8 = vld [vmem:[%s3380_s2 + $0x1c0] sm:$0xff]  }
  0x18   : > { %2539 = vmatpush3.bf16.msra.mxu1 %v2760_v9  ;;  %2480 = vmatprep.subr.bf16.mxu0 %v2761_v10  ;;  %v307_v28 = vor.u32 %v306_v25, %v302_v20  ;;  %v776_v41 = vor.u32 %v2996_v38, %v2994_v36  ;;  %v1155_v61 = vshll.u32 %v3039_v54, 16  ;;  %v1021_v62 = vrot.slane %v3009_v44, 2  ;;  %v2794_v25 = vld [vmem:[%s3380_s2 + $0x98] sm:$0xff]  }
  0x19   : > { %2540 = vmatprep.subr.bf16.mxu1 %v2762_v14  ;;  %2546 = vmatprep.mubr.bf16.mxu1 %v654_v26  ;;  %v315_v37 = vor.u32 %v313_v32, %v311_v27  ;;  %v3006_v43 = vor.u32 %v778_v39, %v777_v35  ;;  %v1022_v0 = vrot.slane %v3039_v54, 2  ;;  %v1146_v1 = vrot.slane %v1144_v57, 2  ;;  %v2795_v26 = vld [vmem:[%s3380_s2 + $0x1d8] sm:$0xff]   ;;  %v3136_v32 = vld [vmem:[%s3103_s8] sm:$0xff]  }
  0x1a   : > { %v312_v31 = vsel %vm300_vm1, %v307_v28, %v311_v27  ;;  %v1149_v2 = vrot.slane %v1147_v58, 3  ;;  %v1154_v3 = vrot.slane %v1152_v60, 2  ;;  %v1157_v4 = vrot.slane %v1155_v61, 3  ;;  %v2796_v27 = vld [vmem:[%s3380_s2 + $0xa0] sm:$0xff]   ;;  %v2803_v38 = vld [vmem:[%s3380_s2 + $0x1f8] sm:$0xff]  }
  0x1b   : > { %2481 = vmatpush3.bf16.msra.mxu0 %v2761_v10  ;;  %2486 = vmatprep.mubr.bf16.mxu0 %v312_v31  ;;  %v3062_v5 = vsel %vm1020_vm2, %v1021_v62, %v1022_v0  ;;  %v530_v7 = vrot.slane %v2962_v16, 1  ;;  %v531_v9 = vrot.slane %v2966_v17, 1  ;;  %v2037_v10 = vcombine.low %v2954_v13, %v2954_v13  ;;  %v2791_v13 = vld [vmem:[%s3380_s2 + $0x1c8] sm:$0xff]   ;;  %v2797_v28 = vld [vmem:[%s3380_s2 + $0x1e0] sm:$0xff]   ;;  %v2800_v31 = vld [vmem:[%s3380_s2 + $0xb0] sm:$0xff]  }
  0x1c   : > { %2541 = vmatpush3.bf16.msra.mxu1 %v2762_v14  ;;  %2482 = vmatprep.subr.bf16.mxu0 %v2763_v18  ;;  %v1150_v12 = vor.u32 %v1149_v2, %v1146_v1  ;;  %v3076_v14 = vor.u32 %v1157_v4, %v1154_v3  ;;  %v1279_v19 = vrot.slane %v3039_v54, 3  ;;  %v3109_v23 = vsel %vm773_vm5, %v776_v41, %v3006_v43  ;;  %v259_v17 = vld [vmem:[%s3103_s8 + $0xc] sm:$0x7]  ;;  %v2812_v57 = vld [vmem:[%s3381_s3 + $0x58] sm:$0xff]   ;;  %v2813_v1 = vld [vmem:[%s3380_s2 + $0x120] sm:$0xff]  }
  0x1d   : > { %2542 = vmatprep.subr.bf16.mxu1 %v2764_v24  ;;  %v532_v15 = vsel %vm529_vm3, %v530_v7, %v531_v9  ;;  %v1439_v36 = vshll.u32 %v3136_v32, 16  ;;  %v1437_v39 = vshrl.u32 %v3136_v32, 16  ;;  %v2814_v4 = vld [vmem:[%s3381_s3 + $0x60] sm:$0xff]  }
  0x1e   : > { %v2860_v54 = vld [vmem:[%s3381_s3 + $0xe0] sm:$0xff]  }
  0x1f   : > { %2483 = vmatpush3.bf16.msra.mxu0 %v2763_v18  ;;  %v2790_v18 = vld [vmem:[%s3380_s2 + $0x88] sm:$0xff]   ;;  %v1663_v53 = vrot.slane %v1437_v39, 2 }
  0x20   : > { %2543 = vmatpush3.bf16.msra.mxu1 %v2764_v24  ;;  %2484 = vmatprep.subr.bf16.mxu0 %v2765_v29  ;;  %v2793_v24 = vld [vmem:[%s3380_s2 + $0x1d0] sm:$0xff]  }
  0x21   : > { %2544 = vmatprep.subr.bf16.mxu1 %v2766_v30 }
  0x23   : > { %2485 = vmatpush3.bf16.msra.mxu0 %v2765_v29  ;;  %v2798_v29 = vld [vmem:[%s3380_s2 + $0xa8] sm:$0xff]  }
  0x24   : > { %2545 = vmatpush3.bf16.msra.mxu1 %v2766_v30  ;;  %2490 = vmatprep.subr.bf16.mxu0 %v2769_v33  ;;  %v2799_v30 = vld [vmem:[%s3380_s2 + $0x1e8] sm:$0xff]  }
  0x25   : > { %2570 = vmatprep.subr.bf16.mxu1 %v2770_v34 }
  0x26   : > { %2487 = vmatmul.mubr.bf16.vlgmr.msra.gmra.mrb[0].mxu0 %v315_v37  ;;  %v2802_v37 = vld [vmem:[%s3380_s2 + $0xb8] sm:$0xff]  }
  0x27   : > { %2547 = vmatmul.mubr.bf16.vlgmr.msra.gmra.mrb[0].mxu1 %v653_v22  ;;  %2491 = vmatpush3.bf16.msra.mxu0 %v2769_v33  ;;  %v1159_v22 = vsel %vm1142_vm4, %v1150_v12, %v3076_v14  ;;  %v258_v33 = vld [vmem:[%s3103_s8 + $0x8] sm:$0xf]  ;;  %v2819_v12 = vld [vmem:[%s3380_s2 + $0x138] sm:$0xff]  }
  0x28   : > { %2571 = vmatpush3.bf16.msra.mxu1 %v2770_v34  ;;  %2492 = vmatprep.subr.bf16.mxu0 %v2771_v40  ;;  %v2801_v34 = vld [vmem:[%s3380_s2 + $0x1f0] sm:$0xff]   ;;  %v3142_v35 = vcombine.low %v258_v33, %v258_v33 }
  0x29   : > { %2572 = vmatprep.subr.bf16.mxu1 %v2772_v42  ;;  %2506 = vmatprep.mubr.bf16.mxu0 %v2962_v16  ;;  %v1278_v16 = vrot.slane %v3009_v44, 3 }
  0x2a   : > { %2586 = vmatprep.mubr.bf16.mxu1 %v3009_v44  ;;  %v1444_v41 = vshll.u32 %v3142_v35, 16  ;;  %v2806_v44 = vld [vmem:[%s3381_s3 + $0x40] sm:$0xff]  }
  0x2b   : > { %2493 = vmatpush3.bf16.msra.mxu0 %v2771_v40  ;;  %v3093_v20 = vsel %vm651_vm0, %v1278_v16, %v1279_v19  ;;  %v1441_v40 = vrot.slane %v1439_v36, 1  ;;  %v1448_v16 = vshrl.u32 %v3142_v35, 16 }
  0x2c   : > { %2573 = vmatpush3.bf16.msra.mxu1 %v2772_v42  ;;  %2494 = vmatprep.subr.bf16.mxu0 %v2773_v45  ;;  %v2805_v42 = vld [vmem:[%s3380_s2 + $0x100] sm:$0xff]  }
  0x2d   : > { %2574 = vmatprep.subr.bf16.mxu1 %v2774_v46 }
  0x2f   : > { %2495 = vmatpush3.bf16.msra.mxu0 %v2773_v45  ;;  %v1442_v45 = vor.u32 %v1441_v40, %v1437_v39  ;;  %v2844_v39 = vld [vmem:[%s3381_s3 + $0x90] sm:$0xff]   ;;  %v2848_v40 = vld [vmem:[%s3381_s3 + $0xa0] sm:$0xff]  }
  0x30   : > { %2575 = vmatpush3.bf16.msra.mxu1 %v2774_v46  ;;  %2496 = vmatprep.subr.bf16.mxu0 %v2775_v47  ;;  %v3159_v46 = vrot.slane %v1444_v41, 1  ;;  %v2849_v41 = vld [vmem:[%s3380_s2 + $0x228] sm:$0xff]  }
  0x31   : > { %2576 = vmatprep.subr.bf16.mxu1 %v2776_v48 }
  0x33   : > { %2497 = vmatpush3.bf16.msra.mxu0 %v2775_v47  ;;  %v2807_v47 = vld [vmem:[%s3380_s2 + $0x108] sm:$0xff]  }
  0x34   : > { %2577 = vmatpush3.bf16.msra.mxu1 %v2776_v48  ;;  %2498 = vmatprep.subr.bf16.mxu0 %v2777_v49  ;;  %v2808_v48 = vld [vmem:[%s3381_s3 + $0x48] sm:$0xff]  }
  0x35   : > { %2578 = vmatprep.subr.bf16.mxu1 %v2778_v50 }
  0x37   : > { %2499 = vmatpush3.bf16.msra.mxu0 %v2777_v49  ;;  %v2809_v49 = vld [vmem:[%s3380_s2 + $0x110] sm:$0xff]  }
  0x38   : > { %2579 = vmatpush3.bf16.msra.mxu1 %v2778_v50  ;;  %2500 = vmatprep.subr.bf16.mxu0 %v2779_v51  ;;  %v1447_v50 = vsel %vm300_vm1, %v1442_v45, %v3159_v46  ;;  %v2852_v45 = vld [vmem:[%s3381_s3 + $0xb0] sm:$0xff]  }
  0x39   : > { %2580 = vmatprep.subr.bf16.mxu1 %v2780_v52 }
  0x3b   : > { %2501 = vmatpush3.bf16.msra.mxu0 %v2779_v51  ;;  %v2810_v51 = vld [vmem:[%s3381_s3 + $0x50] sm:$0xff]  }
  0x3c   : > { %2581 = vmatpush3.bf16.msra.mxu1 %v2780_v52  ;;  %2502 = vmatprep.subr.bf16.mxu0 %v2781_v55  ;;  %v3180_v52 = vcombine.low %v258_v33, %v259_v17  ;;  %v2839_v33 = vld [vmem:[%s3380_s2 + $0x200] sm:$0xff]   ;;  %v2862_v17 = vld [vmem:[%s3381_s3 + $0xf0] sm:$0xff]  }
  0x3d   : > { %2582 = vmatprep.subr.bf16.mxu1 %v2782_v56 }
  0x3e   : > { %v1667_v58 = vshrl.u32 %v3180_v52, 16  ;;  %v1796_v3 = vrot.slane %v3180_v52, 3 }
  0x3f   : > { %2503 = vmatpush3.bf16.msra.mxu0 %v2781_v55  ;;  %v1664_v55 = vrot.slane %v1439_v36, 3  ;;  %v2841_v36 = vld [vmem:[%s3380_s2 + $0x208] sm:$0xff]  }
  0x40   : > { %2583 = vmatpush3.bf16.msra.mxu1 %v2782_v56  ;;  %2504 = vmatprep.subr.bf16.mxu0 %v2783_v59  ;;  %v2811_v56 = vld [vmem:[%s3380_s2 + $0x118] sm:$0xff]   ;;  %v1669_v61 = vrot.slane %v1667_v58, 2 }
  0x41   : > { %2584 = vmatprep.subr.bf16.mxu1 %v2784_v63  ;;  %v1665_v60 = vor.u32 %v1664_v55, %v1663_v53  ;;  %v2863_v53 = vld [vmem:[%s3381_s3 + $0xf8] sm:$0xff]  }
  0x43   : > { %2505 = vmatpush3.bf16.msra.mxu0 %v2783_v59  ;;  %v1670_v59 = vshll.u32 %v3180_v52, 16 }
  0x44   : > { %2585 = vmatpush3.bf16.msra.mxu1 %v2784_v63  ;;  %2510 = vmatprep.subr.bf16.mxu0 %v2787_v6  ;;  %v1795_v63 = vrot.slane %v3136_v32, 3 }
  0x45   : > { %2610 = vmatprep.subr.bf16.mxu1 %v2789_v8  ;;  %v1672_v62 = vrot.slane %v1670_v59, 3 }
  0x46   : > { %2507 = vmatmul.mubr.bf16.vlgmr.msra.gmra.mrb[4].mxu0 %v2037_v10  ;;  %v3207_v7 = vsel %vm651_vm0, %v1795_v63, %v1796_v3  ;;  %v2817_v10 = vld [vmem:[%s3380_s2 + $0x130] sm:$0xff]  }
  0x47   : > { %2587 = vmatmul.mubr.bf16.vlgmr.msra.gmra.mrb[4].mxu1 %v2144_v11  ;;  %2511 = vmatpush3.bf16.msra.mxu0 %v2787_v6  ;;  %v3194_v2 = vor.u32 %v1672_v62, %v1669_v61  ;;  %v2818_v11 = vld [vmem:[%s3381_s3 + $0x70] sm:$0xff]  }
  0x48   : > { %2611 = vmatpush3.bf16.msra.mxu1 %v2789_v8  ;;  %2512 = vmatprep.subr.bf16.mxu0 %v2790_v18  ;;  %v2815_v8 = vld [vmem:[%s3380_s2 + $0x128] sm:$0xff]  }
  0x49   : > { %2612 = vmatprep.subr.bf16.mxu1 %v2791_v13  ;;  %2526 = vmatprep.mubr.bf16.mxu0 %v532_v15  ;;  %v3202_v6 = vsel %vm1142_vm4, %v1665_v60, %v3194_v2  ;;  %v1450_v15 = vor.u32 %v1448_v16, %v3159_v46  ;;  %v2853_v46 = vld [vmem:[%s3380_s2 + $0x238] sm:$0xff]  }
  0x4a   : > { %2626 = vmatprep.mubr.bf16.mxu1 %v1159_v22  ;;  %v2826_v22 = vld [vmem:[%s3381_s3 + $0x8] sm:$0xff]  }
  0x4b   : > { %2513 = vmatpush3.bf16.msra.mxu0 %v2790_v18  ;;  %v2821_v18 = vld [vmem:[%s3380_s2 + $0x180] sm:$0xff]  }
  0x4c   : > { %2613 = vmatpush3.bf16.msra.mxu1 %v2791_v13  ;;  %2514 = vmatprep.subr.bf16.mxu0 %v2792_v21  ;;  %v2824_v13 = vld [vmem:[%s3381_s3] sm:$0xff]  }
  0x4d   : > { %2614 = vmatprep.subr.bf16.mxu1 %v2793_v24 }
  0x4f   : > { %2515 = vmatpush3.bf16.msra.mxu0 %v2792_v21  ;;  %v2825_v21 = vld [vmem:[%s3380_s2 + $0x188] sm:$0xff]  }
  0x50   : > { %2615 = vmatpush3.bf16.msra.mxu1 %v2793_v24  ;;  %2516 = vmatprep.subr.bf16.mxu0 %v2794_v25  ;;  %v2828_v24 = vld [vmem:[%s3381_s3 + $0x10] sm:$0xff]  }
  0x51   : > { %2616 = vmatprep.subr.bf16.mxu1 %v2795_v26 }
  0x53   : > { %2517 = vmatpush3.bf16.msra.mxu0 %v2794_v25  ;;  %v2830_v25 = vld [vmem:[%s3381_s3 + $0x18] sm:$0xff]  }
  0x54   : > { %2617 = vmatpush3.bf16.msra.mxu1 %v2795_v26  ;;  %2518 = vmatprep.subr.bf16.mxu0 %v2796_v27  ;;  %v2832_v26 = vld [vmem:[%s3381_s3 + $0x20] sm:$0xff]  }
  0x55   : > { %2618 = vmatprep.subr.bf16.mxu1 %v2797_v28 }
  0x57   : > { %2519 = vmatpush3.bf16.msra.mxu0 %v2796_v27  ;;  %v2833_v27 = vld [vmem:[%s3380_s2 + $0x1a8] sm:$0xff]  }
  0x58   : > { %2619 = vmatpush3.bf16.msra.mxu1 %v2797_v28  ;;  %2520 = vmatprep.subr.bf16.mxu0 %v2798_v29  ;;  %v2834_v28 = vld [vmem:[%s3381_s3 + $0x28] sm:$0xff]  }
  0x59   : > { %2620 = vmatprep.subr.bf16.mxu1 %v2799_v30 }
  0x5b   : > { %2521 = vmatpush3.bf16.msra.mxu0 %v2798_v29  ;;  %v2835_v29 = vld [vmem:[%s3380_s2 + $0x1b0] sm:$0xff]  }
  0x5c   : > { %2621 = vmatpush3.bf16.msra.mxu1 %v2799_v30  ;;  %2522 = vmatprep.subr.bf16.mxu0 %v2800_v31  ;;  %v2836_v30 = vld [vmem:[%s3381_s3 + $0x30] sm:$0xff]  }
  0x5d   : > { %2622 = vmatprep.subr.bf16.mxu1 %v2801_v34 }
  0x5f   : > { %2523 = vmatpush3.bf16.msra.mxu0 %v2800_v31  ;;  %v2837_v31 = vld [vmem:[%s3380_s2 + $0x1b8] sm:$0xff]  }
  0x60   : > { %2623 = vmatpush3.bf16.msra.mxu1 %v2801_v34  ;;  %2524 = vmatprep.subr.bf16.mxu0 %v2802_v37  ;;  %v2840_v34 = vld [vmem:[%s3381_s3 + $0x80] sm:$0xff]  }
  0x61   : > { %2624 = vmatprep.subr.bf16.mxu1 %v2803_v38 }
  0x63   : > { %2525 = vmatpush3.bf16.msra.mxu0 %v2802_v37  ;;  %v2842_v37 = vld [vmem:[%s3381_s3 + $0x88] sm:$0xff]  }
  0x64   : > { %2625 = vmatpush3.bf16.msra.mxu1 %v2803_v38  ;;  %2550 = vmatprep.subr.bf16.mxu0 %v2805_v42  ;;  %v2843_v38 = vld [vmem:[%s3380_s2 + $0x210] sm:$0xff]  }
  0x65   : > { %2650 = vmatprep.subr.bf16.mxu1 %v2806_v44 }
  0x66   : > { %2527 = vmatmul.mubr.bf16.vlgmr.msra.gmra.mrb[8].mxu0 %v531_v9  ;;  %v2816_v9 = vld [vmem:[%s3381_s3 + $0x68] sm:$0xff]  }
  0x67   : > { %2627 = vmatmul.mubr.bf16.vlgmr.msra.gmra.mrb[8].mxu1 %v3076_v14  ;;  %2551 = vmatpush3.bf16.msra.mxu0 %v2805_v42  ;;  %v2820_v14 = vld [vmem:[%s3381_s3 + $0x78] sm:$0xff]   ;;  %v2850_v42 = vld [vmem:[%s3381_s3 + $0xa8] sm:$0xff]  }
  0x68   : > { %2651 = vmatpush3.bf16.msra.mxu1 %v2806_v44  ;;  %2552 = vmatprep.subr.bf16.mxu0 %v2807_v47  ;;  %v2851_v44 = vld [vmem:[%s3380_s2 + $0x230] sm:$0xff]  }
  0x69   : > { %2652 = vmatprep.subr.bf16.mxu1 %v2808_v48  ;;  %2566 = vmatprep.mubr.bf16.mxu0 %v3109_v23  ;;  %v2827_v23 = vld [vmem:[%s3380_s2 + $0x190] sm:$0xff]  }
  0x6a   : > { %2666 = vmatprep.mubr.bf16.mxu1 %v1447_v50  ;;  %v2858_v50 = vld [vmem:[%s3381_s3 + $0xd0] sm:$0xff]  }
  0x6b   : > { %2553 = vmatpush3.bf16.msra.mxu0 %v2807_v47  ;;  %v2854_v47 = vld [vmem:[%s3381_s3 + $0xb8] sm:$0xff]  }
  0x6c   : > { %2653 = vmatpush3.bf16.msra.mxu1 %v2808_v48  ;;  %2554 = vmatprep.subr.bf16.mxu0 %v2809_v49  ;;  %v2856_v48 = vld [vmem:[%s3381_s3 + $0xc0] sm:$0xff]  }
  0x6d   : > { %2654 = vmatprep.subr.bf16.mxu1 %v2810_v51 }
  0x6f   : > { %2555 = vmatpush3.bf16.msra.mxu0 %v2809_v49  ;;  %v2857_v49 = vld [vmem:[%s3381_s3 + $0xc8] sm:$0xff]  }
  0x70   : > { %2655 = vmatpush3.bf16.msra.mxu1 %v2810_v51  ;;  %2556 = vmatprep.subr.bf16.mxu0 %v2811_v56  ;;  %v2859_v51 = vld [vmem:[%s3381_s3 + $0xd8] sm:$0xff]  }
  0x71   : > { %2656 = vmatprep.subr.bf16.mxu1 %v2812_v57 }
  0x73   : > { %2557 = vmatpush3.bf16.msra.mxu0 %v2811_v56 }
  0x74   : > { %2657 = vmatpush3.bf16.msra.mxu1 %v2812_v57  ;;  %2558 = vmatprep.subr.bf16.mxu0 %v2813_v1 }
  0x75   : > { %2658 = vmatprep.subr.bf16.mxu1 %v2814_v4 }
  0x77   : > { %2559 = vmatpush3.bf16.msra.mxu0 %v2813_v1 }
  0x78   : > { %2659 = vmatpush3.bf16.msra.mxu1 %v2814_v4  ;;  %2560 = vmatprep.subr.bf16.mxu0 %v2815_v8 }
  0x79   : > { %2660 = vmatprep.subr.bf16.mxu1 %v2816_v9 }
  0x7b   : > { %2561 = vmatpush3.bf16.msra.mxu0 %v2815_v8 }
  0x7c   : > { %2661 = vmatpush3.bf16.msra.mxu1 %v2816_v9  ;;  %2562 = vmatprep.subr.bf16.mxu0 %v2817_v10 }
  0x7d   : > { %2662 = vmatprep.subr.bf16.mxu1 %v2818_v11 }
  0x7f   : > { %2563 = vmatpush3.bf16.msra.mxu0 %v2817_v10 }
  0x80   : > { %2663 = vmatpush3.bf16.msra.mxu1 %v2818_v11  ;;  %2564 = vmatprep.subr.bf16.mxu0 %v2819_v12 }
  0x81   : > { %2664 = vmatprep.subr.bf16.mxu1 %v2820_v14 }
  0x83   : > { %2565 = vmatpush3.bf16.msra.mxu0 %v2819_v12 }
  0x84   : > { %2665 = vmatpush3.bf16.msra.mxu1 %v2820_v14  ;;  %2590 = vmatprep.subr.bf16.mxu0 %v2821_v18 }
  0x85   : > { %2670 = vmatprep.subr.bf16.mxu1 %v2824_v13 }
  0x86   : > { %2567 = vmatmul.mubr.bf16.vlgmr.msra.gmra.mrb[12].mxu0 %v3006_v43  ;;  %v2829_v43 = vld [vmem:[%s3380_s2 + $0x198] sm:$0xff]  }
  0x87   : > { %2591 = vmatpush3.bf16.msra.mxu0 %v2821_v18  ;;  %2667 = vmatmul.mubr.bf16.vlgmr.msra.gmra.mrb[12].mxu1 %v1450_v15 }
  0x88   : > { %2671 = vmatpush3.bf16.msra.mxu1 %v2824_v13  ;;  %2592 = vmatprep.subr.bf16.mxu0 %v2825_v21 }
  0x89   : > { %2672 = vmatprep.subr.bf16.mxu1 %v2826_v22  ;;  %2606 = vmatprep.mubr.bf16.mxu0 %v3062_v5  ;;  %v2831_v5 = vld [vmem:[%s3380_s2 + $0x1a0] sm:$0xff]  }
  0x8a   : > { %2686 = vmatprep.mubr.bf16.mxu1 %v3136_v32  ;;  %v2838_v32 = vld [vmem:[%s3381_s3 + $0x38] sm:$0xff]  }
  0x8b   : > { %2593 = vmatpush3.bf16.msra.mxu0 %v2825_v21 }
  0x8c   : > { %2673 = vmatpush3.bf16.msra.mxu1 %v2826_v22  ;;  %2594 = vmatprep.subr.bf16.mxu0 %v2827_v23 }
  0x8d   : > { %2674 = vmatprep.subr.bf16.mxu1 %v2828_v24 }
  0x8f   : > { %2595 = vmatpush3.bf16.msra.mxu0 %v2827_v23 }
  0x90   : > { %2675 = vmatpush3.bf16.msra.mxu1 %v2828_v24  ;;  %2596 = vmatprep.subr.bf16.mxu0 %v2829_v43 }
  0x91   : > { %2676 = vmatprep.subr.bf16.mxu1 %v2830_v25 }
  0x93   : > { %2597 = vmatpush3.bf16.msra.mxu0 %v2829_v43 }
  0x94   : > { %2677 = vmatpush3.bf16.msra.mxu1 %v2830_v25  ;;  %2598 = vmatprep.subr.bf16.mxu0 %v2831_v5 }
  0x95   : > { %2678 = vmatprep.subr.bf16.mxu1 %v2832_v26 }
  0x97   : > { %2599 = vmatpush3.bf16.msra.mxu0 %v2831_v5 }
  0x98   : > { %2679 = vmatpush3.bf16.msra.mxu1 %v2832_v26  ;;  %2600 = vmatprep.subr.bf16.mxu0 %v2833_v27 }
  0x99   : > { %2680 = vmatprep.subr.bf16.mxu1 %v2834_v28 }
  0x9b   : > { %2601 = vmatpush3.bf16.msra.mxu0 %v2833_v27 }
  0x9c   : > { %2681 = vmatpush3.bf16.msra.mxu1 %v2834_v28  ;;  %2602 = vmatprep.subr.bf16.mxu0 %v2835_v29 }
  0x9d   : > { %2682 = vmatprep.subr.bf16.mxu1 %v2836_v30 }
  0x9f   : > { %2603 = vmatpush3.bf16.msra.mxu0 %v2835_v29 }
  0xa0   : > { %2683 = vmatpush3.bf16.msra.mxu1 %v2836_v30  ;;  %2604 = vmatprep.subr.bf16.mxu0 %v2837_v31 }
  0xa1   : > { %2684 = vmatprep.subr.bf16.mxu1 %v2838_v32 }
  0xa3   : > { %2605 = vmatpush3.bf16.msra.mxu0 %v2837_v31 }
  0xa4   : > { %2685 = vmatpush3.bf16.msra.mxu1 %v2838_v32  ;;  %2630 = vmatprep.subr.bf16.mxu0 %v2839_v33 }
  0xa5   : > { %2690 = vmatprep.subr.bf16.mxu1 %v2840_v34 }
  0xa6   : > { %2607 = vmatmul.mubr.bf16.vlgmr.msra.gmra.mrb[16].mxu0 %v1022_v0  ;;  %v2845_v0 = vld [vmem:[%s3380_s2 + $0x218] sm:$0xff]  }
  0xa7   : > { %2631 = vmatpush3.bf16.msra.mxu0 %v2839_v33  ;;  %2687 = vmatmul.mubr.bf16.vlgmr.msra.gmra.mrb[12].mxu1 %v3142_v35  ;;  %v2846_v35 = vld [vmem:[%s3381_s3 + $0x98] sm:$0xff]  }
  0xa8   : > { %2691 = vmatpush3.bf16.msra.mxu1 %v2840_v34  ;;  %2632 = vmatprep.subr.bf16.mxu0 %v2841_v36 }
  0xa9   : > { %2692 = vmatprep.subr.bf16.mxu1 %v2842_v37  ;;  %2646 = vmatprep.mubr.bf16.mxu0 %v3093_v20  ;;  %v2847_v20 = vld [vmem:[%s3380_s2 + $0x220] sm:$0xff]  }
  0xaa   : > { %2706 = vmatprep.mubr.bf16.mxu1 %v3202_v6 }
  0xab   : > { %2633 = vmatpush3.bf16.msra.mxu0 %v2841_v36 }
  0xac   : > { %2693 = vmatpush3.bf16.msra.mxu1 %v2842_v37  ;;  %2634 = vmatprep.subr.bf16.mxu0 %v2843_v38 }
  0xad   : > { %2694 = vmatprep.subr.bf16.mxu1 %v2844_v39 }
  0xaf   : > { %2635 = vmatpush3.bf16.msra.mxu0 %v2843_v38 }
  0xb0   : > { %2695 = vmatpush3.bf16.msra.mxu1 %v2844_v39  ;;  %2636 = vmatprep.subr.bf16.mxu0 %v2845_v0 }
  0xb1   : > { %2696 = vmatprep.subr.bf16.mxu1 %v2846_v35 }
  0xb3   : > { %2637 = vmatpush3.bf16.msra.mxu0 %v2845_v0 }
  0xb4   : > { %2697 = vmatpush3.bf16.msra.mxu1 %v2846_v35  ;;  %2638 = vmatprep.subr.bf16.mxu0 %v2847_v20 }
  0xb5   : > { %2698 = vmatprep.subr.bf16.mxu1 %v2848_v40 }
  0xb7   : > { %2639 = vmatpush3.bf16.msra.mxu0 %v2847_v20 }
  0xb8   : > { %2699 = vmatpush3.bf16.msra.mxu1 %v2848_v40  ;;  %2640 = vmatprep.subr.bf16.mxu0 %v2849_v41 }
  0xb9   : > { %2700 = vmatprep.subr.bf16.mxu1 %v2850_v42 }
  0xbb   : > { %2641 = vmatpush3.bf16.msra.mxu0 %v2849_v41 }
  0xbc   : > { %2701 = vmatpush3.bf16.msra.mxu1 %v2850_v42  ;;  %2642 = vmatprep.subr.bf16.mxu0 %v2851_v44 }
  0xbd   : > { %2702 = vmatprep.subr.bf16.mxu1 %v2852_v45 }
  0xbf   : > { %2643 = vmatpush3.bf16.msra.mxu0 %v2851_v44 }
  0xc0   : > { %2703 = vmatpush3.bf16.msra.mxu1 %v2852_v45  ;;  %2644 = vmatprep.subr.bf16.mxu0 %v2853_v46 }
  0xc1   : > { %2704 = vmatprep.subr.bf16.mxu1 %v2854_v47 }
  0xc3   : > { %2645 = vmatpush3.bf16.msra.mxu0 %v2853_v46 }
  0xc4   : > { %2705 = vmatpush3.bf16.msra.mxu1 %v2854_v47 }
  0xc5   : > { %2710 = vmatprep.subr.bf16.mxu1 %v2856_v48 }
  0xc6   : > { %2647 = vmatmul.mubr.bf16.vlgmr.msra.gmra.mrb[20].mxu0 %v1279_v19  ;;  %v2861_v19 = vld [vmem:[%s3381_s3 + $0xe8] sm:$0xff]  }
  0xc7   : > { %2707 = vmatmul.mubr.bf16.vlgmr.msra.gmra.mrb[12].mxu1 %v3194_v2 }
  0xc8   : > { %2711 = vmatpush3.bf16.msra.mxu1 %v2856_v48  ;;  %2726 = vmatprep.mubr.bf16.mxu1 %v3207_v7 }
  0xc9   : > { %2712 = vmatprep.subr.bf16.mxu1 %v2857_v49 }
  0xcc   : > { %2713 = vmatpush3.bf16.msra.mxu1 %v2857_v49 }
  0xcd   : > { %2714 = vmatprep.subr.bf16.mxu1 %v2858_v50 }
  0xd0   : > { %2715 = vmatpush3.bf16.msra.mxu1 %v2858_v50 }
  0xd1   : > { %2716 = vmatprep.subr.bf16.mxu1 %v2859_v51 }
  0xd4   : > { %2717 = vmatpush3.bf16.msra.mxu1 %v2859_v51 }
  0xd5   : > { %2718 = vmatprep.subr.bf16.mxu1 %v2860_v54 }
  0xd8   : > { %2719 = vmatpush3.bf16.msra.mxu1 %v2860_v54  ;;  %v2242_v54 = vld [vmem:[%s3382_s4] ss:$0 sm:$0xff] }
  0xd9   : > { %2720 = vmatprep.subr.bf16.mxu1 %v2861_v19 }
  0xdc   : > { %2721 = vmatpush3.bf16.msra.mxu1 %v2861_v19 }
  0xdd   : > { %2722 = vmatprep.subr.bf16.mxu1 %v2862_v17 }
  0xe0   : > { %2723 = vmatpush3.bf16.msra.mxu1 %v2862_v17 }
  0xe1   : > { %2724 = vmatprep.subr.bf16.mxu1 %v2863_v53 }
  0xe4   : > { %2725 = vmatpush3.bf16.msra.mxu1 %v2863_v53 }
  0xe7   : > { %2727 = vmatmul.mubr.bf16.vlgmr.msra.gmra.mrb[12].mxu1 %v1796_v3 }
  0xf9   : > { %v2488_v55 = vpop.f32.mrb[0].mxu0 }
  0xfa   : > { %v2548_v56 = vpop.f32.mrb[0].mxu1  ;;  %v400_v57 = vpop.f32.mrb[1].mxu0 }
  0xfb   : > { %v739_v58 = vpop.f32.mrb[1].mxu1  ;;  %v2489_v59 = vpop.f32.mrb[2].mxu0 }
  0xfc   : > { %v2549_v60 = vpop.f32.mrb[2].mxu1  ;;  %v403_v61 = vpop.f32.mrb[3].mxu0 }
  0xfd   : > { %v742_v62 = vpop.f32.mrb[3].mxu1 }
 0x119   : > { %v2508_v63 = vpop.f32.mrb[4].mxu0 }
 0x11a   : > { %v505_v1 = vadd.f32 %v2508_v63, %v2488_v55  ;;  %v2588_v2 = vpop.f32.mrb[4].mxu1  ;;  %v496_v4 = vpop.f32.mrb[5].mxu0 }
 0x11b   : > { %v497_v6 = vadd.f32 %v496_v4, %v400_v57  ;;  %v983_v7 = vpop.f32.mrb[5].mxu1  ;;  %v2509_v8 = vpop.f32.mrb[6].mxu0 }
 0x11c   : > { %v2589_v9 = vpop.f32.mrb[6].mxu1  ;;  %v499_v10 = vpop.f32.mrb[7].mxu0 }
 0x11d   : > { %v500_v11 = vadd.f32 %v499_v10, %v403_v61  ;;  %v986_v52 = vpop.f32.mrb[7].mxu1 }
 0x139   : > { %v2528_v3 = vpop.f32.mrb[8].mxu0 }
 0x13a   : > { %v633_v12 = vadd.f32 %v2528_v3, %v505_v1  ;;  %v2628_v14 = vpop.f32.mrb[8].mxu1  ;;  %v617_v16 = vpop.f32.mrb[9].mxu0 }
 0x13b   : > { %v631_v18 = vadd.f32 %v617_v16, %v497_v6  ;;  %v1244_v13 = vpop.f32.mrb[9].mxu1  ;;  %v2529_v15 = vpop.f32.mrb[10].mxu0 }
 0x13c   : > { %v2629_v21 = vpop.f32.mrb[10].mxu1  ;;  %v620_v22 = vpop.f32.mrb[11].mxu0  ;;  %v755_v23 = vadd.f32 %v2548_v56, %v633_v12 }
 0x13d   : > { %v632_v24 = vadd.f32 %v620_v22, %v500_v11  ;;  %v1247_v43 = vpop.f32.mrb[11].mxu1  ;;  %v753_v25 = vadd.f32 %v739_v58, %v631_v18 }
 0x13f   : > { %v754_v5 = vadd.f32 %v742_v62, %v632_v24 }
 0x159   : > { %v2568_v26 = vpop.f32.mrb[12].mxu0 }
 0x15a   : > { %v881_v27 = vadd.f32 %v2568_v26, %v755_v23  ;;  %v865_v28 = vpop.f32.mrb[13].mxu0 }
 0x15b   : > { %v879_v29 = vadd.f32 %v865_v28, %v753_v25  ;;  %v2569_v30 = vpop.f32.mrb[14].mxu0 }
 0x15c   : > { %v868_v31 = vpop.f32.mrb[15].mxu0  ;;  %v999_v32 = vadd.f32 %v2588_v2, %v881_v27 }
 0x15d   : > { %v880_v33 = vadd.f32 %v868_v31, %v754_v5  ;;  %v997_v34 = vadd.f32 %v983_v7, %v879_v29 }
 0x15f   : > { %v998_v36 = vadd.f32 %v986_v52, %v880_v33 }
 0x179   : > { %v2608_v37 = vpop.f32.mrb[16].mxu0 }
 0x17a   : > { %v1124_v38 = vadd.f32 %v2608_v37, %v999_v32  ;;  %v1108_v39 = vpop.f32.mrb[17].mxu0 }
 0x17b   : > { %v1122_v0 = vadd.f32 %v1108_v39, %v997_v34  ;;  %v2609_v35 = vpop.f32.mrb[18].mxu0 }
 0x17c   : > { %v1111_v20 = vpop.f32.mrb[19].mxu0  ;;  %v1260_v40 = vadd.f32 %v2628_v14, %v1124_v38 }
 0x17d   : > { %v1123_v41 = vadd.f32 %v1111_v20, %v998_v36  ;;  %v1258_v42 = vadd.f32 %v1244_v13, %v1122_v0 }
 0x17f   : > { %v1259_v44 = vadd.f32 %v1247_v43, %v1123_v41 }
 0x199   : > { %v2648_v45 = vpop.f32.mrb[20].mxu0 }
 0x19a   : > { %v1381_v46 = vadd.f32 %v2648_v45, %v1260_v40  ;;  %v1365_v47 = vpop.f32.mrb[21].mxu0 }
 0x19b   : > { %v1379_v48 = vadd.f32 %v1365_v47, %v1258_v42  ;;  %v2649_v49 = vpop.f32.mrb[22].mxu0 }
 0x19c   : > { %v1368_v50 = vpop.f32.mrb[23].mxu0  ;;  %v1391_v55 = vadd.f32 %v2242_v54, %v1381_v46 }
 0x19d   : > { %v1380_v51 = vadd.f32 %v1368_v50, %v1259_v44  ;;  %v1389_v19 = vadd.f32 %v2242_v54, %v1379_v48 }
 0x19e   : > { %vm1394_vm8 = vcmp.ge.f32.partialorder %v1391_v55, 0.0  ;;  %v1397_v63 = vmul.f32 0.2, %v1391_v55 }
 0x19f   : > { %v1395_v17 = vmul.f32 0.2, %v1389_v19  ;;  %v1390_v53 = vadd.f32 %v2242_v54, %v1380_v51  ;;  %vm1392_vm6 = vcmp.ge.f32.partialorder %v1389_v19, 0.0 }
 0x1a0   : > { %v1400_v14 = vsel %vm1394_vm8, %v1391_v55, %v1397_v63 }
 0x1a1   : > { %v1396_v57 = vmul.f32 0.2, %v1390_v53  ;;  %v1398_v58 = vsel %vm1392_vm6, %v1389_v19, %v1395_v17  ;;  %vm1393_vm7 = vcmp.ge.f32.partialorder %v1390_v53, 0.0 }
 0x1a3   : > { %v1399_v9 = vsel %vm1393_vm7, %v1390_v53, %v1396_v57 }
 0x1ba   : > { %v2728_v56 = vpop.f32.mrb[12].mxu1 }
 0x1bb   : > { %v1882_v59 = vpop.f32.mrb[13].mxu1  ;;  %v1947_v8 = vrot.slane %v2728_v56, 5 }
 0x1bc   : > { %v1899_v60 = vadd.f32 %v1882_v59, %v1398_v58  ;;  %v1907_v61 = vrot.slane %v1882_v59, 7  ;;  %v2729_v62 = vpop.f32.mrb[14].mxu1 }
 0x1bd   : > { %v1885_v1 = vpop.f32.mrb[15].mxu1 }
 0x1be   : > { %v1900_v2 = vmul.f32 0.70710677, %v1899_v60  ;;  %v1912_v4 = vadd.f32 %v1907_v61, %v1398_v58  ;;  %v1908_v6 = vrot.slane %v1885_v1, 7  ;;  %v1932_v7 = vrot.slane %v1885_v1, 6 }
 0x1bf   : > { %v1946_v10 = vrot.slane %v1885_v1, 5 }
 0x1c0   : > { %v1901_v11 = vpack.c.bf16 %v1900_v2, %v1900_v2  ;;  %v1914_v52 = vmul.f32 0.70710677, %v1912_v4  ;;  %v1909_v3 = vsel %vm1906_vm9, %v1907_v61, %v1908_v6  ;;  %v1934_v12 = vadd.f32 %v1932_v7, %v1399_v9 }
 0x1c1   : > { %v1913_v16 = vadd.f32 %v1909_v3, %v1399_v9  ;;  %v1948_v18 = vsel %vm1922_vm10, %v1946_v10, %v1947_v8 }
 0x1c2   : > { %1903 = vst.msk [vmem:[%s244_s11] sm:$0x3] %vm1902_vm11, %v1901_v11  ;;  %v1935_v13 = vmul.f32 0.70710677, %v1934_v12  ;;  %v1950_v15 = vadd.f32 %v1948_v18, %v1400_v14  ;;  %v2336_v21 = vpack.c.bf16 %v1914_v52, %v1914_v52 }
 0x1c3   : > { %v1915_v22 = vmul.f32 0.70710677, %v1913_v16 }
 0x1c4   : > { %v2338_v23 = vpack.c.bf16 %v1935_v13, %v1935_v13  ;;  %v1951_v24 = vmul.f32 0.70710677, %v1950_v15  ;;  %v2328_v26 = vrot.slane %v2336_v21, 9 }
 0x1c5   : > { %v2337_v43 = vpack.c.bf16 %v1915_v22, %v1915_v22 }
 0x1c6   : > { %v2330_v25 = vrot.slane %v2338_v23, 10  ;;  %v2339_v5 = vpack.c.bf16 %v1951_v24, %v1951_v24 }
 0x1c7   : > { %v1927_v27 = vrot.slane %v2337_v43, 5 }
 0x1c8   : > { %1943 = vst.msk [vmem:[%s244_s11 + $0x4] sm:$0x3] %vm1902_vm11, %v2330_v25  ;;  %v1956_v28 = vrot.slane %v2339_v5, 7 }
 0x1c9   : > { %v1928_v29 = vsel %vm1924_vm13, %v2328_v26, %v1927_v27 }
 0x1ca   : > { %1931 = vst.msk [vmem:[%s244_s11] sm:$0xc] %vm1930_vm14, %v1928_v29  ;;  %1958 = vst.msk [vmem:[%s244_s11 + $0x4] sm:$0xc] %vm1930_vm14, %v1956_v28 }
 0x1cb PF: > { %s15_s18 = sadd.s32 1, %s2870_s18  }
 0x1cc   : > { %p12_p4 = scmp.ge.s32.totalorder %s15_s18, 4  }
 0x1ce   :  { %14 = sbr.rel (!%p12_p4) target bundleno = 1 (0x1), region = 84 }

// kernel: forward.12
= control target key start
LH: loop header
LB: loop body
LE: loop exit
PB: predicated region body
PF: predicated region fallthrough
CT: control target
= control target key end

     0   :  { %s1401_s12 = smov 0   ;;  %s1572_s0 = inlined_call_operand.vmem [shape: bf16[2,42,33], index: 0, kind: input, shape index: {}]   ;;  %s1573_s1 = inlined_call_operand.vmem [shape: bf16[9,33,32], index: 1, kind: input, shape index: {}]   ;;  %s1574_s2 = inlined_call_operand.vmem [shape: f32[1,32], index: 2, kind: input, shape index: {}]   ;;  %s1575_s3 = inlined_call_operand.vmem [shape: bf16[2,16,32], index: 3, kind: output, shape index: {}]  }
   0x1 LB: > { %s1081_s13 = sadd.s32 4294967295, %s1378_s12   ;;  %p1085_p0 = scmp.ge.s32.totalorder %s1378_s12, 1  ;;  %s1378_s12 = sphi %s1401_s12, %s13_s12  }
   0x2   : > { %p137_p1 = scmp.lt.s32.totalorder %s1378_s12, 3 }
   0x4   : > { %p138_p2 = pnand %p1085_p0, %p137_p1 }
   0x5   : > { %v1339_v0 = vld [vmem:[%s1573_s1 + $0x14] sm:$0xff] (!%p138_p2)   ;;  %vm234_vm0 = vcmask (!%p138_p2), 1040384   ;;  %v1340_v1 = vld [vmem:[%s1573_s1] sm:$0xff] (!%p138_p2)   ;;  %v1380_v3 = vmov (!%p138_p2), 0   ;;  %v1342_v5 = vld [vmem:[%s1573_s1 + $0x8] sm:$0xff] (!%p138_p2)   ;;  %p161_p3 = scmp.lt.s32.totalorder (!%p138_p2), %s1081_s13, 1 }
   0x6   : > { %141 = sbr.rel (%p138_p2) target bundleno = 304 (0x130), region = 32  ;;  %1239 = vmatprep.subr.bf16.mxu0 (!%p138_p2), %v1339_v0  ;;  %v1341_v2 = vld [vmem:[%s1573_s1 + $0x1c] sm:$0xff] (!%p138_p2)   ;;  %v1418_v4 = vsel (!%p138_p2), %vm234_vm0, 65535, %v1380_v3  ;;  %1249 = vmatprep.subr.bf16.mxu1 (!%p138_p2), %v1340_v1  ;;  %v1343_v6 = vld [vmem:[%s1573_s1 + $0x24] ss:$0 sps:$4 sm:$0x11] (!%p138_p2)  }
   0x7   : > { %1240 = vmatpush3.bf16.msra.mxu0 (!%p138_p2), %v1339_v0  ;;  %1250 = vmatpush3.bf16.msra.mxu1 (!%p138_p2), %v1340_v1  ;;  %v1344_v7 = vld [vmem:[%s1573_s1 + $0x10] ss:$0 sps:$4 sm:$0x11] (!%p138_p2)   ;;  %v238_v8 = vand.u32 (!%p138_p2), %v1343_v6, %v1418_v4  ;;  %v1347_v10 = vld [vmem:[%s1573_s1 + $0x28] sm:$0xff] (!%p138_p2)   ;;  %vm227_vm1 = vcmask (!%p138_p2), 269312   ;;  %v1349_v11 = vld [vmem:[%s1573_s1 + $0x3c] sm:$0xff] (!%p138_p2)  }
   0x8   : > { %1241 = vmatprep.subr.bf16.mxu0 (!%p138_p2), %v1341_v2  ;;  %1251 = vmatprep.subr.bf16.mxu1 (!%p138_p2), %v1342_v5  ;;  %v309_v9 = vand.u32 (!%p138_p2), %v1344_v7, %v1418_v4  ;;  %vm196_vm2 = vsmask.f32 (!%p138_p2), 7424  ;;  %v1351_v21 = vld [vmem:[%s1573_s1 + $0x44] sm:$0xff] (!%p138_p2)   ;;  %v1353_v22 = vld [vmem:[%s1573_s1 + $0x4c] ss:$0 sps:$4 sm:$0x11] (!%p138_p2)  }
   0x9   : > { %vm452_vm3 = vcmask (!%p138_p2), 1044480   ;;  %vm367_vm4 = vcmask (!%p138_p2), 1046528   ;;  %v478_v32 = vand.u32 (!%p138_p2), %v1353_v22, %v1418_v4  ;;  %v1350_v36 = vld [vmem:[%s1573_s1 + $0x30] sm:$0xff] (!%p138_p2)   ;;  %v1352_v37 = vld [vmem:[%s1573_s1 + $0x38] ss:$0 sps:$4 sm:$0x11] (!%p138_p2)  }
   0xa   : > { %v1355_v39 = vld [vmem:[%s1573_s1 + $0x64] sm:$0xff] (!%p138_p2)   ;;  %v393_v42 = vand.u32 (!%p138_p2), %v1352_v37, %v1418_v4  ;;  %v1359_v43 = vld [vmem:[%s1573_s1 + $0x74] ss:$0 sps:$4 sm:$0x11] (!%p138_p2)   ;;  %v1357_v47 = vld [vmem:[%s1573_s1 + $0x6c] sm:$0xff] (!%p138_p2)   ;;  %vm712_vm7 = vcmask (!%p138_p2), 1045504  }
   0xb   : > { %1242 = vmatpush3.bf16.msra.mxu0 (!%p138_p2), %v1341_v2  ;;  %1252 = vmatpush3.bf16.msra.mxu1 (!%p138_p2), %v1342_v5  ;;  %v1354_v50 = vld [vmem:[%s1573_s1 + $0x50] sm:$0xff] (!%p138_p2)   ;;  %vm537_vm5 = vsmask.f32 (!%p138_p2), 4352  ;;  %v650_v55 = vand.u32 (!%p138_p2), %v1359_v43, %v1418_v4  ;;  %v1356_v60 = vld [vmem:[%s1573_s1 + $0x58] sm:$0xff] (!%p138_p2)   ;;  %vm797_vm6 = vsmask.f32 (!%p138_p2), 5376 }
   0xc   : > { %1243 = vmatprep.subr.bf16.mxu0 (!%p138_p2), %v238_v8  ;;  %1253 = vmatprep.subr.bf16.mxu1 (!%p138_p2), %v309_v9  ;;  %v1358_v61 = vld [vmem:[%s1573_s1 + $0x60] ss:$0 sps:$4 sm:$0x11] (!%p138_p2)   ;;  %v1363_v1 = vld [vmem:[%s1573_s1 + $0x8c] sm:$0xff] (!%p138_p2)   ;;  %v1365_v7 = vld [vmem:[%s1573_s1 + $0x94] sm:$0xff] (!%p138_p2)   ;;  %vm993_vm10 = vcmask (!%p138_p2), 254976  }
   0xd   : > { %s1577_s13 = smov (!%p161_p3, %s1081_s13), 1  ;;  %v567_v5 = vand.u32 %v1358_v61, %v1418_v4  ;;  %v1371_v22 = vld [vmem:[%s1573_s1 + $0xb0] ss:$0 sps:$4 sm:$0x11]   ;;  %vm1009_vm12 = vcmask 257026   ;;  %vm1001_vm13 = vcmask 1042432  }
   0xe   : > { %s1329_s26 = smul.u32 24, %s1577_s13  ;;  %s1189_s24 = sshll.u32 %s1577_s13, 3  ;;  %vm1002_vm14 = vcmask 1046532  }
   0xf   : > { %1244 = vmatpush3.bf16.msra.mxu0 %v238_v8  ;;  %1254 = vmatpush3.bf16.msra.mxu1 %v309_v9  ;;  %v1367_v8 = vld [vmem:[%s1573_s1 + $0x9c] ss:$0 sps:$4 sm:$0x11]   ;;  %s170_s27 = scalar_lea.vmem %s1575_s3, %s1189_s24  ;;  %vm1003_vm15 = vmor %vm1001_vm13, %vm1002_vm14 }
  0x10   : > { %s1440_s4 = scalar_lea.vmem %s1572_s0, %s1329_s26  ;;  %1259 = vmatprep.subr.bf16.mxu0 %v1347_v10  ;;  %1269 = vmatprep.subr.bf16.mxu1 %v1349_v11 }
  0x11   : > { %v172_v12 = vld [vmem:[%s1440_s4] sm:$0xf]  ;;  %v173_v13 = vld [vmem:[%s1440_s4 + $0x4] sm:$0xf]  ;;  %v174_v14 = vld [vmem:[%s1440_s4 + $0x8] sm:$0xf] }
  0x12   : > { %v1449_v15 = vld [vmem:[%s1440_s4 + $0xc] sm:$0xf]  ;;  %v1089_v16 = vcombine.low %v172_v12, %v173_v13  ;;  %v1090_v17 = vcombine.low %v174_v14, %v174_v14  ;;  %v1486_v46 = vcombine.low %v173_v13, %v174_v14  ;;  %v176_v53 = vld [vmem:[%s1440_s4 + $0x10] sm:$0xf]  ;;  %v836_v13 = vand.u32 %v1367_v8, %v1418_v4 }
  0x13   : > { %v1452_v18 = vcombine.low %v174_v14, %v1449_v15  ;;  %v1501_v54 = vcombine.low %v1449_v15, %v176_v53  ;;  %v1138_v6 = vcombine.low %v1449_v15, %v1449_v15  ;;  %v1364_v14 = vld [vmem:[%s1573_s1 + $0x80] sm:$0xff]   ;;  %v1366_v15 = vld [vmem:[%s1573_s1 + $0x88] ss:$0 sps:$4 sm:$0x11]  }
  0x14   : > { %v198_v19 = vshrl.u32 %v1089_v16, 16  ;;  %v200_v20 = vshll.u32 %v1089_v16, 16  ;;  %1255 = vmatprep.mubr.msk.bf16.mxu1 %vm227_vm1, %v1089_v16  ;;  %v368_v26 = vrot.slane %v1089_v16, 1  ;;  %v453_v28 = vrot.slane %v1089_v16, 3 }
  0x15   : > { %v205_v23 = vshll.u32 %v1452_v18, 16  ;;  %v209_v24 = vshrl.u32 %v1452_v18, 16  ;;  %1256 = vmatmul.mubr.msk.bf16.vlgmr.msra.gmra.mrb[0].mxu1 %vm227_vm1, %v1090_v17  ;;  %v369_v27 = vrot.slane %v1452_v18, 1  ;;  %v454_v30 = vrot.slane %v1452_v18, 3  ;;  %v1369_v18 = vld [vmem:[%s1573_s1 + $0xa0] sm:$0xff]  }
  0x16   : > { %v202_v25 = vrot.slane %v200_v20, 1  ;;  %1270 = vmatpush3.bf16.msra.mxu1 %v1349_v11  ;;  %v538_v40 = vrot.slane %v198_v19, 3  ;;  %v539_v44 = vrot.slane %v200_v20, 4  ;;  %v798_v48 = vshrl.u32 %v1486_v46, 16 }
  0x17   : > { %v207_v29 = vrot.slane %v205_v23, 1  ;;  %1271 = vmatprep.subr.bf16.mxu1 %v1351_v21  ;;  %v455_v34 = vsel %vm452_vm3, %v453_v28, %v454_v30  ;;  %v370_v38 = vsel %vm367_vm4, %v368_v26, %v369_v27  ;;  %v542_v41 = vrot.slane %v205_v23, 4 }
  0x18   : > { %v203_v31 = vor.u32 %v202_v25, %v198_v19  ;;  %1275 = vmatprep.mubr.msk.bf16.mxu1 %vm227_vm1, %v455_v34  ;;  %v541_v45 = vrot.slane %v209_v24, 3  ;;  %v801_v49 = vshll.u32 %v1486_v46, 16  ;;  %v540_v51 = vor.u32 %v539_v44, %v538_v40 }
  0x19   : > { %v211_v33 = vor.u32 %v209_v24, %v207_v29  ;;  %v800_v56 = vrot.slane %v798_v48, 2  ;;  %v806_v58 = vshrl.u32 %v1501_v54, 16  ;;  %v809_v59 = vshll.u32 %v1501_v54, 16 }
  0x1a   : > { %v208_v35 = vsel %vm196_vm2, %v203_v31, %v207_v29  ;;  %1272 = vmatpush3.bf16.msra.mxu1 %v1351_v21  ;;  %v543_v52 = vor.u32 %v542_v41, %v541_v45  ;;  %v803_v57 = vrot.slane %v801_v49, 3  ;;  %v713_v11 = vrot.slane %v1486_v46, 2  ;;  %v1370_v21 = vld [vmem:[%s1573_s1 + $0xa8] sm:$0xff]  }
  0x1b   : > { %1245 = vmatprep.mubr.msk.bf16.mxu0 %vm227_vm1, %v208_v35  ;;  %1273 = vmatprep.subr.bf16.mxu1 %v478_v32  ;;  %v808_v63 = vrot.slane %v806_v58, 2  ;;  %v811_v0 = vrot.slane %v809_v59, 3  ;;  %v714_v12 = vrot.slane %v1501_v54, 2  ;;  %v738_v17 = vand.u32 %v1366_v15, %v1418_v4  ;;  %v1180_v15 = vld [vmem:[%s1574_s2] ss:$0 sm:$0xff] }
  0x1c   : > { %1246 = vmatmul.mubr.msk.bf16.vlgmr.msra.gmra.mrb[0].mxu0 %vm227_vm1, %v211_v33  ;;  %v544_v62 = vsel %vm537_vm5, %v540_v51, %v543_v52  ;;  %v804_v2 = vor.u32 %v803_v57, %v800_v56  ;;  %v895_v19 = vrot.slane %v1486_v46, 3  ;;  %v896_v20 = vrot.slane %v1501_v54, 3 }
  0x1d   : > { %1260 = vmatpush3.bf16.msra.mxu0 %v1347_v10  ;;  %1265 = vmatprep.mubr.msk.bf16.mxu0 %vm227_vm1, %v370_v38  ;;  %v812_v3 = vor.u32 %v811_v0, %v808_v63  ;;  %v1360_v10 = vld [vmem:[%s1573_s1 + $0x78] sm:$0xff]   ;;  %v715_v16 = vsel %vm712_vm7, %v713_v11, %v714_v12  ;;  %v920_v24 = vand.u32 %v1371_v22, %v1418_v4 }
  0x1e   : > { %1261 = vmatprep.subr.bf16.mxu0 %v1350_v36  ;;  %1274 = vmatpush3.bf16.msra.mxu1 %v478_v32  ;;  %v897_v23 = vsel %vm452_vm3, %v895_v19, %v896_v20 }
  0x1f   : > { %1289 = vmatprep.subr.bf16.mxu1 %v1355_v39  ;;  %v813_v9 = vsel %vm797_vm6, %v804_v2, %v812_v3 }
  0x21   : > { %1262 = vmatpush3.bf16.msra.mxu0 %v1350_v36  ;;  %1276 = vmatmul.mubr.msk.bf16.vlgmr.msra.gmra.mrb[4].mxu1 %vm227_vm1, %v454_v30 }
  0x22   : > { %1263 = vmatprep.subr.bf16.mxu0 %v393_v42  ;;  %1290 = vmatpush3.bf16.msra.mxu1 %v1355_v39 }
  0x23   : > { %1295 = vmatprep.mubr.msk.bf16.mxu1 %vm227_vm1, %v1486_v46  ;;  %1291 = vmatprep.subr.bf16.mxu1 %v1357_v47 }
  0x25   : > { %1264 = vmatpush3.bf16.msra.mxu0 %v393_v42 }
  0x26   : > { %1279 = vmatprep.subr.bf16.mxu0 %v1354_v50  ;;  %1292 = vmatpush3.bf16.msra.mxu1 %v1357_v47 }
  0x27   : > { %1293 = vmatprep.subr.bf16.mxu1 %v650_v55 }
  0x28   : > { %1266 = vmatmul.mubr.msk.bf16.vlgmr.msra.gmra.mrb[4].mxu0 %vm227_vm1, %v369_v27 }
  0x29   : > { %1280 = vmatpush3.bf16.msra.mxu0 %v1354_v50  ;;  %1285 = vmatprep.mubr.msk.bf16.mxu0 %vm227_vm1, %v544_v62 }
  0x2a   : > { %1281 = vmatprep.subr.bf16.mxu0 %v1356_v60  ;;  %1294 = vmatpush3.bf16.msra.mxu1 %v650_v55 }
  0x2b   : > { %1309 = vmatprep.subr.bf16.mxu1 %v1363_v1 }
  0x2d   : > { %1282 = vmatpush3.bf16.msra.mxu0 %v1356_v60  ;;  %1296 = vmatmul.mubr.msk.bf16.vlgmr.msra.gmra.mrb[8].mxu1 %vm227_vm1, %v1138_v6 }
  0x2e   : > { %1283 = vmatprep.subr.bf16.mxu0 %v567_v5  ;;  %1310 = vmatpush3.bf16.msra.mxu1 %v1363_v1 }
  0x2f   : > { %1315 = vmatprep.mubr.msk.bf16.mxu1 %vm227_vm1, %v813_v9  ;;  %1311 = vmatprep.subr.bf16.mxu1 %v1365_v7 }
  0x31   : > { %1284 = vmatpush3.bf16.msra.mxu0 %v567_v5 }
  0x32   : > { %1299 = vmatprep.subr.bf16.mxu0 %v1360_v10  ;;  %1312 = vmatpush3.bf16.msra.mxu1 %v1365_v7 }
  0x33   : > { %1313 = vmatprep.subr.bf16.mxu1 %v836_v13 }
  0x34   : > { %1286 = vmatmul.mubr.msk.bf16.vlgmr.msra.gmra.mrb[8].mxu0 %vm227_vm1, %v543_v52 }
  0x35   : > { %1300 = vmatpush3.bf16.msra.mxu0 %v1360_v10  ;;  %1305 = vmatprep.mubr.msk.bf16.mxu0 %vm227_vm1, %v715_v16 }
  0x36   : > { %1301 = vmatprep.subr.bf16.mxu0 %v1364_v14  ;;  %1314 = vmatpush3.bf16.msra.mxu1 %v836_v13 }
  0x39   : > { %1302 = vmatpush3.bf16.msra.mxu0 %v1364_v14  ;;  %1316 = vmatmul.mubr.msk.bf16.vlgmr.msra.gmra.mrb[12].mxu1 %vm227_vm1, %v812_v3 }
  0x3a   : > { %1303 = vmatprep.subr.bf16.mxu0 %v738_v17 }
  0x3d   : > { %1304 = vmatpush3.bf16.msra.mxu0 %v738_v17 }
  0x3e   : > { %1319 = vmatprep.subr.bf16.mxu0 %v1369_v18 }
  0x40   : > { %1306 = vmatmul.mubr.msk.bf16.vlgmr.msra.gmra.mrb[12].mxu0 %vm227_vm1, %v714_v12 }
  0x41   : > { %1320 = vmatpush3.bf16.msra.mxu0 %v1369_v18  ;;  %1325 = vmatprep.mubr.msk.bf16.mxu0 %vm227_vm1, %v897_v23 }
  0x42   : > { %1321 = vmatprep.subr.bf16.mxu0 %v1370_v21 }
  0x45   : > { %1322 = vmatpush3.bf16.msra.mxu0 %v1370_v21 }
  0x46   : > { %1323 = vmatprep.subr.bf16.mxu0 %v920_v24 }
  0x49   : > { %1324 = vmatpush3.bf16.msra.mxu0 %v920_v24 }
  0x4c   : > { %1326 = vmatmul.mubr.msk.bf16.vlgmr.msra.gmra.mrb[16].mxu0 %vm227_vm1, %v896_v20 }
  0xe8   : > { %v1257_v25 = vpop.f32.mrb[0].mxu1 }
  0xe9   : > { %v345_v26 = vpop.f32.mrb[1].mxu1 }
  0xea   : > { %v1258_v27 = vpop.f32.mrb[2].mxu1 }
  0xeb   : > { %v348_v28 = vpop.f32.mrb[3].mxu1 }
  0xef   : > { %v1247_v29 = vpop.f32.mrb[0].mxu0 }
  0xf0   : > { %v354_v30 = vadd.f32 %v1257_v25, %v1247_v29  ;;  %v274_v31 = vpop.f32.mrb[1].mxu0 }
  0xf1   : > { %v346_v32 = vadd.f32 %v345_v26, %v274_v31  ;;  %v1248_v33 = vpop.f32.mrb[2].mxu0 }
  0xf2   : > { %v277_v34 = vpop.f32.mrb[3].mxu0 }
  0xf3   : > { %v349_v35 = vadd.f32 %v348_v28, %v277_v34 }
  0xf4   : > { %v1277_v36 = vpop.f32.mrb[4].mxu1 }
  0xf5   : > { %v514_v37 = vpop.f32.mrb[5].mxu1 }
  0xf6   : > { %v1278_v38 = vpop.f32.mrb[6].mxu1 }
  0xf7   : > { %v517_v4 = vpop.f32.mrb[7].mxu1 }
  0xfb   : > { %v1267_v39 = vpop.f32.mrb[4].mxu0 }
  0xfc   : > { %v445_v40 = vadd.f32 %v1267_v39, %v354_v30  ;;  %v429_v41 = vpop.f32.mrb[5].mxu0 }
  0xfd   : > { %v443_v42 = vadd.f32 %v429_v41, %v346_v32  ;;  %v1268_v43 = vpop.f32.mrb[6].mxu0 }
  0xfe   : > { %v530_v44 = vadd.f32 %v1277_v36, %v445_v40  ;;  %v432_v45 = vpop.f32.mrb[7].mxu0 }
  0xff   : > { %v444_v46 = vadd.f32 %v432_v45, %v349_v35  ;;  %v528_v47 = vadd.f32 %v514_v37, %v443_v42 }
 0x100   : > { %v1297_v49 = vpop.f32.mrb[8].mxu1 }
 0x101   : > { %v529_v48 = vadd.f32 %v517_v4, %v444_v46  ;;  %v686_v50 = vpop.f32.mrb[9].mxu1 }
 0x102   : > { %v1298_v51 = vpop.f32.mrb[10].mxu1 }
 0x103   : > { %v689_v52 = vpop.f32.mrb[11].mxu1 }
 0x107   : > { %v1287_v53 = vpop.f32.mrb[8].mxu0 }
 0x108   : > { %v619_v54 = vadd.f32 %v1287_v53, %v530_v44  ;;  %v603_v55 = vpop.f32.mrb[9].mxu0 }
 0x109   : > { %v617_v56 = vadd.f32 %v603_v55, %v528_v47  ;;  %v1288_v57 = vpop.f32.mrb[10].mxu0 }
 0x10a   : > { %v702_v58 = vadd.f32 %v1297_v49, %v619_v54  ;;  %v606_v59 = vpop.f32.mrb[11].mxu0 }
 0x10b   : > { %v618_v60 = vadd.f32 %v606_v59, %v529_v48  ;;  %v700_v61 = vadd.f32 %v686_v50, %v617_v56 }
 0x10c   : > { %v1317_v63 = vpop.f32.mrb[12].mxu1 }
 0x10d   : > { %v701_v62 = vadd.f32 %v689_v52, %v618_v60  ;;  %v872_v0 = vpop.f32.mrb[13].mxu1 }
 0x10e   : > { %v1318_v1 = vpop.f32.mrb[14].mxu1 }
 0x10f   : > { %v875_v2 = vpop.f32.mrb[15].mxu1 }
 0x113   : > { %v1307_v3 = vpop.f32.mrb[12].mxu0 }
 0x114   : > { %v790_v5 = vadd.f32 %v1307_v3, %v702_v58  ;;  %v774_v6 = vpop.f32.mrb[13].mxu0 }
 0x115   : > { %v788_v7 = vadd.f32 %v774_v6, %v700_v61  ;;  %v1308_v8 = vpop.f32.mrb[14].mxu0 }
 0x116   : > { %v888_v9 = vadd.f32 %v1317_v63, %v790_v5  ;;  %v777_v10 = vpop.f32.mrb[15].mxu0 }
 0x117   : > { %v789_v11 = vadd.f32 %v777_v10, %v701_v62  ;;  %v886_v12 = vadd.f32 %v872_v0, %v788_v7 }
 0x119   : > { %v887_v13 = vadd.f32 %v875_v2, %v789_v11 }
 0x11f   : > { %v1327_v14 = vpop.f32.mrb[16].mxu0 }
 0x120   : > { %v972_v16 = vadd.f32 %v1327_v14, %v888_v9  ;;  %v956_v17 = vpop.f32.mrb[17].mxu0 }
 0x121   : > { %v970_v18 = vadd.f32 %v956_v17, %v886_v12  ;;  %v1328_v19 = vpop.f32.mrb[18].mxu0 }
 0x122   : > { %v982_v20 = vadd.f32 %v1180_v15, %v972_v16  ;;  %v959_v21 = vpop.f32.mrb[19].mxu0 }
 0x123   : > { %v980_v22 = vadd.f32 %v1180_v15, %v970_v18  ;;  %v971_v23 = vadd.f32 %v959_v21, %v887_v13 }
 0x124   : > { %vm985_vm8 = vcmp.ge.f32.partialorder %v982_v20, 0.0  ;;  %v988_v24 = vmul.f32 0.2, %v982_v20 }
 0x125   : > { %vm983_vm9 = vcmp.ge.f32.partialorder %v980_v22, 0.0  ;;  %v986_v25 = vmul.f32 0.2, %v980_v22  ;;  %v981_v26 = vadd.f32 %v1180_v15, %v971_v23 }
 0x126   : > { %v991_v27 = vsel %vm985_vm8, %v982_v20, %v988_v24 }
 0x127   : > { %v1193_v28 = vpack.c.bf16 %v991_v27, %v991_v27  ;;  %v989_v29 = vsel %vm983_vm9, %v980_v22, %v986_v25  ;;  %vm984_vm11 = vcmp.ge.f32.partialorder %v981_v26, 0.0  ;;  %v987_v30 = vmul.f32 0.2, %v981_v26 }
 0x128   : > { %v992_v31 = vpack.c.bf16 %v989_v29, %v989_v29 }
 0x129   : > { %v1023_v32 = vrot.slane %v1193_v28, 7  ;;  %v990_v33 = vsel %vm984_vm11, %v981_v26, %v987_v30 }
 0x12a   : > { %994 = vst.msk [vmem:[%s170_s27] sm:$0x3] %vm993_vm10, %v992_v31  ;;  %v1191_v34 = vpack.c.bf16 %v990_v33, %v990_v33  ;;  %v1183_v35 = vrot.slane %v992_v31, 9 }
 0x12b   : > { %1025 = vst.msk [vmem:[%s170_s27 + $0x4] sm:$0xc] %vm1009_vm12, %v1023_v32 }
 0x12c   : > { %v1006_v36 = vrot.slane %v1191_v34, 5  ;;  %v1185_v37 = vrot.slane %v1191_v34, 10 }
 0x12e   : > { %v1007_v38 = vsel %vm1003_vm15, %v1183_v35, %v1006_v36  ;;  %1018 = vst.msk [vmem:[%s170_s27 + $0x4] sm:$0x3] %vm993_vm10, %v1185_v37 }
 0x12f   : > { %1010 = vst.msk [vmem:[%s170_s27] sm:$0xc] %vm1009_vm12, %v1007_v38 }
 0x130 PF: > { %s13_s12 = sadd.s32 1, %s1378_s12  }
 0x131   : > { %p10_p4 = scmp.ge.s32.totalorder %s13_s12, 4  }
 0x133   :  { %12 = sbr.rel (!%p10_p4) target bundleno = 1 (0x1), region = 70 }

// kernel: forward.13
= control target key start
LH: loop header
LB: loop body
LE: loop exit
PB: predicated region body
PF: predicated region fallthrough
CT: control target
= control target key end

     0   :  { %v603_v22 = vmov 1966171168   ;;  %v107_v24 = vlaneseq  ;;  %v604_v45 = vmov 0.0   ;;  %vm605_vm0 = vmmov 0   ;;  %s750_s1 = inlined_call_operand.vmem [shape: bf16[512,32], index: 1, kind: input, shape index: {}]   ;;  %s751_s0 = inlined_call_operand.vmem [shape: bf16[2,512], index: 0, kind: input, shape index: {}]   ;;  %s752_s3 = inlined_call_operand.vmem [shape: bf16[32,1], index: 3, kind: input, shape index: {}]   ;;  %s753_s4 = inlined_call_operand.<no memory space> [shape: f32[1,1], index: 4, kind: input, shape index: {}]   ;;  %s754_s2 = inlined_call_operand.vmem [shape: f32[1,32], index: 2, kind: input, shape index: {}]   ;;  %s755_s5 = inlined_call_operand.vmem [shape: f32[2,1], index: 5, kind: output, shape index: {}]  }
   0x1   :  { %v569_v0 = vld [vmem:[%s750_s1 + $0x40] sm:$0xff]   ;;  %v573_v4 = vld [vmem:[%s750_s1 + $0x48] sm:$0xff]   ;;  %v577_v8 = vld [vmem:[%s750_s1 + $0x50] sm:$0xff]   ;;  %v105_v23 = vunpack.c.l.s4 %v603_v22  ;;  %v10_v47 = vstv %s753_s4  ;;  %vm423_vm2 = vcmask 261120   ;;  %vm467_vm3 = vcmask 1024  }
   0x2   :  { %v570_v1 = vld [vmem:[%s750_s1 + $0xc0] sm:$0xff]   ;;  %511 = vmatprep.subr.bf16.mxu0 %v569_v0  ;;  %v574_v5 = vld [vmem:[%s750_s1 + $0xc8] sm:$0xff]   ;;  %v578_v9 = vld [vmem:[%s750_s1 + $0xd0] sm:$0xff]   ;;  %v108_v30 = vshrl.u32 %v107_v24, 7  ;;  %11 = vst [vmem:[#allocation2] sm:$0x1] %v10_v47 }
   0x3   :  { %v571_v2 = vld [vmem:[%s750_s1] sm:$0xff]   ;;  %533 = vmatprep.subr.bf16.mxu1 %v570_v1  ;;  %v575_v6 = vld [vmem:[%s750_s1 + $0x8] sm:$0xff]   ;;  %v579_v10 = vld [vmem:[%s750_s1 + $0x10] sm:$0xff]   ;;  %v106_v29 = vunpack.c.0.s8 %v105_v23 }
   0x4   :  { %v572_v3 = vld [vmem:[%s750_s1 + $0x80] sm:$0xff]   ;;  %512 = vmatpush3.bf16.msra.mxu0 %v571_v2  ;;  %v576_v7 = vld [vmem:[%s750_s1 + $0x88] sm:$0xff]   ;;  %v580_v11 = vld [vmem:[%s750_s1 + $0x90] sm:$0xff]  }
   0x5   :  { %534 = vmatpush3.bf16.msra.mxu1 %v572_v3  ;;  %513 = vmatprep.subr.bf16.mxu0 %v573_v4  ;;  %v581_v12 = vld [vmem:[%s750_s1 + $0x58] sm:$0xff]   ;;  %v585_v16 = vld [vmem:[%s750_s1 + $0x60] sm:$0xff]   ;;  %v589_v20 = vld [vmem:[%s750_s1 + $0x68] sm:$0xff]   ;;  %v109_v35 = vsub.s32 %v106_v29, %v108_v30 }
   0x6   :  { %535 = vmatprep.subr.bf16.mxu1 %v574_v5  ;;  %v582_v13 = vld [vmem:[%s750_s1 + $0xd8] sm:$0xff]   ;;  %v586_v17 = vld [vmem:[%s750_s1 + $0xe0] sm:$0xff]   ;;  %v590_v21 = vld [vmem:[%s750_s1 + $0xe8] sm:$0xff]  }
   0x7   :  { %v583_v14 = vld [vmem:[%s750_s1 + $0x18] sm:$0xff]   ;;  %v587_v18 = vld [vmem:[%s750_s1 + $0x20] sm:$0xff]   ;;  %v591_v25 = vld [vmem:[%s750_s1 + $0x28] sm:$0xff]  }
   0x8   :  { %514 = vmatpush3.bf16.msra.mxu0 %v575_v6  ;;  %v584_v15 = vld [vmem:[%s750_s1 + $0x98] sm:$0xff]   ;;  %v588_v19 = vld [vmem:[%s750_s1 + $0xa0] sm:$0xff]   ;;  %v592_v26 = vld [vmem:[%s750_s1 + $0xa8] sm:$0xff]  }
   0x9   :  { %536 = vmatpush3.bf16.msra.mxu1 %v576_v7  ;;  %515 = vmatprep.subr.bf16.mxu0 %v577_v8  ;;  %v593_v27 = vld [vmem:[%s750_s1 + $0x70] sm:$0xff]   ;;  %v597_v33 = vld [vmem:[%s750_s1 + $0x78] sm:$0xff]   ;;  %v474_v38 = vld.sshfl [vmem:[%s751_s0] sm:$0x33 pattern:$0x75316420] }
   0xa   :  { %537 = vmatprep.subr.bf16.mxu1 %v578_v9  ;;  %v594_v28 = vld [vmem:[%s750_s1 + $0xf0] sm:$0xff]   ;;  %v598_v34 = vld [vmem:[%s750_s1 + $0xf8] sm:$0xff]   ;;  %v103_v39 = vcombine.high %v474_v38, %v474_v38  ;;  %v110_v40 = vrot.slane %v474_v38, %v109_v35  ;;  %v601_v44 = vld [vmem:[%s752_s3] sm:$0xff]  }
   0xb   :  { %v595_v31 = vld [vmem:[%s750_s1 + $0x30] sm:$0xff]   ;;  %v599_v36 = vld [vmem:[%s750_s1 + $0x38] sm:$0xff]   ;;  %v602_v46 = vld [vmem:[%s752_s3 + $0x8] sm:$0xff]  }
   0xc   :  { %516 = vmatpush3.bf16.msra.mxu0 %v579_v10  ;;  %v596_v32 = vld [vmem:[%s750_s1 + $0xb0] sm:$0xff]   ;;  %v600_v37 = vld [vmem:[%s750_s1 + $0xb8] sm:$0xff]   ;;  %v117_v41 = vrot.slane %v103_v39, %v109_v35  ;;  %v118_v42 = vcombine.high %v110_v40, %v110_v40  ;;  %v473_v49 = vld [vmem:[%s754_s2] ss:$0 sm:$0xff] }
   0xd   :  { %538 = vmatpush3.bf16.msra.mxu1 %v580_v11  ;;  %517 = vmatprep.subr.bf16.mxu0 %v581_v12  ;;  %v507_v0 = vld [vmem:[#allocation2] ss:$0 sm:$0xff] }
   0xe   :  { %539 = vmatprep.subr.bf16.mxu1 %v582_v13  ;;  %348 = vmatprep.mubr.bf16.mxu0 %v117_v41  ;;  %v119_v43 = vcombine.high %v117_v41, %v117_v41 }
  0x10   :  { %518 = vmatpush3.bf16.msra.mxu0 %v583_v14  ;;  %388 = vmatprep.mubr.bf16.mxu1 %v119_v43 }
  0x11   :  { %540 = vmatpush3.bf16.msra.mxu1 %v584_v15  ;;  %519 = vmatprep.subr.bf16.mxu0 %v585_v16 }
  0x12   :  { %541 = vmatprep.subr.bf16.mxu1 %v586_v17 }
  0x14   :  { %520 = vmatpush3.bf16.msra.mxu0 %v587_v18 }
  0x15   :  { %542 = vmatpush3.bf16.msra.mxu1 %v588_v19  ;;  %521 = vmatprep.subr.bf16.mxu0 %v589_v20 }
  0x16   :  { %543 = vmatprep.subr.bf16.mxu1 %v590_v21 }
  0x18   :  { %522 = vmatpush3.bf16.msra.mxu0 %v591_v25 }
  0x19   :  { %544 = vmatpush3.bf16.msra.mxu1 %v592_v26  ;;  %523 = vmatprep.subr.bf16.mxu0 %v593_v27 }
  0x1a   :  { %545 = vmatprep.subr.bf16.mxu1 %v594_v28 }
  0x1c   :  { %524 = vmatpush3.bf16.msra.mxu0 %v595_v31 }
  0x1d   :  { %546 = vmatpush3.bf16.msra.mxu1 %v596_v32  ;;  %525 = vmatprep.subr.bf16.mxu0 %v597_v33 }
  0x1e   :  { %547 = vmatprep.subr.bf16.mxu1 %v598_v34 }
  0x20   :  { %526 = vmatpush3.bf16.msra.mxu0 %v599_v36 }
  0x21   :  { %548 = vmatpush3.bf16.msra.mxu1 %v600_v37  ;;  %558 = vmatprep.subr.bf16.mxu0 %v604_v45 }
  0x23   :  { %349 = vmatmul.mubr.bf16.vlgmr.msra.gmra.mrb[0].mxu0 %v110_v40 }
  0x24   :  { %389 = vmatmul.mubr.bf16.vlgmr.msra.gmra.mrb[0].mxu1 %v118_v42  ;;  %559 = vmatpush3.bf16.msra.mxu0 %v601_v44 }
  0x25   :  { %560 = vmatprep.subr.bf16.mxu0 %v604_v45  ;;  %562 = vmatprep.mubr.msk.bf16.mxu0 %vm605_vm0, %v604_v45 }
  0x28   :  { %561 = vmatpush3.bf16.msra.mxu0 %v602_v46 }
  0xf6   :  { %v527_v48 = vpop.f32.mrb[0].mxu0 }
  0xf7   :  { %v528_v50 = vpop.f32.mrb[1].mxu0  ;;  %v549_v51 = vpop.f32.mrb[0].mxu1 }
  0xf8   :  { %v529_v52 = vadd.f32 %v528_v50, %v527_v48  ;;  %v530_v53 = vpop.f32.mrb[2].mxu0  ;;  %v550_v54 = vpop.f32.mrb[1].mxu1 }
  0xf9   :  { %v531_v55 = vpop.f32.mrb[3].mxu0  ;;  %v551_v57 = vadd.f32 %v550_v54, %v549_v51  ;;  %v552_v58 = vpop.f32.mrb[2].mxu1 }
  0xfa   :  { %v351_v56 = vadd.f32 %v529_v52, %v473_v49  ;;  %v553_v59 = vpop.f32.mrb[3].mxu1 }
  0xfc   :  { %v391_v60 = vadd.f32 %v551_v57, %v351_v56 }
  0xfe   :  { %vm396_vm1 = vcmp.ge.f32.partialorder %v391_v60, 0.0  ;;  %v397_v61 = vmul.f32 0.2, %v391_v60 }
 0x100   :  { %v398_v62 = vsel %vm396_vm1, %v391_v60, %v397_v61 }
 0x101   :  { %v399_v63 = vpack.c.bf16 %v398_v62, %v398_v62 }
 0x103   :  { %563 = vmatmul.mubr.msk.bf16.vlgmr.msra.gmra.mrb[4].mxu0 %vm423_vm2, %v399_v63 }
 0x1d6   :  { %v461_v1 = vpop.f32.mrb[4].mxu0 }
 0x1d7   :  { %v462_v2 = vadd.f32 %v507_v0, %v461_v1  ;;  %v564_v3 = vpop.f32.mrb[5].mxu0 }
 0x1d8   :  { %v464_v4 = vpop.f32.mrb[6].mxu0 }
 0x1d9   :  { %468 = vst.msk [vmem:[%s755_s5] sm:$0x3] %vm467_vm3, %v462_v2  ;;  %v565_v5 = vpop.f32.mrb[7].mxu0 }

</bundles_post_ra>
